<compile_context>
chip_gen: v5e
topology: v5e:2x2
jax: 0.10.0
libtpu: 0.0.40
codegen_flags: <defaults>
</compile_context>

<pallas_src>
import jax
import jax.numpy as jnp
import numpy as np
from jax.experimental import pallas as pl
from jax.experimental.pallas import tpu as pltpu


# ----------------------------------------------------------------------------
# Kernel: processes TB batch elements per grid step. All refs are 2-D.
# ----------------------------------------------------------------------------
def critic_kernel(
    box_ref,    # (TB*Nb, Db)     batch-major flattened box states
    vmask_ref,  # (TB*Nb, 1)      {0,1} valid mask
    ems_ref,    # (TB*Ne, De)
    emask_ref,  # (TB*Ne, 1)
    wobj_ref,   # (Db, H)         object-encoder weight (pre-transposed)
    wsp_ref,    # (De, H)         space-encoder weight (pre-transposed)
    bias_ref,   # (3, H)          rows: [bobj, bsp, bo1 + folded c2b/c2e]
    a1b_ref,    # (TB*Nb, TB*Nb)  I_TB (x) box_combine_mlp[0].weight
    c1b_ref,    # (TB*Nb, 1)      tiled box_combine_mlp[0].bias
    a2b_ref,    # (TB, TB*Nb)     I_TB (x) box_combine_mlp[2].weight
    a1e_ref,    # (TB*Ne, TB*Ne)  I_TB (x) ems_combine_mlp[0].weight
    c1e_ref,    # (TB*Ne, 1)
    a2e_ref,    # (TB, TB*Ne)
    wo1_ref,    # (2H, H)         output_layer[0].weight (pre-transposed)
    wo2_ref,    # (H, Dout)       output_layer[2].weight (pre-transposed)
    bo2_ref,    # (1, Dout)
    out_ref,    # (TB, Dout)
):
    f32 = jnp.float32
    H = wobj_ref.shape[1]

    # --- encoders: one big matmul over all TB*N rows of the tile ----------------
    box_h = jnp.maximum(
        jnp.dot(box_ref[...], wobj_ref[...], preferred_element_type=f32)
        + bias_ref[0:1, :], 0.0)                                     # (TB*Nb, H)
    ems_h = jnp.maximum(
        jnp.dot(ems_ref[...], wsp_ref[...], preferred_element_type=f32)
        + bias_ref[1:2, :], 0.0)                                     # (TB*Ne, H)

    # --- masked_fill(mask == 0, 0): masks are {0,1} -> single multiply ----------
    box_feats = box_h * vmask_ref[...]                               # (TB*Nb, H)
    ems_feats = ems_h * emask_ref[...]                               # (TB*Ne, H)

    # --- combine MLPs: block-diagonal expanded weights -> single MXU matmuls ----
    yb = jnp.maximum(
        jnp.dot(a1b_ref[...], box_feats, preferred_element_type=f32)
        + c1b_ref[...], 0.0)                                         # (TB*Nb, H)
    box_vec = jnp.dot(a2b_ref[...], yb, preferred_element_type=f32)  # (TB, H)

    ye = jnp.maximum(
        jnp.dot(a1e_ref[...], ems_feats, preferred_element_type=f32)
        + c1e_ref[...], 0.0)                                         # (TB*Ne, H)
    ems_vec = jnp.dot(a2e_ref[...], ye, preferred_element_type=f32)  # (TB, H)

    # --- output head on cat([box_vec, ems_vec]) via split weight (same math) ----
    wo1 = wo1_ref[...]
    o1 = jnp.maximum(
        jnp.dot(box_vec, wo1[:H, :], preferred_element_type=f32)
        + jnp.dot(ems_vec, wo1[H:, :], preferred_element_type=f32)
        + bias_ref[2:3, :], 0.0)                                     # (TB, H)
    out_ref[...] = (jnp.dot(o1, wo2_ref[...], preferred_element_type=f32)
                    + bo2_ref[...]).astype(out_ref.dtype)            # (TB, Dout)


# ----------------------------------------------------------------------------
# Wrapper
# ----------------------------------------------------------------------------
def critic_forward(box_states, valid_mask, ems, ems_mask, params, *, block_b=64):
    B, Nb, Db = box_states.shape
    _, Ne, De = ems.shape
    H = params["wobj"].shape[1]
    Dout = params["wo2"].shape[1]
    f32 = jnp.float32

    # Batch tile: multiple of 8, capped at block_b (64 keeps the block-diagonal
    # combine weights small enough to fit comfortably in VMEM on every TPU gen).
    TB = min(block_b, ((B + 7) // 8) * 8)
    n_tiles = -(-B // TB)
    B_pad = n_tiles * TB
    pad = B_pad - B

    box_states = box_states.astype(f32)
    ems = ems.astype(f32)
    # Binarize masks so masked_fill(mask==0, 0) is exactly a multiply in-kernel.
    valid_mask = (valid_mask != 0).astype(f32)
    ems_mask = (ems_mask != 0).astype(f32)
    if pad:
        box_states = jnp.pad(box_states, ((0, pad), (0, 0), (0, 0)))
        valid_mask = jnp.pad(valid_mask, ((0, pad), (0, 0), (0, 0)))
        ems = jnp.pad(ems, ((0, pad), (0, 0), (0, 0)))
        ems_mask = jnp.pad(ems_mask, ((0, pad), (0, 0), (0, 0)))

    # Batch-major flattening (done by XLA) -> kernel needs zero reshapes.
    box2 = box_states.reshape(B_pad * Nb, Db)
    vmask2 = valid_mask.reshape(B_pad * Nb, 1)
    ems2 = ems.reshape(B_pad * Ne, De)
    emask2 = ems_mask.reshape(B_pad * Ne, 1)

    # Block-diagonal expansion of the tiny combine-MLP weights (one-time, XLA
    # side): applying (I_TB (x) W) to batch-major rows == per-batch-element W.
    eye = jnp.eye(TB, dtype=f32)
    a1b = jnp.kron(eye, params["a1b"].astype(f32))       # (TB*Nb, TB*Nb)
    c1b = jnp.tile(params["c1b"].astype(f32), (TB, 1))   # (TB*Nb, 1)
    a2b = jnp.kron(eye, params["a2b"].astype(f32))       # (TB, TB*Nb)
    a1e = jnp.kron(eye, params["a1e"].astype(f32))
    c1e = jnp.tile(params["c1e"].astype(f32), (TB, 1))
    a2e = jnp.kron(eye, params["a2e"].astype(f32))

    # Fold the scalar biases of the combine second layers (c2b, c2e) into the
    # output-head bias (exact: they add a constant to every lane of box/ems_vec).
    wo1 = params["wo1"].astype(f32)
    bo1 = (params["bo1"].astype(f32)
           + params["c2b"][0, 0] * jnp.sum(wo1[:H, :], axis=0, keepdims=True)
           + params["c2e"][0, 0] * jnp.sum(wo1[H:, :], axis=0, keepdims=True))
    bias3 = jnp.concatenate(
        [params["bobj"].astype(f32), params["bsp"].astype(f32), bo1], axis=0)  # (3, H)

    weights = [params["wobj"].astype(f32), params["wsp"].astype(f32), bias3,
               a1b, c1b, a2b, a1e, c1e, a2e,
               wo1, params["wo2"].astype(f32), params["bo2"].astype(f32)]

    grid_spec = pltpu.PrefetchScalarGridSpec(
        num_scalar_prefetch=0,
        grid=(n_tiles,),
        in_specs=[
            pl.BlockSpec((TB * Nb, Db), lambda i: (i, 0)),   # box (flattened)
            pl.BlockSpec((TB * Nb, 1), lambda i: (i, 0)),    # valid mask
            pl.BlockSpec((TB * Ne, De), lambda i: (i, 0)),   # ems
            pl.BlockSpec((TB * Ne, 1), lambda i: (i, 0)),    # ems mask
        ] + [pl.BlockSpec(w.shape, lambda i: (0, 0)) for w in weights],
        out_specs=pl.BlockSpec((TB, Dout), lambda i: (i, 0)),
    )

    out = pl.pallas_call(
        critic_kernel,
        out_shape=jax.ShapeDtypeStruct((B_pad, Dout), f32),
        grid_spec=grid_spec,
        compiler_params=pltpu.CompilerParams(
            dimension_semantics=("parallel",),        # batch tiles are independent
            vmem_limit_bytes=32 * 1024 * 1024),
    )(box2, vmask2, ems2, emask2, *weights)
    return out[:B]                                           # (B, Dout)


# ----------------------------------------------------------------------------
# Pure-JAX reference (mirrors the PyTorch forward, uses the *unexpanded* params)
# ----------------------------------------------------------------------------
def critic_reference(box_states, valid_mask, ems, ems_mask, p):
    box_h = jax.nn.relu(box_states @ p["wobj"] + p["bobj"])          # (B, Nb, H)
    ems_h = jax.nn.relu(ems @ p["wsp"] + p["bsp"])                   # (B, Ne, H)
    box_feats = jnp.where(valid_mask != 0, box_h, 0.0)
    ems_feats = jnp.where(ems_mask != 0, ems_h, 0.0)

    # combine MLPs on transposed feats: (B, H, N) @ W.T  (PyTorch Linear)
    bt = jnp.swapaxes(box_feats, 1, 2)                               # (B, H, Nb)
    yb = jax.nn.relu(bt @ p["a1b"].T + p["c1b"][:, 0])
    box_vec = (yb @ p["a2b"].T + p["c2b"][0, 0])[..., 0]             # (B, H)

    et = jnp.swapaxes(ems_feats, 1, 2)
    ye = jax.nn.relu(et @ p["a1e"].T + p["c1e"][:, 0])
    ems_vec = (ye @ p["a2e"].T + p["c2e"][0, 0])[..., 0]             # (B, H)

    cat = jnp.concatenate([box_vec, ems_vec], axis=-1)               # (B, 2H)
    o1 = jax.nn.relu(cat @ p["wo1"] + p["bo1"])
    return o1 @ p["wo2"] + p["bo2"]                                  # (B, Dout)


# ----------------------------------------------------------------------------
# Main
# ----------------------------------------------------------------------------
if __name__ == "__main__":
    B, box_num, ems_num = 100, 8, 8          # B=100 exercises tiling + padding
    box_dim, ems_dim = 6, 6
    hidden_dim, output_dim = 32, 1

    key = jax.random.PRNGKey(0)
    keys = jax.random.split(key, 24)

    def nrm(k, shape, scale=0.1):
        return (scale * jax.random.normal(k, shape)).astype(jnp.float32)

    params = {
        "wobj": nrm(keys[0], (box_dim, hidden_dim)),
        "bobj": nrm(keys[1], (1, hidden_dim)),
        "wsp":  nrm(keys[2], (ems_dim, hidden_dim)),
        "bsp":  nrm(keys[3], (1, hidden_dim)),
        "a1b":  nrm(keys[4], (box_num, box_num)),
        "c1b":  nrm(keys[5], (box_num, 1)),
        "a2b":  nrm(keys[6], (1, box_num)),
        "c2b":  nrm(keys[7], (1, 1)),
        "a1e":  nrm(keys[8], (ems_num, ems_num)),
        "c1e":  nrm(keys[9], (ems_num, 1)),
        "a2e":  nrm(keys[10], (1, ems_num)),
        "c2e":  nrm(keys[11], (1, 1)),
        "wo1":  nrm(keys[12], (2 * hidden_dim, hidden_dim)),
        "bo1":  nrm(keys[13], (1, hidden_dim)),
        "wo2":  nrm(keys[14], (hidden_dim, output_dim)),
        "bo2":  nrm(keys[15], (1, output_dim)),
    }

    box_states = nrm(keys[16], (B, box_num, box_dim), scale=1.0)
    ems = nrm(keys[17], (B, ems_num, ems_dim), scale=1.0)
    valid_mask = (jax.random.uniform(keys[18], (B, box_num, 1)) > 0.3).astype(jnp.float32)
    ems_mask = (jax.random.uniform(keys[19], (B, ems_num, 1)) > 0.3).astype(jnp.float32)

    out = critic_forward(box_states, valid_mask, ems, ems_mask, params)
    out = jax.block_until_ready(out)

    ref = critic_reference(box_states, valid_mask, ems, ems_mask, params)
    np.testing.assert_allclose(np.asarray(out), np.asarray(ref), rtol=1e-4, atol=1e-5)

    assert out.shape == (B, output_dim)
    print("KERNEL_OK")
</pallas_src>

<mosaic_0001>
module attributes {stable_mosaic.version = 11 : i64} {
  func.func @critic_kernel(%arg0: i32, %arg1: memref<512x6xf32, #tpu.memory_space<vmem>>, %arg2: memref<512x1xf32, #tpu.memory_space<vmem>>, %arg3: memref<512x6xf32, #tpu.memory_space<vmem>>, %arg4: memref<512x1xf32, #tpu.memory_space<vmem>>, %arg5: memref<6x32xf32, #tpu.memory_space<vmem>>, %arg6: memref<6x32xf32, #tpu.memory_space<vmem>>, %arg7: memref<3x32xf32, #tpu.memory_space<vmem>>, %arg8: memref<512x512xf32, #tpu.memory_space<vmem>>, %arg9: memref<512x1xf32, #tpu.memory_space<vmem>>, %arg10: memref<64x512xf32, #tpu.memory_space<vmem>>, %arg11: memref<512x512xf32, #tpu.memory_space<vmem>>, %arg12: memref<512x1xf32, #tpu.memory_space<vmem>>, %arg13: memref<64x512xf32, #tpu.memory_space<vmem>>, %arg14: memref<64x32xf32, #tpu.memory_space<vmem>>, %arg15: memref<32x1xf32, #tpu.memory_space<vmem>>, %arg16: memref<1x1xf32, #tpu.memory_space<vmem>>, %arg17: memref<64x1xf32, #tpu.memory_space<vmem>>) attributes {dimension_semantics = [#tpu.dimension_semantics<parallel>], iteration_bounds = array<i64: 2>, scalar_prefetch = 0 : i64, scratch_operands = 0 : i64, tpu.core_type = #tpu.core_type<tc>, window_params = [{transform_indices = @transform_0, window_bounds = array<i64: 512, 6>}, {transform_indices = @transform_1, window_bounds = array<i64: 512, 1>}, {transform_indices = @transform_2, window_bounds = array<i64: 512, 6>}, {transform_indices = @transform_3, window_bounds = array<i64: 512, 1>}, {pipeline_mode = #tpu.pipeline_mode<synchronous>, transform_indices = @transform_4, window_bounds = array<i64: 6, 32>}, {pipeline_mode = #tpu.pipeline_mode<synchronous>, transform_indices = @transform_5, window_bounds = array<i64: 6, 32>}, {pipeline_mode = #tpu.pipeline_mode<synchronous>, transform_indices = @transform_6, window_bounds = array<i64: 3, 32>}, {pipeline_mode = #tpu.pipeline_mode<synchronous>, transform_indices = @transform_7, window_bounds = array<i64: 512, 512>}, {pipeline_mode = #tpu.pipeline_mode<synchronous>, transform_indices = @transform_8, window_bounds = array<i64: 512, 1>}, {pipeline_mode = #tpu.pipeline_mode<synchronous>, transform_indices = @transform_9, window_bounds = array<i64: 64, 512>}, {pipeline_mode = #tpu.pipeline_mode<synchronous>, transform_indices = @transform_10, window_bounds = array<i64: 512, 512>}, {pipeline_mode = #tpu.pipeline_mode<synchronous>, transform_indices = @transform_11, window_bounds = array<i64: 512, 1>}, {pipeline_mode = #tpu.pipeline_mode<synchronous>, transform_indices = @transform_12, window_bounds = array<i64: 64, 512>}, {pipeline_mode = #tpu.pipeline_mode<synchronous>, transform_indices = @transform_13, window_bounds = array<i64: 64, 32>}, {pipeline_mode = #tpu.pipeline_mode<synchronous>, transform_indices = @transform_14, window_bounds = array<i64: 32, 1>}, {pipeline_mode = #tpu.pipeline_mode<synchronous>, transform_indices = @transform_15, window_bounds = array<i64: 1, 1>}, {transform_indices = @transform_16, window_bounds = array<i64: 64, 1>}]} {
    %c0 = arith.constant 0 : index
    %c0_0 = arith.constant 0 : index
    %0 = vector.load %arg1[%c0, %c0_0] : memref<512x6xf32, #tpu.memory_space<vmem>>, vector<512x6xf32>
    %c0_1 = arith.constant 0 : index
    %c0_2 = arith.constant 0 : index
    %1 = vector.load %arg5[%c0_1, %c0_2] : memref<6x32xf32, #tpu.memory_space<vmem>>, vector<6x32xf32>
    %cst = arith.constant dense<0.000000e+00> : vector<512x32xf32>
    %2 = tpu.matmul %0, %1, %cst {dimension_numbers = #tpu.dot_dimension_numbers<[1], [0], [0], [1], [0, 0, 1, 1], [], []>} : vector<512x6xf32>, vector<6x32xf32>, vector<512x32xf32> -> vector<512x32xf32>
    %c0_3 = arith.constant 0 : index
    %c0_4 = arith.constant 0 : index
    %3 = vector.load %arg7[%c0_3, %c0_4] : memref<3x32xf32, #tpu.memory_space<vmem>>, vector<1x32xf32>
    %4 = vector.broadcast %3 : vector<1x32xf32> to vector<512x32xf32>
    %5 = arith.addf %2, %4 : vector<512x32xf32>
    %cst_5 = arith.constant 0.000000e+00 : f32
    %6 = vector.broadcast %cst_5 : f32 to vector<512x32xf32>
    %7 = arith.maximumf %5, %6 : vector<512x32xf32>
    %c0_6 = arith.constant 0 : index
    %c0_7 = arith.constant 0 : index
    %8 = vector.load %arg3[%c0_6, %c0_7] : memref<512x6xf32, #tpu.memory_space<vmem>>, vector<512x6xf32>
    %c0_8 = arith.constant 0 : index
    %c0_9 = arith.constant 0 : index
    %9 = vector.load %arg6[%c0_8, %c0_9] : memref<6x32xf32, #tpu.memory_space<vmem>>, vector<6x32xf32>
    %cst_10 = arith.constant dense<0.000000e+00> : vector<512x32xf32>
    %10 = tpu.matmul %8, %9, %cst_10 {dimension_numbers = #tpu.dot_dimension_numbers<[1], [0], [0], [1], [0, 0, 1, 1], [], []>} : vector<512x6xf32>, vector<6x32xf32>, vector<512x32xf32> -> vector<512x32xf32>
    %c1 = arith.constant 1 : index
    %c0_11 = arith.constant 0 : index
    %11 = vector.load %arg7[%c1, %c0_11] : memref<3x32xf32, #tpu.memory_space<vmem>>, vector<1x32xf32>
    %12 = vector.broadcast %11 : vector<1x32xf32> to vector<512x32xf32>
    %13 = arith.addf %10, %12 : vector<512x32xf32>
    %cst_12 = arith.constant 0.000000e+00 : f32
    %14 = vector.broadcast %cst_12 : f32 to vector<512x32xf32>
    %15 = arith.maximumf %13, %14 : vector<512x32xf32>
    %c0_13 = arith.constant 0 : index
    %c0_14 = arith.constant 0 : index
    %16 = vector.load %arg2[%c0_13, %c0_14] : memref<512x1xf32, #tpu.memory_space<vmem>>, vector<512x1xf32>
    %17 = vector.broadcast %16 : vector<512x1xf32> to vector<512x32xf32>
    %18 = arith.mulf %7, %17 : vector<512x32xf32>
    %c0_15 = arith.constant 0 : index
    %c0_16 = arith.constant 0 : index
    %19 = vector.load %arg4[%c0_15, %c0_16] : memref<512x1xf32, #tpu.memory_space<vmem>>, vector<512x1xf32>
    %20 = vector.broadcast %19 : vector<512x1xf32> to vector<512x32xf32>
    %21 = arith.mulf %15, %20 : vector<512x32xf32>
    %c0_17 = arith.constant 0 : index
    %c0_18 = arith.constant 0 : index
    %22 = vector.load %arg8[%c0_17, %c0_18] : memref<512x512xf32, #tpu.memory_space<vmem>>, vector<512x512xf32>
    %cst_19 = arith.constant dense<0.000000e+00> : vector<512x32xf32>
    %23 = tpu.matmul %22, %18, %cst_19 {dimension_numbers = #tpu.dot_dimension_numbers<[1], [0], [0], [1], [0, 0, 1, 1], [], []>} : vector<512x512xf32>, vector<512x32xf32>, vector<512x32xf32> -> vector<512x32xf32>
    %c0_20 = arith.constant 0 : index
    %c0_21 = arith.constant 0 : index
    %24 = vector.load %arg9[%c0_20, %c0_21] : memref<512x1xf32, #tpu.memory_space<vmem>>, vector<512x1xf32>
    %25 = vector.broadcast %24 : vector<512x1xf32> to vector<512x32xf32>
    %26 = arith.addf %23, %25 : vector<512x32xf32>
    %cst_22 = arith.constant 0.000000e+00 : f32
    %27 = vector.broadcast %cst_22 : f32 to vector<512x32xf32>
    %28 = arith.maximumf %26, %27 : vector<512x32xf32>
    %c0_23 = arith.constant 0 : index
    %c0_24 = arith.constant 0 : index
    %29 = vector.load %arg10[%c0_23, %c0_24] : memref<64x512xf32, #tpu.memory_space<vmem>>, vector<64x512xf32>
    %cst_25 = arith.constant dense<0.000000e+00> : vector<64x32xf32>
    %30 = tpu.matmul %29, %28, %cst_25 {dimension_numbers = #tpu.dot_dimension_numbers<[1], [0], [0], [1], [0, 0, 1, 1], [], []>} : vector<64x512xf32>, vector<512x32xf32>, vector<64x32xf32> -> vector<64x32xf32>
    %c0_26 = arith.constant 0 : index
    %c0_27 = arith.constant 0 : index
    %31 = vector.load %arg11[%c0_26, %c0_27] : memref<512x512xf32, #tpu.memory_space<vmem>>, vector<512x512xf32>
    %cst_28 = arith.constant dense<0.000000e+00> : vector<512x32xf32>
    %32 = tpu.matmul %31, %21, %cst_28 {dimension_numbers = #tpu.dot_dimension_numbers<[1], [0], [0], [1], [0, 0, 1, 1], [], []>} : vector<512x512xf32>, vector<512x32xf32>, vector<512x32xf32> -> vector<512x32xf32>
    %c0_29 = arith.constant 0 : index
    %c0_30 = arith.constant 0 : index
    %33 = vector.load %arg12[%c0_29, %c0_30] : memref<512x1xf32, #tpu.memory_space<vmem>>, vector<512x1xf32>
    %34 = vector.broadcast %33 : vector<512x1xf32> to vector<512x32xf32>
    %35 = arith.addf %32, %34 : vector<512x32xf32>
    %cst_31 = arith.constant 0.000000e+00 : f32
    %36 = vector.broadcast %cst_31 : f32 to vector<512x32xf32>
    %37 = arith.maximumf %35, %36 : vector<512x32xf32>
    %c0_32 = arith.constant 0 : index
    %c0_33 = arith.constant 0 : index
    %38 = vector.load %arg13[%c0_32, %c0_33] : memref<64x512xf32, #tpu.memory_space<vmem>>, vector<64x512xf32>
    %cst_34 = arith.constant dense<0.000000e+00> : vector<64x32xf32>
    %39 = tpu.matmul %38, %37, %cst_34 {dimension_numbers = #tpu.dot_dimension_numbers<[1], [0], [0], [1], [0, 0, 1, 1], [], []>} : vector<64x512xf32>, vector<512x32xf32>, vector<64x32xf32> -> vector<64x32xf32>
    %c0_35 = arith.constant 0 : index
    %c0_36 = arith.constant 0 : index
    %40 = vector.load %arg14[%c0_35, %c0_36] : memref<64x32xf32, #tpu.memory_space<vmem>>, vector<64x32xf32>
    %41 = vector.extract_strided_slice %40 {offsets = [0, 0], sizes = [32, 32], strides = [1, 1]} : vector<64x32xf32> to vector<32x32xf32>
    %cst_37 = arith.constant dense<0.000000e+00> : vector<64x32xf32>
    %42 = tpu.matmul %30, %41, %cst_37 {dimension_numbers = #tpu.dot_dimension_numbers<[1], [0], [0], [1], [0, 0, 1, 1], [], []>} : vector<64x32xf32>, vector<32x32xf32>, vector<64x32xf32> -> vector<64x32xf32>
    %43 = vector.extract_strided_slice %40 {offsets = [32, 0], sizes = [32, 32], strides = [1, 1]} : vector<64x32xf32> to vector<32x32xf32>
    %cst_38 = arith.constant dense<0.000000e+00> : vector<64x32xf32>
    %44 = tpu.matmul %39, %43, %cst_38 {dimension_numbers = #tpu.dot_dimension_numbers<[1], [0], [0], [1], [0, 0, 1, 1], [], []>} : vector<64x32xf32>, vector<32x32xf32>, vector<64x32xf32> -> vector<64x32xf32>
    %45 = arith.addf %42, %44 : vector<64x32xf32>
    %c2 = arith.constant 2 : index
    %c0_39 = arith.constant 0 : index
    %46 = vector.load %arg7[%c2, %c0_39] : memref<3x32xf32, #tpu.memory_space<vmem>>, vector<1x32xf32>
    %47 = vector.broadcast %46 : vector<1x32xf32> to vector<64x32xf32>
    %48 = arith.addf %45, %47 : vector<64x32xf32>
    %cst_40 = arith.constant 0.000000e+00 : f32
    %49 = vector.broadcast %cst_40 : f32 to vector<64x32xf32>
    %50 = arith.maximumf %48, %49 : vector<64x32xf32>
    %c0_41 = arith.constant 0 : index
    %c0_42 = arith.constant 0 : index
    %51 = vector.load %arg15[%c0_41, %c0_42] : memref<32x1xf32, #tpu.memory_space<vmem>>, vector<32x1xf32>
    %cst_43 = arith.constant dense<0.000000e+00> : vector<64x1xf32>
    %52 = tpu.matmul %50, %51, %cst_43 {dimension_numbers = #tpu.dot_dimension_numbers<[1], [0], [0], [1], [0, 0, 1, 1], [], []>} : vector<64x32xf32>, vector<32x1xf32>, vector<64x1xf32> -> vector<64x1xf32>
    %c0_44 = arith.constant 0 : index
    %c0_45 = arith.constant 0 : index
    %53 = vector.load %arg16[%c0_44, %c0_45] : memref<1x1xf32, #tpu.memory_space<vmem>>, vector<1x1xf32>
    %54 = vector.broadcast %53 : vector<1x1xf32> to vector<64x1xf32>
    %55 = arith.addf %52, %54 : vector<64x1xf32>
    %c0_46 = arith.constant 0 : index
    %c0_47 = arith.constant 0 : index
    %56 = vector.load %arg17[%c0_46, %c0_47] : memref<64x1xf32, #tpu.memory_space<vmem>>, vector<64x1xf32>
    tpu.vector_store %arg17[%c0_46, %c0_47], %55 {strides = array<i32>} : memref<64x1xf32, #tpu.memory_space<vmem>>, vector<64x1xf32>,
    return
  }
  func.func @transform_0(%arg0: i32) -> (i32, i32) {
    %c0_i32 = arith.constant 0 : i32
    %c0_i32_0 = arith.constant 0 : i32
    return %arg0, %c0_i32 : i32, i32
  }
  func.func @transform_1(%arg0: i32) -> (i32, i32) {
    %c0_i32 = arith.constant 0 : i32
    %c0_i32_0 = arith.constant 0 : i32
    return %arg0, %c0_i32 : i32, i32
  }
  func.func @transform_2(%arg0: i32) -> (i32, i32) {
    %c0_i32 = arith.constant 0 : i32
    %c0_i32_0 = arith.constant 0 : i32
    return %arg0, %c0_i32 : i32, i32
  }
  func.func @transform_3(%arg0: i32) -> (i32, i32) {
    %c0_i32 = arith.constant 0 : i32
    %c0_i32_0 = arith.constant 0 : i32
    return %arg0, %c0_i32 : i32, i32
  }
  func.func @transform_4(%arg0: i32) -> (i32, i32) {
    %c0_i32 = arith.constant 0 : i32
    %c0_i32_0 = arith.constant 0 : i32
    %c0_i32_1 = arith.constant 0 : i32
    return %c0_i32, %c0_i32_0 : i32, i32
  }
  func.func @transform_5(%arg0: i32) -> (i32, i32) {
    %c0_i32 = arith.constant 0 : i32
    %c0_i32_0 = arith.constant 0 : i32
    %c0_i32_1 = arith.constant 0 : i32
    return %c0_i32, %c0_i32_0 : i32, i32
  }
  func.func @transform_6(%arg0: i32) -> (i32, i32) {
    %c0_i32 = arith.constant 0 : i32
    %c0_i32_0 = arith.constant 0 : i32
    %c0_i32_1 = arith.constant 0 : i32
    return %c0_i32, %c0_i32_0 : i32, i32
  }
  func.func @transform_7(%arg0: i32) -> (i32, i32) {
    %c0_i32 = arith.constant 0 : i32
    %c0_i32_0 = arith.constant 0 : i32
    %c0_i32_1 = arith.constant 0 : i32
    return %c0_i32, %c0_i32_0 : i32, i32
  }
  func.func @transform_8(%arg0: i32) -> (i32, i32) {
    %c0_i32 = arith.constant 0 : i32
    %c0_i32_0 = arith.constant 0 : i32
    %c0_i32_1 = arith.constant 0 : i32
    return %c0_i32, %c0_i32_0 : i32, i32
  }
  func.func @transform_9(%arg0: i32) -> (i32, i32) {
    %c0_i32 = arith.constant 0 : i32
    %c0_i32_0 = arith.constant 0 : i32
    %c0_i32_1 = arith.constant 0 : i32
    return %c0_i32, %c0_i32_0 : i32, i32
  }
  func.func @transform_10(%arg0: i32) -> (i32, i32) {
    %c0_i32 = arith.constant 0 : i32
    %c0_i32_0 = arith.constant 0 : i32
    %c0_i32_1 = arith.constant 0 : i32
    return %c0_i32, %c0_i32_0 : i32, i32
  }
  func.func @transform_11(%arg0: i32) -> (i32, i32) {
    %c0_i32 = arith.constant 0 : i32
    %c0_i32_0 = arith.constant 0 : i32
    %c0_i32_1 = arith.constant 0 : i32
    return %c0_i32, %c0_i32_0 : i32, i32
  }
  func.func @transform_12(%arg0: i32) -> (i32, i32) {
    %c0_i32 = arith.constant 0 : i32
    %c0_i32_0 = arith.constant 0 : i32
    %c0_i32_1 = arith.constant 0 : i32
    return %c0_i32, %c0_i32_0 : i32, i32
  }
  func.func @transform_13(%arg0: i32) -> (i32, i32) {
    %c0_i32 = arith.constant 0 : i32
    %c0_i32_0 = arith.constant 0 : i32
    %c0_i32_1 = arith.constant 0 : i32
    return %c0_i32, %c0_i32_0 : i32, i32
  }
  func.func @transform_14(%arg0: i32) -> (i32, i32) {
    %c0_i32 = arith.constant 0 : i32
    %c0_i32_0 = arith.constant 0 : i32
    %c0_i32_1 = arith.constant 0 : i32
    return %c0_i32, %c0_i32_0 : i32, i32
  }
  func.func @transform_15(%arg0: i32) -> (i32, i32) {
    %c0_i32 = arith.constant 0 : i32
    %c0_i32_0 = arith.constant 0 : i32
    %c0_i32_1 = arith.constant 0 : i32
    return %c0_i32, %c0_i32_0 : i32, i32
  }
  func.func @transform_16(%arg0: i32) -> (i32, i32) {
    %c0_i32 = arith.constant 0 : i32
    %c0_i32_0 = arith.constant 0 : i32
    return %arg0, %c0_i32 : i32, i32
  }
}

</mosaic_0001>

<bundles_post_ra>
// kernel: tpu_custom_call.1
= control target key start
LH: loop header
LB: loop body
LE: loop exit
PB: predicated region body
PF: predicated region fallthrough
CT: control target
= control target key end

     0   :  { %s6654_s23 = smov 0   ;;  %s11732_s0 = inlined_call_operand.vmem [shape: f32[1024,6], index: 0, kind: input, shape index: {}]   ;;  %s11733_s1 = inlined_call_operand.vmem [shape: f32[1024,1], index: 1, kind: input, shape index: {}]   ;;  %s11734_s2 = inlined_call_operand.vmem [shape: f32[1024,6], index: 2, kind: input, shape index: {}]   ;;  %s11735_s3 = inlined_call_operand.vmem [shape: f32[1024,1], index: 3, kind: input, shape index: {}]   ;;  %s11736_s4 = inlined_call_operand.vmem [shape: f32[6,32], index: 4, kind: input, shape index: {}]   ;;  %s11737_s5 = inlined_call_operand.vmem [shape: f32[6,32], index: 5, kind: input, shape index: {}]   ;;  %s11738_s6 = inlined_call_operand.vmem [shape: f32[3,32], index: 6, kind: input, shape index: {}]   ;;  %s11739_s7 = inlined_call_operand.vmem [shape: f32[512,512], index: 7, kind: input, shape index: {}]   ;;  %s11740_s8 = inlined_call_operand.vmem [shape: f32[512,1], index: 8, kind: input, shape index: {}]   ;;  %s11741_s9 = inlined_call_operand.vmem [shape: f32[64,512], index: 9, kind: input, shape index: {}]   ;;  %s11742_s10 = inlined_call_operand.vmem [shape: f32[512,512], index: 10, kind: input, shape index: {}]   ;;  %s11743_s11 = inlined_call_operand.vmem [shape: f32[512,1], index: 11, kind: input, shape index: {}]   ;;  %s11744_s12 = inlined_call_operand.vmem [shape: f32[64,512], index: 12, kind: input, shape index: {}]   ;;  %s11745_s13 = inlined_call_operand.vmem [shape: f32[64,32], index: 13, kind: input, shape index: {}]   ;;  %s11746_s14 = inlined_call_operand.vmem [shape: f32[32,1], index: 14, kind: input, shape index: {}]   ;;  %s11747_s15 = inlined_call_operand.<no memory space> [shape: f32[1,1], index: 15, kind: input, shape index: {}]   ;;  %s11748_s16 = inlined_call_operand.vmem [shape: f32[128,1], index: 16, kind: output, shape index: {}]  }
   0x1   :  { %11751 = sst [smem:[#allocation145_spill]] %s11732_s0  ;;  %v21_v0 = vstv %s11747_s15 }
   0x2   :  { %22 = vst [vmem:[#allocation2] sm:$0x1] %v21_v0 }
   0x3 LB: > { %s6364_s24 = sadd.s32 4294967295, %s6563_s23   ;;  %p6368_p0 = scmp.ge.s32.totalorder %s6563_s23, 1  ;;  %s6563_s23 = sphi %s6654_s23, %s28_s23  }
   0x4   : > { %p498_p1 = scmp.lt.s32.totalorder %s6563_s23, 3 }
   0x6   : > { %p499_p2 = pnand %p6368_p0, %p498_p1 }
   0x8   : > { %502 = sbr.rel (%p499_p2) target bundleno = 2458 (0x99a), region = 84 }
   0xd   : > { %v657_v1 = vld [vmem:[%s11736_s4] sm:$0x3f]  ;;  %vm853_vm0 = vcmask 1045504   ;;  %v6565_v3 = vmov 0   ;;  %s6369_s28 = sshll.u32 %s6364_s24, 6  ;;  %vm660_vm1 = vcmask 48128  }
   0xe   : > { %v1194_v2 = vld [vmem:[%s11737_s5] sm:$0x3f]  ;;  %6550 = vset.pattern.permute.xlu2 %v6565_v3  ;;  %6549 = vset.pattern.permute.xlu1 %v6565_v3  ;;  %p564_p3 = scmp.lt.s32.totalorder %s6369_s28, 127  ;;  %s11752_s25 = sld [smem:[#allocation145_spill]]  ;;  %vm6041_vm2 = vcmask 261120   ;;  %vm6263_vm3 = vcmask 7168  }
   0xf   : > { %6548 = vset.pattern.permute.xlu0 %v6565_v3  ;;  %6379 = vmatpush.msk.msra.mxu0 %vm853_vm0, %v657_v1  ;;  %s6377_s21 = sshll.u32 %s6364_s24, 3 }
  0x10   : > { %6444 = vmatpush.msk.msra.mxu1 %vm853_vm0, %v1194_v2  ;;  %6536 = vmatpush.msk.msra.mxu3 %vm853_vm0, %v657_v1  ;;  %s12262_s28 = smov (!%p564_p3, %s6369_s28), 127  ;;  %p588_p4 = scmp.lt.s32.totalorder %s6377_s21, 15 }
  0x11   : > { %6535 = vmatpush.msk.msra.mxu2 %vm853_vm0, %v657_v1  ;;  %s6670_s29 = sshll.u32 %s12262_s28, 3 }
  0x12   : > { %6538 = vmatpush.msk.msrb.mxu3 %vm853_vm0, %v1194_v2  ;;  %s6676_s17 = scalar_lea.vmem %s11734_s2, %s6670_s29  ;;  %s6682_s20 = scalar_lea.vmem %s11733_s1, %s6670_s29 }
  0x13   : > { %6537 = vmatpush.msk.msrb.mxu2 %vm853_vm0, %v1194_v2  ;;  %v1130_v4 = vld [vmem:[%s6676_s17] sm:$0xff]  ;;  %v1696_v5 = vld [vmem:[%s6682_s20 + $0xf8] sm:$0xff]  ;;  %v1695_v6 = vld [vmem:[%s6682_s20 + $0xf0] sm:$0xff]  ;;  %s12264_s21 = smov (!%p588_p4, %s6377_s21), 15 }
  0x14   : > { %s6691_s26 = scalar_lea.vmem %s11752_s25, %s6670_s29  ;;  %6445 = vmatmul.msk.f32.vlgmr.msra.gmra.mxu1 %vm660_vm1, %v1130_v4  ;;  %1886 = vperm.xlu1 %6549, %v1696_v5   ;;  %v1680_v7 = vld [vmem:[%s6682_s20 + $0x78] sm:$0xff]  ;;  %v1131_v9 = vld [vmem:[%s6676_s17 + $0x8] sm:$0xff]  ;;  %v1679_v11 = vld [vmem:[%s6682_s20 + $0x70] sm:$0xff]  ;;  %s7505_s25 = scalar_lea.vmem %s11735_s3, %s6670_s29 }
  0x15   : > { %v593_v8 = vld [vmem:[%s6691_s26] sm:$0xff]  ;;  %1881 = vperm.xlu2 %6550, %v1695_v6   ;;  %1806 = vperm.xlu0 %6548, %v1680_v7   ;;  %v1678_v10 = vld [vmem:[%s6682_s20 + $0x68] sm:$0xff]  ;;  %v1132_v14 = vld [vmem:[%s6676_s17 + $0x10] sm:$0xff]  ;;  %s6378_s22 = sshll.u32 %s12264_s21, 3 }
  0x16   : > { %6380 = vmatmul.msk.f32.vlgmr.msra.gmra.mxu0 %vm660_vm1, %v593_v8  ;;  %v1677_v12 = vld [vmem:[%s6682_s20 + $0x60] sm:$0xff]  ;;  %v594_v13 = vld [vmem:[%s6691_s26 + $0x8] sm:$0xff]  ;;  %v1676_v15 = vld [vmem:[%s6682_s20 + $0x58] sm:$0xff] }
  0x17   : > { %v1694_v16 = vld [vmem:[%s6682_s20 + $0xe8] sm:$0xff]  ;;  %v1693_v17 = vld [vmem:[%s6682_s20 + $0xe0] sm:$0xff]  ;;  %v595_v18 = vld [vmem:[%s6691_s26 + $0x10] sm:$0xff] }
  0x18   : > { %v1133_v19 = vld [vmem:[%s6676_s17 + $0x18] sm:$0xff]  ;;  %v1675_v22 = vld [vmem:[%s6682_s20 + $0x50] sm:$0xff]  ;;  %v1134_v24 = vld [vmem:[%s6676_s17 + $0x20] sm:$0xff] }
  0x19   : > { %v1692_v20 = vld [vmem:[%s6682_s20 + $0xd8] sm:$0xff]  ;;  %v1691_v25 = vld [vmem:[%s6682_s20 + $0xd0] sm:$0xff]  ;;  %v1674_v27 = vld [vmem:[%s6682_s20 + $0x48] sm:$0xff] }
  0x1a   : > { %v1712_v21 = vld [vmem:[%s6682_s20 + $0x178] sm:$0xff]  ;;  %v1711_v26 = vld [vmem:[%s6682_s20 + $0x170] sm:$0xff]  ;;  %v597_v28 = vld [vmem:[%s6691_s26 + $0x20] sm:$0xff] }
  0x1b   : > { %v596_v23 = vld [vmem:[%s6691_s26 + $0x18] sm:$0xff]  ;;  %v1135_v29 = vld [vmem:[%s6676_s17 + $0x28] sm:$0xff]  ;;  %v1673_v30 = vld [vmem:[%s6682_s20 + $0x40] sm:$0xff] }
  0x1c   : > { %6446 = vmatmul.msk.f32.gmra.mxu1 %vm660_vm1, %v1131_v9  ;;  %1796 = vperm.xlu1 %6549, %v1678_v10   ;;  %v1690_v31 = vld [vmem:[%s6682_s20 + $0xc8] sm:$0xff]  ;;  %v1728_v32 = vld [vmem:[%s6682_s20 + $0x1f8] sm:$0xff]  ;;  %v1136_v34 = vld [vmem:[%s6676_s17 + $0x30] sm:$0xff] }
  0x1d   : > { %1801 = vperm.xlu0 %6548, %v1679_v11   ;;  %1791 = vperm.xlu2 %6550, %v1677_v12   ;;  %v598_v33 = vld [vmem:[%s6691_s26 + $0x28] sm:$0xff]  ;;  %v1727_v35 = vld [vmem:[%s6682_s20 + $0x1f0] sm:$0xff]  ;;  %v1672_v37 = vld [vmem:[%s6682_s20 + $0x38] sm:$0xff] }
  0x1e   : > { %6381 = vmatmul.msk.f32.gmra.mxu0 %vm660_vm1, %v594_v13  ;;  %v1710_v36 = vld [vmem:[%s6682_s20 + $0x168] sm:$0xff]  ;;  %v599_v38 = vld [vmem:[%s6691_s26 + $0x30] sm:$0xff]  ;;  %v1137_v39 = vld [vmem:[%s6676_s17 + $0x38] sm:$0xff] }
  0x1f   : > { %v1709_v40 = vld [vmem:[%s6682_s20 + $0x160] sm:$0xff]  ;;  %v1726_v42 = vld [vmem:[%s6682_s20 + $0x1e8] sm:$0xff]  ;;  %v600_v43 = vld [vmem:[%s6691_s26 + $0x38] sm:$0xff] }
  0x20   : > { %v1689_v41 = vld [vmem:[%s6682_s20 + $0xc0] sm:$0xff]  ;;  %v1688_v45 = vld [vmem:[%s6682_s20 + $0xb8] sm:$0xff]  ;;  %v1671_v47 = vld [vmem:[%s6682_s20 + $0x30] sm:$0xff] }
  0x21   : > { %v1138_v44 = vld [vmem:[%s6676_s17 + $0x40] sm:$0xff]  ;;  %v1708_v46 = vld [vmem:[%s6682_s20 + $0x158] sm:$0xff]  ;;  %v1139_v49 = vld [vmem:[%s6676_s17 + $0x48] sm:$0xff] }
  0x22   : > { %v601_v48 = vld [vmem:[%s6691_s26 + $0x40] sm:$0xff]  ;;  %v1670_v50 = vld [vmem:[%s6682_s20 + $0x28] sm:$0xff]  ;;  %v1687_v51 = vld [vmem:[%s6682_s20 + $0xb0] sm:$0xff] }
  0x23   : > { %v1725_v52 = vld [vmem:[%s6682_s20 + $0x1e0] sm:$0xff]  ;;  %v602_v53 = vld [vmem:[%s6691_s26 + $0x48] sm:$0xff]  ;;  %v1140_v54 = vld [vmem:[%s6676_s17 + $0x50] sm:$0xff] }
  0x24   : > { %6447 = vmatmul.msk.f32.gmra.mxu1 %vm660_vm1, %v1132_v14  ;;  %1786 = vperm.xlu1 %6549, %v1676_v15   ;;  %v1724_v55 = vld [vmem:[%s6682_s20 + $0x1d8] sm:$0xff]  ;;  %v1707_v56 = vld [vmem:[%s6682_s20 + $0x150] sm:$0xff]  ;;  %v1669_v57 = vld [vmem:[%s6682_s20 + $0x20] sm:$0xff] }
  0x25   : > { %1876 = vperm.xlu0 %6548, %v1694_v16   ;;  %1871 = vperm.xlu2 %6550, %v1693_v17   ;;  %v603_v58 = vld [vmem:[%s6691_s26 + $0x50] sm:$0xff]  ;;  %v1141_v59 = vld [vmem:[%s6676_s17 + $0x58] sm:$0xff]  ;;  %v1706_v60 = vld [vmem:[%s6682_s20 + $0x148] sm:$0xff] }
  0x26   : > { %6382 = vmatmul.msk.f32.gmra.mxu0 %vm660_vm1, %v595_v18  ;;  %v1686_v61 = vld [vmem:[%s6682_s20 + $0xa8] sm:$0xff]  ;;  %v1723_v62 = vld [vmem:[%s6682_s20 + $0x1d0] sm:$0xff]  ;;  %v604_v63 = vld [vmem:[%s6691_s26 + $0x58] sm:$0xff] }
  0x27   : > { %v1142_v1 = vld [vmem:[%s6676_s17 + $0x60] sm:$0xff]  ;;  %v1668_v4 = vld [vmem:[%s6682_s20 + $0x18] sm:$0xff]  ;;  %v1143_v7 = vld [vmem:[%s6676_s17 + $0x68] sm:$0xff] }
  0x28   : > { %v1685_v2 = vld [vmem:[%s6682_s20 + $0xa0] sm:$0xff]  ;;  %v1667_v8 = vld [vmem:[%s6682_s20 + $0x10] sm:$0xff]  ;;  %v1684_v9 = vld [vmem:[%s6682_s20 + $0x98] sm:$0xff] }
  0x29   : > { %v1705_v3 = vld [vmem:[%s6682_s20 + $0x140] sm:$0xff]  ;;  %v1722_v10 = vld [vmem:[%s6682_s20 + $0x1c8] sm:$0xff]  ;;  %v1144_v13 = vld [vmem:[%s6676_s17 + $0x70] sm:$0xff] }
  0x2a   : > { %v605_v5 = vld [vmem:[%s6691_s26 + $0x60] sm:$0xff]  ;;  %v606_v11 = vld [vmem:[%s6691_s26 + $0x68] sm:$0xff]  ;;  %v1704_v15 = vld [vmem:[%s6682_s20 + $0x138] sm:$0xff] }
  0x2b   : > { %v1721_v14 = vld [vmem:[%s6682_s20 + $0x1c0] sm:$0xff]  ;;  %v1666_v16 = vld [vmem:[%s6682_s20 + $0x8] sm:$0xff]  ;;  %v607_v17 = vld [vmem:[%s6691_s26 + $0x70] sm:$0xff] }
  0x2c   : > { %6448 = vmatmul.msk.f32.gmra.mxu1 %vm660_vm1, %v1133_v19  ;;  %1866 = vperm.xlu1 %6549, %v1692_v20  }
  0x2d   : > { %1966 = vperm.xlu2 %6550, %v1712_v21   ;;  %1781 = vperm.xlu0 %6548, %v1675_v22   ;;  %v1145_v21 = vld [vmem:[%s6676_s17 + $0x78] sm:$0xff]  ;;  %v1703_v22 = vld [vmem:[%s6682_s20 + $0x130] sm:$0xff] }
  0x2e   : > { %6383 = vmatmul.msk.f32.gmra.mxu0 %vm660_vm1, %v596_v23  ;;  %v1683_v23 = vld [vmem:[%s6682_s20 + $0x90] sm:$0xff] }
  0x34   : > { %6449 = vmatmul.msk.f32.gmra.mxu1 %vm660_vm1, %v1134_v24  ;;  %1861 = vperm.xlu1 %6549, %v1691_v25   ;;  %v1720_v24 = vld [vmem:[%s6682_s20 + $0x1b8] sm:$0xff] }
  0x35   : > { %1961 = vperm.xlu2 %6550, %v1711_v26   ;;  %1776 = vperm.xlu0 %6548, %v1674_v27   ;;  %v608_v25 = vld [vmem:[%s6691_s26 + $0x78] sm:$0xff] }
  0x36   : > { %6384 = vmatmul.msk.f32.gmra.mxu0 %vm660_vm1, %v597_v28 }
  0x3c   : > { %6450 = vmatmul.msk.f32.gmra.mxu1 %vm660_vm1, %v1135_v29  ;;  %1771 = vperm.xlu1 %6549, %v1673_v30   ;;  %v1146_v30 = vld [vmem:[%s6676_s17 + $0x80] sm:$0xff] }
  0x3d   : > { %1856 = vperm.xlu2 %6550, %v1690_v31   ;;  %2046 = vperm.xlu0 %6548, %v1728_v32   ;;  %v1682_v31 = vld [vmem:[%s6682_s20 + $0x88] sm:$0xff] }
  0x3e   : > { %6385 = vmatmul.msk.f32.gmra.mxu0 %vm660_vm1, %v598_v33  ;;  %v1702_v32 = vld [vmem:[%s6682_s20 + $0x128] sm:$0xff]  ;;  %v1665_v33 = vld [vmem:[%s6682_s20] sm:$0xff] }
  0x44   : > { %6451 = vmatmul.msk.f32.gmra.mxu1 %vm660_vm1, %v1136_v34  ;;  %2041 = vperm.xlu1 %6549, %v1727_v35   ;;  %v609_v35 = vld [vmem:[%s6691_s26 + $0x80] sm:$0xff] }
  0x45   : > { %1956 = vperm.xlu0 %6548, %v1710_v36   ;;  %1766 = vperm.xlu2 %6550, %v1672_v37  }
  0x46   : > { %6386 = vmatmul.msk.f32.gmra.mxu0 %vm660_vm1, %v599_v38 }
  0x4c   : > { %6452 = vmatmul.msk.f32.gmra.mxu1 %vm660_vm1, %v1137_v39  ;;  %1951 = vperm.xlu1 %6549, %v1709_v40   ;;  %v1147_v40 = vld [vmem:[%s6676_s17 + $0x88] sm:$0xff] }
  0x4d   : > { %1851 = vperm.xlu0 %6548, %v1689_v41   ;;  %2036 = vperm.xlu2 %6550, %v1726_v42   ;;  %v1681_v41 = vld [vmem:[%s6682_s20 + $0x80] sm:$0xff] }
  0x4e   : > { %6387 = vmatmul.msk.f32.gmra.mxu0 %vm660_vm1, %v600_v43  ;;  %v1701_v42 = vld [vmem:[%s6682_s20 + $0x120] sm:$0xff]  ;;  %v1719_v43 = vld [vmem:[%s6682_s20 + $0x1b0] sm:$0xff] }
  0x54   : > { %6453 = vmatmul.msk.f32.gmra.mxu1 %vm660_vm1, %v1138_v44  ;;  %1846 = vperm.xlu1 %6549, %v1688_v45   ;;  %v610_v45 = vld [vmem:[%s6691_s26 + $0x88] sm:$0xff] }
  0x55   : > { %1946 = vperm.xlu2 %6550, %v1708_v46   ;;  %1761 = vperm.xlu0 %6548, %v1671_v47  }
  0x56   : > { %6388 = vmatmul.msk.f32.gmra.mxu0 %vm660_vm1, %v601_v48 }
  0x5c   : > { %6454 = vmatmul.msk.f32.gmra.mxu1 %vm660_vm1, %v1139_v49  ;;  %1756 = vperm.xlu1 %6549, %v1670_v50   ;;  %v1148_v50 = vld [vmem:[%s6676_s17 + $0x90] sm:$0xff] }
  0x5d   : > { %1841 = vperm.xlu2 %6550, %v1687_v51   ;;  %2031 = vperm.xlu0 %6548, %v1725_v52   ;;  %v1700_v51 = vld [vmem:[%s6682_s20 + $0x118] sm:$0xff]  ;;  %v1717_v52 = vld [vmem:[%s6682_s20 + $0x1a0] sm:$0xff] }
  0x5e   : > { %6389 = vmatmul.msk.f32.gmra.mxu0 %vm660_vm1, %v602_v53  ;;  %v1718_v53 = vld [vmem:[%s6682_s20 + $0x1a8] sm:$0xff] }
  0x64   : > { %6455 = vmatmul.msk.f32.gmra.mxu1 %vm660_vm1, %v1140_v54  ;;  %2026 = vperm.xlu1 %6549, %v1724_v55   ;;  %v611_v55 = vld [vmem:[%s6691_s26 + $0x90] sm:$0xff] }
  0x65   : > { %1941 = vperm.xlu0 %6548, %v1707_v56   ;;  %1751 = vperm.xlu2 %6550, %v1669_v57  }
  0x66   : > { %6390 = vmatmul.msk.f32.gmra.mxu0 %vm660_vm1, %v603_v58 }
  0x6c   : > { %6456 = vmatmul.msk.f32.gmra.mxu1 %vm660_vm1, %v1141_v59  ;;  %1936 = vperm.xlu1 %6549, %v1706_v60   ;;  %v648_v59 = vld [vmem:[%s6691_s26 + $0x1b8] sm:$0xff] }
  0x6d   : > { %1836 = vperm.xlu0 %6548, %v1686_v61   ;;  %2021 = vperm.xlu2 %6550, %v1723_v62   ;;  %v1149_v61 = vld [vmem:[%s6676_s17 + $0x98] sm:$0xff] }
  0x6e   : > { %6391 = vmatmul.msk.f32.gmra.mxu0 %vm660_vm1, %v604_v63  ;;  %6435 = vmatmul.msk.f32.vlgmr.msra.gmra.mxu3 %vm660_vm1, %v648_v59  ;;  %v1716_v62 = vld [vmem:[%s6682_s20 + $0x198] sm:$0xff]  ;;  %v1698_v63 = vld [vmem:[%s6682_s20 + $0x108] sm:$0xff]  ;;  %v615_v59 = vld [vmem:[%s6691_s26 + $0xb0] sm:$0xff] }
  0x6f   : > { %v6774_v0 = vpop.permute.xlu2 %1881 }
  0x74   : > { %6457 = vmatmul.msk.f32.gmra.mxu1 %vm660_vm1, %v1142_v1  ;;  %1831 = vperm.xlu1 %6549, %v1685_v2   ;;  %v1699_v1 = vld [vmem:[%s6682_s20 + $0x110] sm:$0xff] }
  0x75   : > { %1931 = vperm.xlu2 %6550, %v1705_v3   ;;  %1746 = vperm.xlu0 %6548, %v1668_v4   ;;  %v612_v3 = vld [vmem:[%s6691_s26 + $0x98] sm:$0xff] }
  0x76   : > { %6392 = vmatmul.msk.f32.gmra.mxu0 %vm660_vm1, %v605_v5 }
  0x77   : > { %v6783_v6 = vpop.permute.xlu2 %1791 }
  0x7c   : > { %6458 = vmatmul.msk.f32.gmra.mxu1 %vm660_vm1, %v1143_v7  ;;  %1741 = vperm.xlu1 %6549, %v1667_v8   ;;  %v649_v8 = vld [vmem:[%s6691_s26 + $0x1c0] sm:$0xff] }
  0x7d   : > { %1826 = vperm.xlu2 %6550, %v1684_v9   ;;  %2016 = vperm.xlu0 %6548, %v1722_v10   ;;  %v1150_v10 = vld [vmem:[%s6676_s17 + $0xa0] sm:$0xff] }
  0x7e   : > { %6393 = vmatmul.msk.f32.gmra.mxu0 %vm660_vm1, %v606_v11  ;;  %6436 = vmatmul.msk.f32.gmra.mxu3 %vm660_vm1, %v649_v8  ;;  %v1697_v11 = vld [vmem:[%s6682_s20 + $0x100] sm:$0xff]  ;;  %v1153_v8 = vld [vmem:[%s6676_s17 + $0xb8] sm:$0xff] }
  0x7f   : > { %v6792_v12 = vpop.permute.xlu2 %1871 }
  0x84   : > { %6459 = vmatmul.msk.f32.gmra.mxu1 %vm660_vm1, %v1144_v13  ;;  %2011 = vperm.xlu1 %6549, %v1721_v14   ;;  %v1714_v13 = vld [vmem:[%s6682_s20 + $0x188] sm:$0xff]  ;;  %v1715_v14 = vld [vmem:[%s6682_s20 + $0x190] sm:$0xff] }
  0x85   : > { %1926 = vperm.xlu0 %6548, %v1704_v15   ;;  %1736 = vperm.xlu2 %6550, %v1666_v16   ;;  %v613_v16 = vld [vmem:[%s6691_s26 + $0xa0] sm:$0xff] }
  0x86   : > { %6394 = vmatmul.msk.f32.gmra.mxu0 %vm660_vm1, %v607_v17  ;;  %v6801_v18 = vpop.permute.xlu1 %1886 }
  0x87   : > { %v6803_v19 = vpop.permute.xlu0 %1806  ;;  %v6805_v20 = vpop.permute.xlu2 %1966 }
  0x88   : > { %11753 = vst [vmem:[#allocation3_spill] sm:$0xff] %v6805_v20 }
  0x8c   : > { %6460 = vmatmul.msk.f32.gmra.mxu1 %vm660_vm1, %v1145_v21  ;;  %1921 = vperm.xlu1 %6549, %v1703_v22  }
  0x8d   : > { %1821 = vperm.xlu0 %6548, %v1683_v23   ;;  %2006 = vperm.xlu2 %6550, %v1720_v24   ;;  %v650_v23 = vld [vmem:[%s6691_s26 + $0x1c8] sm:$0xff] }
  0x8e   : > { %6395 = vmatmul.msk.f32.gmra.mxu0 %vm660_vm1, %v608_v25  ;;  %v6814_v26 = vpop.permute.xlu1 %1796  ;;  %6437 = vmatmul.msk.f32.gmra.mxu3 %vm660_vm1, %v650_v23  ;;  %v1151_v25 = vld [vmem:[%s6676_s17 + $0xa8] sm:$0xff] }
  0x8f   : > { %v6816_v27 = vpop.permute.xlu0 %1801  ;;  %v6818_v28 = vpop.permute.xlu2 %1961 }
  0x90   : > { %11754 = vst [vmem:[#allocation4_spill] sm:$0xff] %v6818_v28 }
  0x91   : > { %v6820_v29 = vpop.f32.mrf.mxu1 }
  0x92   : > { %11755 = vst [vmem:[#allocation5_spill] sm:$0xff] %v6820_v29  ;;  %v647_v29 = vld [vmem:[%s6691_s26 + $0x1b0] sm:$0xff] }
  0x93   : > { %v6826_v34 = vpop.f32.mrf.mxu0  ;;  %6434 = vmatmul.msk.f32.vlgmr.msra.gmra.mxu2 %vm660_vm1, %v647_v29  ;;  %v2842_v29 = vld [vmem:[%s11740_s8 + $0xc8] sm:$0xff] }
  0x94   : > { %6461 = vmatmul.msk.f32.gmra.mxu1 %vm660_vm1, %v1146_v30  ;;  %1816 = vperm.xlu1 %6549, %v1682_v31   ;;  %v2832_v30 = vld [vmem:[%s11740_s8 + $0x78] sm:$0xff]  ;;  %v2831_v31 = vld [vmem:[%s11740_s8 + $0x70] sm:$0xff] }
  0x95   : > { %1916 = vperm.xlu2 %6550, %v1702_v32   ;;  %1731 = vperm.xlu0 %6548, %v1665_v33   ;;  %v1713_v32 = vld [vmem:[%s6682_s20 + $0x180] sm:$0xff] }
  0x96   : > { %6396 = vmatmul.msk.f32.gmra.mxu0 %vm660_vm1, %v609_v35  ;;  %v6831_v36 = vpop.permute.xlu1 %1786  ;;  %v614_v35 = vld [vmem:[%s6691_s26 + $0xa8] sm:$0xff] }
  0x97   : > { %v6833_v37 = vpop.permute.xlu0 %1876  ;;  %v6835_v38 = vpop.permute.xlu2 %1856 }
  0x99   : > { %v6837_v39 = vpop.f32.mrf.mxu1 }
  0x9a   : > { %11756 = vst [vmem:[#allocation6_spill] sm:$0xff] %v6837_v39  ;;  %v655_v39 = vld [vmem:[%s6691_s26 + $0x1f0] sm:$0xff] }
  0x9b   : > { %v6843_v44 = vpop.f32.mrf.mxu0 }
  0x9c   : > { %6462 = vmatmul.msk.f32.gmra.mxu1 %vm660_vm1, %v1147_v40  ;;  %1811 = vperm.xlu1 %6549, %v1681_v41  }
  0x9d   : > { %1911 = vperm.xlu2 %6550, %v1701_v42   ;;  %2001 = vperm.xlu0 %6548, %v1719_v43   ;;  %v651_v43 = vld [vmem:[%s6691_s26 + $0x1d0] sm:$0xff] }
  0x9e   : > { %6397 = vmatmul.msk.f32.gmra.mxu0 %vm660_vm1, %v610_v45  ;;  %v6848_v46 = vpop.permute.xlu1 %1866  ;;  %6438 = vmatmul.msk.f32.gmra.mxu3 %vm660_vm1, %v651_v43  ;;  %v2827_v43 = vld [vmem:[%s11740_s8 + $0x50] sm:$0xff] }
  0x9f   : > { %v6850_v47 = vpop.permute.xlu0 %1781  ;;  %v6852_v48 = vpop.permute.xlu2 %1766 }
  0xa1   : > { %v6854_v49 = vpop.f32.mrf.mxu1 }
  0xa2   : > { %11757 = vst [vmem:[#allocation7_spill] sm:$0xff] %v6854_v49 }
  0xa3   : > { %v6860_v54 = vpop.f32.mrf.mxu0 }
  0xa4   : > { %6463 = vmatmul.msk.f32.gmra.mxu1 %vm660_vm1, %v1148_v50  ;;  %1906 = vperm.xlu1 %6549, %v1700_v51   ;;  %v1152_v50 = vld [vmem:[%s6676_s17 + $0xb0] sm:$0xff]  ;;  %v2830_v51 = vld [vmem:[%s11740_s8 + $0x68] sm:$0xff] }
  0xa5   : > { %1991 = vperm.xlu2 %6550, %v1717_v52   ;;  %1996 = vperm.xlu0 %6548, %v1718_v53   ;;  %v2847_v52 = vld [vmem:[%s11740_s8 + $0xf0] sm:$0xff]  ;;  %v2848_v53 = vld [vmem:[%s11740_s8 + $0xf8] sm:$0xff] }
  0xa6   : > { %6398 = vmatmul.msk.f32.gmra.mxu0 %vm660_vm1, %v611_v55  ;;  %v6865_v56 = vpop.permute.xlu1 %1861 }
  0xa7   : > { %v6867_v57 = vpop.permute.xlu0 %1776  ;;  %v6869_v58 = vpop.permute.xlu2 %2036 }
  0xa9   : > { %v6873_v60 = vpop.f32.mrf.mxu1 }
  0xaa   : > { %11758 = vst [vmem:[#allocation8_spill] sm:$0xff] %v6873_v60 }
  0xab   : > { %v6879_v2 = vpop.f32.mrf.mxu0 }
  0xac   : > { %6464 = vmatmul.msk.f32.gmra.mxu1 %vm660_vm1, %v1149_v61  ;;  %1986 = vperm.xlu1 %6549, %v1716_v62  }
  0xad   : > { %1896 = vperm.xlu2 %6550, %v1698_v63   ;;  %1901 = vperm.xlu0 %6548, %v1699_v1   ;;  %v652_v1 = vld [vmem:[%s6691_s26 + $0x1d8] sm:$0xff] }
  0xae   : > { %6399 = vmatmul.msk.f32.gmra.mxu0 %vm660_vm1, %v612_v3  ;;  %v6884_v4 = vpop.permute.xlu1 %1771  ;;  %6439 = vmatmul.msk.f32.gmra.mxu3 %vm660_vm1, %v652_v1 }
  0xaf   : > { %v6886_v5 = vpop.permute.xlu0 %2046  ;;  %v6888_v7 = vpop.permute.xlu2 %1946 }
  0xb0   : > { %11759 = vst [vmem:[#allocation9_spill] sm:$0xff] %v6888_v7  ;;  %v2837_v7 = vld [vmem:[%s11740_s8 + $0xa0] sm:$0xff] }
  0xb1   : > { %v6892_v9 = vpop.f32.mrf.mxu1 }
  0xb2   : > { %11760 = vst [vmem:[#allocation10_spill] sm:$0xff] %v6892_v9 }
  0xb3   : > { %v6898_v15 = vpop.f32.mrf.mxu0 }
  0xb4   : > { %6465 = vmatmul.msk.f32.gmra.mxu1 %vm660_vm1, %v1150_v10  ;;  %1891 = vperm.xlu1 %6549, %v1697_v11   ;;  %v2846_v10 = vld [vmem:[%s11740_s8 + $0xe8] sm:$0xff]  ;;  %v2828_v11 = vld [vmem:[%s11740_s8 + $0x58] sm:$0xff] }
  0xb5   : > { %1976 = vperm.xlu2 %6550, %v1714_v13   ;;  %1981 = vperm.xlu0 %6548, %v1715_v14   ;;  %v2829_v13 = vld [vmem:[%s11740_s8 + $0x60] sm:$0xff] }
  0xb6   : > { %6400 = vmatmul.msk.f32.gmra.mxu0 %vm660_vm1, %v613_v16  ;;  %v6903_v17 = vpop.permute.xlu1 %2041  ;;  %v616_v16 = vld [vmem:[%s6691_s26 + $0xb8] sm:$0xff] }
  0xb7   : > { %v6905_v21 = vpop.permute.xlu0 %1956  ;;  %v6907_v22 = vpop.permute.xlu2 %1841 }
  0xb8   : > { %11761 = vst [vmem:[#allocation11_spill] sm:$0xff] %v6905_v21  ;;  %v1160_v21 = vld [vmem:[%s6676_s17 + $0xf0] sm:$0xff] }
  0xb9   : > { %v6911_v24 = vpop.f32.mrf.mxu1 }
  0xba   : > { %11762 = vst [vmem:[#allocation12_spill] sm:$0xff] %v6911_v24  ;;  %v1185_v24 = vld [vmem:[%s6676_s17 + $0x1b8] sm:$0xff] }
  0xbb   : > { %v6921_v33 = vpop.f32.mrf.mxu0  ;;  %6500 = vmatmul.msk.f32.vlgmr.msrb.gmra.mxu2 %vm660_vm1, %v1185_v24 }
  0xbc   : > { %6466 = vmatmul.msk.f32.gmra.mxu1 %vm660_vm1, %v1151_v25  ;;  %2958 = vperm.xlu1 %6549, %v2832_v30  }
  0xbd   : > { %2953 = vperm.xlu2 %6550, %v2831_v31   ;;  %1971 = vperm.xlu0 %6548, %v1713_v32   ;;  %v653_v31 = vld [vmem:[%s6691_s26 + $0x1e0] sm:$0xff] }
  0xbe   : > { %6401 = vmatmul.msk.f32.gmra.mxu0 %vm660_vm1, %v614_v35  ;;  %v6926_v40 = vpop.permute.xlu1 %1951  ;;  %v1154_v35 = vld [vmem:[%s6676_s17 + $0xc0] sm:$0xff]  ;;  %6440 = vmatmul.msk.f32.gmra.mxu3 %vm660_vm1, %v653_v31 }
  0xbf   : > { %11763 = vst [vmem:[#allocation13_spill] sm:$0xff] %v6926_v40  ;;  %v6928_v41 = vpop.permute.xlu0 %1851  ;;  %v6930_v42 = vpop.permute.xlu2 %1751  ;;  %v2825_v31 = vld [vmem:[%s11740_s8 + $0x40] sm:$0xff] }
  0xc1   : > { %v6934_v45 = vpop.f32.mrf.mxu1 }
  0xc2   : > { %11764 = vst [vmem:[#allocation14_spill] sm:$0xff] %v6934_v45  ;;  %v656_v45 = vld [vmem:[%s6691_s26 + $0x1f8] sm:$0xff] }
  0xc3   : > { %v6946_v55 = vpop.f32.mrf.mxu0 }
  0xc4   : > { %6467 = vmatmul.msk.f32.gmra.mxu1 %vm660_vm1, %v1152_v50  ;;  %2948 = vperm.xlu1 %6549, %v2830_v51   ;;  %v2844_v50 = vld [vmem:[%s11740_s8 + $0xd8] sm:$0xff]  ;;  %v2845_v51 = vld [vmem:[%s11740_s8 + $0xe0] sm:$0xff] }
  0xc5   : > { %3033 = vperm.xlu2 %6550, %v2847_v52   ;;  %3038 = vperm.xlu0 %6548, %v2848_v53   ;;  %v617_v53 = vld [vmem:[%s6691_s26 + $0xc0] sm:$0xff] }
  0xc6   : > { %6402 = vmatmul.msk.f32.gmra.mxu0 %vm660_vm1, %v615_v59  ;;  %v6951_v61 = vpop.permute.xlu1 %1846 }
  0xc7   : > { %v6953_v62 = vpop.permute.xlu0 %1761  ;;  %v6955_v63 = vpop.permute.xlu2 %2021 }
  0xc9   : > { %v6959_v3 = vpop.f32.mrf.mxu1 }
  0xca   : > { %11765 = vst [vmem:[#allocation15_spill] sm:$0xff] %v6959_v3 }
  0xcb   : > { %v6971_v14 = vpop.f32.mrf.mxu0 }
  0xcc   : > { %6468 = vmatmul.msk.f32.gmra.mxu1 %vm660_vm1, %v1153_v8  ;;  %3028 = vperm.xlu1 %6549, %v2846_v10   ;;  %v654_v10 = vld [vmem:[%s6691_s26 + $0x1e8] sm:$0xff] }
  0xcd   : > { %2938 = vperm.xlu2 %6550, %v2828_v11   ;;  %2943 = vperm.xlu0 %6548, %v2829_v13   ;;  %v1155_v13 = vld [vmem:[%s6676_s17 + $0xc8] sm:$0xff] }
  0xce   : > { %6403 = vmatmul.msk.f32.gmra.mxu0 %vm660_vm1, %v616_v16  ;;  %v6976_v23 = vpop.permute.xlu1 %1756  ;;  %v2843_v16 = vld [vmem:[%s11740_s8 + $0xd0] sm:$0xff]  ;;  %6441 = vmatmul.msk.f32.gmra.mxu3 %vm660_vm1, %v654_v10 }
  0xcf   : > { %v6978_v25 = vpop.permute.xlu0 %2031  ;;  %v6980_v30 = vpop.permute.xlu2 %1931 }
  0xd0   : > { %11766 = vst [vmem:[#allocation16_spill] sm:$0xff] %v6980_v30  ;;  %v1158_v30 = vld [vmem:[%s6676_s17 + $0xe0] sm:$0xff] }
  0xd1   : > { %v6983_v32 = vpop.f32.mrf.mxu1 }
  0xd2   : > { %11767 = vst [vmem:[#allocation17_spill] sm:$0xff] %v6983_v32  ;;  %v1157_v32 = vld [vmem:[%s6676_s17 + $0xd8] sm:$0xff] }
  0xd3   : > { %v6996_v52 = vpop.f32.mrf.mxu0 }
  0xd4   : > { %6469 = vmatmul.msk.f32.gmra.mxu1 %vm660_vm1, %v1154_v35  ;;  %2933 = vperm.xlu1 %6549, %v2827_v43   ;;  %v2826_v35 = vld [vmem:[%s11740_s8 + $0x48] sm:$0xff] }
  0xd5   : > { %3018 = vperm.xlu2 %6550, %v2844_v50   ;;  %3023 = vperm.xlu0 %6548, %v2845_v51   ;;  %v618_v50 = vld [vmem:[%s6691_s26 + $0xc8] sm:$0xff] }
  0xd6   : > { %6404 = vmatmul.msk.f32.gmra.mxu0 %vm660_vm1, %v617_v53  ;;  %v7001_v59 = vpop.permute.xlu1 %2026  ;;  %6442 = vmatmul.msk.f32.gmra.mxu3 %vm660_vm1, %v655_v39 }
  0xd7   : > { %v7003_v1 = vpop.permute.xlu0 %1941  ;;  %v7005_v8 = vpop.permute.xlu2 %1826 }
  0xd8   : > { %11768 = vst [vmem:[#allocation18_spill] sm:$0xff] %v7003_v1  ;;  %v1159_v1 = vld [vmem:[%s6676_s17 + $0xe8] sm:$0xff] }
  0xd9   : > { %11769 = vst [vmem:[#allocation19_spill] sm:$0xff] %v7005_v8  ;;  %v7008_v11 = vpop.f32.mrf.mxu1 }
  0xda   : > { %11770 = vst [vmem:[#allocation20_spill] sm:$0xff] %v7008_v11 }
  0xdb   : > { %v7021_v43 = vpop.f32.mrf.mxu0 }
  0xdc   : > { %6470 = vmatmul.msk.f32.gmra.mxu1 %vm660_vm1, %v1155_v13  ;;  %3013 = vperm.xlu1 %6549, %v2843_v16   ;;  %v1156_v13 = vld [vmem:[%s6676_s17 + $0xd0] sm:$0xff]  ;;  %v2824_v16 = vld [vmem:[%s11740_s8 + $0x38] sm:$0xff] }
  0xdd   : > { %2923 = vperm.xlu2 %6550, %v2825_v31   ;;  %2928 = vperm.xlu0 %6548, %v2826_v35   ;;  %v2841_v31 = vld [vmem:[%s11740_s8 + $0xc0] sm:$0xff] }
  0xde   : > { %6405 = vmatmul.msk.f32.gmra.mxu0 %vm660_vm1, %v618_v50  ;;  %v7026_v51 = vpop.permute.xlu1 %1936  ;;  %v619_v50 = vld [vmem:[%s6691_s26 + $0xd0] sm:$0xff]  ;;  %6443 = vmatmul.msk.f32.gmra.mxu3 %vm660_vm1, %v656_v45 }
  0xdf   : > { %11771 = vst [vmem:[#allocation21_spill] sm:$0xff] %v7026_v51  ;;  %v7028_v53 = vpop.permute.xlu0 %1836  ;;  %v7030_v10 = vpop.permute.xlu2 %1736 }
  0xe0   : > { %11772 = vst [vmem:[#allocation22_spill] sm:$0xff] %v7028_v53 }
  0xe1   : > { %v7035_v49 = vpop.f32.mrf.mxu1 }
  0xe2   : > { %11773 = vst [vmem:[#allocation23_spill] sm:$0xff] %v7035_v49  ;;  %v1186_v49 = vld [vmem:[%s6676_s17 + $0x1c0] sm:$0xff] }
  0xe3   : > { %v7048_v35 = vpop.f32.mrf.mxu0  ;;  %6501 = vmatmul.msk.f32.gmra.mxu2 %vm660_vm1, %v1186_v49 }
  0xe4   : > { %6471 = vmatmul.msk.f32.gmra.mxu1 %vm660_vm1, %v1156_v13  ;;  %2918 = vperm.xlu1 %6549, %v2824_v16   ;;  %v2840_v13 = vld [vmem:[%s11740_s8 + $0xb8] sm:$0xff]  ;;  %v2822_v16 = vld [vmem:[%s11740_s8 + $0x28] sm:$0xff] }
  0xe5   : > { %3003 = vperm.xlu2 %6550, %v2841_v31   ;;  %3008 = vperm.xlu0 %6548, %v2842_v29   ;;  %v2823_v31 = vld [vmem:[%s11740_s8 + $0x30] sm:$0xff] }
  0xe6   : > { %6406 = vmatmul.msk.f32.gmra.mxu0 %vm660_vm1, %v619_v50  ;;  %v7053_v39 = vpop.permute.xlu1 %1831  ;;  %v620_v50 = vld [vmem:[%s6691_s26 + $0xd8] sm:$0xff] }
  0xe7   : > { %11774 = vst [vmem:[#allocation24_spill] sm:$0xff] %v7053_v39  ;;  %v7055_v60 = vpop.permute.xlu0 %1746  ;;  %v7057_v9 = vpop.permute.xlu2 %2006 }
  0xe9   : > { %v7061_v3 = vpop.f32.mrf.mxu1 }
  0xea   : > { %11775 = vst [vmem:[#allocation25_spill] sm:$0xff] %v7061_v3 }
  0xeb   : > { %v7075_v29 = vpop.f32.mrf.mxu0 }
  0xec   : > { %6472 = vmatmul.msk.f32.gmra.mxu1 %vm660_vm1, %v1157_v32  ;;  %2998 = vperm.xlu1 %6549, %v2840_v13   ;;  %v2821_v32 = vld [vmem:[%s11740_s8 + $0x20] sm:$0xff]  ;;  %v2838_v13 = vld [vmem:[%s11740_s8 + $0xa8] sm:$0xff] }
  0xed   : > { %2908 = vperm.xlu2 %6550, %v2822_v16   ;;  %2913 = vperm.xlu0 %6548, %v2823_v31   ;;  %v2839_v16 = vld [vmem:[%s11740_s8 + $0xb0] sm:$0xff] }
  0xee   : > { %6407 = vmatmul.msk.f32.gmra.mxu0 %vm660_vm1, %v620_v50  ;;  %v7080_v24 = vpop.permute.xlu1 %1741  ;;  %v621_v50 = vld [vmem:[%s6691_s26 + $0xe0] sm:$0xff] }
  0xef   : > { %v7082_v45 = vpop.permute.xlu0 %2016  ;;  %v7084_v11 = vpop.permute.xlu2 %1916 }
  0xf0   : > { %11776 = vst [vmem:[#allocation26_spill] sm:$0xff] %v7084_v11 }
  0xf1   : > { %v7087_v3 = vpop.f32.mrf.mxu1 }
  0xf2   : > { %11777 = vst [vmem:[#allocation27_spill] sm:$0xff] %v7087_v3 }
  0xf3   : > { %v7100_v31 = vpop.f32.mrf.mxu0 }
  0xf4   : > { %6473 = vmatmul.msk.f32.gmra.mxu1 %vm660_vm1, %v1158_v30  ;;  %2903 = vperm.xlu1 %6549, %v2821_v32   ;;  %v1187_v30 = vld [vmem:[%s6676_s17 + $0x1c8] sm:$0xff]  ;;  %v2819_v32 = vld [vmem:[%s11740_s8 + $0x10] sm:$0xff] }
  0xf5   : > { %2988 = vperm.xlu2 %6550, %v2838_v13   ;;  %2993 = vperm.xlu0 %6548, %v2839_v16   ;;  %v2820_v13 = vld [vmem:[%s11740_s8 + $0x18] sm:$0xff] }
  0xf6   : > { %6408 = vmatmul.msk.f32.gmra.mxu0 %vm660_vm1, %v621_v50  ;;  %v7105_v49 = vpop.permute.xlu1 %2011  ;;  %6502 = vmatmul.msk.f32.gmra.mxu2 %vm660_vm1, %v1187_v30  ;;  %v622_v50 = vld [vmem:[%s6691_s26 + $0xe8] sm:$0xff] }
  0xf7   : > { %v7107_v3 = vpop.permute.xlu0 %1926  ;;  %v7109_v11 = vpop.permute.xlu2 %1911  ;;  %v2818_v30 = vld [vmem:[%s11740_s8 + $0x8] sm:$0xff] }
  0xf8   : > { %11778 = vst [vmem:[#allocation28_spill] sm:$0xff] %v7107_v3 }
  0xf9   : > { %11779 = vst [vmem:[#allocation29_spill] sm:$0xff] %v7109_v11  ;;  %v7111_v51 = vpop.f32.mrf.mxu1 }
  0xfa   : > { %11780 = vst [vmem:[#allocation30_spill] sm:$0xff] %v7111_v51 }
  0xfb   : > { %v913_v16 = vpop.f32.mrf.mxu0 }
  0xfc   : > { %6474 = vmatmul.msk.f32.gmra.mxu1 %vm660_vm1, %v1159_v1  ;;  %2983 = vperm.xlu1 %6549, %v2837_v7   ;;  %v1188_v1 = vld [vmem:[%s6676_s17 + $0x1d0] sm:$0xff] }
  0xfd   : > { %2893 = vperm.xlu2 %6550, %v2819_v32   ;;  %2898 = vperm.xlu0 %6548, %v2820_v13   ;;  %v2835_v7 = vld [vmem:[%s11740_s8 + $0x90] sm:$0xff]  ;;  %v2836_v32 = vld [vmem:[%s11740_s8 + $0x98] sm:$0xff] }
  0xfe   : > { %6409 = vmatmul.msk.f32.gmra.mxu0 %vm660_vm1, %v622_v50  ;;  %v7128_v51 = vpop.permute.xlu1 %1921  ;;  %6503 = vmatmul.msk.f32.gmra.mxu2 %vm660_vm1, %v1188_v1  ;;  %v623_v50 = vld [vmem:[%s6691_s26 + $0xf0] sm:$0xff]  ;;  %v7160_v1 = vld [vmem:[%s11738_s6] ss:$0 sm:$0xff] }
  0xff   : > { %11781 = vst [vmem:[#allocation31_spill] sm:$0xff] %v7128_v51  ;;  %v7130_v11 = vpop.permute.xlu0 %1821  ;;  %v7132_v3 = vpop.permute.xlu2 %1991 }
 0x100   : > { %11782 = vst [vmem:[#allocation32_spill] sm:$0xff] %v7130_v11 }
 0x101   : > { %11783 = vst [vmem:[#allocation33_spill] sm:$0xff] %v7132_v3  ;;  %v7134_v40 = vpop.f32.mrf.mxu1 }
 0x102   : > { %11784 = vst [vmem:[#allocation34_spill] sm:$0xff] %v7134_v40 }
 0x103   : > { %v916_v13 = vpop.f32.mrf.mxu0 }
 0x104   : > { %6475 = vmatmul.msk.f32.gmra.mxu1 %vm660_vm1, %v1160_v21  ;;  %2888 = vperm.xlu1 %6549, %v2818_v30   ;;  %v1161_v21 = vld [vmem:[%s6676_s17 + $0xf8] sm:$0xff]  ;;  %v2834_v30 = vld [vmem:[%s11740_s8 + $0x88] sm:$0xff] }
 0x105   : > { %2973 = vperm.xlu2 %6550, %v2835_v7   ;;  %2978 = vperm.xlu0 %6548, %v2836_v32   ;;  %v1189_v7 = vld [vmem:[%s6676_s17 + $0x1d8] sm:$0xff]  ;;  %v917_v32 = vadd.f32 %v7160_v1, %v916_v13  ;;  %v914_v13 = vadd.f32 %v7160_v1, %v913_v16  ;;  %v908_v16 = vadd.f32 %v7160_v1, %v7075_v29 }
 0x106   : > { %6410 = vmatmul.msk.f32.gmra.mxu0 %vm660_vm1, %v623_v50  ;;  %v7151_v40 = vpop.permute.xlu1 %1816  ;;  %v2833_v50 = vld [vmem:[%s11740_s8 + $0x80] sm:$0xff]  ;;  %6504 = vmatmul.msk.f32.gmra.mxu2 %vm660_vm1, %v1189_v7  ;;  %v911_v7 = vadd.f32 %v7160_v1, %v7100_v31  ;;  %v2863_v31 = vld [vmem:[%s11740_s8 + $0x170] sm:$0xff] }
 0x107   : > { %11785 = vst [vmem:[#allocation35_spill] sm:$0xff] %v7151_v40  ;;  %v7153_v3 = vpop.permute.xlu2 %1896  ;;  %v7155_v51 = vpop.permute.xlu0 %1731  ;;  %v1080_v11 = vmax.f32 %v917_v32, 0.0  ;;  %v2880_v32 = vld [vmem:[%s11740_s8 + $0x1f8] sm:$0xff] }
 0x108   : > { %11786 = vst [vmem:[#allocation36_spill] sm:$0xff] %v7153_v3  ;;  %v2817_v3 = vld [vmem:[%s11740_s8] sm:$0xff] }
 0x109   : > { %v7162_v28 = vpop.f32.mrf.mxu1 }
 0x10a   : > { %11787 = vst [vmem:[#allocation37_spill] sm:$0xff] %v7162_v28  ;;  %v624_v28 = vld [vmem:[%s6691_s26 + $0xf8] sm:$0xff] }
 0x10b   : > { %v919_v20 = vpop.f32.mrf.mxu0 }
 0x10c   : > { %v920_v40 = vadd.f32 %v7160_v1, %v919_v20  ;;  %6476 = vmatmul.msk.f32.gmra.mxu1 %vm660_vm1, %v1161_v21  ;;  %2968 = vperm.xlu1 %6549, %v2834_v30  }
 0x10d   : > { %2963 = vperm.xlu2 %6550, %v2833_v50   ;;  %2883 = vperm.xlu0 %6548, %v2817_v3   ;;  %v1079_v3 = vmax.f32 %v914_v13, 0.0  ;;  %v2864_v50 = vld [vmem:[%s11740_s8 + $0x178] sm:$0xff]  ;;  %v625_v13 = vld [vmem:[%s6691_s26 + $0x100] sm:$0xff] }
 0x10e   : > { %v1081_v8 = vmax.f32 %v920_v40, 0.0  ;;  %6411 = vmatmul.msk.f32.gmra.mxu0 %vm660_vm1, %v624_v28  ;;  %v7182_v39 = vpop.permute.xlu1 %1811  ;;  %v1162_v40 = vld [vmem:[%s6676_s17 + $0x100] sm:$0xff]  ;;  %v2063_v28 = vmul.f32 %v6816_v27, %v1080_v11  ;;  %v902_v27 = vadd.f32 %v7160_v1, %v7021_v43  ;;  %v1077_v11 = vmax.f32 %v908_v16, 0.0 }
 0x10f   : > { %v7186_v53 = vpop.permute.xlu2 %1976  ;;  %v7188_v20 = vpop.permute.xlu0 %2001 }
 0x110   : > { %v2064_v21 = vmul.f32 %v6803_v19, %v1081_v8  ;;  %v905_v19 = vadd.f32 %v7160_v1, %v7048_v35  ;;  %v1078_v8 = vmax.f32 %v911_v7, 0.0  ;;  %v2062_v35 = vmul.f32 %v6814_v26, %v1079_v3 }
 0x111   : > { %v7193_v30 = vpop.f32.mrf.mxu1  ;;  %v896_v26 = vadd.f32 %v7160_v1, %v6971_v14  ;;  %v1075_v16 = vmax.f32 %v902_v27, 0.0  ;;  %v2060_v3 = vmul.f32 %v6831_v36, %v1077_v11  ;;  %v2861_v36 = vld [vmem:[%s11740_s8 + $0x160] sm:$0xff]  ;;  %v890_v11 = vadd.f32 %v7160_v1, %v6921_v33  ;;  %v1164_v33 = vld [vmem:[%s6676_s17 + $0x110] sm:$0xff] }
 0x112   : > { %11788 = vst [vmem:[#allocation38_spill] sm:$0xff] %v7193_v30  ;;  %3201 = vmatpush.msra.mxu2 %v2064_v21  ;;  %v899_v21 = vadd.f32 %v7160_v1, %v6996_v52  ;;  %v2061_v43 = vmul.f32 %v6783_v6, %v1078_v8  ;;  %v2879_v52 = vld [vmem:[%s11740_s8 + $0x1f0] sm:$0xff]  ;;  %v2862_v8 = vld [vmem:[%s11740_s8 + $0x168] sm:$0xff] }
 0x113   : > { %v7205_v29 = vpop.f32.mrf.mxu0  ;;  %v1073_v27 = vmax.f32 %v896_v26, 0.0 }
 0x114   : > { %3202 = vmatpush.msra.mxu2 %v2063_v28  ;;  %6477 = vmatmul.msk.f32.gmra.mxu1 %vm660_vm1, %v1162_v40  ;;  %v1076_v28 = vmax.f32 %v905_v19, 0.0  ;;  %v893_v19 = vadd.f32 %v7160_v1, %v6946_v55  ;;  %v2058_v55 = vmul.f32 %v6867_v57, %v1075_v16  ;;  %v887_v57 = vadd.f32 %v7160_v1, %v6898_v15  ;;  %v2878_v15 = vld [vmem:[%s11740_s8 + $0x1e8] sm:$0xff] }
 0x115   : > { %3113 = vperm.xlu1 %6549, %v2863_v31   ;;  %3198 = vperm.xlu2 %6550, %v2880_v32   ;;  %v1163_v32 = vld [vmem:[%s6676_s17 + $0x108] sm:$0xff]  ;;  %v2056_v26 = vmul.f32 %v6852_v48, %v1073_v27  ;;  %v2877_v48 = vld [vmem:[%s11740_s8 + $0x1e0] sm:$0xff] }
 0x116   : > { %3118 = vperm.xlu0 %6548, %v2864_v50   ;;  %6412 = vmatmul.msk.f32.gmra.mxu0 %vm660_vm1, %v625_v13  ;;  %v7216_v7 = vpop.permute.xlu1 %1906  ;;  %v1074_v50 = vmax.f32 %v899_v21, 0.0  ;;  %v2059_v14 = vmul.f32 %v6850_v47, %v1076_v28  ;;  %v626_v13 = vld [vmem:[%s6691_s26 + $0x108] sm:$0xff] }
 0x117   : > { %3203 = vmatpush.msra.mxu2 %v2062_v35  ;;  %v7220_v40 = vpop.permute.xlu2 %2953  ;;  %v7222_v30 = vpop.permute.xlu0 %1996  ;;  %v1072_v35 = vmax.f32 %v893_v19, 0.0 }
 0x118   : > { %11789 = vst [vmem:[#allocation39_spill] sm:$0xff] %v7220_v40 }
 0x119   : > { %3204 = vmatpush.msra.mxu2 %v2061_v43  ;;  %v7228_v31 = vpop.f32.mrf.mxu1  ;;  %v2057_v43 = vmul.f32 %v6884_v4, %v1074_v50  ;;  %v2055_v19 = vmul.f32 %v6953_v62, %v1072_v35  ;;  %v627_v50 = vld [vmem:[%s6691_s26 + $0x110] sm:$0xff] }
 0x11a   : > { %11790 = vst [vmem:[#allocation40_spill] sm:$0xff] %v7228_v31 }
 0x11b   : > { %3205 = vmatpush.msra.mxu2 %v2060_v3  ;;  %v7236_v6 = vpop.f32.mrf.mxu0  ;;  %v2860_v3 = vld [vmem:[%s11740_s8 + $0x158] sm:$0xff] }
 0x11c   : > { %6478 = vmatmul.msk.f32.gmra.mxu1 %vm660_vm1, %v1163_v32  ;;  %v884_v32 = vadd.f32 %v7160_v1, %v6879_v2  ;;  %v881_v2 = vadd.f32 %v7160_v1, %v6860_v54 }
 0x11d   : > { %3206 = vmatpush.msra.mxu2 %v2059_v14  ;;  %3193 = vperm.xlu1 %6549, %v2879_v52   ;;  %v1071_v52 = vmax.f32 %v890_v11, 0.0  ;;  %v1070_v14 = vmax.f32 %v887_v57, 0.0  ;;  %v1190_v57 = vld [vmem:[%s6676_s17 + $0x1e0] sm:$0xff] }
 0x11e   : > { %3103 = vperm.xlu2 %6550, %v2861_v36   ;;  %3108 = vperm.xlu0 %6548, %v2862_v8   ;;  %v7248_v47 = vpop.permute.xlu1 %1986  ;;  %v878_v8 = vadd.f32 %v7160_v1, %v6843_v44  ;;  %v1068_v11 = vmax.f32 %v881_v2, 0.0  ;;  %v1165_v44 = vld [vmem:[%s6676_s17 + $0x118] sm:$0xff] }
 0x11f   : > { %6413 = vmatmul.msk.f32.gmra.mxu0 %vm660_vm1, %v626_v13  ;;  %3207 = vmatpush.msra.mxu2 %v2058_v55  ;;  %v7253_v21 = vpop.permute.xlu2 %3033  ;;  %v7255_v28 = vpop.permute.xlu0 %1901  ;;  %v2054_v62 = vmul.f32 %v6976_v23, %v1071_v52  ;;  %v1069_v13 = vmax.f32 %v884_v32, 0.0  ;;  %v2053_v27 = vmul.f32 %v6930_v42, %v1070_v14  ;;  %v875_v55 = vadd.f32 %v7160_v1, %v6826_v34  ;;  %v2876_v42 = vld [vmem:[%s11740_s8 + $0x1d8] sm:$0xff] }
 0x120   : > { %11791 = vst [vmem:[#allocation41_spill] sm:$0xff] %v7253_v21  ;;  %6505 = vmatmul.msk.f32.vlgmr.msrb.gmra.mxu3 %vm660_vm1, %v1190_v57  ;;  %v628_v32 = vld [vmem:[%s6691_s26 + $0x118] sm:$0xff]  ;;  %v7315_v52 = vpop.f32.mrf.mxu3  ;;  %v2577_v21 = vld [vmem:[%s11739_s7 + $0x80] sm:$0xff] }
 0x121   : > { %3208 = vmatpush.msra.mxu2 %v2057_v43  ;;  %v7261_v16 = vpop.f32.mrf.mxu1  ;;  %v2052_v35 = vmul.f32 %v7055_v60, %v1069_v13  ;;  %v2858_v60 = vld [vmem:[%s11740_s8 + $0x148] sm:$0xff] }
 0x122   : > { %11792 = vst [vmem:[#allocation42_spill] sm:$0xff] %v7261_v16 }
 0x123   : > { %3209 = vmatpush.msra.mxu2 %v2056_v26  ;;  %v7270_v4 = vpop.f32.mrf.mxu0  ;;  %v1067_v26 = vmax.f32 %v878_v8, 0.0  ;;  %v1191_v8 = vld [vmem:[%s6676_s17 + $0x1e8] sm:$0xff] }
 0x124   : > { %6479 = vmatmul.msk.f32.gmra.mxu1 %vm660_vm1, %v1164_v33  ;;  %v2051_v33 = vmul.f32 %v7080_v24, %v1068_v11  ;;  %v629_v11 = vld [vmem:[%s6691_s26 + $0x120] sm:$0xff] }
 0x125   : > { %3210 = vmatpush.msra.mxu2 %v2055_v19  ;;  %3098 = vperm.xlu1 %6549, %v2860_v3   ;;  %v2859_v3 = vld [vmem:[%s11740_s8 + $0x150] sm:$0xff]  ;;  %v1066_v19 = vmax.f32 %v875_v55, 0.0  ;;  %v2050_v24 = vmul.f32 %v7030_v10, %v1067_v26  ;;  %v2561_v10 = vld [vmem:[%s11739_s7] sm:$0xff] }
 0x126   : > { %3183 = vperm.xlu2 %6550, %v2877_v48   ;;  %3188 = vperm.xlu0 %6548, %v2878_v15   ;;  %v7283_v36 = vpop.permute.xlu1 %1891  ;;  %v2875_v55 = vld [vmem:[%s11740_s8 + $0x1d0] sm:$0xff]  ;;  %v2565_v26 = vld [vmem:[%s11739_s7 + $0x20] sm:$0xff] }
 0x127   : > { %6414 = vmatmul.msk.f32.gmra.mxu0 %vm660_vm1, %v627_v50  ;;  %3211 = vmatpush.msra.mxu2 %v2054_v62  ;;  %v7289_v54 = vpop.permute.xlu2 %2938  ;;  %v7291_v23 = vpop.permute.xlu0 %1981  ;;  %v2049_v15 = vmul.f32 %v7155_v51, %v1066_v19  ;;  %v1166_v62 = vld [vmem:[%s6676_s17 + $0x120] sm:$0xff] }
 0x128   : > { %11793 = vst [vmem:[#allocation43_spill] sm:$0xff] %v7289_v54  ;;  %v2857_v51 = vld [vmem:[%s11740_s8 + $0x140] sm:$0xff]  ;;  %6506 = vmatmul.msk.f32.gmra.mxu3 %vm660_vm1, %v1191_v8 }
 0x129   : > { %3212 = vmatpush.msra.mxu2 %v2053_v27  ;;  %v7296_v43 = vpop.f32.mrf.mxu1  ;;  %v2874_v27 = vld [vmem:[%s11740_s8 + $0x1c8] sm:$0xff] }
 0x12a   : > { %11794 = vst [vmem:[#allocation44_spill] sm:$0xff] %v7296_v43  ;;  %v2573_v43 = vld [vmem:[%s11739_s7 + $0x60] sm:$0xff] }
 0x12b   : > { %3213 = vmatpush.msra.mxu2 %v2052_v35  ;;  %v7305_v34 = vpop.f32.mrf.mxu0  ;;  %v7347_v35 = vpop.f32.mrf.mxu3 }
 0x12c   : > { %6480 = vmatmul.msk.f32.gmra.mxu1 %vm660_vm1, %v1165_v44 }
 0x12d   : > { %3214 = vmatpush.msra.mxu2 %v2051_v33  ;;  %3178 = vperm.xlu1 %6549, %v2876_v42  }
 0x12e   : > { %3088 = vperm.xlu2 %6550, %v2858_v60   ;;  %3093 = vperm.xlu0 %6548, %v2859_v3   ;;  %v7318_v48 = vpop.permute.xlu1 %2958  ;;  %v1167_v60 = vld [vmem:[%s6676_s17 + $0x128] sm:$0xff]  ;;  %v1192_v3 = vld [vmem:[%s6676_s17 + $0x1f0] sm:$0xff] }
 0x12f   : > { %11795 = vst [vmem:[#allocation45_spill] sm:$0xff] %v7318_v48  ;;  %6415 = vmatmul.msk.f32.gmra.mxu0 %vm660_vm1, %v628_v32  ;;  %3215 = vmatpush.msra.mxu2 %v2050_v24  ;;  %v7322_v50 = vpop.permute.xlu2 %3018  ;;  %v7324_v2 = vpop.permute.xlu0 %1971  ;;  %v2873_v32 = vld [vmem:[%s11740_s8 + $0x1c0] sm:$0xff]  ;;  %v2855_v24 = vld [vmem:[%s11740_s8 + $0x130] sm:$0xff] }
 0x130   : > { %11796 = vst [vmem:[#allocation46_spill] sm:$0xff] %v7322_v50  ;;  %6507 = vmatmul.msk.f32.gmra.mxu3 %vm660_vm1, %v1192_v3  ;;  %v2854_v3 = vld [vmem:[%s11740_s8 + $0x128] sm:$0xff] }
 0x131   : > { %11797 = vst [vmem:[#allocation47_spill] sm:$0xff] %v7324_v2  ;;  %3216 = vmatpush.msra.mxu2 %v2049_v15  ;;  %v7329_v14 = vpop.f32.mrf.mxu1  ;;  %v2856_v15 = vld [vmem:[%s11740_s8 + $0x138] sm:$0xff]  ;;  %v2143_v2 = vld [vmem:[%s7505_s25 + $0xf0] sm:$0xff] }
 0x132   : > { %11798 = vst [vmem:[#allocation48_spill] sm:$0xff] %v7329_v14  ;;  %3217 = vmatmul.f32.vlgmr.msra.gmra.mxu2 %v2561_v10  ;;  %v630_v10 = vld [vmem:[%s6691_s26 + $0x128] sm:$0xff]  ;;  %v1169_v14 = vld [vmem:[%s6676_s17 + $0x138] sm:$0xff] }
 0x133   : > { %v7337_v13 = vpop.f32.mrf.mxu0 }
 0x134   : > { %6481 = vmatmul.msk.f32.gmra.mxu1 %vm660_vm1, %v1166_v62  ;;  %v7377_v62 = vpop.f32.mrf.mxu3 }
 0x135   : > { %3083 = vperm.xlu1 %6549, %v2857_v51  }
 0x136   : > { %3168 = vperm.xlu2 %6550, %v2874_v27   ;;  %3173 = vperm.xlu0 %6548, %v2875_v55   ;;  %v7349_v44 = vpop.permute.xlu1 %2948  ;;  %v2569_v55 = vld [vmem:[%s11739_s7 + $0x40] sm:$0xff] }
 0x137   : > { %11799 = vst [vmem:[#allocation49_spill] sm:$0xff] %v7349_v44  ;;  %6416 = vmatmul.msk.f32.gmra.mxu0 %vm660_vm1, %v629_v11  ;;  %v7352_v57 = vpop.permute.xlu2 %2923  ;;  %v7354_v42 = vpop.permute.xlu0 %3038  ;;  %v2585_v44 = vld [vmem:[%s11739_s7 + $0xc0] sm:$0xff] }
 0x138   : > { %11800 = vst [vmem:[#allocation50_spill] sm:$0xff] %v7352_v57 }
 0x139   : > { %11801 = vst [vmem:[#allocation51_spill] sm:$0xff] %v7354_v42  ;;  %v7359_v33 = vpop.f32.mrf.mxu1 }
 0x13a   : > { %11802 = vst [vmem:[#allocation52_spill] sm:$0xff] %v7359_v33  ;;  %3220 = vmatmul.f32.gmra.mxu2 %v2565_v26  ;;  %v1168_v26 = vld [vmem:[%s6676_s17 + $0x130] sm:$0xff]  ;;  %v632_v33 = vld [vmem:[%s6691_s26 + $0x138] sm:$0xff] }
 0x13b   : > { %v7367_v19 = vpop.f32.mrf.mxu0 }
 0x13c   : > { %6482 = vmatmul.msk.f32.gmra.mxu1 %vm660_vm1, %v1167_v60  ;;  %v1193_v60 = vld [vmem:[%s6676_s17 + $0x1f8] sm:$0xff] }
 0x13d   : > { %3163 = vperm.xlu1 %6549, %v2873_v32   ;;  %6508 = vmatmul.msk.f32.gmra.mxu3 %vm660_vm1, %v1193_v60 }
 0x13e   : > { %3073 = vperm.xlu2 %6550, %v2855_v24   ;;  %3078 = vperm.xlu0 %6548, %v2856_v15   ;;  %v7379_v8 = vpop.permute.xlu1 %3028  ;;  %v2871_v24 = vld [vmem:[%s11740_s8 + $0x1b0] sm:$0xff]  ;;  %v2872_v15 = vld [vmem:[%s11740_s8 + $0x1b8] sm:$0xff] }
 0x13f   : > { %11803 = vst [vmem:[#allocation53_spill] sm:$0xff] %v7379_v8  ;;  %6417 = vmatmul.msk.f32.gmra.mxu0 %vm660_vm1, %v630_v10  ;;  %v7382_v51 = vpop.permute.xlu2 %3003  ;;  %v7384_v27 = vpop.permute.xlu0 %2943  ;;  %v631_v10 = vld [vmem:[%s6691_s26 + $0x130] sm:$0xff]  ;;  %v1170_v8 = vld [vmem:[%s6676_s17 + $0x140] sm:$0xff] }
 0x140   : > { %11804 = vst [vmem:[#allocation54_spill] sm:$0xff] %v7382_v51  ;;  %v2581_v51 = vld [vmem:[%s11739_s7 + $0xa0] sm:$0xff] }
 0x141   : > { %11805 = vst [vmem:[#allocation55_spill] sm:$0xff] %v7384_v27  ;;  %v7389_v11 = vpop.f32.mrf.mxu1 }
 0x142   : > { %11806 = vst [vmem:[#allocation56_spill] sm:$0xff] %v7389_v11  ;;  %3223 = vmatmul.f32.gmra.mxu2 %v2569_v55  ;;  %v7407_v55 = vpop.f32.mrf.mxu3 }
 0x143   : > { %v7397_v32 = vpop.f32.mrf.mxu0 }
 0x144   : > { %6483 = vmatmul.msk.f32.gmra.mxu1 %vm660_vm1, %v1168_v26 }
 0x145   : > { %3068 = vperm.xlu1 %6549, %v2854_v3   ;;  %v2870_v3 = vld [vmem:[%s11740_s8 + $0x1a8] sm:$0xff] }
 0x146   : > { %3153 = vperm.xlu2 %6550, %v2871_v24   ;;  %3158 = vperm.xlu0 %6548, %v2872_v15   ;;  %v7409_v60 = vpop.permute.xlu1 %2933  ;;  %v2852_v15 = vld [vmem:[%s11740_s8 + $0x118] sm:$0xff] }
 0x147   : > { %11807 = vst [vmem:[#allocation57_spill] sm:$0xff] %v7409_v60  ;;  %6418 = vmatmul.msk.f32.gmra.mxu0 %vm660_vm1, %v631_v10  ;;  %v7412_v31 = vpop.permute.xlu2 %2908  ;;  %v7414_v16 = vpop.permute.xlu0 %3023  ;;  %v2853_v10 = vld [vmem:[%s11740_s8 + $0x120] sm:$0xff] }
 0x148   : > { %11808 = vst [vmem:[#allocation58_spill] sm:$0xff] %v7412_v31 }
 0x149   : > { %11809 = vst [vmem:[#allocation59_spill] sm:$0xff] %v7414_v16  ;;  %v7419_v26 = vpop.f32.mrf.mxu1 }
 0x14a   : > { %11810 = vst [vmem:[#allocation60_spill] sm:$0xff] %v7419_v26  ;;  %3226 = vmatmul.f32.gmra.mxu2 %v2573_v43  ;;  %v7435_v11 = vpop.f32.mrf.mxu3 }
 0x14b   : > { %v7425_v24 = vpop.f32.mrf.mxu0 }
 0x14c   : > { %6484 = vmatmul.msk.f32.gmra.mxu1 %vm660_vm1, %v1169_v14 }
 0x14d   : > { %3148 = vperm.xlu1 %6549, %v2870_v3   ;;  %v2851_v3 = vld [vmem:[%s11740_s8 + $0x110] sm:$0xff] }
 0x14e   : > { %3058 = vperm.xlu2 %6550, %v2852_v15   ;;  %3063 = vperm.xlu0 %6548, %v2853_v10   ;;  %v7437_v43 = vpop.permute.xlu1 %3013  ;;  %v2869_v10 = vld [vmem:[%s11740_s8 + $0x1a0] sm:$0xff] }
 0x14f   : > { %11811 = vst [vmem:[#allocation61_spill] sm:$0xff] %v7437_v43  ;;  %6419 = vmatmul.msk.f32.gmra.mxu0 %vm660_vm1, %v632_v33  ;;  %v7440_v26 = vpop.permute.xlu2 %2988  ;;  %v7442_v42 = vpop.permute.xlu0 %2928  ;;  %v2868_v33 = vld [vmem:[%s11740_s8 + $0x198] sm:$0xff] }
 0x150   : > { %11812 = vst [vmem:[#allocation62_spill] sm:$0xff] %v7440_v26  ;;  %v1171_v26 = vld [vmem:[%s6676_s17 + $0x148] sm:$0xff] }
 0x151   : > { %11813 = vst [vmem:[#allocation63_spill] sm:$0xff] %v7442_v42  ;;  %v7447_v14 = vpop.f32.mrf.mxu1  ;;  %v1173_v42 = vld [vmem:[%s6676_s17 + $0x158] sm:$0xff] }
 0x152   : > { %11814 = vst [vmem:[#allocation64_spill] sm:$0xff] %v7447_v14  ;;  %3229 = vmatmul.f32.gmra.mxu2 %v2577_v21  ;;  %v633_v14 = vld [vmem:[%s6691_s26 + $0x140] sm:$0xff]  ;;  %v7463_v16 = vpop.f32.mrf.mxu3 }
 0x153   : > { %v7453_v15 = vpop.f32.mrf.mxu0 }
 0x154   : > { %6485 = vmatmul.msk.f32.gmra.mxu1 %vm660_vm1, %v1170_v8 }
 0x155   : > { %3053 = vperm.xlu1 %6549, %v2851_v3   ;;  %v2867_v3 = vld [vmem:[%s11740_s8 + $0x190] sm:$0xff] }
 0x156   : > { %3138 = vperm.xlu2 %6550, %v2868_v33   ;;  %3143 = vperm.xlu0 %6548, %v2869_v10   ;;  %v7465_v21 = vpop.permute.xlu1 %2918  ;;  %v2850_v10 = vld [vmem:[%s11740_s8 + $0x108] sm:$0xff] }
 0x157   : > { %11815 = vst [vmem:[#allocation65_spill] sm:$0xff] %v7465_v21  ;;  %6420 = vmatmul.msk.f32.gmra.mxu0 %vm660_vm1, %v633_v14  ;;  %v7468_v50 = vpop.permute.xlu2 %2893  ;;  %v7470_v43 = vpop.permute.xlu0 %3008  ;;  %v2849_v14 = vld [vmem:[%s11740_s8 + $0x100] sm:$0xff] }
 0x158   : > { %11816 = vst [vmem:[#allocation66_spill] sm:$0xff] %v7470_v43 }
 0x159   : > { %v7475_v8 = vpop.f32.mrf.mxu1 }
 0x15a   : > { %11817 = vst [vmem:[#allocation67_spill] sm:$0xff] %v7475_v8  ;;  %3232 = vmatmul.f32.gmra.mxu2 %v2581_v51  ;;  %v634_v8 = vld [vmem:[%s6691_s26 + $0x148] sm:$0xff]  ;;  %v1057_v51 = vpop.f32.mrf.mxu3 }
 0x15b   : > { %v7481_v33 = vpop.f32.mrf.mxu0 }
 0x15c   : > { %6486 = vmatmul.msk.f32.gmra.mxu1 %vm660_vm1, %v1171_v26 }
 0x15d   : > { %3133 = vperm.xlu1 %6549, %v2867_v3   ;;  %v1172_v3 = vld [vmem:[%s6676_s17 + $0x150] sm:$0xff] }
 0x15e   : > { %3043 = vperm.xlu2 %6550, %v2849_v14   ;;  %3048 = vperm.xlu0 %6548, %v2850_v10   ;;  %v7491_v43 = vpop.permute.xlu1 %2998  ;;  %v2128_v10 = vld [vmem:[%s7505_s25 + $0x78] sm:$0xff] }
 0x15f   : > { %11818 = vst [vmem:[#allocation68_spill] sm:$0xff] %v7491_v43  ;;  %6421 = vmatmul.msk.f32.gmra.mxu0 %vm660_vm1, %v634_v8  ;;  %v7494_v48 = vpop.permute.xlu2 %2973  ;;  %v7496_v40 = vpop.permute.xlu0 %2913  ;;  %v2865_v8 = vld [vmem:[%s11740_s8 + $0x180] sm:$0xff]  ;;  %v2866_v43 = vld [vmem:[%s11740_s8 + $0x188] sm:$0xff] }
 0x160   : > { %11819 = vst [vmem:[#allocation69_spill] sm:$0xff] %v7494_v48  ;;  %v635_v48 = vld [vmem:[%s6691_s26 + $0x150] sm:$0xff] }
 0x161   : > { %11820 = vst [vmem:[#allocation70_spill] sm:$0xff] %v7496_v40  ;;  %v7507_v26 = vpop.f32.mrf.mxu1 }
 0x162   : > { %11821 = vst [vmem:[#allocation71_spill] sm:$0xff] %v7507_v26  ;;  %3235 = vmatmul.f32.gmra.mxu2 %v2585_v44  ;;  %v1060_v26 = vpop.f32.mrf.mxu3 }
 0x163   : > { %v7513_v14 = vpop.f32.mrf.mxu0 }
 0x164   : > { %6487 = vmatmul.msk.f32.gmra.mxu1 %vm660_vm1, %v1172_v3  ;;  %v2589_v3 = vld [vmem:[%s11739_s7 + $0xe0] sm:$0xff] }
 0x165   : > { %3123 = vperm.xlu1 %6549, %v2865_v8   ;;  %v2144_v8 = vld [vmem:[%s7505_s25 + $0xf8] sm:$0xff] }
 0x166   : > { %2254 = vperm.xlu2 %6550, %v2128_v10   ;;  %3128 = vperm.xlu0 %6548, %v2866_v43   ;;  %v7521_v44 = vpop.permute.xlu1 %2903  ;;  %v2126_v43 = vld [vmem:[%s7505_s25 + $0x68] sm:$0xff]  ;;  %v2127_v10 = vld [vmem:[%s7505_s25 + $0x70] sm:$0xff] }
 0x167   : > { %11822 = vst [vmem:[#allocation72_spill] sm:$0xff] %v7521_v44  ;;  %6422 = vmatmul.msk.f32.gmra.mxu0 %vm660_vm1, %v635_v48  ;;  %v7524_v27 = vpop.permute.xlu2 %2963  ;;  %v7526_v54 = vpop.permute.xlu0 %2993  ;;  %v636_v48 = vld [vmem:[%s6691_s26 + $0x158] sm:$0xff]  ;;  %v2142_v44 = vld [vmem:[%s7505_s25 + $0xe8] sm:$0xff] }
 0x168   : > { %11823 = vst [vmem:[#allocation73_spill] sm:$0xff] %v7524_v27 }
 0x169   : > { %11824 = vst [vmem:[#allocation74_spill] sm:$0xff] %v7526_v54  ;;  %v7531_v60 = vpop.f32.mrf.mxu1 }
 0x16a   : > { %11825 = vst [vmem:[#allocation75_spill] sm:$0xff] %v7531_v60  ;;  %3238 = vmatmul.f32.gmra.mxu2 %v2589_v3  ;;  %v1063_v27 = vpop.f32.mrf.mxu3 }
 0x16b   : > { %v7535_v57 = vpop.f32.mrf.mxu0  ;;  %v1064_v54 = vadd.f32 %v7160_v1, %v1063_v27 }
 0x16c   : > { %6488 = vmatmul.msk.f32.gmra.mxu1 %vm660_vm1, %v1173_v42  ;;  %v2593_v42 = vld [vmem:[%s11739_s7 + $0x100] sm:$0xff] }
 0x16d   : > { %2334 = vperm.xlu1 %6549, %v2144_v8   ;;  %v1061_v8 = vadd.f32 %v7160_v1, %v1060_v26  ;;  %v1129_v27 = vmax.f32 %v1064_v54, 0.0  ;;  %v1055_v54 = vadd.f32 %v7160_v1, %v7463_v16 }
 0x16e   : > { %2244 = vperm.xlu2 %6550, %v2126_v43   ;;  %2249 = vperm.xlu0 %6548, %v2127_v10   ;;  %v7542_v60 = vpop.permute.xlu1 %2983  ;;  %v1174_v43 = vld [vmem:[%s6676_s17 + $0x160] sm:$0xff]  ;;  %v1058_v10 = vadd.f32 %v7160_v1, %v1057_v51 }
 0x16f   : > { %11826 = vst [vmem:[#allocation76_spill] sm:$0xff] %v7542_v60  ;;  %6423 = vmatmul.msk.f32.gmra.mxu0 %vm660_vm1, %v636_v48  ;;  %v7545_v3 = vpop.permute.xlu2 %3198  ;;  %v7547_v21 = vpop.permute.xlu0 %2898  ;;  %v1128_v60 = vmax.f32 %v1061_v8, 0.0  ;;  %v2112_v48 = vmul.f32 %v6886_v5, %v1129_v27  ;;  %v637_v51 = vld [vmem:[%s6691_s26 + $0x160] sm:$0xff]  ;;  %v1046_v5 = vadd.f32 %v7160_v1, %v7377_v62  ;;  %v1126_v8 = vmax.f32 %v1055_v54, 0.0  ;;  %v1175_v27 = vld [vmem:[%s6676_s17 + $0x168] sm:$0xff] }
 0x170   : > { %11827 = vst [vmem:[#allocation77_spill] sm:$0xff] %v7545_v3  ;;  %v2125_v3 = vld [vmem:[%s7505_s25 + $0x60] sm:$0xff]  ;;  %v1127_v26 = vmax.f32 %v1058_v10, 0.0 }
 0x171   : > { %11828 = vst [vmem:[#allocation78_spill] sm:$0xff] %v7547_v21  ;;  %v7553_v40 = vpop.f32.mrf.mxu1  ;;  %v1049_v21 = vadd.f32 %v7160_v1, %v7407_v55  ;;  %3828 = vmatpush.msrb.mxu1 %v2112_v48  ;;  %v2597_v62 = vld [vmem:[%s11739_s7 + $0x120] sm:$0xff]  ;;  %v1123_v10 = vmax.f32 %v1046_v5, 0.0 }
 0x172   : > { %11829 = vst [vmem:[#allocation79_spill] sm:$0xff] %v7553_v40  ;;  %3241 = vmatmul.f32.gmra.mxu2 %v2593_v42  ;;  %v2111_v40 = vmul.f32 %v6903_v17, %v1128_v60  ;;  %v1052_v42 = vadd.f32 %v7160_v1, %v7435_v11  ;;  %v2110_v55 = vmul.f32 %v6869_v58, %v1127_v26  ;;  %v2123_v26 = vld [vmem:[%s7505_s25 + $0x50] sm:$0xff] }
 0x173   : > { %v7559_v31 = vpop.f32.mrf.mxu0  ;;  %v1043_v11 = vadd.f32 %v7160_v1, %v7347_v35  ;;  %v2109_v58 = vmul.f32 %v6978_v25, %v1126_v8  ;;  %v2124_v25 = vld [vmem:[%s7505_s25 + $0x58] sm:$0xff] }
 0x174   : > { %6489 = vmatmul.msk.f32.gmra.mxu1 %vm660_vm1, %v1174_v43  ;;  %v1125_v60 = vmax.f32 %v1052_v42, 0.0  ;;  %v1036_v43 = vpop.f32.mrf.mxu2  ;;  %v638_v42 = vld [vmem:[%s6691_s26 + $0x168] sm:$0xff] }
 0x175   : > { %2239 = vperm.xlu1 %6549, %v2125_v3   ;;  %3829 = vmatpush.msrb.mxu1 %v2111_v40  ;;  %v1124_v40 = vmax.f32 %v1049_v21, 0.0  ;;  %v2141_v21 = vld [vmem:[%s7505_s25 + $0xe0] sm:$0xff]  ;;  %v1122_v54 = vmax.f32 %v1043_v11, 0.0 }
 0x176   : > { %2324 = vperm.xlu2 %6550, %v2142_v44   ;;  %2329 = vperm.xlu0 %6548, %v2143_v2   ;;  %v7575_v16 = vpop.permute.xlu1 %2888  ;;  %v1040_v44 = vadd.f32 %v7160_v1, %v7315_v52  ;;  %v2108_v35 = vmul.f32 %v7001_v59, %v1125_v60  ;;  %v2106_v59 = vmul.f32 %v7082_v45, %v1123_v10  ;;  %v1176_v60 = vld [vmem:[%s6676_s17 + $0x170] sm:$0xff]  ;;  %v2140_v10 = vld [vmem:[%s7505_s25 + $0xd8] sm:$0xff] }
 0x177   : > { %6424 = vmatmul.msk.f32.gmra.mxu0 %vm660_vm1, %v637_v51  ;;  %v7578_v17 = vpop.permute.xlu0 %2978  ;;  %3830 = vmatpush.msrb.mxu1 %v2110_v55  ;;  %v1037_v51 = vadd.f32 %v7160_v1, %v1036_v43  ;;  %v2107_v52 = vmul.f32 %v6955_v63, %v1124_v40  ;;  %v2601_v63 = vld [vmem:[%s11739_s7 + $0x140] sm:$0xff]  ;;  %v2105_v45 = vmul.f32 %v7105_v49, %v1122_v54  ;;  %v2122_v43 = vld [vmem:[%s7505_s25 + $0x48] sm:$0xff]  ;;  %v639_v49 = vld [vmem:[%s6691_s26 + $0x170] sm:$0xff] }
 0x178   : > { %11830 = vst [vmem:[#allocation80_spill] sm:$0xff] %v7578_v17  ;;  %v7586_v2 = vpop.permute.xlu2 %3103  ;;  %v1121_v8 = vmax.f32 %v1040_v44, 0.0  ;;  %v2160_v44 = vld [vmem:[%s7505_s25 + $0x178] sm:$0xff]  ;;  %v2605_v54 = vld [vmem:[%s11739_s7 + $0x160] sm:$0xff] }
 0x179   : > { %11831 = vst [vmem:[#allocation81_spill] sm:$0xff] %v7586_v2  ;;  %v7590_v3 = vpop.f32.mrf.mxu1  ;;  %3831 = vmatpush.msrb.mxu1 %v2109_v58 }
 0x17a   : > { %11832 = vst [vmem:[#allocation82_spill] sm:$0xff] %v7590_v3  ;;  %3244 = vmatmul.f32.gmra.mxu2 %v2597_v62  ;;  %v1120_v62 = vmax.f32 %v1037_v51, 0.0  ;;  %v2104_v58 = vmul.f32 %v7057_v9, %v1121_v8  ;;  %v1177_v51 = vld [vmem:[%s6676_s17 + $0x178] sm:$0xff]  ;;  %v641_v3 = vld [vmem:[%s6691_s26 + $0x180] sm:$0xff] }
 0x17b   : > { %v961_v48 = vpop.f32.mrf.mxu0  ;;  %3832 = vmatpush.msrb.mxu1 %v2108_v35 }
 0x17c   : > { %6490 = vmatmul.msk.f32.gmra.mxu1 %vm660_vm1, %v1175_v27  ;;  %v7620_v35 = vpop.f32.mrf.mxu2 }
 0x17d   : > { %2319 = vperm.xlu1 %6549, %v2141_v21   ;;  %3833 = vmatpush.msrb.mxu1 %v2107_v52  ;;  %11836 = vst [vmem:[#allocation86_spill] sm:$0xff] %v7620_v35  ;;  %v2103_v21 = vmul.f32 %v7188_v20, %v1120_v62 }
 0x17e   : > { %2229 = vperm.xlu2 %6550, %v2123_v26   ;;  %2234 = vperm.xlu0 %6548, %v2124_v25   ;;  %v7602_v5 = vpop.permute.xlu1 %2968 }
 0x17f   : > { %11833 = vst [vmem:[#allocation83_spill] sm:$0xff] %v7602_v5  ;;  %6425 = vmatmul.msk.f32.gmra.mxu0 %vm660_vm1, %v638_v42  ;;  %v7605_v55 = vpop.permute.xlu0 %2883  ;;  %3834 = vmatpush.msrb.mxu1 %v2106_v59  ;;  %v2159_v42 = vld [vmem:[%s7505_s25 + $0x170] sm:$0xff]  ;;  %v2176_v59 = vld [vmem:[%s7505_s25 + $0x1f8] sm:$0xff] }
 0x180   : > { %v7611_v11 = vpop.permute.xlu2 %3183 }
 0x181   : > { %11834 = vst [vmem:[#allocation84_spill] sm:$0xff] %v7611_v11  ;;  %v7613_v40 = vpop.f32.mrf.mxu1  ;;  %3835 = vmatpush.msrb.mxu1 %v2105_v45  ;;  %v640_v45 = vld [vmem:[%s6691_s26 + $0x178] sm:$0xff] }
 0x182   : > { %11835 = vst [vmem:[#allocation85_spill] sm:$0xff] %v7613_v40  ;;  %3247 = vmatmul.f32.gmra.mxu2 %v2601_v63  ;;  %v2139_v63 = vld [vmem:[%s7505_s25 + $0xd0] sm:$0xff] }
 0x183   : > { %v964_v27 = vpop.f32.mrf.mxu0  ;;  %3836 = vmatpush.msrb.mxu1 %v2104_v58 }
 0x184   : > { %6491 = vmatmul.msk.f32.gmra.mxu1 %vm660_vm1, %v1176_v60  ;;  %v965_v52 = vadd.f32 %v7160_v1, %v964_v27  ;;  %v962_v60 = vadd.f32 %v7160_v1, %v961_v48  ;;  %v7646_v58 = vpop.f32.mrf.mxu2  ;;  %v959_v27 = vadd.f32 %v7160_v1, %v7559_v31  ;;  %v2609_v48 = vld [vmem:[%s11739_s7 + $0x180] sm:$0xff]  ;;  %v956_v31 = vadd.f32 %v7160_v1, %v7535_v57 }
 0x185   : > { %2414 = vperm.xlu1 %6549, %v2160_v44   ;;  %3837 = vmatpush.msrb.mxu1 %v2103_v21  ;;  %v950_v57 = vadd.f32 %v7160_v1, %v7481_v33  ;;  %v2613_v33 = vld [vmem:[%s11739_s7 + $0x1a0] sm:$0xff] }
 0x186   : > { %2224 = vperm.xlu2 %6550, %v2122_v43   ;;  %2314 = vperm.xlu0 %6548, %v2140_v10   ;;  %v1096_v44 = vmax.f32 %v965_v52, 0.0 }
 0x187   : > { %6426 = vmatmul.msk.f32.gmra.mxu0 %vm660_vm1, %v639_v49  ;;  %v7626_v9 = vpop.permute.xlu1 %3113 }
 0x188   : > { %11837 = vst [vmem:[#allocation87_spill] sm:$0xff] %v7626_v9  ;;  %v7631_v20 = vpop.permute.xlu2 %3088  ;;  %v7633_v26 = vpop.permute.xlu0 %3118 }
 0x189   : > { %11838 = vst [vmem:[#allocation88_spill] sm:$0xff] %v7631_v20  ;;  %v7635_v25 = vpop.f32.mrf.mxu1 }
 0x18a   : > { %11839 = vst [vmem:[#allocation89_spill] sm:$0xff] %v7633_v26  ;;  %3250 = vmatmul.f32.gmra.mxu2 %v2605_v54 }
 0x18b   : > { %11840 = vst [vmem:[#allocation90_spill] sm:$0xff] %v7635_v25  ;;  %v967_v8 = vpop.f32.mrf.mxu0 }
 0x18c   : > { %v968_v62 = vadd.f32 %v7160_v1, %v967_v8  ;;  %6492 = vmatmul.msk.f32.gmra.mxu1 %vm660_vm1, %v1177_v51  ;;  %v1095_v51 = vmax.f32 %v962_v60, 0.0  ;;  %v2079_v8 = vmul.f32 %v6774_v0, %v1096_v44  ;;  %v1093_v60 = vmax.f32 %v956_v31, 0.0 }
 0x18d   : > { %2409 = vperm.xlu1 %6549, %v2159_v42   ;;  %v1178_v42 = vld [vmem:[%s6676_s17 + $0x180] sm:$0xff]  ;;  %v1091_v31 = vmax.f32 %v950_v57, 0.0 }
 0x18e   : > { %v1097_v43 = vmax.f32 %v968_v62, 0.0  ;;  %2494 = vperm.xlu2 %6550, %v2176_v59   ;;  %2309 = vperm.xlu0 %6548, %v2139_v63   ;;  %v2138_v59 = vld [vmem:[%s7505_s25 + $0xc8] sm:$0xff]  ;;  %v1094_v63 = vmax.f32 %v959_v27, 0.0  ;;  %v2078_v0 = vmul.f32 %v6833_v37, %v1095_v51  ;;  %v7688_v37 = vpop.f32.mrf.mxu2 }
 0x18f   : > { %6427 = vmatmul.msk.f32.gmra.mxu0 %vm660_vm1, %v640_v45  ;;  %v7651_v10 = vpop.permute.xlu1 %3193  ;;  %v2158_v45 = vld [vmem:[%s7505_s25 + $0x168] sm:$0xff] }
 0x190   : > { %11841 = vst [vmem:[#allocation91_spill] sm:$0xff] %v7651_v10  ;;  %v2080_v21 = vmul.f32 %v6801_v18, %v1097_v43  ;;  %v7657_v49 = vpop.permute.xlu2 %3168  ;;  %v7659_v54 = vpop.permute.xlu0 %3108  ;;  %v953_v18 = vadd.f32 %v7160_v1, %v7513_v14  ;;  %v2121_v43 = vld [vmem:[%s7505_s25 + $0x40] sm:$0xff]  ;;  %v947_v14 = vadd.f32 %v7160_v1, %v7453_v15 }
 0x191   : > { %11842 = vst [vmem:[#allocation92_spill] sm:$0xff] %v7657_v49  ;;  %v7663_v52 = vpop.f32.mrf.mxu1 }
 0x192   : > { %11843 = vst [vmem:[#allocation93_spill] sm:$0xff] %v7659_v54  ;;  %3253 = vmatmul.f32.gmra.mxu2 %v2609_v48  ;;  %3410 = vmatpush.msra.mxu3 %v2080_v21  ;;  %v1092_v44 = vmax.f32 %v953_v18, 0.0  ;;  %v2077_v48 = vmul.f32 %v6792_v12, %v1094_v63  ;;  %v2076_v12 = vmul.f32 %v6848_v46, %v1093_v60  ;;  %v1090_v18 = vmax.f32 %v947_v14, 0.0 }
 0x193   : > { %11844 = vst [vmem:[#allocation94_spill] sm:$0xff] %v7663_v52  ;;  %v7670_v62 = vpop.f32.mrf.mxu0  ;;  %v938_v46 = vadd.f32 %v7160_v1, %v7367_v19  ;;  %v2074_v60 = vmul.f32 %v6835_v38, %v1091_v31 }
 0x194   : > { %3411 = vmatpush.msra.mxu3 %v2079_v8  ;;  %6493 = vmatmul.msk.f32.gmra.mxu1 %vm660_vm1, %v1178_v42  ;;  %v1179_v42 = vld [vmem:[%s6676_s17 + $0x188] sm:$0xff]  ;;  %v2120_v8 = vld [vmem:[%s7505_s25 + $0x38] sm:$0xff]  ;;  %v2075_v63 = vmul.f32 %v6865_v56, %v1092_v44  ;;  %v935_v56 = vadd.f32 %v7160_v1, %v7337_v13  ;;  %v2073_v19 = vmul.f32 %v6928_v41, %v1090_v18  ;;  %v2617_v44 = vld [vmem:[%s11739_s7 + $0x1c0] sm:$0xff] }
 0x195   : > { %2304 = vperm.xlu1 %6549, %v2138_v59   ;;  %v941_v59 = vadd.f32 %v7160_v1, %v7397_v32  ;;  %v932_v13 = vadd.f32 %v7160_v1, %v7305_v34  ;;  %v2119_v34 = vld [vmem:[%s7505_s25 + $0x30] sm:$0xff] }
 0x196   : > { %2404 = vperm.xlu2 %6550, %v2158_v45   ;;  %2219 = vperm.xlu0 %6548, %v2121_v43   ;;  %v2137_v45 = vld [vmem:[%s7505_s25 + $0xc0] sm:$0xff]  ;;  %v2175_v43 = vld [vmem:[%s7505_s25 + $0x1f0] sm:$0xff]  ;;  %v7731_v41 = vpop.f32.mrf.mxu2 }
 0x197   : > { %6428 = vmatmul.msk.f32.gmra.mxu0 %vm660_vm1, %v641_v3  ;;  %3412 = vmatpush.msra.mxu3 %v2078_v0  ;;  %v7682_v27 = vpop.permute.xlu1 %3098  ;;  %v944_v3 = vadd.f32 %v7160_v1, %v7425_v24  ;;  %v642_v24 = vld [vmem:[%s6691_s26 + $0x188] sm:$0xff]  ;;  %v1088_v32 = vmax.f32 %v941_v59, 0.0  ;;  %v1086_v59 = vmax.f32 %v935_v56, 0.0 }
 0x198   : > { %11845 = vst [vmem:[#allocation95_spill] sm:$0xff] %v7682_v27  ;;  %v7690_v21 = vpop.permute.xlu2 %3073  ;;  %v7692_v15 = vpop.permute.xlu0 %3188  ;;  %v11855_v56 = vld [vmem:[#allocation24_spill] sm:$0xff] }
 0x199   : > { %11846 = vst [vmem:[#allocation96_spill] sm:$0xff] %v7690_v21  ;;  %3413 = vmatpush.msra.mxu3 %v2077_v48  ;;  %v7697_v51 = vpop.f32.mrf.mxu1  ;;  %v1089_v57 = vmax.f32 %v944_v3, 0.0  ;;  %v2071_v18 = vmul.f32 %v6907_v22, %v1088_v32  ;;  %v923_v22 = vadd.f32 %v7160_v1, %v7205_v29  ;;  %v2621_v32 = vld [vmem:[%s11739_s7 + $0x1e0] sm:$0xff] }
 0x19a   : > { %11847 = vst [vmem:[#allocation97_spill] sm:$0xff] %v7692_v15  ;;  %3256 = vmatmul.f32.gmra.mxu2 %v2613_v33  ;;  %v1087_v33 = vmax.f32 %v938_v46, 0.0  ;;  %v11853_v46 = vld [vmem:[#allocation22_spill] sm:$0xff]  ;;  %v11858_v29 = vld [vmem:[#allocation19_spill] sm:$0xff] }
 0x19b   : > { %11848 = vst [vmem:[#allocation98_spill] sm:$0xff] %v7697_v51  ;;  %3414 = vmatpush.msra.mxu3 %v2076_v12  ;;  %v2072_v3 = vmul.f32 %v6951_v61, %v1089_v57  ;;  %v1180_v12 = vld [vmem:[%s6676_s17 + $0x190] sm:$0xff]  ;;  %v926_v61 = vadd.f32 %v7160_v1, %v7236_v6  ;;  %v2069_v6 = vmul.f32 %v11855_v56, %v1086_v59  ;;  %v2562_v56 = vld [vmem:[%s11739_s7 + $0x8] sm:$0xff] }
 0x19c   : > { %v7706_v0 = vpop.f32.mrf.mxu0  ;;  %6494 = vmatmul.msk.f32.gmra.mxu1 %vm660_vm1, %v1179_v42  ;;  %v2174_v42 = vld [vmem:[%s7505_s25 + $0x1e8] sm:$0xff]  ;;  %v2070_v57 = vmul.f32 %v11853_v46, %v1087_v33  ;;  %v644_v46 = vld [vmem:[%s6691_s26 + $0x198] sm:$0xff] }
 0x19d   : > { %3415 = vmatpush.msra.mxu3 %v2075_v63  ;;  %2214 = vperm.xlu1 %6549, %v2120_v8   ;;  %v929_v8 = vadd.f32 %v7160_v1, %v7270_v4  ;;  %v2157_v63 = vld [vmem:[%s7505_s25 + $0x160] sm:$0xff]  ;;  %v1083_v1 = vmax.f32 %v926_v61, 0.0  ;;  %v11860_v59 = vld [vmem:[#allocation32_spill] sm:$0xff] }
 0x19e   : > { %2299 = vperm.xlu2 %6550, %v2137_v45   ;;  %2489 = vperm.xlu0 %6548, %v2175_v43   ;;  %v643_v43 = vld [vmem:[%s6691_s26 + $0x190] sm:$0xff]  ;;  %v11861_v61 = vld [vmem:[#allocation35_spill] sm:$0xff] }
 0x19f   : > { %6429 = vmatmul.msk.f32.gmra.mxu0 %vm660_vm1, %v642_v24  ;;  %3416 = vmatpush.msra.mxu3 %v2074_v60  ;;  %v7716_v14 = vpop.permute.xlu1 %3178  ;;  %v1085_v24 = vmax.f32 %v932_v13, 0.0  ;;  %v1084_v4 = vmax.f32 %v929_v8, 0.0  ;;  %v7765_v8 = vpop.f32.mrf.mxu2 }
 0x1a0   : > { %11849 = vst [vmem:[#allocation99_spill] sm:$0xff] %v7716_v14  ;;  %v7722_v38 = vpop.permute.xlu2 %3153  ;;  %v7724_v48 = vpop.permute.xlu0 %3093 }
 0x1a1   : > { %11850 = vst [vmem:[#allocation100_spill] sm:$0xff] %v7722_v38  ;;  %3417 = vmatpush.msra.mxu3 %v2073_v19  ;;  %v7729_v31 = vpop.f32.mrf.mxu1  ;;  %v2068_v13 = vmul.f32 %v11858_v29, %v1085_v24  ;;  %v2066_v24 = vmul.f32 %v11861_v61, %v1083_v1  ;;  %v1182_v29 = vld [vmem:[%s6676_s17 + $0x1a0] sm:$0xff] }
 0x1a2   : > { %11851 = vst [vmem:[#allocation101_spill] sm:$0xff] %v7724_v48  ;;  %3259 = vmatmul.f32.gmra.mxu2 %v2617_v44 }
 0x1a3   : > { %11852 = vst [vmem:[#allocation102_spill] sm:$0xff] %v7729_v31  ;;  %3418 = vmatpush.msra.mxu3 %v2072_v3  ;;  %v1181_v3 = vld [vmem:[%s6676_s17 + $0x198] sm:$0xff] }
 0x1a4   : > { %v7740_v45 = vpop.f32.mrf.mxu0  ;;  %6495 = vmatmul.msk.f32.gmra.mxu1 %vm660_vm1, %v1180_v12  ;;  %v2156_v12 = vld [vmem:[%s7505_s25 + $0x158] sm:$0xff] }
 0x1a5   : > { %3419 = vmatpush.msra.mxu3 %v2071_v18  ;;  %2484 = vperm.xlu1 %6549, %v2174_v42   ;;  %v1082_v42 = vmax.f32 %v923_v22, 0.0  ;;  %v2067_v18 = vmul.f32 %v11860_v59, %v1084_v4  ;;  %v2625_v4 = vld [vmem:[%s11739_s7 + $0x200] sm:$0xff] }
 0x1a6   : > { %2209 = vperm.xlu2 %6550, %v2119_v34   ;;  %2399 = vperm.xlu0 %6548, %v2157_v63   ;;  %v2173_v34 = vld [vmem:[%s7505_s25 + $0x1e0] sm:$0xff]  ;;  %v2136_v63 = vld [vmem:[%s7505_s25 + $0xb8] sm:$0xff] }
 0x1a7   : > { %6430 = vmatmul.msk.f32.gmra.mxu0 %vm660_vm1, %v643_v43  ;;  %3420 = vmatpush.msra.mxu3 %v2070_v57  ;;  %v7750_v60 = vpop.permute.xlu1 %3083  ;;  %v2065_v22 = vmul.f32 %v7182_v39, %v1082_v42  ;;  %v2155_v39 = vld [vmem:[%s7505_s25 + $0x150] sm:$0xff]  ;;  %v645_v42 = vld [vmem:[%s6691_s26 + $0x1a0] sm:$0xff] }
 0x1a8   : > { %11854 = vst [vmem:[#allocation22_spill] sm:$0xff] %v7750_v60  ;;  %v7756_v19 = vpop.permute.xlu2 %3058  ;;  %v7758_v44 = vpop.permute.xlu0 %3173 }
 0x1a9   : > { %11856 = vst [vmem:[#allocation24_spill] sm:$0xff] %v7756_v19  ;;  %3421 = vmatpush.msra.mxu3 %v2069_v6  ;;  %v7761_v33 = vpop.f32.mrf.mxu1 }
 0x1aa   : > { %11857 = vst [vmem:[#allocation103_spill] sm:$0xff] %v7758_v44  ;;  %3262 = vmatmul.f32.gmra.mxu2 %v2621_v32 }
 0x1ab   : > { %11859 = vst [vmem:[#allocation19_spill] sm:$0xff] %v7761_v33  ;;  %3422 = vmatpush.msra.mxu3 %v2068_v13  ;;  %v2135_v13 = vld [vmem:[%s7505_s25 + $0xb0] sm:$0xff] }
 0x1ac   : > { %v7770_v43 = vpop.f32.mrf.mxu0  ;;  %6496 = vmatmul.msk.f32.gmra.mxu1 %vm660_vm1, %v1181_v3  ;;  %v2118_v3 = vld [vmem:[%s7505_s25 + $0x28] sm:$0xff] }
 0x1ad   : > { %3423 = vmatpush.msra.mxu3 %v2067_v18  ;;  %2394 = vperm.xlu1 %6549, %v2156_v12  }
 0x1ae   : > { %2479 = vperm.xlu2 %6550, %v2173_v34   ;;  %2294 = vperm.xlu0 %6548, %v2136_v63   ;;  %v2629_v34 = vld [vmem:[%s11739_s7 + $0x220] sm:$0xff]  ;;  %v2566_v63 = vld [vmem:[%s11739_s7 + $0x28] sm:$0xff] }
 0x1af   : > { %6431 = vmatmul.msk.f32.gmra.mxu0 %vm660_vm1, %v644_v46  ;;  %3424 = vmatpush.msra.mxu3 %v2066_v24  ;;  %v7776_v57 = vpop.permute.xlu1 %3163 }
 0x1b0   : > { %11862 = vst [vmem:[#allocation32_spill] sm:$0xff] %v7776_v57  ;;  %v7785_v6 = vpop.permute.xlu2 %3138  ;;  %v7787_v32 = vpop.permute.xlu0 %3078 }
 0x1b1   : > { %11863 = vst [vmem:[#allocation35_spill] sm:$0xff] %v7785_v6  ;;  %3425 = vmatpush.msra.mxu3 %v2065_v22  ;;  %v7789_v1 = vpop.f32.mrf.mxu1  ;;  %v1183_v22 = vld [vmem:[%s6676_s17 + $0x1a8] sm:$0xff] }
 0x1b2   : > { %11864 = vst [vmem:[#allocation104_spill] sm:$0xff] %v7787_v32  ;;  %3265 = vmatmul.f32.gmra.mxu2 %v2625_v4  ;;  %3426 = vmatmul.f32.vlgmr.msra.gmra.mxu3 %v2562_v56  ;;  %v2117_v4 = vld [vmem:[%s7505_s25 + $0x20] sm:$0xff]  ;;  %v2134_v56 = vld [vmem:[%s7505_s25 + $0xa8] sm:$0xff] }
 0x1b3   : > { %11865 = vst [vmem:[#allocation105_spill] sm:$0xff] %v7789_v1 }
 0x1b4   : > { %v7795_v12 = vpop.f32.mrf.mxu0  ;;  %6497 = vmatmul.msk.f32.gmra.mxu1 %vm660_vm1, %v1182_v29  ;;  %v2172_v29 = vld [vmem:[%s7505_s25 + $0x1d8] sm:$0xff] }
 0x1b5   : > { %v7799_v59 = vpop.f32.mrf.mxu2  ;;  %2289 = vperm.xlu1 %6549, %v2135_v13  }
 0x1b6   : > { %2389 = vperm.xlu2 %6550, %v2155_v39   ;;  %2204 = vperm.xlu0 %6548, %v2118_v3   ;;  %v646_v39 = vld [vmem:[%s6691_s26 + $0x1a8] sm:$0xff] }
 0x1b7   : > { %6432 = vmatmul.msk.f32.gmra.mxu0 %vm660_vm1, %v645_v42  ;;  %v7802_v18 = vpop.permute.xlu1 %3068 }
 0x1b8   : > { %11866 = vst [vmem:[#allocation106_spill] sm:$0xff] %v7802_v18  ;;  %v7810_v46 = vpop.permute.xlu2 %3043  ;;  %v7812_v61 = vpop.permute.xlu0 %3158 }
 0x1b9   : > { %11867 = vst [vmem:[#allocation107_spill] sm:$0xff] %v7810_v46  ;;  %v7814_v24 = vpop.f32.mrf.mxu1 }
 0x1ba   : > { %11868 = vst [vmem:[#allocation108_spill] sm:$0xff] %v7812_v61  ;;  %3268 = vmatmul.f32.gmra.mxu2 %v2629_v34  ;;  %3429 = vmatmul.f32.gmra.mxu3 %v2566_v63  ;;  %v2633_v34 = vld [vmem:[%s11739_s7 + $0x240] sm:$0xff]  ;;  %v2570_v63 = vld [vmem:[%s11739_s7 + $0x48] sm:$0xff] }
 0x1bb   : > { %11869 = vst [vmem:[#allocation109_spill] sm:$0xff] %v7814_v24 }
 0x1bc   : > { %v7820_v13 = vpop.f32.mrf.mxu0  ;;  %6498 = vmatmul.msk.f32.gmra.mxu1 %vm660_vm1, %v1183_v22 }
 0x1bd   : > { %v7824_v3 = vpop.f32.mrf.mxu2  ;;  %2199 = vperm.xlu1 %6549, %v2117_v4   ;;  %v1184_v4 = vld [vmem:[%s6676_s17 + $0x1b0] sm:$0xff]  ;;  %s591_s17 = scalar_lea.vmem %s11748_s16, %s6378_s22 }
 0x1be   : > { %2284 = vperm.xlu2 %6550, %v2134_v56   ;;  %2474 = vperm.xlu0 %6548, %v2172_v29   ;;  %v2171_v56 = vld [vmem:[%s7505_s25 + $0x1d0] sm:$0xff]  ;;  %v2116_v29 = vld [vmem:[%s7505_s25 + $0x18] sm:$0xff] }
 0x1bf   : > { %6433 = vmatmul.msk.f32.gmra.mxu0 %vm660_vm1, %v646_v39  ;;  %v7827_v42 = vpop.permute.xlu1 %3148  ;;  %v2154_v39 = vld [vmem:[%s7505_s25 + $0x148] sm:$0xff] }
 0x1c0   : > { %11870 = vst [vmem:[#allocation110_spill] sm:$0xff] %v7827_v42  ;;  %v7835_v22 = vpop.permute.xlu2 %2254  ;;  %v7837_v40 = vpop.permute.xlu0 %3063 }
 0x1c1   : > { %11871 = vst [vmem:[#allocation111_spill] sm:$0xff] %v7835_v22  ;;  %v7839_v25 = vpop.f32.mrf.mxu1 }
 0x1c2   : > { %11872 = vst [vmem:[#allocation112_spill] sm:$0xff] %v7837_v40  ;;  %3271 = vmatmul.f32.gmra.mxu2 %v2633_v34  ;;  %3432 = vmatmul.f32.gmra.mxu3 %v2570_v63  ;;  %v2637_v34 = vld [vmem:[%s11739_s7 + $0x260] sm:$0xff]  ;;  %v2574_v63 = vld [vmem:[%s11739_s7 + $0x68] sm:$0xff] }
 0x1c4   : > { %v7845_v6 = vpop.f32.mrf.mxu0  ;;  %6499 = vmatmul.msk.f32.gmra.mxu1 %vm660_vm1, %v1184_v4 }
 0x1c5   : > { %v7848_v42 = vpop.f32.mrf.mxu2  ;;  %2469 = vperm.xlu1 %6549, %v2171_v56   ;;  %v2153_v56 = vld [vmem:[%s7505_s25 + $0x140] sm:$0xff] }
 0x1c6   : > { %2194 = vperm.xlu2 %6550, %v2116_v29   ;;  %2384 = vperm.xlu0 %6548, %v2154_v39   ;;  %v2170_v29 = vld [vmem:[%s7505_s25 + $0x1c8] sm:$0xff]  ;;  %v2133_v39 = vld [vmem:[%s7505_s25 + $0xa0] sm:$0xff] }
 0x1c7   : > { %v7850_v38 = vpop.permute.xlu1 %3053 }
 0x1c8   : > { %11873 = vst [vmem:[#allocation113_spill] sm:$0xff] %v7850_v38  ;;  %v7858_v61 = vpop.permute.xlu2 %2244  ;;  %v7860_v57 = vpop.permute.xlu0 %3143 }
 0x1c9   : > { %11874 = vst [vmem:[#allocation114_spill] sm:$0xff] %v7858_v61  ;;  %v7862_v4 = vpop.f32.mrf.mxu1 }
 0x1ca   : > { %11875 = vst [vmem:[#allocation115_spill] sm:$0xff] %v7860_v57  ;;  %3274 = vmatmul.f32.gmra.mxu2 %v2637_v34  ;;  %3435 = vmatmul.f32.gmra.mxu3 %v2574_v63  ;;  %v2641_v34 = vld [vmem:[%s11739_s7 + $0x280] sm:$0xff]  ;;  %v2578_v63 = vld [vmem:[%s11739_s7 + $0x88] sm:$0xff] }
 0x1cc   : > { %v7867_v49 = vpop.f32.mrf.mxu0 }
 0x1cd   : > { %v7869_v44 = vpop.f32.mrf.mxu2  ;;  %2379 = vperm.xlu1 %6549, %v2153_v56   ;;  %v2132_v56 = vld [vmem:[%s7505_s25 + $0x98] sm:$0xff] }
 0x1ce   : > { %2464 = vperm.xlu2 %6550, %v2170_v29   ;;  %2279 = vperm.xlu0 %6548, %v2133_v39   ;;  %v2152_v29 = vld [vmem:[%s7505_s25 + $0x138] sm:$0xff]  ;;  %v2115_v39 = vld [vmem:[%s7505_s25 + $0x10] sm:$0xff] }
 0x1cf   : > { %v7871_v14 = vpop.permute.xlu1 %3133 }
 0x1d0   : > { %11876 = vst [vmem:[#allocation116_spill] sm:$0xff] %v7871_v14  ;;  %v7879_v57 = vpop.permute.xlu2 %2324  ;;  %v7881_v11 = vpop.permute.xlu0 %3048 }
 0x1d1   : > { %11877 = vst [vmem:[#allocation117_spill] sm:$0xff] %v7879_v57  ;;  %v7883_v15 = vpop.f32.mrf.mxu1 }
 0x1d2   : > { %11878 = vst [vmem:[#allocation118_spill] sm:$0xff] %v7881_v11  ;;  %3277 = vmatmul.f32.gmra.mxu2 %v2641_v34  ;;  %3438 = vmatmul.f32.gmra.mxu3 %v2578_v63  ;;  %v2645_v34 = vld [vmem:[%s11739_s7 + $0x2a0] sm:$0xff]  ;;  %v2582_v63 = vld [vmem:[%s11739_s7 + $0xa8] sm:$0xff] }
 0x1d4   : > { %v7888_v14 = vpop.f32.mrf.mxu0 }
 0x1d5   : > { %v7890_v10 = vpop.f32.mrf.mxu2  ;;  %2274 = vperm.xlu1 %6549, %v2132_v56   ;;  %v2114_v56 = vld [vmem:[%s7505_s25 + $0x8] sm:$0xff] }
 0x1d6   : > { %11879 = vst [vmem:[#allocation119_spill] sm:$0xff] %v7890_v10  ;;  %2374 = vperm.xlu2 %6550, %v2152_v29   ;;  %2189 = vperm.xlu0 %6548, %v2115_v39   ;;  %v2131_v29 = vld [vmem:[%s7505_s25 + $0x90] sm:$0xff]  ;;  %v2169_v39 = vld [vmem:[%s7505_s25 + $0x1c0] sm:$0xff] }
 0x1d7   : > { %v7892_v57 = vpop.permute.xlu1 %3123 }
 0x1d8   : > { %11880 = vst [vmem:[#allocation120_spill] sm:$0xff] %v7892_v57  ;;  %v7900_v61 = vpop.permute.xlu2 %2229  ;;  %v7902_v22 = vpop.permute.xlu0 %3128 }
 0x1d9   : > { %11881 = vst [vmem:[#allocation121_spill] sm:$0xff] %v7900_v61  ;;  %v7904_v60 = vpop.f32.mrf.mxu1 }
 0x1da   : > { %11882 = vst [vmem:[#allocation122_spill] sm:$0xff] %v7902_v22  ;;  %3280 = vmatmul.f32.gmra.mxu2 %v2645_v34  ;;  %3441 = vmatmul.f32.gmra.mxu3 %v2582_v63  ;;  %v2649_v34 = vld [vmem:[%s11739_s7 + $0x2c0] sm:$0xff]  ;;  %v2586_v63 = vld [vmem:[%s11739_s7 + $0xc8] sm:$0xff] }
 0x1dc   : > { %v7909_v57 = vpop.f32.mrf.mxu0 }
 0x1dd   : > { %v7911_v20 = vpop.f32.mrf.mxu2  ;;  %2184 = vperm.xlu1 %6549, %v2114_v56   ;;  %v2168_v56 = vld [vmem:[%s7505_s25 + $0x1b8] sm:$0xff] }
 0x1de   : > { %11883 = vst [vmem:[#allocation123_spill] sm:$0xff] %v7911_v20  ;;  %2269 = vperm.xlu2 %6550, %v2131_v29   ;;  %2459 = vperm.xlu0 %6548, %v2169_v39   ;;  %v2113_v29 = vld [vmem:[%s7505_s25] sm:$0xff]  ;;  %v2151_v39 = vld [vmem:[%s7505_s25 + $0x130] sm:$0xff] }
 0x1df   : > { %v7913_v61 = vpop.permute.xlu1 %2334 }
 0x1e0   : > { %11884 = vst [vmem:[#allocation124_spill] sm:$0xff] %v7913_v61  ;;  %v7921_v22 = vpop.permute.xlu2 %2224  ;;  %v7923_v48 = vpop.permute.xlu0 %2249 }
 0x1e1   : > { %11885 = vst [vmem:[#allocation125_spill] sm:$0xff] %v7921_v22  ;;  %v7925_v27 = vpop.f32.mrf.mxu1 }
 0x1e2   : > { %11886 = vst [vmem:[#allocation126_spill] sm:$0xff] %v7923_v48  ;;  %3283 = vmatmul.f32.gmra.mxu2 %v2649_v34  ;;  %3444 = vmatmul.f32.gmra.mxu3 %v2586_v63  ;;  %v2653_v34 = vld [vmem:[%s11739_s7 + $0x2e0] sm:$0xff]  ;;  %v2590_v63 = vld [vmem:[%s11739_s7 + $0xe8] sm:$0xff] }
 0x1e4   : > { %v7930_v61 = vpop.f32.mrf.mxu0 }
 0x1e5   : > { %v7932_v2 = vpop.f32.mrf.mxu2  ;;  %2454 = vperm.xlu1 %6549, %v2168_v56   ;;  %v2150_v56 = vld [vmem:[%s7505_s25 + $0x128] sm:$0xff] }
 0x1e6   : > { %11887 = vst [vmem:[#allocation127_spill] sm:$0xff] %v7932_v2  ;;  %2179 = vperm.xlu2 %6550, %v2113_v29   ;;  %2369 = vperm.xlu0 %6548, %v2151_v39   ;;  %v2167_v29 = vld [vmem:[%s7505_s25 + $0x1b0] sm:$0xff]  ;;  %v2130_v39 = vld [vmem:[%s7505_s25 + $0x88] sm:$0xff] }
 0x1e7   : > { %v7934_v22 = vpop.permute.xlu1 %2239 }
 0x1e8   : > { %11888 = vst [vmem:[#allocation128_spill] sm:$0xff] %v7934_v22  ;;  %v7942_v48 = vpop.permute.xlu2 %2494  ;;  %v7944_v54 = vpop.permute.xlu0 %2329 }
 0x1e9   : > { %11889 = vst [vmem:[#allocation129_spill] sm:$0xff] %v7944_v54  ;;  %v7946_v26 = vpop.f32.mrf.mxu1 }
 0x1ea   : > { %3286 = vmatmul.f32.gmra.mxu2 %v2653_v34  ;;  %3447 = vmatmul.f32.gmra.mxu3 %v2590_v63  ;;  %v2657_v34 = vld [vmem:[%s11739_s7 + $0x300] sm:$0xff]  ;;  %v2594_v63 = vld [vmem:[%s11739_s7 + $0x108] sm:$0xff] }
 0x1ec   : > { %v7951_v22 = vpop.f32.mrf.mxu0 }
 0x1ed   : > { %v7953_v9 = vpop.f32.mrf.mxu2  ;;  %2364 = vperm.xlu1 %6549, %v2150_v56   ;;  %v2149_v56 = vld [vmem:[%s7505_s25 + $0x120] sm:$0xff] }
 0x1ee   : > { %11890 = vst [vmem:[#allocation130_spill] sm:$0xff] %v7953_v9  ;;  %2449 = vperm.xlu2 %6550, %v2167_v29   ;;  %2264 = vperm.xlu0 %6548, %v2130_v39   ;;  %v2166_v29 = vld [vmem:[%s7505_s25 + $0x1a8] sm:$0xff]  ;;  %v2129_v39 = vld [vmem:[%s7505_s25 + $0x80] sm:$0xff] }
 0x1ef   : > { %v7955_v32 = vpop.permute.xlu1 %2319 }
 0x1f0   : > { %11891 = vst [vmem:[#allocation131_spill] sm:$0xff] %v7955_v32  ;;  %v7963_v54 = vpop.permute.xlu2 %2404  ;;  %v7965_v21 = vpop.permute.xlu0 %2234 }
 0x1f1   : > { %11892 = vst [vmem:[#allocation132_spill] sm:$0xff] %v7965_v21  ;;  %v7967_v18 = vpop.f32.mrf.mxu1  ;;  %v2661_v21 = vld [vmem:[%s11739_s7 + $0x320] sm:$0xff] }
 0x1f2   : > { %3289 = vmatmul.f32.gmra.mxu2 %v2657_v34  ;;  %3450 = vmatmul.f32.gmra.mxu3 %v2594_v63  ;;  %v2598_v34 = vld [vmem:[%s11739_s7 + $0x128] sm:$0xff] }
 0x1f4   : > { %v1006_v32 = vpop.f32.mrf.mxu0 }
 0x1f5   : > { %v7972_v40 = vpop.f32.mrf.mxu2  ;;  %2359 = vperm.xlu1 %6549, %v2149_v56   ;;  %v2165_v56 = vld [vmem:[%s7505_s25 + $0x1a0] sm:$0xff] }
 0x1f6   : > { %11893 = vst [vmem:[#allocation133_spill] sm:$0xff] %v7972_v40  ;;  %2444 = vperm.xlu2 %6550, %v2166_v29   ;;  %2259 = vperm.xlu0 %6548, %v2129_v39   ;;  %v2147_v29 = vld [vmem:[%s7505_s25 + $0x110] sm:$0xff]  ;;  %v2148_v39 = vld [vmem:[%s7505_s25 + $0x118] sm:$0xff] }
 0x1f7   : > { %v7974_v19 = vpop.permute.xlu1 %2414 }
 0x1f8   : > { %v7982_v63 = vpop.permute.xlu2 %2299  ;;  %v7984_v38 = vpop.permute.xlu0 %2314 }
 0x1f9   : > { %11894 = vst [vmem:[#allocation134_spill] sm:$0xff] %v7982_v63  ;;  %v7986_v11 = vpop.f32.mrf.mxu1 }
 0x1fa   : > { %11895 = vst [vmem:[#allocation135_spill] sm:$0xff] %v7984_v38  ;;  %3292 = vmatmul.f32.gmra.mxu2 %v2661_v21  ;;  %3453 = vmatmul.f32.gmra.mxu3 %v2598_v34  ;;  %v2665_v21 = vld [vmem:[%s11739_s7 + $0x340] sm:$0xff]  ;;  %v2602_v34 = vld [vmem:[%s11739_s7 + $0x148] sm:$0xff] }
 0x1fc   : > { %v1009_v46 = vpop.f32.mrf.mxu0 }
 0x1fd   : > { %v7991_v17 = vpop.f32.mrf.mxu2  ;;  %2439 = vperm.xlu1 %6549, %v2165_v56   ;;  %v2163_v56 = vld [vmem:[%s7505_s25 + $0x190] sm:$0xff] }
 0x1fe   : > { %11896 = vst [vmem:[#allocation136_spill] sm:$0xff] %v7991_v17  ;;  %2349 = vperm.xlu2 %6550, %v2147_v29   ;;  %2354 = vperm.xlu0 %6548, %v2148_v39   ;;  %v2146_v17 = vld [vmem:[%s7505_s25 + $0x108] sm:$0xff]  ;;  %v2164_v29 = vld [vmem:[%s7505_s25 + $0x198] sm:$0xff] }
 0x1ff   : > { %v7993_v5 = vpop.permute.xlu1 %2409 }
 0x200   : > { %v8001_v63 = vpop.permute.xlu2 %2209  ;;  %v8003_v38 = vpop.permute.xlu0 %2309 }
 0x201   : > { %11897 = vst [vmem:[#allocation137_spill] sm:$0xff] %v8001_v63  ;;  %v8008_v52 = vpop.f32.mrf.mxu1 }
 0x202   : > { %11898 = vst [vmem:[#allocation138_spill] sm:$0xff] %v8003_v38  ;;  %3295 = vmatmul.f32.gmra.mxu2 %v2665_v21  ;;  %3456 = vmatmul.f32.gmra.mxu3 %v2602_v34  ;;  %v2669_v21 = vld [vmem:[%s11739_s7 + $0x360] sm:$0xff]  ;;  %v2606_v34 = vld [vmem:[%s11739_s7 + $0x168] sm:$0xff] }
 0x204   : > { %v1012_v39 = vpop.f32.mrf.mxu0 }
 0x205   : > { %2344 = vperm.xlu1 %6549, %v2146_v17   ;;  %v8010_v40 = vpop.f32.mrf.mxu2  ;;  %v2162_v17 = vld [vmem:[%s7505_s25 + $0x188] sm:$0xff] }
 0x206   : > { %2429 = vperm.xlu2 %6550, %v2163_v56   ;;  %2434 = vperm.xlu0 %6548, %v2164_v29   ;;  %11899 = vst [vmem:[#allocation139_spill] sm:$0xff] %v8010_v40  ;;  %v8028_v56 = vld [vmem:[%s11738_s6] ss:$0 sm:$0xff] }
 0x207   : > { %v8012_v51 = vpop.permute.xlu1 %2304  ;;  %v1013_v29 = vadd.f32 %v8028_v56, %v1012_v39  ;;  %v2145_v40 = vld [vmem:[%s7505_s25 + $0x100] sm:$0xff]  ;;  %v1010_v9 = vadd.f32 %v8028_v56, %v1009_v46  ;;  %v1001_v24 = vadd.f32 %v8028_v56, %v7930_v61 }
 0x208   : > { %11900 = vst [vmem:[#allocation140_spill] sm:$0xff] %v8012_v51  ;;  %v8020_v38 = vpop.permute.xlu2 %2479  ;;  %v8022_v63 = vpop.permute.xlu0 %2219  ;;  %v2161_v51 = vld [vmem:[%s7505_s25 + $0x180] sm:$0xff] }
 0x209   : > { %11901 = vst [vmem:[#allocation141_spill] sm:$0xff] %v8020_v38  ;;  %v8035_v2 = vpop.f32.mrf.mxu1  ;;  %v2673_v39 = vld [vmem:[%s11739_s7 + $0x380] sm:$0xff]  ;;  %v11906_v38 = vld [vmem:[#allocation4_spill] sm:$0xff] }
 0x20a   : > { %11902 = vst [vmem:[#allocation142_spill] sm:$0xff] %v8022_v63  ;;  %3298 = vmatmul.f32.gmra.mxu2 %v2669_v21  ;;  %3459 = vmatmul.f32.gmra.mxu3 %v2606_v34  ;;  %v8037_v21 = vpop.f32.mrf.mxu3  ;;  %v1007_v34 = vadd.f32 %v8028_v56, %v1006_v32  ;;  %v1112_v63 = vmax.f32 %v1013_v29, 0.0  ;;  %v1111_v32 = vmax.f32 %v1010_v9, 0.0  ;;  %v4584_v9 = vld [vmem:[%s11743_s11 + $0xf8] sm:$0xff]  ;;  %v11907_v61 = vld [vmem:[#allocation11_spill] sm:$0xff] }
 0x20c   : > { %v1015_v31 = vpop.f32.mrf.mxu0  ;;  %v1110_v35 = vmax.f32 %v1007_v34, 0.0  ;;  %v2095_v10 = vmul.f32 %v11906_v38, %v1112_v63  ;;  %v2094_v34 = vmul.f32 %v11907_v61, %v1111_v32  ;;  %v995_v38 = vadd.f32 %v8028_v56, %v7888_v14  ;;  %v4583_v61 = vld [vmem:[%s11743_s11 + $0xf0] sm:$0xff] }
 0x20d   : > { %v1016_v33 = vadd.f32 %v8028_v56, %v1015_v31  ;;  %2424 = vperm.xlu1 %6549, %v2162_v17   ;;  %v2610_v31 = vld [vmem:[%s11739_s7 + $0x188] sm:$0xff]  ;;  %v8055_v29 = vpop.f32.mrf.mxu2  ;;  %v1108_v63 = vmax.f32 %v1001_v24, 0.0  ;;  %v992_v14 = vadd.f32 %v8028_v56, %v7867_v49  ;;  %v11912_v49 = vld [vmem:[#allocation18_spill] sm:$0xff] }
 0x20e   : > { %2419 = vperm.xlu2 %6550, %v2161_v51   ;;  %2339 = vperm.xlu0 %6548, %v2145_v40   ;;  %v1004_v40 = vadd.f32 %v8028_v56, %v7951_v22  ;;  %v11904_v17 = vld [vmem:[#allocation3_spill] sm:$0xff] }
 0x20f   : > { %v1113_v1 = vmax.f32 %v1016_v33, 0.0  ;;  %v8040_v20 = vpop.permute.xlu1 %2214  ;;  %11905 = vst [vmem:[#allocation3_spill] sm:$0xff] %v8055_v29 }
 0x210   : > { %11903 = vst [vmem:[#allocation143_spill] sm:$0xff] %v8040_v20  ;;  %v8048_v46 = vpop.permute.xlu2 %2389  ;;  %v8050_v51 = vpop.permute.xlu0 %2489  ;;  %v4567_v20 = vld [vmem:[%s11743_s11 + $0x70] sm:$0xff] }
 0x211   : > { %v2096_v33 = vmul.f32 %v11904_v17, %v1113_v1  ;;  %v4568_v1 = vld [vmem:[%s11743_s11 + $0x78] sm:$0xff] }
 0x212   : > { %3301 = vmatmul.f32.gmra.mxu2 %v2673_v39  ;;  %3462 = vmatmul.f32.gmra.mxu3 %v2610_v31  ;;  %v998_v39 = vadd.f32 %v8028_v56, %v7909_v57  ;;  %v1109_v31 = vmax.f32 %v1004_v40, 0.0  ;;  %v2677_v57 = vld [vmem:[%s11739_s7 + $0x3a0] sm:$0xff]  ;;  %v8091_v32 = vpop.f32.mrf.mxu3 }
 0x213   : > { %3619 = vmatpush.msrb.mxu0 %v2096_v33  ;;  %v11908_v33 = vld [vmem:[#allocation13_spill] sm:$0xff] }
 0x214   : > { %v8069_v22 = vpop.f32.mrf.mxu0  ;;  %v2093_v29 = vmul.f32 %v11908_v33, %v1110_v35  ;;  %v1107_v24 = vmax.f32 %v998_v39, 0.0  ;;  %v11911_v35 = vld [vmem:[#allocation9_spill] sm:$0xff]  ;;  %v1106_v33 = vmax.f32 %v995_v38, 0.0  ;;  %v2091_v39 = vmul.f32 %v11912_v49, %v1108_v63 }
 0x215   : > { %3620 = vmatpush.msrb.mxu0 %v2095_v10  ;;  %4689 = vperm.xlu1 %6549, %v4567_v20   ;;  %v2614_v20 = vld [vmem:[%s11739_s7 + $0x1a8] sm:$0xff]  ;;  %v8085_v10 = vpop.f32.mrf.mxu1  ;;  %v11914_v38 = vld [vmem:[#allocation21_spill] sm:$0xff] }
 0x216   : > { %4774 = vperm.xlu2 %6550, %v4584_v9   ;;  %4694 = vperm.xlu0 %6548, %v4568_v1   ;;  %11909 = vst [vmem:[#allocation4_spill] sm:$0xff] %v8085_v10  ;;  %v2092_v1 = vmul.f32 %v11911_v35, %v1109_v31  ;;  %v8108_v31 = vpop.f32.mrf.mxu2  ;;  %v2090_v63 = vmul.f32 %v11914_v38, %v1107_v24 }
 0x217   : > { %3621 = vmatpush.msrb.mxu0 %v2094_v34  ;;  %v8076_v17 = vpop.permute.xlu1 %2484  ;;  %v989_v34 = vadd.f32 %v8028_v56, %v7845_v6  ;;  %11913 = vst [vmem:[#allocation13_spill] sm:$0xff] %v8108_v31  ;;  %v1105_v6 = vmax.f32 %v992_v14, 0.0  ;;  %v983_v35 = vadd.f32 %v8028_v56, %v7795_v12  ;;  %v11915_v31 = vld [vmem:[#allocation16_spill] sm:$0xff] }
 0x218   : > { %v8087_v40 = vpop.permute.xlu0 %2399  ;;  %v8093_v9 = vpop.permute.xlu2 %2284  ;;  %v2089_v10 = vmul.f32 %v11915_v31, %v1106_v33  ;;  %v2618_v14 = vld [vmem:[%s11739_s7 + $0x1c8] sm:$0xff]  ;;  %v4564_v33 = vld [vmem:[%s11743_s11 + $0x58] sm:$0xff] }
 0x219   : > { %11910 = vst [vmem:[#allocation11_spill] sm:$0xff] %v8093_v9  ;;  %3622 = vmatpush.msrb.mxu0 %v2093_v29  ;;  %v4565_v9 = vld [vmem:[%s11743_s11 + $0x60] sm:$0xff]  ;;  %v4566_v29 = vld [vmem:[%s11743_s11 + $0x68] sm:$0xff]  ;;  %v1102_v31 = vmax.f32 %v983_v35, 0.0 }
 0x21a   : > { %3304 = vmatmul.f32.gmra.mxu2 %v2677_v57  ;;  %3465 = vmatmul.f32.gmra.mxu3 %v2614_v20  ;;  %v986_v20 = vadd.f32 %v8028_v56, %v7820_v13  ;;  %v2681_v13 = vld [vmem:[%s11739_s7 + $0x3c0] sm:$0xff]  ;;  %v8138_v38 = vpop.f32.mrf.mxu3 }
 0x21b   : > { %3623 = vmatpush.msrb.mxu0 %v2092_v1  ;;  %v1104_v1 = vmax.f32 %v989_v34, 0.0 }
 0x21c   : > { %v8110_v57 = vpop.f32.mrf.mxu0  ;;  %v1103_v12 = vmax.f32 %v986_v20, 0.0  ;;  %v4581_v20 = vld [vmem:[%s11743_s11 + $0xe0] sm:$0xff] }
 0x21d   : > { %3624 = vmatpush.msrb.mxu0 %v2091_v39  ;;  %4769 = vperm.xlu1 %6549, %v4583_v61   ;;  %v11917_v61 = vld [vmem:[#allocation28_spill] sm:$0xff]  ;;  %v8131_v39 = vpop.f32.mrf.mxu1 }
 0x21e   : > { %4679 = vperm.xlu2 %6550, %v4565_v9   ;;  %4684 = vperm.xlu0 %6548, %v4566_v29   ;;  %v980_v9 = vadd.f32 %v8028_v56, %v7770_v43  ;;  %v2088_v34 = vmul.f32 %v11917_v61, %v1105_v6  ;;  %11918 = vst [vmem:[#allocation18_spill] sm:$0xff] %v8131_v39  ;;  %v11920_v43 = vld [vmem:[#allocation31_spill] sm:$0xff] }
 0x21f   : > { %3625 = vmatpush.msrb.mxu0 %v2090_v63  ;;  %v8117_v49 = vpop.permute.xlu1 %2394  ;;  %v977_v29 = vadd.f32 %v8028_v56, %v7740_v45  ;;  %v4582_v6 = vld [vmem:[%s11743_s11 + $0xe8] sm:$0xff]  ;;  %v974_v45 = vadd.f32 %v8028_v56, %v7706_v0  ;;  %v2685_v0 = vld [vmem:[%s11739_s7 + $0x3e0] sm:$0xff] }
 0x220   : > { %v8126_v24 = vpop.permute.xlu0 %2294  ;;  %v8140_v63 = vpop.permute.xlu2 %2194  ;;  %v1101_v35 = vmax.f32 %v980_v9, 0.0  ;;  %v2622_v9 = vld [vmem:[%s11739_s7 + $0x1e8] sm:$0xff] }
 0x221   : > { %11916 = vst [vmem:[#allocation9_spill] sm:$0xff] %v8126_v24  ;;  %3626 = vmatpush.msrb.mxu0 %v2089_v10  ;;  %v2087_v10 = vmul.f32 %v11920_v43, %v1104_v1  ;;  %v971_v1 = vadd.f32 %v8028_v56, %v7670_v62  ;;  %v1100_v43 = vmax.f32 %v977_v29, 0.0 }
 0x222   : > { %3307 = vmatmul.f32.gmra.mxu2 %v2681_v13  ;;  %3468 = vmatmul.f32.gmra.mxu3 %v2618_v14  ;;  %11919 = vst [vmem:[#allocation21_spill] sm:$0xff] %v8140_v63  ;;  %v11921_v14 = vld [vmem:[#allocation26_spill] sm:$0xff]  ;;  %v11923_v63 = vld [vmem:[#allocation29_spill] sm:$0xff]  ;;  %v2084_v29 = vmul.f32 %v7216_v7, %v1101_v35  ;;  %v8193_v35 = vpop.f32.mrf.mxu3 }
 0x223   : > { %3627 = vmatpush.msrb.mxu0 %v2088_v34  ;;  %v2086_v61 = vmul.f32 %v11921_v14, %v1103_v12  ;;  %v8154_v34 = vpop.f32.mrf.mxu2  ;;  %v2085_v39 = vmul.f32 %v11923_v63, %v1102_v31  ;;  %v8170_v12 = vld [vmem:[%s11738_s6 + $0x1] ss:$0 sm:$0xff]  ;;  %v4580_v63 = vld [vmem:[%s11743_s11 + $0xd8] sm:$0xff]  ;;  %v4563_v7 = vld [vmem:[%s11743_s11 + $0x50] sm:$0xff] }
 0x224   : > { %v8149_v13 = vpop.f32.mrf.mxu0  ;;  %v1551_v31 = vadd.f32 %v8170_v12, %v8035_v2  ;;  %v1548_v2 = vadd.f32 %v8170_v12, %v8008_v52 }
 0x225   : > { %3628 = vmatpush.msrb.mxu0 %v2087_v10  ;;  %4674 = vperm.xlu1 %6549, %v4564_v33   ;;  %v1099_v33 = vmax.f32 %v974_v45, 0.0  ;;  %v1098_v10 = vmax.f32 %v971_v1, 0.0  ;;  %v1545_v1 = vadd.f32 %v8170_v12, %v7986_v11 }
 0x226   : > { %4759 = vperm.xlu2 %6550, %v4581_v20   ;;  %4764 = vperm.xlu0 %6548, %v4582_v6   ;;  %v2083_v20 = vmul.f32 %v7255_v28, %v1100_v43  ;;  %v4562_v6 = vld [vmem:[%s11743_s11 + $0x48] sm:$0xff]  ;;  %v1648_v43 = vmax.f32 %v1551_v31, 0.0  ;;  %v1647_v11 = vmax.f32 %v1548_v2, 0.0  ;;  %v3219_v2 = vadd.f32 %v7799_v59, %v7605_v55 }
 0x227   : > { %3629 = vmatpush.msrb.mxu0 %v2086_v61  ;;  %v8158_v24 = vpop.permute.xlu1 %2289  ;;  %v11925_v28 = vld [vmem:[#allocation36_spill] sm:$0xff] }
 0x228   : > { %11922 = vst [vmem:[#allocation16_spill] sm:$0xff] %v8158_v24  ;;  %v8172_v62 = vpop.permute.xlu0 %2204  ;;  %v8195_v14 = vpop.permute.xlu2 %2464  ;;  %v2082_v61 = vmul.f32 %v11925_v28, %v1099_v33  ;;  %v1542_v33 = vadd.f32 %v8170_v12, %v7967_v18  ;;  %v4561_v18 = vld [vmem:[%s11743_s11 + $0x40] sm:$0xff] }
 0x229   : > { %11924 = vst [vmem:[#allocation28_spill] sm:$0xff] %v8172_v62  ;;  %3630 = vmatpush.msrb.mxu0 %v2085_v39  ;;  %v8189_v39 = vpop.f32.mrf.mxu1 }
 0x22a   : > { %3310 = vmatmul.f32.gmra.mxu2 %v2685_v0  ;;  %3471 = vmatmul.f32.gmra.mxu3 %v2622_v9  ;;  %v2081_v0 = vmul.f32 %v7283_v36, %v1098_v10  ;;  %v2689_v9 = vld [vmem:[%s11739_s7 + $0x400] sm:$0xff]  ;;  %v2563_v36 = vld [vmem:[%s11739_s7 + $0x10] sm:$0xff]  ;;  %v1539_v10 = vadd.f32 %v8170_v12, %v7946_v26  ;;  %v1536_v26 = vadd.f32 %v8170_v12, %v7925_v27  ;;  %v1645_v28 = vmax.f32 %v1542_v33, 0.0 }
 0x22b   : > { %3631 = vmatpush.msrb.mxu0 %v2084_v29  ;;  %v2626_v29 = vld [vmem:[%s11739_s7 + $0x208] sm:$0xff]  ;;  %v8211_v31 = vpop.f32.mrf.mxu2  ;;  %v2693_v33 = vld [vmem:[%s11739_s7 + $0x420] sm:$0xff] }
 0x22c   : > { %v8191_v45 = vpop.f32.mrf.mxu0 }
 0x22d   : > { %3632 = vmatpush.msrb.mxu0 %v2083_v20  ;;  %4754 = vperm.xlu1 %6549, %v4580_v63   ;;  %v1646_v20 = vmax.f32 %v1545_v1, 0.0  ;;  %v4579_v1 = vld [vmem:[%s11743_s11 + $0xd0] sm:$0xff] }
 0x22e   : > { %4664 = vperm.xlu2 %6550, %v4562_v6   ;;  %4669 = vperm.xlu0 %6548, %v4563_v7   ;;  %v2544_v6 = vmul.f32 %v7974_v19, %v1648_v43  ;;  %v4578_v7 = vld [vmem:[%s11743_s11 + $0xc8] sm:$0xff] }
 0x22f   : > { %3633 = vmatpush.msrb.mxu0 %v2082_v61  ;;  %v8200_v52 = vpop.permute.xlu1 %2199  ;;  %v2543_v61 = vmul.f32 %v7993_v5, %v1647_v11  ;;  %v2542_v27 = vmul.f32 %v7963_v54, %v1646_v20  ;;  %v1643_v11 = vmax.f32 %v1536_v26, 0.0  ;;  %v2630_v54 = vld [vmem:[%s11739_s7 + $0x228] sm:$0xff]  ;;  %v2567_v20 = vld [vmem:[%s11739_s7 + $0x30] sm:$0xff] }
 0x230   : > { %11926 = vst [vmem:[#allocation31_spill] sm:$0xff] %v8200_v52  ;;  %v8213_v63 = vpop.permute.xlu0 %2474  ;;  %v2375_v59 = vpop.permute.xlu2 %2374  ;;  %v2797_v52 = vld [vmem:[%s11739_s7 + $0x760] sm:$0xff] }
 0x231   : > { %3634 = vmatpush.msrb.mxu0 %v2081_v0  ;;  %v1533_v0 = vadd.f32 %v8170_v12, %v7904_v60  ;;  %v1530_v60 = vadd.f32 %v8170_v12, %v7883_v15 }
 0x232   : > { %3313 = vmatmul.f32.gmra.mxu2 %v2689_v9  ;;  %3474 = vmatmul.f32.gmra.mxu3 %v2626_v29  ;;  %v1644_v9 = vmax.f32 %v1539_v10, 0.0  ;;  %v8237_v29 = vpop.f32.mrf.mxu1 }
 0x233   : > { %3635 = vmatmul.f32.vlgmr.msrb.gmra.mxu0 %v2563_v36  ;;  %v2541_v36 = vmul.f32 %v8087_v40, %v1645_v28  ;;  %v8259_v15 = vpop.f32.mrf.mxu2  ;;  %v4577_v40 = vld [vmem:[%s11743_s11 + $0xc0] sm:$0xff]  ;;  %v1641_v26 = vmax.f32 %v1530_v60, 0.0  ;;  %v1025_v60 = vadd.f32 %v8028_v56, %v8149_v13  ;;  %v1022_v13 = vadd.f32 %v8028_v56, %v8110_v57 }
 0x234   : > { %5355 = vmatpush.msra.mxu0 %v2544_v6  ;;  %v1030_v19 = vpop.f32.mrf.mxu0  ;;  %v1527_v6 = vadd.f32 %v8170_v12, %v7862_v4  ;;  %v3222_v4 = vadd.f32 %v7824_v3, %v7575_v16  ;;  %v1019_v57 = vadd.f32 %v8028_v56, %v8069_v22 }
 0x235   : > { %v3427_v43 = vpop.f32.mrf.mxu3  ;;  %4659 = vperm.xlu1 %6549, %v4561_v18   ;;  %v1642_v18 = vmax.f32 %v1533_v0, 0.0  ;;  %v1031_v28 = vadd.f32 %v8028_v56, %v1030_v19 }
 0x236   : > { %5356 = vmatpush.msra.mxu0 %v2543_v61  ;;  %v8239_v55 = vadd.f32 %v3427_v43, %v3219_v2  ;;  %4744 = vperm.xlu2 %6550, %v4578_v7   ;;  %v2540_v7 = vmul.f32 %v8117_v49, %v1644_v9  ;;  %v4559_v2 = vld [vmem:[%s11743_s11 + $0x30] sm:$0xff]  ;;  %v2539_v49 = vmul.f32 %v8048_v46, %v1643_v11  ;;  %v1640_v9 = vmax.f32 %v1527_v6, 0.0 }
 0x237   : > { %4749 = vperm.xlu0 %6548, %v4579_v1   ;;  %v8242_v5 = vpop.permute.xlu1 %2469  ;;  %v4560_v1 = vld [vmem:[%s11743_s11 + $0x38] sm:$0xff]  ;;  %v1118_v11 = vmax.f32 %v1031_v28, 0.0 }
 0x238   : > { %5357 = vmatpush.msra.mxu0 %v2542_v27  ;;  %v2385_v10 = vpop.permute.xlu0 %2384  ;;  %v1028_v27 = vadd.f32 %v8028_v56, %v8191_v45  ;;  %v8294_v6 = vpop.permute.xlu2 %2269 }
 0x239   : > { %v2538_v16 = vmul.f32 %v2385_v10, %v1642_v18  ;;  %11928 = vst [vmem:[#allocation29_spill] sm:$0xff] %v8294_v6  ;;  %v2659_v6 = vld [vmem:[%s11739_s7 + $0x310] sm:$0xff] }
 0x23a   : > { %5358 = vmatpush.msra.mxu0 %v2541_v36  ;;  %3316 = vmatmul.f32.gmra.mxu2 %v2693_v33  ;;  %v2697_v33 = vld [vmem:[%s11739_s7 + $0x440] sm:$0xff]  ;;  %v8284_v36 = vpop.f32.mrf.mxu1 }
 0x23b   : > { %3477 = vmatmul.f32.gmra.mxu3 %v2630_v54  ;;  %3638 = vmatmul.f32.gmra.mxu0 %v2567_v20  ;;  %v2634_v54 = vld [vmem:[%s11739_s7 + $0x248] sm:$0xff]  ;;  %v2571_v20 = vld [vmem:[%s11739_s7 + $0x50] sm:$0xff] }
 0x23c   : > { %5359 = vmatpush.msra.mxu0 %v2540_v7  ;;  %v1033_v61 = vpop.f32.mrf.mxu0  ;;  %v1117_v7 = vmax.f32 %v1028_v27, 0.0  ;;  %v1114_v27 = vmax.f32 %v1019_v57, 0.0 }
 0x23d   : > { %v1034_v43 = vadd.f32 %v8028_v56, %v1033_v61  ;;  %v3430_v0 = vpop.f32.mrf.mxu3  ;;  %4739 = vperm.xlu1 %6549, %v4577_v40   ;;  %v2536_v40 = vmul.f32 %v2375_v59, %v1640_v9  ;;  %v8309_v59 = vpop.f32.mrf.mxu2  ;;  %v4576_v61 = vld [vmem:[%s11743_s11 + $0xb8] sm:$0xff]  ;;  %v1596_v9 = vadd.f32 %v8170_v12, %v8138_v38 }
 0x23e   : > { %5360 = vmatpush.msra.mxu0 %v2539_v49  ;;  %v8277_v3 = vadd.f32 %v3430_v0, %v3222_v4  ;;  %4649 = vperm.xlu2 %6550, %v4559_v2   ;;  %v4558_v2 = vld [vmem:[%s11743_s11 + $0x28] sm:$0xff]  ;;  %v4575_v4 = vld [vmem:[%s11743_s11 + $0xb0] sm:$0xff]  ;;  %v2100_v56 = vmul.f32 %v7248_v47, %v1117_v7  ;;  %v2701_v0 = vld [vmem:[%s11739_s7 + $0x460] sm:$0xff] }
 0x23f   : > { %v1119_v46 = vmax.f32 %v1034_v43, 0.0  ;;  %4654 = vperm.xlu0 %6548, %v4560_v1   ;;  %v2380_v19 = vpop.permute.xlu1 %2379  ;;  %v11929_v49 = vld [vmem:[#allocation33_spill] sm:$0xff]  ;;  %v1599_v43 = vadd.f32 %v8170_v12, %v8193_v35  ;;  %v2638_v47 = vld [vmem:[%s11739_s7 + $0x268] sm:$0xff] }
 0x240   : > { %5361 = vmatpush.msra.mxu0 %v2538_v16  ;;  %v2537_v45 = vmul.f32 %v2380_v19, %v1641_v26  ;;  %v8286_v10 = vpop.permute.xlu0 %2279  ;;  %v1116_v26 = vmax.f32 %v1025_v60, 0.0  ;;  %v2101_v28 = vmul.f32 %v11929_v49, %v1118_v11  ;;  %v1593_v19 = vadd.f32 %v8170_v12, %v8091_v32  ;;  %v8344_v11 = vpop.permute.xlu2 %2179  ;;  %v11933_v32 = vld [vmem:[#allocation78_spill] sm:$0xff] }
 0x241   : > { %11927 = vst [vmem:[#allocation26_spill] sm:$0xff] %v8286_v10  ;;  %v2102_v18 = vmul.f32 %v7222_v30, %v1119_v46  ;;  %v3225_v30 = vadd.f32 %v7848_v42, %v7468_v50  ;;  %v1115_v50 = vmax.f32 %v1022_v13, 0.0  ;;  %v2575_v46 = vld [vmem:[%s11739_s7 + $0x70] sm:$0xff]  ;;  %v2564_v7 = vld [vmem:[%s11739_s7 + $0x18] sm:$0xff]  ;;  %v2705_v49 = vld [vmem:[%s11739_s7 + $0x480] sm:$0xff] }
 0x242   : > { %3319 = vmatmul.f32.gmra.mxu2 %v2697_v33  ;;  %5362 = vmatpush.msra.mxu0 %v2537_v45  ;;  %v2099_v16 = vmul.f32 %v7291_v23, %v1116_v26  ;;  %v1664_v33 = vmax.f32 %v1599_v43, 0.0  ;;  %v8338_v60 = vpop.f32.mrf.mxu1  ;;  %v4574_v23 = vld [vmem:[%s11743_s11 + $0xa8] sm:$0xff]  ;;  %11932 = vst [vmem:[#allocation144_spill] sm:$0xff] %v8344_v11  ;;  %v4556_v45 = vld [vmem:[%s11743_s11 + $0x18] sm:$0xff]  ;;  %v2579_v43 = vld [vmem:[%s11739_s7 + $0x90] sm:$0xff] }
 0x243   : > { %3480 = vmatmul.f32.gmra.mxu3 %v2634_v54  ;;  %3641 = vmatmul.f32.gmra.mxu0 %v2571_v20  ;;  %v2098_v38 = vmul.f32 %v7186_v53, %v1115_v50  ;;  %v3228_v54 = vadd.f32 %v7869_v44, %v11933_v32  ;;  %v1590_v20 = vadd.f32 %v8170_v12, %v8037_v21  ;;  %v11934_v53 = vld [vmem:[#allocation47_spill] sm:$0xff] }
 0x244   : > { %3838 = vmatpush.msrb.mxu1 %v2102_v18  ;;  %5363 = vmatpush.msra.mxu0 %v2536_v40  ;;  %v1663_v18 = vmax.f32 %v1596_v9, 0.0  ;;  %v2097_v13 = vmul.f32 %v11934_v53, %v1114_v27  ;;  %v4557_v40 = vld [vmem:[%s11743_s11 + $0x20] sm:$0xff]  ;;  %v1587_v44 = vadd.f32 %v8170_v12, %v7765_v8  ;;  %v2560_v21 = vmul.f32 %v7942_v48, %v1664_v33  ;;  %v4572_v9 = vld [vmem:[%s11743_s11 + $0x98] sm:$0xff] }
 0x245   : > { %v3433_v1 = vpop.f32.mrf.mxu3  ;;  %4644 = vperm.xlu1 %6549, %v4558_v2   ;;  %v1584_v8 = vadd.f32 %v8170_v12, %v7731_v41  ;;  %v1581_v50 = vadd.f32 %v8170_v12, %v7688_v37  ;;  %v4555_v41 = vld [vmem:[%s11743_s11 + $0x10] sm:$0xff]  ;;  %v1578_v37 = vadd.f32 %v8170_v12, %v7646_v58  ;;  %v11939_v58 = vld [vmem:[#allocation86_spill] sm:$0xff] }
 0x246   : > { %v8317_v42 = vadd.f32 %v3433_v1, %v3225_v30  ;;  %3839 = vmatpush.msrb.mxu1 %v2101_v28  ;;  %4729 = vperm.xlu2 %6550, %v4575_v4   ;;  %v1662_v4 = vmax.f32 %v1593_v19, 0.0  ;;  %v8363_v30 = vpop.f32.mrf.mxu2  ;;  %v1661_v28 = vmax.f32 %v1590_v20, 0.0  ;;  %v2559_v48 = vmul.f32 %v8050_v51, %v1663_v18  ;;  %v2642_v1 = vld [vmem:[%s11739_s7 + $0x288] sm:$0xff]  ;;  %v2793_v11 = vld [vmem:[%s11739_s7 + $0x740] sm:$0xff] }
 0x247   : > { %4734 = vperm.xlu0 %6548, %v4576_v61   ;;  %v8320_v22 = vpop.permute.xlu1 %2274  ;;  %v1524_v51 = vadd.f32 %v8170_v12, %v7839_v25  ;;  %v1659_v27 = vmax.f32 %v1584_v8, 0.0  ;;  %v2568_v25 = vld [vmem:[%s11739_s7 + $0x38] sm:$0xff]  ;;  %v1575_v32 = vadd.f32 %v8170_v12, %v11939_v58  ;;  %v2650_v58 = vld [vmem:[%s11739_s7 + $0x2c8] sm:$0xff] }
 0x248   : > { %11930 = vst [vmem:[#allocation36_spill] sm:$0xff] %v8320_v22  ;;  %3840 = vmatpush.msrb.mxu1 %v2100_v56  ;;  %v8327_v35 = vpop.permute.xlu0 %2189  ;;  %v1660_v56 = vmax.f32 %v1587_v44, 0.0 }
 0x249   : > { %11931 = vst [vmem:[#allocation33_spill] sm:$0xff] %v8327_v35  ;;  %v1639_v53 = vmax.f32 %v1524_v51, 0.0 }
 0x24a   : > { %3841 = vmatpush.msrb.mxu1 %v2099_v16  ;;  %3322 = vmatmul.f32.gmra.mxu2 %v2701_v0  ;;  %v2558_v0 = vmul.f32 %v8076_v17, %v1662_v4  ;;  %v11936_v17 = vld [vmem:[#allocation72_spill] sm:$0xff]  ;;  %v11937_v16 = vld [vmem:[#allocation119_spill] sm:$0xff]  ;;  %v1571_v33 = vpop.f32.mrf.mxu1  ;;  %v2556_v20 = vmul.f32 %v8213_v63, %v1660_v56 }
 0x24b   : > { %3483 = vmatmul.f32.gmra.mxu3 %v2638_v47  ;;  %3644 = vmatmul.f32.gmra.mxu0 %v2575_v46  ;;  %v3231_v47 = vadd.f32 %v11937_v16, %v11936_v17  ;;  %v11938_v46 = vld [vmem:[#allocation141_spill] sm:$0xff]  ;;  %v1572_v44 = vadd.f32 %v8170_v12, %v1571_v33  ;;  %v4553_v56 = vld [vmem:[%s11743_s11] sm:$0xff] }
 0x24c   : > { %3842 = vmatpush.msrb.mxu1 %v2098_v38  ;;  %v2557_v19 = vmul.f32 %v11938_v46, %v1661_v28  ;;  %v4573_v38 = vld [vmem:[%s11743_s11 + $0xa0] sm:$0xff]  ;;  %v1656_v28 = vmax.f32 %v1575_v32, 0.0  ;;  %v2587_v32 = vld [vmem:[%s11739_s7 + $0xd0] sm:$0xff] }
 0x24d   : > { %v3436_v2 = vpop.f32.mrf.mxu3  ;;  %4724 = vperm.xlu1 %6549, %v4574_v23   ;;  %v2450_v23 = vpop.permute.xlu2 %2449  ;;  %v2713_v33 = vld [vmem:[%s11739_s7 + $0x4c0] sm:$0xff] }
 0x24e   : > { %v8365_v57 = vadd.f32 %v3436_v2, %v3228_v54  ;;  %3843 = vmatpush.msrb.mxu1 %v2097_v13  ;;  %4634 = vperm.xlu2 %6550, %v4556_v45   ;;  %v1658_v54 = vmax.f32 %v1581_v50, 0.0  ;;  %v2555_v2 = vmul.f32 %v8242_v5, %v1659_v27  ;;  %v8413_v4 = vpop.f32.mrf.mxu2  ;;  %v4571_v50 = vld [vmem:[%s11743_s11 + $0x90] sm:$0xff] }
 0x24f   : > { %3844 = vmatmul.f32.vlgmr.msrb.gmra.mxu1 %v2564_v7  ;;  %4639 = vperm.xlu0 %6548, %v4557_v40   ;;  %v8367_v26 = vpop.permute.xlu1 %2184  ;;  %v2709_v7 = vld [vmem:[%s11739_s7 + $0x4a0] sm:$0xff]  ;;  %v1657_v40 = vmax.f32 %v1578_v37, 0.0  ;;  %v4554_v37 = vld [vmem:[%s11743_s11 + $0x8] sm:$0xff] }
 0x250   : > { %11935 = vst [vmem:[#allocation78_spill] sm:$0xff] %v8367_v26  ;;  %5564 = vmatpush.msra.mxu1 %v2560_v21  ;;  %v2460_v61 = vpop.permute.xlu0 %2459  ;;  %v2646_v21 = vld [vmem:[%s11739_s7 + $0x2a8] sm:$0xff]  ;;  %v2554_v5 = vmul.f32 %v8195_v14, %v1658_v54  ;;  %v11944_v54 = vld [vmem:[#allocation105_spill] sm:$0xff] }
 0x251   : > { %v2553_v14 = vmul.f32 %v2460_v61, %v1657_v40  ;;  %v11945_v40 = vld [vmem:[#allocation70_spill] sm:$0xff] }
 0x252   : > { %5565 = vmatpush.msra.mxu1 %v2559_v48  ;;  %3325 = vmatmul.f32.gmra.mxu2 %v2705_v49  ;;  %v2583_v49 = vld [vmem:[%s11739_s7 + $0xb0] sm:$0xff] }
 0x253   : > { %3486 = vmatmul.f32.gmra.mxu3 %v2642_v1  ;;  %3647 = vmatmul.f32.gmra.mxu0 %v2579_v43  ;;  %v11940_v48 = vld [vmem:[#allocation109_spill] sm:$0xff]  ;;  %v1569_v43 = vadd.f32 %v8170_v12, %v8338_v60 }
 0x254   : > { %5566 = vmatpush.msra.mxu1 %v2558_v0  ;;  %v1521_v1 = vadd.f32 %v8170_v12, %v11940_v48  ;;  %v11941_v0 = vld [vmem:[#allocation58_spill] sm:$0xff] }
 0x255   : > { %v3439_v45 = vpop.f32.mrf.mxu3  ;;  %4629 = vperm.xlu1 %6549, %v4555_v41   ;;  %v11942_v41 = vld [vmem:[#allocation123_spill] sm:$0xff]  ;;  %v2572_v60 = vld [vmem:[%s11739_s7 + $0x58] sm:$0xff]  ;;  %v1654_v16 = vmax.f32 %v1569_v43, 0.0  ;;  %v2445_v61 = vpop.permute.xlu2 %2444 }
 0x256   : > { %5567 = vmatpush.msra.mxu1 %v2557_v19  ;;  %v8406_v18 = vadd.f32 %v3439_v45, %v3231_v47  ;;  %4714 = vperm.xlu2 %6550, %v4572_v9   ;;  %v3234_v51 = vadd.f32 %v11942_v41, %v11941_v0  ;;  %v1655_v9 = vmax.f32 %v1572_v44, 0.0  ;;  %v1638_v17 = vmax.f32 %v1521_v1, 0.0  ;;  %v2717_v1 = vld [vmem:[%s11739_s7 + $0x4e0] sm:$0xff]  ;;  %v2591_v0 = vld [vmem:[%s11739_s7 + $0xf0] sm:$0xff]  ;;  %v4616_v41 = vld [vmem:[%s11743_s11 + $0x1f8] sm:$0xff] }
 0x257   : > { %3847 = vmatmul.f32.gmra.mxu1 %v2568_v25  ;;  %4719 = vperm.xlu0 %6548, %v4573_v38   ;;  %v2455_v13 = vpop.permute.xlu1 %2454 }
 0x258   : > { %5568 = vmatpush.msra.mxu1 %v2556_v20  ;;  %v2370_v63 = vpop.permute.xlu0 %2369  ;;  %v2552_v47 = vmul.f32 %v2455_v13, %v1656_v28  ;;  %v2551_v25 = vmul.f32 %v2450_v23, %v1655_v9  ;;  %v1518_v20 = vadd.f32 %v8170_v12, %v11944_v54  ;;  %v2550_v13 = vmul.f32 %v2445_v61, %v1654_v16  ;;  %v4569_v23 = vld [vmem:[%s11743_s11 + $0x80] sm:$0xff]  ;;  %v4599_v61 = vld [vmem:[%s11743_s11 + $0x170] sm:$0xff] }
 0x259   : > { %v2535_v8 = vmul.f32 %v2370_v63, %v1639_v53  ;;  %v8455_v53 = vpop.f32.mrf.mxu2  ;;  %v2576_v63 = vld [vmem:[%s11739_s7 + $0x78] sm:$0xff]  ;;  %v2721_v54 = vld [vmem:[%s11739_s7 + $0x500] sm:$0xff] }
 0x25a   : > { %5569 = vmatpush.msra.mxu1 %v2555_v2  ;;  %3328 = vmatmul.f32.gmra.mxu2 %v2709_v7  ;;  %v4600_v7 = vld [vmem:[%s11743_s11 + $0x178] sm:$0xff]  ;;  %v11946_v2 = vld [vmem:[#allocation127_spill] sm:$0xff] }
 0x25b   : > { %3489 = vmatmul.f32.gmra.mxu3 %v2646_v21  ;;  %3650 = vmatmul.f32.gmra.mxu0 %v2583_v49  ;;  %v3237_v44 = vadd.f32 %v11946_v2, %v11945_v40  ;;  %v4570_v21 = vld [vmem:[%s11743_s11 + $0x88] sm:$0xff]  ;;  %v1563_v40 = vadd.f32 %v8170_v12, %v8237_v29 }
 0x25c   : > { %5570 = vmatpush.msra.mxu1 %v2554_v5  ;;  %5364 = vmatpush.msra.mxu0 %v2535_v8  ;;  %v1637_v8 = vmax.f32 %v1518_v20, 0.0  ;;  %v1566_v5 = vadd.f32 %v8170_v12, %v8284_v36 }
 0x25d   : > { %v3442_v27 = vpop.f32.mrf.mxu3  ;;  %4709 = vperm.xlu1 %6549, %v4571_v50   ;;  %v2350_v9 = vpop.permute.xlu2 %2349 }
 0x25e   : > { %5571 = vmatpush.msra.mxu1 %v2553_v14  ;;  %v8440_v46 = vadd.f32 %v3442_v27, %v3234_v51  ;;  %4619 = vperm.xlu2 %6550, %v4553_v56   ;;  %v2654_v56 = vld [vmem:[%s11739_s7 + $0x2e8] sm:$0xff] }
 0x25f   : > { %3850 = vmatmul.f32.gmra.mxu1 %v2572_v60  ;;  %4624 = vperm.xlu0 %6548, %v4554_v37   ;;  %v2365_v19 = vpop.permute.xlu1 %2364  ;;  %v11948_v51 = vld [vmem:[#allocation19_spill] sm:$0xff]  ;;  %v11949_v60 = vld [vmem:[#allocation65_spill] sm:$0xff]  ;;  %v11950_v37 = vld [vmem:[#allocation130_spill] sm:$0xff] }
 0x260   : > { %5572 = vmatpush.msra.mxu1 %v2552_v47  ;;  %v2534_v38 = vmul.f32 %v2365_v19, %v1638_v17  ;;  %v8445_v45 = vpop.permute.xlu0 %2264  ;;  %v1515_v36 = vadd.f32 %v8170_v12, %v11948_v51  ;;  %v4598_v14 = vld [vmem:[%s11743_s11 + $0x168] sm:$0xff]  ;;  %v3240_v27 = vadd.f32 %v11950_v37, %v11949_v60  ;;  %v1653_v17 = vmax.f32 %v1566_v5, 0.0  ;;  %v2580_v47 = vld [vmem:[%s11739_s7 + $0x98] sm:$0xff] }
 0x261   : > { %11943 = vst [vmem:[#allocation47_spill] sm:$0xff] %v8445_v45  ;;  %v8496_v16 = vpop.f32.mrf.mxu2  ;;  %v1560_v5 = vadd.f32 %v8170_v12, %v8189_v39 }
 0x262   : > { %5573 = vmatpush.msra.mxu1 %v2551_v25  ;;  %3331 = vmatmul.f32.gmra.mxu2 %v2713_v33  ;;  %v11951_v33 = vld [vmem:[#allocation102_spill] sm:$0xff] }
 0x263   : > { %3492 = vmatmul.f32.gmra.mxu3 %v2650_v58  ;;  %3653 = vmatmul.f32.gmra.mxu0 %v2587_v32  ;;  %v1512_v25 = vadd.f32 %v8170_v12, %v11951_v33  ;;  %v1636_v58 = vmax.f32 %v1515_v36, 0.0  ;;  %v2662_v33 = vld [vmem:[%s11739_s7 + $0x328] sm:$0xff] }
 0x264   : > { %5574 = vmatpush.msra.mxu1 %v2550_v13  ;;  %5365 = vmatpush.msra.mxu0 %v2534_v38 }
 0x265   : > { %v3445_v49 = vpop.f32.mrf.mxu3  ;;  %4699 = vperm.xlu1 %6549, %v4569_v23   ;;  %v2658_v23 = vld [vmem:[%s11739_s7 + $0x308] sm:$0xff]  ;;  %v2430_v51 = vpop.permute.xlu2 %2429 }
 0x266   : > { %v8471_v28 = vadd.f32 %v3445_v49, %v3237_v44  ;;  %4854 = vperm.xlu2 %6550, %v4600_v7   ;;  %v2595_v7 = vld [vmem:[%s11739_s7 + $0x110] sm:$0xff]  ;;  %v11952_v44 = vld [vmem:[#allocation98_spill] sm:$0xff] }
 0x267   : > { %3853 = vmatmul.f32.gmra.mxu1 %v2576_v63  ;;  %4704 = vperm.xlu0 %6548, %v4570_v21   ;;  %v2360_v48 = vpop.permute.xlu1 %2359  ;;  %v1509_v63 = vadd.f32 %v8170_v12, %v11952_v44  ;;  %v1635_v21 = vmax.f32 %v1512_v25, 0.0  ;;  %v4597_v49 = vld [vmem:[%s11743_s11 + $0x160] sm:$0xff]  ;;  %v2599_v25 = vld [vmem:[%s11739_s7 + $0x130] sm:$0xff] }
 0x268   : > { %v2533_v43 = vmul.f32 %v2360_v48, %v1637_v8  ;;  %v8478_v50 = vpop.permute.xlu0 %2259  ;;  %v4614_v8 = vld [vmem:[%s11743_s11 + $0x1e8] sm:$0xff]  ;;  %v11953_v48 = vld [vmem:[#allocation50_spill] sm:$0xff] }
 0x269   : > { %11947 = vst [vmem:[#allocation72_spill] sm:$0xff] %v8478_v50  ;;  %v8537_v60 = vpop.f32.mrf.mxu2 }
 0x26a   : > { %3334 = vmatmul.f32.gmra.mxu2 %v2717_v1  ;;  %5366 = vmatpush.msra.mxu0 %v2533_v43  ;;  %v11954_v1 = vld [vmem:[#allocation133_spill] sm:$0xff]  ;;  %v2531_v43 = vmul.f32 %v2350_v9, %v1635_v21  ;;  %v2725_v9 = vld [vmem:[%s11739_s7 + $0x520] sm:$0xff] }
 0x26b   : > { %3495 = vmatmul.f32.gmra.mxu3 %v2654_v56  ;;  %3656 = vmatmul.f32.gmra.mxu0 %v2591_v0  ;;  %v3243_v29 = vadd.f32 %v11954_v1, %v11953_v48  ;;  %v2584_v56 = vld [vmem:[%s11739_s7 + $0xb8] sm:$0xff]  ;;  %v4615_v0 = vld [vmem:[%s11743_s11 + $0x1f0] sm:$0xff] }
 0x26d   : > { %v3448_v19 = vpop.f32.mrf.mxu3  ;;  %4934 = vperm.xlu1 %6549, %v4616_v41   ;;  %v1652_v41 = vmax.f32 %v1563_v40, 0.0  ;;  %v11958_v40 = vld [vmem:[#allocation63_spill] sm:$0xff] }
 0x26e   : > { %v8506_v38 = vadd.f32 %v3448_v19, %v3240_v27  ;;  %4844 = vperm.xlu2 %6550, %v4598_v14   ;;  %v1634_v14 = vmax.f32 %v1509_v63, 0.0  ;;  %v11955_v27 = vld [vmem:[#allocation18_spill] sm:$0xff] }
 0x26f   : > { %3856 = vmatmul.f32.gmra.mxu1 %v2580_v47  ;;  %4849 = vperm.xlu0 %6548, %v4599_v61   ;;  %v2440_v32 = vpop.permute.xlu1 %2439  ;;  %v1651_v47 = vmax.f32 %v1560_v5, 0.0  ;;  %v2420_v5 = vpop.permute.xlu2 %2419 }
 0x270   : > { %v2549_v20 = vmul.f32 %v2440_v32, %v1653_v17  ;;  %v2355_v13 = vpop.permute.xlu0 %2354  ;;  %v1557_v17 = vadd.f32 %v8170_v12, %v11955_v27  ;;  %v11956_v32 = vld [vmem:[#allocation4_spill] sm:$0xff] }
 0x271   : > { %v2532_v2 = vmul.f32 %v2355_v13, %v1636_v58  ;;  %v11957_v13 = vld [vmem:[#allocation94_spill] sm:$0xff]  ;;  %v2547_v21 = vmul.f32 %v2430_v51, %v1651_v47  ;;  %v4594_v27 = vld [vmem:[%s11743_s11 + $0x148] sm:$0xff]  ;;  %v11960_v47 = vld [vmem:[#allocation57_spill] sm:$0xff] }
 0x272   : > { %3337 = vmatmul.f32.gmra.mxu2 %v2721_v54  ;;  %5575 = vmatpush.msra.mxu1 %v2549_v20  ;;  %v1554_v54 = vadd.f32 %v8170_v12, %v11956_v32  ;;  %v4613_v20 = vld [vmem:[%s11743_s11 + $0x1e0] sm:$0xff]  ;;  %v1650_v63 = vmax.f32 %v1557_v17, 0.0  ;;  %v4611_v17 = vld [vmem:[%s11743_s11 + $0x1d0] sm:$0xff] }
 0x273   : > { %3498 = vmatmul.f32.gmra.mxu3 %v2658_v23  ;;  %3659 = vmatmul.f32.gmra.mxu0 %v2595_v7  ;;  %v1506_v23 = vadd.f32 %v8170_v12, %v11957_v13  ;;  %v4595_v7 = vld [vmem:[%s11743_s11 + $0x150] sm:$0xff]  ;;  %v4596_v12 = vld [vmem:[%s11743_s11 + $0x158] sm:$0xff] }
 0x274   : > { %5367 = vmatpush.msra.mxu0 %v2532_v2  ;;  %v11959_v2 = vld [vmem:[#allocation136_spill] sm:$0xff]  ;;  %v1649_v48 = vmax.f32 %v1554_v54, 0.0  ;;  %v2733_v54 = vld [vmem:[%s11739_s7 + $0x560] sm:$0xff] }
 0x275   : > { %v3451_v36 = vpop.f32.mrf.mxu3  ;;  %4839 = vperm.xlu1 %6549, %v4597_v49   ;;  %v3246_v44 = vadd.f32 %v11959_v2, %v11958_v40  ;;  %v2588_v49 = vld [vmem:[%s11739_s7 + $0xd8] sm:$0xff]  ;;  %v2607_v13 = vld [vmem:[%s11739_s7 + $0x170] sm:$0xff]  ;;  %v11962_v2 = vld [vmem:[#allocation43_spill] sm:$0xff] }
 0x276   : > { %v8539_v37 = vadd.f32 %v3451_v36, %v3243_v29  ;;  %5368 = vmatpush.msra.mxu0 %v2531_v43  ;;  %4924 = vperm.xlu2 %6550, %v4614_v8   ;;  %v1633_v29 = vmax.f32 %v1506_v23, 0.0  ;;  %v2666_v36 = vld [vmem:[%s11739_s7 + $0x348] sm:$0xff]  ;;  %v4592_v40 = vld [vmem:[%s11743_s11 + $0x138] sm:$0xff] }
 0x277   : > { %3859 = vmatmul.f32.gmra.mxu1 %v2584_v56  ;;  %4929 = vperm.xlu0 %6548, %v4615_v0   ;;  %v2345_v39 = vpop.permute.xlu1 %2344  ;;  %v2729_v56 = vld [vmem:[%s11739_s7 + $0x540] sm:$0xff]  ;;  %v8575_v0 = vpop.f32.mrf.mxu2 }
 0x278   : > { %v2530_v61 = vmul.f32 %v2345_v39, %v1634_v14  ;;  %v2435_v19 = vpop.permute.xlu0 %2434  ;;  %v2603_v14 = vld [vmem:[%s11739_s7 + $0x150] sm:$0xff] }
 0x279   : > { %v2548_v58 = vmul.f32 %v2435_v19, %v1652_v41 }
 0x27a   : > { %3340 = vmatmul.f32.gmra.mxu2 %v2725_v9  ;;  %5369 = vmatpush.msra.mxu0 %v2530_v61  ;;  %v2545_v9 = vmul.f32 %v2420_v5, %v1649_v48  ;;  %v11961_v61 = vld [vmem:[#allocation139_spill] sm:$0xff]  ;;  %v2611_v5 = vld [vmem:[%s11739_s7 + $0x190] sm:$0xff] }
 0x27b   : > { %3501 = vmatmul.f32.gmra.mxu3 %v2662_v33  ;;  %3662 = vmatmul.f32.gmra.mxu0 %v2599_v25  ;;  %v3249_v19 = vadd.f32 %v11961_v61, %v11960_v47  ;;  %v2592_v33 = vld [vmem:[%s11739_s7 + $0xf8] sm:$0xff]  ;;  %v2737_v48 = vld [vmem:[%s11739_s7 + $0x580] sm:$0xff]  ;;  %v2678_v61 = vld [vmem:[%s11739_s7 + $0x3a8] sm:$0xff] }
 0x27c   : > { %5576 = vmatpush.msra.mxu1 %v2548_v58  ;;  %v4612_v25 = vld [vmem:[%s11743_s11 + $0x1d8] sm:$0xff]  ;;  %v2741_v47 = vld [vmem:[%s11739_s7 + $0x5a0] sm:$0xff] }
 0x27d   : > { %v3454_v8 = vpop.f32.mrf.mxu3  ;;  %4919 = vperm.xlu1 %6549, %v4613_v20   ;;  %v2670_v20 = vld [vmem:[%s11739_s7 + $0x368] sm:$0xff] }
 0x27e   : > { %v8570_v1 = vadd.f32 %v3454_v8, %v3246_v44  ;;  %5577 = vmatpush.msra.mxu1 %v2547_v21  ;;  %4829 = vperm.xlu2 %6550, %v4595_v7   ;;  %v4610_v7 = vld [vmem:[%s11743_s11 + $0x1c8] sm:$0xff]  ;;  %v2596_v21 = vld [vmem:[%s11739_s7 + $0x118] sm:$0xff] }
 0x27f   : > { %3862 = vmatmul.f32.gmra.mxu1 %v2588_v49  ;;  %4834 = vperm.xlu0 %6548, %v4596_v12   ;;  %v2425_v43 = vpop.permute.xlu1 %2424  ;;  %v8608_v23 = vpop.f32.mrf.mxu2  ;;  %v11963_v44 = vld [vmem:[#allocation3_spill] sm:$0xff] }
 0x280   : > { %v2546_v41 = vmul.f32 %v2425_v43, %v1650_v63  ;;  %v2340_v51 = vpop.permute.xlu0 %2339  ;;  %v3252_v63 = vadd.f32 %v11963_v44, %v11962_v2  ;;  %v4593_v49 = vld [vmem:[%s11743_s11 + $0x140] sm:$0xff]  ;;  %v4591_v43 = vld [vmem:[%s11743_s11 + $0x130] sm:$0xff]  ;;  %v2682_v44 = vld [vmem:[%s11739_s7 + $0x3c8] sm:$0xff] }
 0x281   : > { %v2529_v39 = vmul.f32 %v2340_v51, %v1633_v29  ;;  %v2674_v29 = vld [vmem:[%s11739_s7 + $0x388] sm:$0xff]  ;;  %v11965_v51 = vld [vmem:[#allocation13_spill] sm:$0xff] }
 0x282   : > { %3343 = vmatmul.f32.gmra.mxu2 %v2729_v56  ;;  %5578 = vmatpush.msra.mxu1 %v2546_v41  ;;  %v4608_v56 = vld [vmem:[%s11743_s11 + $0x1b8] sm:$0xff]  ;;  %v11964_v41 = vld [vmem:[#allocation55_spill] sm:$0xff] }
 0x283   : > { %3504 = vmatmul.f32.gmra.mxu3 %v2666_v36  ;;  %3665 = vmatmul.f32.gmra.mxu0 %v2603_v14  ;;  %v3255_v36 = vadd.f32 %v11965_v51, %v11964_v41  ;;  %v2749_v41 = vld [vmem:[%s11739_s7 + $0x5e0] sm:$0xff]  ;;  %v2686_v51 = vld [vmem:[%s11739_s7 + $0x3e8] sm:$0xff] }
 0x284   : > { %5370 = vmatpush.msra.mxu0 %v2529_v39  ;;  %5579 = vmatpush.msra.mxu1 %v2545_v9  ;;  %v2600_v39 = vld [vmem:[%s11739_s7 + $0x138] sm:$0xff]  ;;  %v4609_v9 = vld [vmem:[%s11743_s11 + $0x1c0] sm:$0xff] }
 0x285   : > { %v3457_v58 = vpop.f32.mrf.mxu3  ;;  %4824 = vperm.xlu1 %6549, %v4594_v27  }
 0x286   : > { %v8597_v32 = vadd.f32 %v3457_v58, %v3249_v19  ;;  %4909 = vperm.xlu2 %6550, %v4611_v17   ;;  %v2615_v19 = vld [vmem:[%s11739_s7 + $0x1b0] sm:$0xff] }
 0x287   : > { %3865 = vmatmul.f32.gmra.mxu1 %v2592_v33  ;;  %4914 = vperm.xlu0 %6548, %v4612_v25   ;;  %v8643_v14 = vpop.f32.mrf.mxu2  ;;  %v4607_v33 = vld [vmem:[%s11743_s11 + $0x1b0] sm:$0xff]  ;;  %v4589_v25 = vld [vmem:[%s11743_s11 + $0x120] sm:$0xff] }
 0x288   : > { %v11966_v58 = vld [vmem:[#allocation49_spill] sm:$0xff] }
 0x28a   : > { %3346 = vmatmul.f32.gmra.mxu2 %v2733_v54  ;;  %v3258_v54 = vadd.f32 %v8154_v34, %v11966_v58  ;;  %v2745_v34 = vld [vmem:[%s11739_s7 + $0x5c0] sm:$0xff] }
 0x28b   : > { %3507 = vmatmul.f32.gmra.mxu3 %v2670_v20  ;;  %3668 = vmatmul.f32.gmra.mxu0 %v2607_v13  ;;  %v2604_v20 = vld [vmem:[%s11739_s7 + $0x158] sm:$0xff]  ;;  %v4590_v13 = vld [vmem:[%s11743_s11 + $0x128] sm:$0xff]  ;;  %v2753_v58 = vld [vmem:[%s11739_s7 + $0x600] sm:$0xff] }
 0x28d   : > { %v3460_v12 = vpop.f32.mrf.mxu3  ;;  %4904 = vperm.xlu1 %6549, %v4610_v7  }
 0x28e   : > { %v8624_v8 = vadd.f32 %v3460_v12, %v3252_v63  ;;  %4814 = vperm.xlu2 %6550, %v4592_v40   ;;  %v2619_v63 = vld [vmem:[%s11739_s7 + $0x1d0] sm:$0xff]  ;;  %v11967_v12 = vld [vmem:[#allocation39_spill] sm:$0xff] }
 0x28f   : > { %3868 = vmatmul.f32.gmra.mxu1 %v2596_v21  ;;  %4819 = vperm.xlu0 %6548, %v4593_v49   ;;  %v8676_v40 = vpop.f32.mrf.mxu2  ;;  %v4588_v21 = vld [vmem:[%s11743_s11 + $0x118] sm:$0xff]  ;;  %v4605_v49 = vld [vmem:[%s11743_s11 + $0x1a0] sm:$0xff] }
 0x292   : > { %3349 = vmatmul.f32.gmra.mxu2 %v2737_v48  ;;  %v3261_v48 = vadd.f32 %v8211_v31, %v11967_v12 }
 0x293   : > { %3510 = vmatmul.f32.gmra.mxu3 %v2674_v29  ;;  %3671 = vmatmul.f32.gmra.mxu0 %v2611_v5  ;;  %v2608_v29 = vld [vmem:[%s11739_s7 + $0x178] sm:$0xff]  ;;  %v4606_v5 = vld [vmem:[%s11743_s11 + $0x1a8] sm:$0xff] }
 0x295   : > { %v3463_v27 = vpop.f32.mrf.mxu3  ;;  %4809 = vperm.xlu1 %6549, %v4591_v43  }
 0x296   : > { %v8651_v17 = vadd.f32 %v3463_v27, %v3255_v36  ;;  %4894 = vperm.xlu2 %6550, %v4608_v56   ;;  %v2623_v36 = vld [vmem:[%s11739_s7 + $0x1f0] sm:$0xff] }
 0x297   : > { %3871 = vmatmul.f32.gmra.mxu1 %v2600_v39  ;;  %4899 = vperm.xlu0 %6548, %v4609_v9   ;;  %v8708_v31 = vpop.f32.mrf.mxu2  ;;  %v4604_v39 = vld [vmem:[%s11743_s11 + $0x198] sm:$0xff]  ;;  %v4586_v9 = vld [vmem:[%s11743_s11 + $0x108] sm:$0xff] }
 0x298   : > { %v11968_v27 = vld [vmem:[#allocation45_spill] sm:$0xff] }
 0x29a   : > { %3352 = vmatmul.f32.gmra.mxu2 %v2741_v47  ;;  %v3264_v47 = vadd.f32 %v8259_v15, %v11968_v27 }
 0x29b   : > { %3513 = vmatmul.f32.gmra.mxu3 %v2678_v61  ;;  %3674 = vmatmul.f32.gmra.mxu0 %v2615_v19  ;;  %v2612_v61 = vld [vmem:[%s11739_s7 + $0x198] sm:$0xff]  ;;  %v4587_v19 = vld [vmem:[%s11743_s11 + $0x110] sm:$0xff] }
 0x29d   : > { %v3466_v7 = vpop.f32.mrf.mxu3  ;;  %4889 = vperm.xlu1 %6549, %v4607_v33  }
 0x29e   : > { %v8678_v2 = vadd.f32 %v3466_v7, %v3258_v54  ;;  %4799 = vperm.xlu2 %6550, %v4589_v25   ;;  %v2690_v54 = vld [vmem:[%s11739_s7 + $0x408] sm:$0xff]  ;;  %v4585_v7 = vld [vmem:[%s11743_s11 + $0x100] sm:$0xff] }
 0x29f   : > { %3874 = vmatmul.f32.gmra.mxu1 %v2604_v20  ;;  %4804 = vperm.xlu0 %6548, %v4590_v13   ;;  %v2627_v20 = vld [vmem:[%s11739_s7 + $0x210] sm:$0xff]  ;;  %v8743_v13 = vpop.f32.mrf.mxu2 }
 0x2a2   : > { %3355 = vmatmul.f32.gmra.mxu2 %v2745_v34  ;;  %v4602_v34 = vld [vmem:[%s11743_s11 + $0x188] sm:$0xff] }
 0x2a3   : > { %3516 = vmatmul.f32.gmra.mxu3 %v2682_v44  ;;  %3677 = vmatmul.f32.gmra.mxu0 %v2619_v63  ;;  %v11969_v44 = vld [vmem:[#allocation73_spill] sm:$0xff] }
 0x2a4   : > { %v3267_v63 = vadd.f32 %v8309_v59, %v11969_v44 }
 0x2a5   : > { %v3469_v43 = vpop.f32.mrf.mxu3  ;;  %4794 = vperm.xlu1 %6549, %v4588_v21   ;;  %v2616_v21 = vld [vmem:[%s11739_s7 + $0x1b8] sm:$0xff] }
 0x2a6   : > { %v8703_v56 = vadd.f32 %v3469_v43, %v3261_v48  ;;  %4879 = vperm.xlu2 %6550, %v4605_v49   ;;  %v4603_v49 = vld [vmem:[%s11743_s11 + $0x190] sm:$0xff] }
 0x2a7   : > { %3877 = vmatmul.f32.gmra.mxu1 %v2608_v29  ;;  %4884 = vperm.xlu0 %6548, %v4606_v5   ;;  %v2757_v29 = vld [vmem:[%s11739_s7 + $0x620] sm:$0xff]  ;;  %v2694_v5 = vld [vmem:[%s11739_s7 + $0x428] sm:$0xff]  ;;  %v2631_v43 = vld [vmem:[%s11739_s7 + $0x230] sm:$0xff] }
 0x2aa   : > { %3358 = vmatmul.f32.gmra.mxu2 %v2749_v41  ;;  %v8772_v41 = vpop.f32.mrf.mxu2 }
 0x2ab   : > { %3519 = vmatmul.f32.gmra.mxu3 %v2686_v51  ;;  %3680 = vmatmul.f32.gmra.mxu0 %v2623_v36  ;;  %v2620_v51 = vld [vmem:[%s11739_s7 + $0x1d8] sm:$0xff]  ;;  %v4601_v36 = vld [vmem:[%s11743_s11 + $0x180] sm:$0xff] }
 0x2ad   : > { %v3472_v33 = vpop.f32.mrf.mxu3  ;;  %4874 = vperm.xlu1 %6549, %v4604_v39   ;;  %v11971_v39 = vld [vmem:[#allocation83_spill] sm:$0xff] }
 0x2ae   : > { %v8730_v25 = vadd.f32 %v3472_v33, %v3264_v47  ;;  %4784 = vperm.xlu2 %6550, %v4586_v9   ;;  %v3270_v9 = vadd.f32 %v8363_v30, %v11971_v39  ;;  %v2698_v33 = vld [vmem:[%s11739_s7 + $0x448] sm:$0xff]  ;;  %v2624_v30 = vld [vmem:[%s11739_s7 + $0x1f8] sm:$0xff]  ;;  %v2769_v39 = vld [vmem:[%s11739_s7 + $0x680] sm:$0xff] }
 0x2af   : > { %3880 = vmatmul.f32.gmra.mxu1 %v2612_v61  ;;  %4789 = vperm.xlu0 %6548, %v4587_v19   ;;  %v2761_v61 = vld [vmem:[%s11739_s7 + $0x640] sm:$0xff] }
 0x2b0   : > { %v8735_v15 = vpop.f32.mrf.mxu0 }
 0x2b2   : > { %3361 = vmatmul.f32.gmra.mxu2 %v2753_v58  ;;  %v2635_v58 = vld [vmem:[%s11739_s7 + $0x250] sm:$0xff] }
 0x2b3   : > { %3522 = vmatmul.f32.gmra.mxu3 %v2690_v54  ;;  %3683 = vmatmul.f32.gmra.mxu0 %v2627_v20  ;;  %v11973_v54 = vld [vmem:[#allocation69_spill] sm:$0xff] }
 0x2b4   : > { %v3273_v20 = vadd.f32 %v8413_v4, %v11973_v54  ;;  %v2639_v4 = vld [vmem:[%s11739_s7 + $0x270] sm:$0xff] }
 0x2b5   : > { %v3475_v12 = vpop.f32.mrf.mxu3  ;;  %4779 = vperm.xlu1 %6549, %v4585_v7   ;;  %v8800_v7 = vpop.f32.mrf.mxu2 }
 0x2b6   : > { %v8759_v48 = vadd.f32 %v3475_v12, %v3267_v63  ;;  %4864 = vperm.xlu2 %6550, %v4602_v34   ;;  %v2765_v63 = vld [vmem:[%s11739_s7 + $0x660] sm:$0xff] }
 0x2b7   : > { %3883 = vmatmul.f32.gmra.mxu1 %v2616_v21  ;;  %4869 = vperm.xlu0 %6548, %v4603_v49   ;;  %v2702_v49 = vld [vmem:[%s11739_s7 + $0x468] sm:$0xff] }
 0x2b8   : > { %11970 = vst [vmem:[#allocation119_spill] sm:$0xff] %v8759_v48  ;;  %v8764_v59 = vpop.f32.mrf.mxu0 }
 0x2ba   : > { %3364 = vmatmul.f32.gmra.mxu2 %v2757_v29  ;;  %v2628_v29 = vld [vmem:[%s11739_s7 + $0x218] sm:$0xff] }
 0x2bb   : > { %3525 = vmatmul.f32.gmra.mxu3 %v2694_v5  ;;  %3686 = vmatmul.f32.gmra.mxu0 %v2631_v43  ;;  %v11975_v5 = vld [vmem:[#allocation80_spill] sm:$0xff] }
 0x2bc   : > { %v3276_v43 = vadd.f32 %v8455_v53, %v11975_v5  ;;  %v2643_v53 = vld [vmem:[%s11739_s7 + $0x290] sm:$0xff] }
 0x2be   : > { %v3478_v27 = vpop.f32.mrf.mxu3 }
 0x2bf   : > { %v8782_v47 = vadd.f32 %v3478_v27, %v3270_v9  ;;  %3886 = vmatmul.f32.gmra.mxu1 %v2620_v51  ;;  %4859 = vperm.xlu0 %6548, %v4601_v36   ;;  %v8827_v9 = vpop.f32.mrf.mxu2 }
 0x2c0   : > { %v8787_v19 = vpop.f32.mrf.mxu0 }
 0x2c1   : > { %11972 = vst [vmem:[#allocation141_spill] sm:$0xff] %v8782_v47 }
 0x2c2   : > { %3367 = vmatmul.f32.gmra.mxu2 %v2761_v61  ;;  %v2706_v61 = vld [vmem:[%s11739_s7 + $0x488] sm:$0xff] }
 0x2c3   : > { %3528 = vmatmul.f32.gmra.mxu3 %v2698_v33  ;;  %3689 = vmatmul.f32.gmra.mxu0 %v2635_v58  ;;  %v2632_v58 = vld [vmem:[%s11739_s7 + $0x238] sm:$0xff] }
 0x2c6   : > { %v3481_v34 = vpop.f32.mrf.mxu3 }
 0x2c7   : > { %v8802_v44 = vadd.f32 %v3481_v34, %v3273_v20  ;;  %3889 = vmatmul.f32.gmra.mxu1 %v2624_v30  ;;  %v11977_v30 = vld [vmem:[#allocation76_spill] sm:$0xff]  ;;  %v8857_v5 = vpop.f32.mrf.mxu2 }
 0x2c8   : > { %v8807_v21 = vpop.f32.mrf.mxu0  ;;  %v3279_v54 = vadd.f32 %v8496_v16, %v11977_v30 }
 0x2c9   : > { %11974 = vst [vmem:[#allocation86_spill] sm:$0xff] %v8802_v44 }
 0x2ca   : > { %3370 = vmatmul.f32.gmra.mxu2 %v2765_v63  ;;  %v2773_v63 = vld [vmem:[%s11739_s7 + $0x6a0] sm:$0xff] }
 0x2cb   : > { %3531 = vmatmul.f32.gmra.mxu3 %v2702_v49  ;;  %3692 = vmatmul.f32.gmra.mxu0 %v2639_v4  ;;  %v2710_v4 = vld [vmem:[%s11739_s7 + $0x4a8] sm:$0xff] }
 0x2cc   : > { %v8815_v12 = vpop.f32.mrf.mxu1 }
 0x2ce   : > { %v3484_v51 = vpop.f32.mrf.mxu3 }
 0x2cf   : > { %v8822_v36 = vadd.f32 %v3484_v51, %v3276_v43  ;;  %3892 = vmatmul.f32.gmra.mxu1 %v2628_v29  ;;  %v2647_v29 = vld [vmem:[%s11739_s7 + $0x2b0] sm:$0xff]  ;;  %v2636_v43 = vld [vmem:[%s11739_s7 + $0x258] sm:$0xff] }
 0x2d0   : > { %v8829_v27 = vpop.f32.mrf.mxu0  ;;  %v11979_v51 = vld [vmem:[#allocation62_spill] sm:$0xff] }
 0x2d1   : > { %11976 = vst [vmem:[#allocation109_spill] sm:$0xff] %v8822_v36 }
 0x2d2   : > { %3373 = vmatmul.f32.gmra.mxu2 %v2769_v39  ;;  %v3282_v39 = vadd.f32 %v8537_v60, %v11979_v51  ;;  %v8879_v60 = vpop.f32.mrf.mxu2 }
 0x2d3   : > { %3534 = vmatmul.f32.gmra.mxu3 %v2706_v61  ;;  %3695 = vmatmul.f32.gmra.mxu0 %v2643_v53 }
 0x2d4   : > { %v8837_v33 = vpop.f32.mrf.mxu1 }
 0x2d6   : > { %v3487_v20 = vpop.f32.mrf.mxu3 }
 0x2d7   : > { %v8844_v34 = vadd.f32 %v3487_v20, %v3279_v54  ;;  %3895 = vmatmul.f32.gmra.mxu1 %v2632_v58  ;;  %v2777_v58 = vld [vmem:[%s11739_s7 + $0x6c0] sm:$0xff]  ;;  %v2714_v54 = vld [vmem:[%s11739_s7 + $0x4c8] sm:$0xff]  ;;  %v2651_v20 = vld [vmem:[%s11739_s7 + $0x2d0] sm:$0xff] }
 0x2d8   : > { %v8849_v49 = vpop.f32.mrf.mxu0 }
 0x2d9   : > { %11978 = vst [vmem:[#allocation58_spill] sm:$0xff] %v8844_v34 }
 0x2da   : > { %3376 = vmatmul.f32.gmra.mxu2 %v2773_v63 }
 0x2db   : > { %3537 = vmatmul.f32.gmra.mxu3 %v2710_v4  ;;  %3698 = vmatmul.f32.gmra.mxu0 %v2647_v29  ;;  %v2640_v4 = vld [vmem:[%s11739_s7 + $0x278] sm:$0xff] }
 0x2dc   : > { %v8859_v16 = vpop.f32.mrf.mxu1  ;;  %v11981_v29 = vld [vmem:[#allocation74_spill] sm:$0xff] }
 0x2de   : > { %v3490_v61 = vpop.f32.mrf.mxu3 }
 0x2df   : > { %v8866_v53 = vadd.f32 %v3490_v61, %v3282_v39  ;;  %3898 = vmatmul.f32.gmra.mxu1 %v2636_v43  ;;  %v3285_v43 = vadd.f32 %v8575_v0, %v11981_v29  ;;  %v2781_v61 = vld [vmem:[%s11739_s7 + $0x6e0] sm:$0xff]  ;;  %v11983_v29 = vld [vmem:[#allocation68_spill] sm:$0xff] }
 0x2e0   : > { %v8871_v30 = vpop.f32.mrf.mxu0 }
 0x2e1   : > { %11980 = vst [vmem:[#allocation123_spill] sm:$0xff] %v8866_v53  ;;  %v2809_v53 = vld [vmem:[%s11739_s7 + $0x7c0] sm:$0xff] }
 0x2e2   : > { %3379 = vmatmul.f32.gmra.mxu2 %v2777_v58 }
 0x2e3   : > { %3540 = vmatmul.f32.gmra.mxu3 %v2714_v54  ;;  %3701 = vmatmul.f32.gmra.mxu0 %v2651_v20  ;;  %v2718_v54 = vld [vmem:[%s11739_s7 + $0x4e8] sm:$0xff]  ;;  %v2655_v20 = vld [vmem:[%s11739_s7 + $0x2f0] sm:$0xff] }
 0x2e4   : > { %v8881_v63 = vpop.f32.mrf.mxu1 }
 0x2e6   : > { %v3493_v51 = vpop.f32.mrf.mxu3 }
 0x2e7   : > { %v8888_v39 = vadd.f32 %v3493_v51, %v3285_v43  ;;  %3901 = vmatmul.f32.gmra.mxu1 %v2640_v4  ;;  %v2644_v4 = vld [vmem:[%s11739_s7 + $0x298] sm:$0xff]  ;;  %v3288_v43 = vadd.f32 %v8608_v23, %v11983_v29  ;;  %v8908_v51 = vpop.f32.mrf.mxu2 }
 0x2e8   : > { %v8893_v58 = vpop.f32.mrf.mxu0  ;;  %v11985_v29 = vld [vmem:[#allocation54_spill] sm:$0xff] }
 0x2e9   : > { %11982 = vst [vmem:[#allocation105_spill] sm:$0xff] %v8888_v39  ;;  %v2683_v39 = vld [vmem:[%s11739_s7 + $0x3d0] sm:$0xff] }
 0x2ea   : > { %3382 = vmatmul.f32.gmra.mxu2 %v2781_v61  ;;  %v2785_v61 = vld [vmem:[%s11739_s7 + $0x700] sm:$0xff] }
 0x2eb   : > { %3543 = vmatmul.f32.gmra.mxu3 %v2718_v54  ;;  %3704 = vmatmul.f32.gmra.mxu0 %v2655_v20  ;;  %v2722_v20 = vld [vmem:[%s11739_s7 + $0x508] sm:$0xff] }
 0x2ec   : > { %v8901_v0 = vpop.f32.mrf.mxu1 }
 0x2ee   : > { %v3496_v50 = vpop.f32.mrf.mxu3 }
 0x2ef   : > { %v8910_v45 = vadd.f32 %v3496_v50, %v3288_v43  ;;  %3904 = vmatmul.f32.gmra.mxu1 %v2644_v4  ;;  %v2648_v4 = vld [vmem:[%s11739_s7 + $0x2b8] sm:$0xff]  ;;  %v3291_v43 = vadd.f32 %v8643_v14, %v11985_v29  ;;  %v2663_v14 = vld [vmem:[%s11739_s7 + $0x330] sm:$0xff] }
 0x2f0   : > { %v3660_v54 = vpop.f32.mrf.mxu0 }
 0x2f1   : > { %11984 = vst [vmem:[#allocation70_spill] sm:$0xff] %v8910_v45  ;;  %v3661_v23 = vadd.f32 %v3660_v54, %v8539_v37  ;;  %v2789_v37 = vld [vmem:[%s11739_s7 + $0x720] sm:$0xff]  ;;  %v2726_v54 = vld [vmem:[%s11739_s7 + $0x528] sm:$0xff] }
 0x2f2   : > { %3385 = vmatmul.f32.gmra.mxu2 %v2785_v61  ;;  %v8934_v61 = vpop.f32.mrf.mxu2 }
 0x2f3   : > { %3546 = vmatmul.f32.gmra.mxu3 %v2722_v20  ;;  %3707 = vmatmul.f32.gmra.mxu0 %v2659_v6  ;;  %v2652_v20 = vld [vmem:[%s11739_s7 + $0x2d8] sm:$0xff] }
 0x2f4   : > { %v8922_v50 = vpop.f32.mrf.mxu1 }
 0x2f6   : > { %v3499_v22 = vpop.f32.mrf.mxu3 }
 0x2f7   : > { %v8929_v10 = vadd.f32 %v3499_v22, %v3291_v43  ;;  %3907 = vmatmul.f32.gmra.mxu1 %v2648_v4  ;;  %v11987_v4 = vld [vmem:[#allocation66_spill] sm:$0xff] }
 0x2f8   : > { %v8936_v6 = vpop.f32.mrf.mxu0  ;;  %v3294_v29 = vadd.f32 %v8676_v40, %v11987_v4  ;;  %v11989_v4 = vld [vmem:[#allocation61_spill] sm:$0xff] }
 0x2f9   : > { %11986 = vst [vmem:[#allocation127_spill] sm:$0xff] %v8929_v10 }
 0x2fa   : > { %3388 = vmatmul.f32.gmra.mxu2 %v2789_v37  ;;  %v8964_v26 = vpop.f32.mrf.mxu2 }
 0x2fb   : > { %3549 = vmatmul.f32.gmra.mxu3 %v2726_v54  ;;  %3710 = vmatmul.f32.gmra.mxu0 %v2663_v14  ;;  %v2730_v54 = vld [vmem:[%s11739_s7 + $0x548] sm:$0xff]  ;;  %v2667_v14 = vld [vmem:[%s11739_s7 + $0x350] sm:$0xff] }
 0x2fc   : > { %v8944_v22 = vpop.f32.mrf.mxu1 }
 0x2fe   : > { %v3502_v43 = vpop.f32.mrf.mxu3 }
 0x2ff   : > { %v8951_v24 = vadd.f32 %v3502_v43, %v3294_v29  ;;  %3910 = vmatmul.f32.gmra.mxu1 %v2652_v20  ;;  %v2656_v20 = vld [vmem:[%s11739_s7 + $0x2f8] sm:$0xff]  ;;  %v3297_v29 = vadd.f32 %v8708_v31, %v11989_v4 }
 0x300   : > { %v8956_v37 = vpop.f32.mrf.mxu0  ;;  %v2660_v4 = vld [vmem:[%s11739_s7 + $0x318] sm:$0xff] }
 0x301   : > { %11988 = vst [vmem:[#allocation19_spill] sm:$0xff] %v8951_v24  ;;  %v2813_v24 = vld [vmem:[%s11739_s7 + $0x7e0] sm:$0xff] }
 0x302   : > { %3391 = vmatmul.f32.gmra.mxu2 %v2793_v11  ;;  %v8986_v31 = vpop.f32.mrf.mxu2 }
 0x303   : > { %3552 = vmatmul.f32.gmra.mxu3 %v2730_v54  ;;  %3713 = vmatmul.f32.gmra.mxu0 %v2667_v14  ;;  %v2734_v54 = vld [vmem:[%s11739_s7 + $0x568] sm:$0xff]  ;;  %v2671_v14 = vld [vmem:[%s11739_s7 + $0x370] sm:$0xff] }
 0x304   : > { %v8966_v40 = vpop.f32.mrf.mxu1 }
 0x306   : > { %v3505_v43 = vpop.f32.mrf.mxu3 }
 0x307   : > { %v8973_v35 = vadd.f32 %v3505_v43, %v3297_v29  ;;  %3913 = vmatmul.f32.gmra.mxu1 %v2656_v20  ;;  %v11991_v29 = vld [vmem:[#allocation46_spill] sm:$0xff] }
 0x308   : > { %v8978_v11 = vpop.f32.mrf.mxu0  ;;  %v3300_v43 = vadd.f32 %v8743_v13, %v11991_v29  ;;  %v2675_v13 = vld [vmem:[%s11739_s7 + $0x390] sm:$0xff] }
 0x309   : > { %11990 = vst [vmem:[#allocation65_spill] sm:$0xff] %v8973_v35 }
 0x30a   : > { %3394 = vmatmul.f32.gmra.mxu2 %v2797_v52  ;;  %v2801_v52 = vld [vmem:[%s11739_s7 + $0x780] sm:$0xff]  ;;  %v9015_v29 = vpop.f32.mrf.mxu2 }
 0x30b   : > { %3555 = vmatmul.f32.gmra.mxu3 %v2734_v54  ;;  %3716 = vmatmul.f32.gmra.mxu0 %v2671_v14  ;;  %v2738_v14 = vld [vmem:[%s11739_s7 + $0x588] sm:$0xff] }
 0x30c   : > { %v3869_v20 = vpop.f32.mrf.mxu1 }
 0x30d   : > { %v8993_v62 = vadd.f32 %v3869_v20, %v3661_v23  ;;  %v2664_v23 = vld [vmem:[%s11739_s7 + $0x338] sm:$0xff]  ;;  %v11993_v20 = vld [vmem:[#allocation59_spill] sm:$0xff] }
 0x30e   : > { %v3508_v48 = vpop.f32.mrf.mxu3 }
 0x30f   : > { %v8995_v47 = vadd.f32 %v3508_v48, %v3300_v43  ;;  %3916 = vmatmul.f32.gmra.mxu1 %v2660_v4  ;;  %v3303_v4 = vadd.f32 %v8772_v41, %v11993_v20  ;;  %v2679_v41 = vld [vmem:[%s11739_s7 + $0x3b0] sm:$0xff] }
 0x310   : > { %v9000_v54 = vpop.f32.mrf.mxu0 }
 0x311   : > { %11992 = vst [vmem:[#allocation130_spill] sm:$0xff] %v8995_v47 }
 0x312   : > { %3397 = vmatmul.f32.gmra.mxu2 %v2801_v52  ;;  %v2805_v52 = vld [vmem:[%s11739_s7 + $0x7a0] sm:$0xff] }
 0x313   : > { %3558 = vmatmul.f32.gmra.mxu3 %v2738_v14  ;;  %3719 = vmatmul.f32.gmra.mxu0 %v2675_v13  ;;  %v2742_v13 = vld [vmem:[%s11739_s7 + $0x5a8] sm:$0xff] }
 0x314   : > { %v9008_v48 = vpop.f32.mrf.mxu1 }
 0x316   : > { %v3511_v43 = vpop.f32.mrf.mxu3 }
 0x317   : > { %v9017_v44 = vadd.f32 %v3511_v43, %v3303_v4  ;;  %3919 = vmatmul.f32.gmra.mxu1 %v2664_v23  ;;  %v2668_v23 = vld [vmem:[%s11739_s7 + $0x358] sm:$0xff] }
 0x318   : > { %v9022_v14 = vpop.f32.mrf.mxu0  ;;  %v11995_v4 = vld [vmem:[#allocation53_spill] sm:$0xff] }
 0x319   : > { %11994 = vst [vmem:[#allocation102_spill] sm:$0xff] %v9017_v44  ;;  %v3306_v43 = vadd.f32 %v8800_v7, %v11995_v4 }
 0x31a   : > { %3400 = vmatmul.f32.gmra.mxu2 %v2805_v52  ;;  %v9042_v52 = vpop.f32.mrf.mxu2 }
 0x31b   : > { %3561 = vmatmul.f32.gmra.mxu3 %v2742_v13  ;;  %3722 = vmatmul.f32.gmra.mxu0 %v2679_v41  ;;  %v2746_v41 = vld [vmem:[%s11739_s7 + $0x5c8] sm:$0xff] }
 0x31c   : > { %v9030_v20 = vpop.f32.mrf.mxu1 }
 0x31e   : > { %v3514_v36 = vpop.f32.mrf.mxu3 }
 0x31f   : > { %v9037_v34 = vadd.f32 %v3514_v36, %v3306_v43  ;;  %3922 = vmatmul.f32.gmra.mxu1 %v2668_v23  ;;  %v2672_v36 = vld [vmem:[%s11739_s7 + $0x378] sm:$0xff] }
 0x320   : > { %v3678_v13 = vpop.f32.mrf.mxu0  ;;  %v11997_v23 = vld [vmem:[#allocation41_spill] sm:$0xff] }
 0x321   : > { %11996 = vst [vmem:[#allocation98_spill] sm:$0xff] %v9037_v34  ;;  %v3309_v4 = vadd.f32 %v8827_v9, %v11997_v23  ;;  %v11999_v23 = vld [vmem:[#allocation51_spill] sm:$0xff] }
 0x322   : > { %3403 = vmatmul.f32.gmra.mxu2 %v2809_v53  ;;  %v9068_v35 = vpop.f32.mrf.mxu2  ;;  %v2758_v34 = vld [vmem:[%s11739_s7 + $0x628] sm:$0xff] }
 0x323   : > { %3564 = vmatmul.f32.gmra.mxu3 %v2746_v41  ;;  %3725 = vmatmul.f32.gmra.mxu0 %v2683_v39  ;;  %v2750_v39 = vld [vmem:[%s11739_s7 + $0x5e8] sm:$0xff]  ;;  %v2687_v41 = vld [vmem:[%s11739_s7 + $0x3f0] sm:$0xff] }
 0x324   : > { %v9050_v7 = vpop.f32.mrf.mxu1 }
 0x326   : > { %v3517_v43 = vpop.f32.mrf.mxu3 }
 0x327   : > { %v9057_v45 = vadd.f32 %v3517_v43, %v3309_v4  ;;  %3925 = vmatmul.f32.gmra.mxu1 %v2672_v36  ;;  %v2676_v36 = vld [vmem:[%s11739_s7 + $0x398] sm:$0xff]  ;;  %v3312_v4 = vadd.f32 %v8857_v5, %v11999_v23  ;;  %v12002_v23 = vld [vmem:[#allocation107_spill] sm:$0xff] }
 0x328   : > { %v3681_v53 = vpop.f32.mrf.mxu0  ;;  %v2680_v5 = vld [vmem:[%s11739_s7 + $0x3b8] sm:$0xff] }
 0x329   : > { %11998 = vst [vmem:[#allocation50_spill] sm:$0xff] %v9057_v45 }
 0x32a   : > { %3406 = vmatmul.f32.gmra.mxu2 %v2813_v24  ;;  %v2754_v24 = vld [vmem:[%s11739_s7 + $0x608] sm:$0xff] }
 0x32b   : > { %3567 = vmatmul.f32.gmra.mxu3 %v2750_v39  ;;  %3728 = vmatmul.f32.gmra.mxu0 %v2687_v41  ;;  %v2691_v39 = vld [vmem:[%s11739_s7 + $0x410] sm:$0xff] }
 0x32c   : > { %v3881_v9 = vpop.f32.mrf.mxu1 }
 0x32e   : > { %v3520_v43 = vpop.f32.mrf.mxu3 }
 0x32f   : > { %v9075_v47 = vadd.f32 %v3520_v43, %v3312_v4  ;;  %3928 = vmatmul.f32.gmra.mxu1 %v2676_v36  ;;  %v3315_v36 = vadd.f32 %v8879_v60, %v12002_v23  ;;  %v2684_v60 = vld [vmem:[%s11739_s7 + $0x3d8] sm:$0xff] }
 0x330   : > { %v9077_v44 = vpop.f32.mrf.mxu0  ;;  %v12005_v23 = vld [vmem:[#allocation118_spill] sm:$0xff] }
 0x331   : > { %12000 = vst [vmem:[#allocation133_spill] sm:$0xff] %v9075_v47 }
 0x332   : > { %12001 = vst [vmem:[#allocation18_spill] sm:$0xff] %v9077_v44 }
 0x333   : > { %3570 = vmatmul.f32.gmra.mxu3 %v2754_v24  ;;  %3731 = vmatmul.f32.gmra.mxu0 %v2691_v39  ;;  %v2695_v24 = vld [vmem:[%s11739_s7 + $0x430] sm:$0xff] }
 0x334   : > { %v3884_v41 = vpop.f32.mrf.mxu1 }
 0x336   : > { %v3523_v4 = vpop.f32.mrf.mxu3 }
 0x337   : > { %v9090_v43 = vadd.f32 %v3523_v4, %v3315_v36  ;;  %3931 = vmatmul.f32.gmra.mxu1 %v2680_v5  ;;  %v3318_v5 = vadd.f32 %v8908_v51, %v12005_v23  ;;  %v3679_v51 = vadd.f32 %v3678_v13, %v8703_v56  ;;  %v3673_v56 = vadd.f32 %v9000_v54, %v8651_v17 }
 0x338   : > { %v9092_v44 = vpop.f32.mrf.mxu0  ;;  %v3667_v17 = vadd.f32 %v8956_v37, %v8597_v32 }
 0x339   : > { %12003 = vst [vmem:[#allocation4_spill] sm:$0xff] %v9090_v43 }
 0x33a   : > { %12004 = vst [vmem:[#allocation94_spill] sm:$0xff] %v9092_v44  ;;  %v2762_v44 = vld [vmem:[%s11739_s7 + $0x648] sm:$0xff] }
 0x33b   : > { %3573 = vmatmul.f32.gmra.mxu3 %v2758_v34  ;;  %3734 = vmatmul.f32.gmra.mxu0 %v2695_v24  ;;  %v2699_v34 = vld [vmem:[%s11739_s7 + $0x450] sm:$0xff]  ;;  %v3682_v24 = vadd.f32 %v3681_v53, %v8730_v25 }
 0x33c   : > { %v3887_v39 = vpop.f32.mrf.mxu1 }
 0x33d   : > { %v3888_v47 = vadd.f32 %v3887_v39, %v3679_v51  ;;  %v12009_v39 = vld [vmem:[#allocation24_spill] sm:$0xff] }
 0x33e   : > { %v3526_v36 = vpop.f32.mrf.mxu3 }
 0x33f   : > { %v9105_v4 = vadd.f32 %v3526_v36, %v3318_v5  ;;  %3934 = vmatmul.f32.gmra.mxu1 %v2684_v60  ;;  %v2688_v60 = vld [vmem:[%s11739_s7 + $0x3f8] sm:$0xff]  ;;  %v4051_v53 = vmax.f32 %v3888_v47, 0.0  ;;  %v3664_v47 = vadd.f32 %v8936_v6, %v8570_v1  ;;  %v2707_v1 = vld [vmem:[%s11739_s7 + $0x490] sm:$0xff]  ;;  %v3658_v6 = vadd.f32 %v8893_v58, %v8506_v38 }
 0x340   : > { %v9107_v43 = vpop.f32.mrf.mxu0  ;;  %v12008_v5 = vld [vmem:[#allocation113_spill] sm:$0xff]  ;;  %v3652_v58 = vadd.f32 %v8849_v49, %v8440_v46  ;;  %v2774_v46 = vld [vmem:[%s11739_s7 + $0x6a8] sm:$0xff]  ;;  %v3646_v49 = vadd.f32 %v8807_v21, %v8365_v57  ;;  %v12011_v57 = vld [vmem:[#allocation106_spill] sm:$0xff] }
 0x341   : > { %12006 = vst [vmem:[#allocation63_spill] sm:$0xff] %v9105_v4  ;;  %v3321_v36 = vadd.f32 %v8934_v61, %v12008_v5  ;;  %v2766_v61 = vld [vmem:[%s11739_s7 + $0x668] sm:$0xff]  ;;  %v3330_v21 = vadd.f32 %v9015_v29, %v12011_v57 }
 0x342   : > { %12007 = vst [vmem:[#allocation136_spill] sm:$0xff] %v9107_v43  ;;  %v3676_v43 = vadd.f32 %v9022_v14, %v8678_v2  ;;  %v2703_v2 = vld [vmem:[%s11739_s7 + $0x470] sm:$0xff]  ;;  %v3882_v14 = vadd.f32 %v3881_v9, %v3673_v56  ;;  %v3649_v56 = vadd.f32 %v8829_v27, %v8406_v18  ;;  %v3643_v27 = vadd.f32 %v8787_v19, %v8317_v42 }
 0x343   : > { %3576 = vmatmul.f32.gmra.mxu3 %v2762_v44  ;;  %3737 = vmatmul.f32.gmra.mxu0 %v2699_v34  ;;  %v12010_v5 = vld [vmem:[#allocation112_spill] sm:$0xff] }
 0x344   : > { %v3890_v23 = vpop.f32.mrf.mxu1  ;;  %v3885_v44 = vadd.f32 %v3884_v41, %v3676_v43  ;;  %v4049_v9 = vmax.f32 %v3882_v14, 0.0  ;;  %v3327_v38 = vadd.f32 %v8986_v31, %v12010_v5  ;;  %v2700_v14 = vld [vmem:[%s11739_s7 + $0x458] sm:$0xff] }
 0x345   : > { %v3891_v4 = vadd.f32 %v3890_v23, %v3682_v24  ;;  %v3867_v24 = vadd.f32 %v8966_v40, %v3658_v6 }
 0x346   : > { %v3529_v45 = vpop.f32.mrf.mxu3  ;;  %v4050_v41 = vmax.f32 %v3885_v44, 0.0  ;;  %v3861_v44 = vadd.f32 %v8922_v50, %v3652_v58  ;;  %v3855_v50 = vadd.f32 %v8881_v63, %v3646_v49  ;;  %v3637_v63 = vadd.f32 %v8735_v15, %v8239_v55  ;;  %v2720_v49 = vld [vmem:[%s11739_s7 + $0x4f8] sm:$0xff] }
 0x347   : > { %v4052_v10 = vmax.f32 %v3891_v4, 0.0  ;;  %v9124_v25 = vadd.f32 %v3529_v45, %v3321_v36  ;;  %3937 = vmatmul.f32.gmra.mxu1 %v2688_v60  ;;  %v3670_v45 = vadd.f32 %v8978_v11, %v8624_v8  ;;  %v3324_v8 = vadd.f32 %v8964_v26, %v12009_v39  ;;  %v2770_v26 = vld [vmem:[%s11739_s7 + $0x688] sm:$0xff]  ;;  %v2696_v60 = vld [vmem:[%s11739_s7 + $0x438] sm:$0xff] }
 0x348   : > { %v9128_v13 = vpop.f32.mrf.mxu0  ;;  %v3876_v11 = vadd.f32 %v9030_v20, %v3667_v17  ;;  %v12012_v39 = vld [vmem:[#allocation96_spill] sm:$0xff] }
 0x349   : > { %4133 = vmatpush.msrb.mxu2 %v4052_v10  ;;  %v3879_v54 = vadd.f32 %v9050_v7, %v3670_v45  ;;  %v2692_v10 = vld [vmem:[%s11739_s7 + $0x418] sm:$0xff]  ;;  %v3873_v7 = vadd.f32 %v9008_v48, %v3664_v47  ;;  %v3655_v48 = vadd.f32 %v8871_v30, %v8471_v28  ;;  %v4045_v28 = vmax.f32 %v8993_v62, 0.0  ;;  %v2711_v62 = vld [vmem:[%s11739_s7 + $0x4b0] sm:$0xff] }
 0x34a   : > { %v4047_v20 = vmax.f32 %v3876_v11, 0.0 }
 0x34b   : > { %3579 = vmatmul.f32.gmra.mxu3 %v2766_v61  ;;  %3740 = vmatmul.f32.gmra.mxu0 %v2703_v2  ;;  %v4048_v4 = vmax.f32 %v3879_v54, 0.0  ;;  %v4046_v51 = vmax.f32 %v3873_v7, 0.0  ;;  %v3864_v36 = vadd.f32 %v8944_v22, %v3655_v48  ;;  %v4044_v61 = vmax.f32 %v3867_v24, 0.0  ;;  %v2719_v7 = vld [vmem:[%s11739_s7 + $0x4f0] sm:$0xff]  ;;  %v2786_v24 = vld [vmem:[%s11739_s7 + $0x708] sm:$0xff] }
 0x34c   : > { %4134 = vmatpush.msrb.mxu2 %v4051_v53  ;;  %v9141_v43 = vpop.f32.mrf.mxu1  ;;  %v3858_v22 = vadd.f32 %v8901_v0, %v3649_v56  ;;  %v4042_v2 = vmax.f32 %v3861_v44, 0.0  ;;  %v3640_v0 = vadd.f32 %v8764_v59, %v8277_v3  ;;  %v3852_v53 = vadd.f32 %v8859_v16, %v3643_v27  ;;  %v2778_v3 = vld [vmem:[%s11739_s7 + $0x6c8] sm:$0xff]  ;;  %v2715_v59 = vld [vmem:[%s11739_s7 + $0x4d0] sm:$0xff]  ;;  %v2716_v56 = vld [vmem:[%s11739_s7 + $0x4d8] sm:$0xff] }
 0x34d   : > { %v4043_v18 = vmax.f32 %v3864_v36, 0.0  ;;  %v3846_v16 = vadd.f32 %v8815_v12, %v3637_v63  ;;  %v2790_v36 = vld [vmem:[%s11739_s7 + $0x728] sm:$0xff]  ;;  %v2735_v27 = vld [vmem:[%s11739_s7 + $0x570] sm:$0xff] }
 0x34e   : > { %4135 = vmatpush.msrb.mxu2 %v4050_v41  ;;  %v3532_v32 = vpop.f32.mrf.mxu3  ;;  %v4041_v17 = vmax.f32 %v3858_v22, 0.0  ;;  %v3849_v54 = vadd.f32 %v8837_v33, %v3640_v0  ;;  %v4040_v41 = vmax.f32 %v3855_v50, 0.0  ;;  %v4039_v29 = vmax.f32 %v3852_v53, 0.0  ;;  %v2704_v33 = vld [vmem:[%s11739_s7 + $0x478] sm:$0xff]  ;;  %v2739_v0 = vld [vmem:[%s11739_s7 + $0x590] sm:$0xff]  ;;  %v2806_v63 = vld [vmem:[%s11739_s7 + $0x7a8] sm:$0xff] }
 0x34f   : > { %v9151_v37 = vadd.f32 %v3532_v32, %v3324_v8  ;;  %3940 = vmatmul.f32.gmra.mxu1 %v2692_v10  ;;  %v3333_v8 = vadd.f32 %v9042_v52, %v12012_v39  ;;  %v4037_v47 = vmax.f32 %v3846_v16, 0.0  ;;  %v2782_v32 = vld [vmem:[%s11739_s7 + $0x6e8] sm:$0xff] }
 0x350   : > { %4136 = vmatpush.msrb.mxu2 %v4049_v9  ;;  %v9154_v34 = vpop.f32.mrf.mxu0  ;;  %v4038_v55 = vmax.f32 %v3849_v54, 0.0  ;;  %v2743_v54 = vld [vmem:[%s11739_s7 + $0x5b0] sm:$0xff]  ;;  %v2810_v16 = vld [vmem:[%s11739_s7 + $0x7c8] sm:$0xff] }
 0x352   : > { %4137 = vmatpush.msrb.mxu2 %v4048_v4  ;;  %v2708_v4 = vld [vmem:[%s11739_s7 + $0x498] sm:$0xff] }
 0x353   : > { %3582 = vmatmul.f32.gmra.mxu3 %v2770_v26  ;;  %3743 = vmatmul.f32.gmra.mxu0 %v2707_v1  ;;  %v12013_v26 = vld [vmem:[#allocation104_spill] sm:$0xff] }
 0x354   : > { %4138 = vmatpush.msrb.mxu2 %v4047_v20  ;;  %v9167_v23 = vpop.f32.mrf.mxu1  ;;  %v3336_v1 = vadd.f32 %v9068_v35, %v12013_v26  ;;  %v2712_v35 = vld [vmem:[%s11739_s7 + $0x4b8] sm:$0xff]  ;;  %v2755_v26 = vld [vmem:[%s11739_s7 + $0x610] sm:$0xff] }
 0x356   : > { %4139 = vmatpush.msrb.mxu2 %v4046_v51  ;;  %v3535_v30 = vpop.f32.mrf.mxu3  ;;  %v2723_v51 = vld [vmem:[%s11739_s7 + $0x510] sm:$0xff] }
 0x357   : > { %v9178_v40 = vadd.f32 %v3535_v30, %v3327_v38  ;;  %3943 = vmatmul.f32.gmra.mxu1 %v2696_v60  ;;  %v12014_v60 = vld [vmem:[#allocation127_spill] sm:$0xff] }
 0x358   : > { %4140 = vmatpush.msrb.mxu2 %v4045_v28  ;;  %v9183_v31 = vpop.f32.mrf.mxu0  ;;  %v2727_v28 = vld [vmem:[%s11739_s7 + $0x530] sm:$0xff] }
 0x35a   : > { %4141 = vmatpush.msrb.mxu2 %v4044_v61  ;;  %v2794_v61 = vld [vmem:[%s11739_s7 + $0x748] sm:$0xff] }
 0x35b   : > { %3585 = vmatmul.f32.gmra.mxu3 %v2774_v46  ;;  %3746 = vmatmul.f32.gmra.mxu0 %v2711_v62  ;;  %v2731_v46 = vld [vmem:[%s11739_s7 + $0x550] sm:$0xff] }
 0x35c   : > { %4142 = vmatpush.msrb.mxu2 %v4043_v18  ;;  %v9197_v45 = vpop.f32.mrf.mxu1  ;;  %v2798_v18 = vld [vmem:[%s11739_s7 + $0x768] sm:$0xff] }
 0x35e   : > { %4143 = vmatpush.msrb.mxu2 %v4042_v2  ;;  %v3538_v42 = vpop.f32.mrf.mxu3  ;;  %v2724_v2 = vld [vmem:[%s11739_s7 + $0x518] sm:$0xff] }
 0x35f   : > { %v9207_v19 = vadd.f32 %v3538_v42, %v3330_v21  ;;  %3946 = vmatmul.f32.gmra.mxu1 %v2700_v14  ;;  %v2802_v21 = vld [vmem:[%s11739_s7 + $0x788] sm:$0xff] }
 0x360   : > { %4144 = vmatpush.msrb.mxu2 %v4041_v17  ;;  %v9212_v10 = vpop.f32.mrf.mxu0  ;;  %v2728_v17 = vld [vmem:[%s11739_s7 + $0x538] sm:$0xff] }
 0x362   : > { %4145 = vmatpush.msrb.mxu2 %v4040_v41 }
 0x363   : > { %3588 = vmatmul.f32.gmra.mxu3 %v2778_v3  ;;  %3749 = vmatmul.f32.gmra.mxu0 %v2715_v59  ;;  %v2732_v3 = vld [vmem:[%s11739_s7 + $0x558] sm:$0xff] }
 0x364   : > { %4146 = vmatpush.msrb.mxu2 %v4039_v29  ;;  %v9221_v15 = vpop.f32.mrf.mxu1  ;;  %v2747_v29 = vld [vmem:[%s11739_s7 + $0x5d0] sm:$0xff] }
 0x366   : > { %4147 = vmatpush.msrb.mxu2 %v4038_v55  ;;  %v3541_v11 = vpop.f32.mrf.mxu3 }
 0x367   : > { %v9228_v9 = vadd.f32 %v3541_v11, %v3333_v8  ;;  %3949 = vmatmul.f32.gmra.mxu1 %v2704_v33  ;;  %v2736_v33 = vld [vmem:[%s11739_s7 + $0x578] sm:$0xff]  ;;  %v2814_v8 = vld [vmem:[%s11739_s7 + $0x7e8] sm:$0xff] }
 0x368   : > { %4148 = vmatpush.msrb.mxu2 %v4037_v47  ;;  %v9230_v12 = vpop.f32.mrf.mxu0  ;;  %v2751_v47 = vld [vmem:[%s11739_s7 + $0x5f0] sm:$0xff] }
 0x36b   : > { %3591 = vmatmul.f32.gmra.mxu3 %v2782_v32  ;;  %3752 = vmatmul.f32.gmra.mxu0 %v2719_v7  ;;  %v2740_v32 = vld [vmem:[%s11739_s7 + $0x598] sm:$0xff]  ;;  %v9338_v7 = vpop.f32.mrf.mxu2 }
 0x36c   : > { %v9238_v52 = vpop.f32.mrf.mxu1 }
 0x36e   : > { %v3544_v6 = vpop.f32.mrf.mxu3 }
 0x36f   : > { %v9245_v20 = vadd.f32 %v3544_v6, %v3336_v1  ;;  %3952 = vmatmul.f32.gmra.mxu1 %v2708_v4  ;;  %v2744_v6 = vld [vmem:[%s11739_s7 + $0x5b8] sm:$0xff] }
 0x370   : > { %v3708_v48 = vpop.f32.mrf.mxu0 }
 0x371   : > { %v3709_v5 = vadd.f32 %v3708_v48, %v12014_v60 }
 0x373   : > { %3594 = vmatmul.f32.gmra.mxu3 %v2786_v24  ;;  %3755 = vmatmul.f32.gmra.mxu0 %v2723_v51  ;;  %v9348_v48 = vpop.f32.mrf.mxu2  ;;  %v2759_v51 = vld [vmem:[%s11739_s7 + $0x630] sm:$0xff] }
 0x374   : > { %v9254_v38 = vpop.f32.mrf.mxu1 }
 0x377   : > { %3955 = vmatmul.f32.gmra.mxu1 %v2712_v35 }
 0x378   : > { %v9259_v58 = vpop.f32.mrf.mxu0 }
 0x37b   : > { %3597 = vmatmul.f32.gmra.mxu3 %v2790_v36  ;;  %3758 = vmatmul.f32.gmra.mxu0 %v2727_v28  ;;  %v2763_v36 = vld [vmem:[%s11739_s7 + $0x650] sm:$0xff]  ;;  %v9363_v28 = vpop.f32.mrf.mxu2 }
 0x37c   : > { %v9267_v30 = vpop.f32.mrf.mxu1 }
 0x37f   : > { %3958 = vmatmul.f32.gmra.mxu1 %v2716_v56  ;;  %v12016_v56 = vld [vmem:[#allocation50_spill] sm:$0xff] }
 0x380   : > { %v9272_v44 = vpop.f32.mrf.mxu0 }
 0x383   : > { %3600 = vmatmul.f32.gmra.mxu3 %v2794_v61  ;;  %3761 = vmatmul.f32.gmra.mxu0 %v2731_v46  ;;  %v12017_v46 = vld [vmem:[#allocation133_spill] sm:$0xff] }
 0x384   : > { %v9280_v62 = vpop.f32.mrf.mxu1 }
 0x387   : > { %3961 = vmatmul.f32.gmra.mxu1 %v2720_v49 }
 0x388   : > { %v9285_v22 = vpop.f32.mrf.mxu0 }
 0x38b   : > { %3603 = vmatmul.f32.gmra.mxu3 %v2798_v18  ;;  %3764 = vmatmul.f32.gmra.mxu0 %v2735_v27  ;;  %v2752_v27 = vld [vmem:[%s11739_s7 + $0x5f8] sm:$0xff] }
 0x38c   : > { %v3917_v50 = vpop.f32.mrf.mxu1 }
 0x38d   : > { %v9296_v14 = vadd.f32 %v3917_v50, %v3709_v5  ;;  %v2748_v5 = vld [vmem:[%s11739_s7 + $0x5d8] sm:$0xff] }
 0x38e   : > { %v12018_v50 = vld [vmem:[#allocation98_spill] sm:$0xff] }
 0x38f   : > { %3964 = vmatmul.f32.gmra.mxu1 %v2724_v2 }
 0x390   : > { %v3720_v57 = vpop.f32.mrf.mxu0 }
 0x393   : > { %3606 = vmatmul.f32.gmra.mxu3 %v2802_v21  ;;  %3767 = vmatmul.f32.gmra.mxu0 %v2739_v0 }
 0x394   : > { %v9304_v53 = vpop.f32.mrf.mxu1 }
 0x397   : > { %3967 = vmatmul.f32.gmra.mxu1 %v2728_v17  ;;  %v12019_v17 = vld [vmem:[#allocation102_spill] sm:$0xff] }
 0x398   : > { %v3723_v42 = vpop.f32.mrf.mxu0 }
 0x399   : > { %v3724_v2 = vadd.f32 %v3723_v42, %v12018_v50  ;;  %v9379_v42 = vpop.f32.mrf.mxu2 }
 0x39b   : > { %3609 = vmatmul.f32.gmra.mxu3 %v2806_v63  ;;  %3770 = vmatmul.f32.gmra.mxu0 %v2743_v54  ;;  %v3721_v63 = vadd.f32 %v3720_v57, %v12019_v17 }
 0x39c   : > { %v9315_v41 = vpop.f32.mrf.mxu1 }
 0x39f   : > { %3970 = vmatmul.f32.gmra.mxu1 %v2732_v3 }
 0x3a0   : > { %v3726_v59 = vpop.f32.mrf.mxu0 }
 0x3a1   : > { %v3727_v61 = vadd.f32 %v3726_v59, %v12016_v56  ;;  %v2767_v59 = vld [vmem:[%s11739_s7 + $0x670] sm:$0xff]  ;;  %v12024_v56 = vld [vmem:[#allocation70_spill] sm:$0xff]  ;;  %v9407_v50 = vpop.f32.mrf.mxu2 }
 0x3a3   : > { %3612 = vmatmul.f32.gmra.mxu3 %v2810_v16  ;;  %3773 = vmatmul.f32.gmra.mxu0 %v2747_v29  ;;  %v12020_v29 = vld [vmem:[#allocation130_spill] sm:$0xff] }
 0x3a4   : > { %v3926_v55 = vpop.f32.mrf.mxu1 }
 0x3a7   : > { %3973 = vmatmul.f32.gmra.mxu1 %v2736_v33  ;;  %v3718_v33 = vadd.f32 %v9285_v22, %v12020_v29 }
 0x3a8   : > { %v3729_v39 = vpop.f32.mrf.mxu0 }
 0x3a9   : > { %v3730_v49 = vadd.f32 %v3729_v39, %v12017_v46 }
 0x3ab   : > { %3615 = vmatmul.f32.gmra.mxu3 %v2814_v8  ;;  %3776 = vmatmul.f32.gmra.mxu0 %v2751_v47  ;;  %v12021_v47 = vld [vmem:[#allocation65_spill] sm:$0xff] }
 0x3ac   : > { %v3929_v11 = vpop.f32.mrf.mxu1  ;;  %v3715_v57 = vadd.f32 %v9272_v44, %v12021_v47 }
 0x3ad   : > { %v3930_v39 = vadd.f32 %v3929_v11, %v3721_v63 }
 0x3ae   : > { %v3924_v11 = vadd.f32 %v9315_v41, %v3715_v57  ;;  %v2764_v57 = vld [vmem:[%s11739_s7 + $0x658] sm:$0xff] }
 0x3af   : > { %3976 = vmatmul.f32.gmra.mxu1 %v2740_v32  ;;  %v3927_v32 = vadd.f32 %v3926_v55, %v3718_v33 }
 0x3b0   : > { %v9340_v4 = vpop.f32.mrf.mxu0  ;;  %v4063_v46 = vmax.f32 %v3924_v11, 0.0 }
 0x3b1   : > { %12015 = vst [vmem:[#allocation57_spill] sm:$0xff] %v9340_v4  ;;  %v4064_v44 = vmax.f32 %v3927_v32, 0.0  ;;  %v12032_v32 = vld [vmem:[#allocation141_spill] sm:$0xff] }
 0x3b3   : > { %3779 = vmatmul.f32.gmra.mxu0 %v2755_v26 }
 0x3b4   : > { %v3932_v1 = vpop.f32.mrf.mxu1 }
 0x3b5   : > { %v3933_v54 = vadd.f32 %v3932_v1, %v3724_v2  ;;  %v12027_v2 = vld [vmem:[#allocation123_spill] sm:$0xff] }
 0x3b7   : > { %3979 = vmatmul.f32.gmra.mxu1 %v2744_v6  ;;  %v4066_v26 = vmax.f32 %v3933_v54, 0.0  ;;  %v2756_v6 = vld [vmem:[%s11739_s7 + $0x618] sm:$0xff]  ;;  %v9416_v54 = vpop.f32.mrf.mxu3 }
 0x3b8   : > { %v9350_v24 = vpop.f32.mrf.mxu0 }
 0x3bb   : > { %3782 = vmatmul.f32.gmra.mxu0 %v2759_v51  ;;  %v12023_v51 = vld [vmem:[#allocation19_spill] sm:$0xff] }
 0x3bc   : > { %v3935_v60 = vpop.f32.mrf.mxu1  ;;  %v3712_v22 = vadd.f32 %v9259_v58, %v12023_v51  ;;  %v12025_v58 = vld [vmem:[#allocation105_spill] sm:$0xff]  ;;  %v9437_v51 = vpop.f32.mrf.mxu2 }
 0x3bd   : > { %v3936_v21 = vadd.f32 %v3935_v60, %v3727_v61  ;;  %v4065_v60 = vmax.f32 %v3930_v39, 0.0  ;;  %v3706_v61 = vadd.f32 %v9230_v12, %v12024_v56  ;;  %v3703_v41 = vadd.f32 %v9212_v10, %v12025_v58 }
 0x3be   : > { %v3700_v12 = vadd.f32 %v9183_v31, %v12027_v2  ;;  %v4061_v10 = vmax.f32 %v9296_v14, 0.0  ;;  %v2775_v31 = vld [vmem:[%s11739_s7 + $0x6b0] sm:$0xff] }
 0x3bf   : > { %3982 = vmatmul.f32.gmra.mxu1 %v2748_v5  ;;  %v4067_v8 = vmax.f32 %v3936_v21, 0.0  ;;  %v3921_v5 = vadd.f32 %v9304_v53, %v3712_v22  ;;  %v3912_v21 = vadd.f32 %v9267_v30, %v3703_v41  ;;  %v12029_v30 = vld [vmem:[#allocation109_spill] sm:$0xff]  ;;  %v12034_v22 = vld [vmem:[#allocation119_spill] sm:$0xff] }
 0x3c0   : > { %v9358_v35 = vpop.f32.mrf.mxu0  ;;  %v3909_v17 = vadd.f32 %v9254_v38, %v3700_v12  ;;  %v3694_v14 = vadd.f32 %v9128_v13, %v12029_v30  ;;  %v12031_v38 = vld [vmem:[#allocation136_spill] sm:$0xff]  ;;  %v12033_v13 = vld [vmem:[#allocation94_spill] sm:$0xff] }
 0x3c1   : > { %v4062_v53 = vmax.f32 %v3921_v5, 0.0  ;;  %v4059_v29 = vmax.f32 %v3912_v21, 0.0  ;;  %v2772_v12 = vld [vmem:[%s11739_s7 + $0x698] sm:$0xff]  ;;  %v2791_v30 = vld [vmem:[%s11739_s7 + $0x730] sm:$0xff] }
 0x3c2   : > { %v3903_v39 = vadd.f32 %v9221_v15, %v3694_v14  ;;  %v12035_v15 = vld [vmem:[#allocation18_spill] sm:$0xff] }
 0x3c3   : > { %3785 = vmatmul.f32.gmra.mxu0 %v2763_v36  ;;  %v2771_v36 = vld [vmem:[%s11739_s7 + $0x690] sm:$0xff]  ;;  %v3685_v11 = vadd.f32 %v12035_v15, %v12034_v22  ;;  %v2788_v22 = vld [vmem:[%s11739_s7 + $0x718] sm:$0xff] }
 0x3c4   : > { %v3938_v18 = vpop.f32.mrf.mxu1  ;;  %v4056_v5 = vmax.f32 %v3903_v39, 0.0 }
 0x3c5   : > { %v3939_v0 = vadd.f32 %v3938_v18, %v3730_v49  ;;  %v3915_v49 = vadd.f32 %v9280_v62, %v3706_v61  ;;  %v12028_v62 = vld [vmem:[#allocation58_spill] sm:$0xff]  ;;  %v9448_v61 = vpop.f32.mrf.mxu3 }
 0x3c7   : > { %v4068_v3 = vmax.f32 %v3939_v0, 0.0  ;;  %3985 = vmatmul.f32.gmra.mxu1 %v2752_v27  ;;  %v2760_v27 = vld [vmem:[%s11739_s7 + $0x638] sm:$0xff]  ;;  %v3697_v0 = vadd.f32 %v9154_v34, %v12028_v62  ;;  %v4060_v63 = vmax.f32 %v3915_v49, 0.0 }
 0x3c8   : > { %v9372_v16 = vpop.f32.mrf.mxu0  ;;  %v12030_v34 = vld [vmem:[#allocation86_spill] sm:$0xff] }
 0x3c9   : > { %4174 = vmatpush.msrb.mxu3 %v4068_v3  ;;  %v3691_v33 = vadd.f32 %v12031_v38, %v12030_v34 }
 0x3cb   : > { %3788 = vmatmul.f32.gmra.mxu0 %v2767_v59  ;;  %4175 = vmatpush.msrb.mxu3 %v4067_v8  ;;  %v3906_v59 = vadd.f32 %v9238_v52, %v3697_v0  ;;  %v4058_v8 = vmax.f32 %v3909_v17, 0.0  ;;  %v3900_v52 = vadd.f32 %v9197_v45, %v3691_v33  ;;  %v3894_v45 = vadd.f32 %v9141_v43, %v3685_v11  ;;  %v2783_v43 = vld [vmem:[%s11739_s7 + $0x6f0] sm:$0xff]  ;;  %v2776_v17 = vld [vmem:[%s11739_s7 + $0x6b8] sm:$0xff] }
 0x3cc   : > { %v9383_v1 = vpop.f32.mrf.mxu1  ;;  %v2795_v33 = vld [vmem:[%s11739_s7 + $0x750] sm:$0xff] }
 0x3cd   : > { %12022 = vst [vmem:[#allocation139_spill] sm:$0xff] %v9383_v1  ;;  %4176 = vmatpush.msrb.mxu3 %v4066_v26  ;;  %v3688_v26 = vadd.f32 %v12033_v13, %v12032_v32  ;;  %v4055_v56 = vmax.f32 %v3900_v52, 0.0  ;;  %v4053_v41 = vmax.f32 %v3894_v45, 0.0  ;;  %v2799_v13 = vld [vmem:[%s11739_s7 + $0x770] sm:$0xff] }
 0x3ce   : > { %v2803_v11 = vld [vmem:[%s11739_s7 + $0x790] sm:$0xff] }
 0x3cf   : > { %3988 = vmatmul.f32.gmra.mxu1 %v2756_v6  ;;  %4177 = vmatpush.msrb.mxu3 %v4065_v60  ;;  %v4057_v6 = vmax.f32 %v3906_v59, 0.0  ;;  %v3897_v60 = vadd.f32 %v9167_v23, %v3688_v26  ;;  %v2768_v23 = vld [vmem:[%s11739_s7 + $0x678] sm:$0xff]  ;;  %v4101_v26 = vld [vmem:[%s11741_s9] sm:$0xff] }
 0x3d0   : > { %v9392_v55 = vpop.f32.mrf.mxu0  ;;  %v2780_v59 = vld [vmem:[%s11739_s7 + $0x6d8] sm:$0xff]  ;;  %4149 = vmatmul.f32.vlgmr.msrb.gmra.mxu2 %v4101_v26 }
 0x3d1   : > { %4178 = vmatpush.msrb.mxu3 %v4064_v44  ;;  %v12052_v1 = vld [vmem:[#allocation81_spill] sm:$0xff] }
 0x3d3   : > { %3791 = vmatmul.f32.gmra.mxu0 %v2771_v36  ;;  %4179 = vmatpush.msrb.mxu3 %v4063_v46  ;;  %v2779_v36 = vld [vmem:[%s11739_s7 + $0x6d0] sm:$0xff]  ;;  %v4054_v46 = vmax.f32 %v3897_v60, 0.0  ;;  %v4105_v60 = vld [vmem:[%s11741_s9 + $0x20] sm:$0xff] }
 0x3d4   : > { %v9402_v18 = vpop.f32.mrf.mxu1 }
 0x3d5   : > { %12026 = vst [vmem:[#allocation43_spill] sm:$0xff] %v9402_v18  ;;  %4180 = vmatpush.msrb.mxu3 %v4062_v53  ;;  %v9460_v53 = vpop.f32.mrf.mxu2  ;;  %v3351_v18 = vadd.f32 %v9407_v50, %v12052_v1  ;;  %v12054_v1 = vld [vmem:[#allocation101_spill] sm:$0xff] }
 0x3d6   : > { %v3345_v50 = vadd.f32 %v9363_v28, %v12054_v1  ;;  %v12061_v1 = vld [vmem:[#allocation4_spill] sm:$0xff] }
 0x3d7   : > { %3991 = vmatmul.f32.gmra.mxu1 %v2760_v27  ;;  %4181 = vmatpush.msrb.mxu3 %v4061_v10  ;;  %v9462_v27 = vpop.f32.mrf.mxu3  ;;  %v2787_v10 = vld [vmem:[%s11739_s7 + $0x710] sm:$0xff] }
 0x3d8   : > { %v9418_v3 = vpop.f32.mrf.mxu0  ;;  %4152 = vmatmul.f32.gmra.mxu2 %v4105_v60  ;;  %v2815_v60 = vld [vmem:[%s11739_s7 + $0x7f0] sm:$0xff] }
 0x3d9   : > { %4182 = vmatpush.msrb.mxu3 %v4060_v63 }
 0x3db   : > { %3794 = vmatmul.f32.gmra.mxu0 %v2775_v31  ;;  %4183 = vmatpush.msrb.mxu3 %v4059_v29 }
 0x3dc   : > { %v9429_v47 = vpop.f32.mrf.mxu1 }
 0x3dd   : > { %4184 = vmatpush.msrb.mxu3 %v4058_v8  ;;  %v9474_v62 = vpop.f32.mrf.mxu2  ;;  %v2784_v8 = vld [vmem:[%s11739_s7 + $0x6f8] sm:$0xff] }
 0x3df   : > { %3994 = vmatmul.f32.gmra.mxu1 %v2764_v57  ;;  %4185 = vmatpush.msrb.mxu3 %v4057_v6  ;;  %v9481_v63 = vpop.f32.mrf.mxu3 }
 0x3e0   : > { %v9442_v44 = vpop.f32.mrf.mxu0 }
 0x3e1   : > { %4186 = vmatpush.msrb.mxu3 %v4056_v5 }
 0x3e3   : > { %3797 = vmatmul.f32.gmra.mxu0 %v2779_v36  ;;  %4187 = vmatpush.msrb.mxu3 %v4055_v56  ;;  %v2792_v56 = vld [vmem:[%s11739_s7 + $0x738] sm:$0xff] }
 0x3e4   : > { %v9450_v58 = vpop.f32.mrf.mxu1 }
 0x3e5   : > { %4188 = vmatpush.msrb.mxu3 %v4054_v46  ;;  %v9493_v29 = vpop.f32.mrf.mxu2 }
 0x3e6   : > { %12036 = vst [vmem:[#allocation3_spill] sm:$0xff] %v9493_v29 }
 0x3e7   : > { %3997 = vmatmul.f32.gmra.mxu1 %v2768_v23  ;;  %4189 = vmatpush.msrb.mxu3 %v4053_v41  ;;  %v9495_v34 = vpop.f32.mrf.mxu3  ;;  %v2807_v23 = vld [vmem:[%s11739_s7 + $0x7b0] sm:$0xff]  ;;  %v4109_v41 = vld [vmem:[%s11741_s9 + $0x40] sm:$0xff] }
 0x3e8   : > { %v9455_v49 = vpop.f32.mrf.mxu0  ;;  %4155 = vmatmul.f32.gmra.mxu2 %v4109_v41  ;;  %v2804_v41 = vld [vmem:[%s11739_s7 + $0x798] sm:$0xff] }
 0x3eb   : > { %3800 = vmatmul.f32.gmra.mxu0 %v2783_v43 }
 0x3ec   : > { %v9464_v2 = vpop.f32.mrf.mxu1 }
 0x3ed   : > { %v9507_v57 = vpop.f32.mrf.mxu2 }
 0x3ee   : > { %12037 = vst [vmem:[#allocation55_spill] sm:$0xff] %v9507_v57  ;;  %v12048_v57 = vld [vmem:[#allocation87_spill] sm:$0xff] }
 0x3ef   : > { %4000 = vmatmul.f32.gmra.mxu1 %v2772_v12  ;;  %v9517_v52 = vpop.f32.mrf.mxu3 }
 0x3f0   : > { %v9469_v21 = vpop.f32.mrf.mxu0 }
 0x3f3   : > { %3803 = vmatmul.f32.gmra.mxu0 %v2787_v10  ;;  %v2796_v10 = vld [vmem:[%s11739_s7 + $0x758] sm:$0xff] }
 0x3f4   : > { %v9476_v0 = vpop.f32.mrf.mxu1 }
 0x3f5   : > { %v9532_v5 = vpop.f32.mrf.mxu2 }
 0x3f6   : > { %12038 = vst [vmem:[#allocation13_spill] sm:$0xff] %v9532_v5  ;;  %v3357_v5 = vadd.f32 %v9460_v53, %v12048_v57 }
 0x3f7   : > { %4003 = vmatmul.f32.gmra.mxu1 %v2776_v17  ;;  %v3565_v36 = vpop.f32.mrf.mxu3 }
 0x3f8   : > { %v9483_v31 = vpop.f32.mrf.mxu0 }
 0x3fb   : > { %3806 = vmatmul.f32.gmra.mxu0 %v2791_v30 }
 0x3fc   : > { %v9488_v14 = vpop.f32.mrf.mxu1 }
 0x3fd   : > { %v9545_v43 = vpop.f32.mrf.mxu2 }
 0x3fe   : > { %12039 = vst [vmem:[#allocation49_spill] sm:$0xff] %v9545_v43 }
 0x3ff   : > { %4006 = vmatmul.f32.gmra.mxu1 %v2780_v59  ;;  %v3568_v17 = vpop.f32.mrf.mxu3  ;;  %v2811_v59 = vld [vmem:[%s11739_s7 + $0x7d0] sm:$0xff] }
 0x400   : > { %v9497_v38 = vpop.f32.mrf.mxu0 }
 0x403   : > { %3809 = vmatmul.f32.gmra.mxu0 %v2795_v33  ;;  %v4113_v33 = vld [vmem:[%s11741_s9 + $0x60] sm:$0xff] }
 0x404   : > { %v9502_v39 = vpop.f32.mrf.mxu1  ;;  %4158 = vmatmul.f32.gmra.mxu2 %v4113_v33  ;;  %v4121_v33 = vld [vmem:[%s11741_s9 + $0xa0] sm:$0xff] }
 0x405   : > { %v9563_v26 = vpop.f32.mrf.mxu2 }
 0x406   : > { %12040 = vst [vmem:[#allocation39_spill] sm:$0xff] %v9563_v26  ;;  %v12051_v26 = vld [vmem:[#allocation93_spill] sm:$0xff] }
 0x407   : > { %4009 = vmatmul.f32.gmra.mxu1 %v2784_v8 }
 0x408   : > { %v9509_v32 = vpop.f32.mrf.mxu0 }
 0x40b   : > { %3812 = vmatmul.f32.gmra.mxu0 %v2799_v13  ;;  %v2800_v13 = vld [vmem:[%s11739_s7 + $0x778] sm:$0xff] }
 0x40c   : > { %v9519_v6 = vpop.f32.mrf.mxu1 }
 0x40f   : > { %4012 = vmatmul.f32.gmra.mxu1 %v2788_v22  ;;  %v9565_v22 = vpop.f32.mrf.mxu3 }
 0x410   : > { %v9524_v15 = vpop.f32.mrf.mxu0  ;;  %12041 = vst [vmem:[#allocation45_spill] sm:$0xff] %v9565_v22 }
 0x413   : > { %3815 = vmatmul.f32.gmra.mxu0 %v2803_v11 }
 0x414   : > { %v9534_v45 = vpop.f32.mrf.mxu1 }
 0x417   : > { %4015 = vmatmul.f32.gmra.mxu1 %v2792_v56  ;;  %v4117_v56 = vld [vmem:[%s11741_s9 + $0x80] sm:$0xff] }
 0x418   : > { %v3771_v46 = vpop.f32.mrf.mxu0  ;;  %4161 = vmatmul.f32.gmra.mxu2 %v4117_v56 }
 0x41b   : > { %3818 = vmatmul.f32.gmra.mxu0 %v2807_v23 }
 0x41c   : > { %v9547_v12 = vpop.f32.mrf.mxu1 }
 0x41f   : > { %4018 = vmatmul.f32.gmra.mxu1 %v2796_v10  ;;  %v9576_v10 = vpop.f32.mrf.mxu2 }
 0x420   : > { %v3774_v30 = vpop.f32.mrf.mxu0  ;;  %12042 = vst [vmem:[#allocation73_spill] sm:$0xff] %v9576_v10  ;;  %4164 = vmatmul.f32.gmra.mxu2 %v4121_v33  ;;  %v3566_v10 = vadd.f32 %v3565_v36, %v3357_v5  ;;  %v3560_v5 = vadd.f32 %v9495_v34, %v3351_v18  ;;  %v3554_v18 = vadd.f32 %v9462_v27, %v3345_v50  ;;  %v12062_v50 = vld [vmem:[#allocation57_spill] sm:$0xff] }
 0x422   : > { %v3775_v57 = vadd.f32 %v3774_v30, %v3566_v10 }
 0x423   : > { %3821 = vmatmul.f32.gmra.mxu0 %v2811_v59 }
 0x424   : > { %v9558_v8 = vpop.f32.mrf.mxu1 }
 0x427   : > { %4021 = vmatmul.f32.gmra.mxu1 %v2800_v13  ;;  %v9583_v13 = vpop.f32.mrf.mxu3 }
 0x428   : > { %v3777_v11 = vpop.f32.mrf.mxu0  ;;  %12044 = vst [vmem:[#allocation69_spill] sm:$0xff] %v9583_v13  ;;  %v2812_v13 = vld [vmem:[%s11739_s7 + $0x7d8] sm:$0xff] }
 0x42b   : > { %3824 = vmatmul.f32.gmra.mxu0 %v2815_v60  ;;  %v2808_v60 = vld [vmem:[%s11739_s7 + $0x7b8] sm:$0xff] }
 0x42c   : > { %v3977_v23 = vpop.f32.mrf.mxu1 }
 0x42f   : > { %4024 = vmatmul.f32.gmra.mxu1 %v2804_v41  ;;  %v4125_v41 = vld [vmem:[%s11741_s9 + $0xc0] sm:$0xff]  ;;  %v9595_v29 = vpop.f32.mrf.mxu3 }
 0x430   : > { %v9578_v59 = vpop.f32.mrf.mxu0  ;;  %4167 = vmatmul.f32.gmra.mxu2 %v4125_v41  ;;  %12047 = vst [vmem:[#allocation62_spill] sm:$0xff] %v9595_v29  ;;  %v4129_v41 = vld [vmem:[%s11741_s9 + $0xe0] sm:$0xff]  ;;  %v3354_v29 = vadd.f32 %v9437_v51, %v12051_v26  ;;  %v2816_v51 = vld [vmem:[%s11739_s7 + $0x7f8] sm:$0xff] }
 0x431   : > { %12043 = vst [vmem:[#allocation83_spill] sm:$0xff] %v9578_v59  ;;  %v9593_v59 = vpop.f32.mrf.mxu2 }
 0x432   : > { %12046 = vst [vmem:[#allocation76_spill] sm:$0xff] %v9593_v59 }
 0x434   : > { %v3980_v22 = vpop.f32.mrf.mxu1 }
 0x437   : > { %4027 = vmatmul.f32.gmra.mxu1 %v2808_v60  ;;  %v12049_v60 = vld [vmem:[#allocation89_spill] sm:$0xff] }
 0x438   : > { %v9588_v56 = vpop.f32.mrf.mxu0  ;;  %4170 = vmatmul.f32.gmra.mxu2 %v4129_v41 }
 0x439   : > { %12045 = vst [vmem:[#allocation80_spill] sm:$0xff] %v9588_v56  ;;  %v3360_v56 = vadd.f32 %v9474_v62, %v12049_v60  ;;  %v9613_v53 = vpop.f32.mrf.mxu2  ;;  %v3563_v62 = vadd.f32 %v9517_v52, %v3354_v29  ;;  %v12053_v60 = vld [vmem:[#allocation95_spill] sm:$0xff]  ;;  %v3769_v52 = vadd.f32 %v9524_v15, %v3560_v5  ;;  %v3745_v5 = vadd.f32 %v9392_v55, %v9178_v40 }
 0x43b   : > { %v3569_v59 = vadd.f32 %v3568_v17, %v3360_v56  ;;  %v3772_v36 = vadd.f32 %v3771_v46, %v3563_v62  ;;  %v9624_v56 = vpop.f32.mrf.mxu3  ;;  %v3978_v34 = vadd.f32 %v3977_v23, %v3769_v52  ;;  %v12056_v46 = vld [vmem:[#allocation22_spill] sm:$0xff]  ;;  %v12063_v52 = vld [vmem:[#allocation43_spill] sm:$0xff] }
 0x43c   : > { %v3983_v33 = vpop.f32.mrf.mxu1 }
 0x43d   : > { %v3984_v17 = vadd.f32 %v3983_v33, %v3775_v57  ;;  %v4081_v62 = vmax.f32 %v3978_v34, 0.0  ;;  %v3754_v57 = vadd.f32 %v9455_v49, %v9245_v20 }
 0x43f   : > { %4030 = vmatmul.f32.gmra.mxu1 %v2812_v13  ;;  %v3778_v13 = vadd.f32 %v3777_v11, %v3569_v59  ;;  %v12055_v11 = vld [vmem:[#allocation88_spill] sm:$0xff]  ;;  %v4083_v28 = vmax.f32 %v3984_v17, 0.0 }
 0x440   : > { %v9604_v43 = vpop.f32.mrf.mxu0  ;;  %v3342_v10 = vadd.f32 %v9348_v48, %v12055_v11 }
 0x441   : > { %12050 = vst [vmem:[#allocation74_spill] sm:$0xff] %v9604_v43  ;;  %v3348_v43 = vadd.f32 %v9379_v42, %v12053_v60  ;;  %v3981_v42 = vadd.f32 %v3980_v22, %v3772_v36  ;;  %v9641_v41 = vpop.f32.mrf.mxu2  ;;  %v3954_v36 = vadd.f32 %v9464_v2, %v3745_v5 }
 0x442   : > { %v3551_v15 = vadd.f32 %v9448_v61, %v3342_v10 }
 0x443   : > { %v3557_v29 = vadd.f32 %v9481_v63, %v3348_v43  ;;  %v3339_v63 = vadd.f32 %v9338_v7, %v12056_v46  ;;  %v3763_v43 = vadd.f32 %v9497_v38, %v3554_v18  ;;  %v4082_v33 = vmax.f32 %v3981_v42, 0.0  ;;  %v12065_v42 = vld [vmem:[#allocation37_spill] sm:$0xff]  ;;  %v12067_v18 = vld [vmem:[#allocation34_spill] sm:$0xff] }
 0x444   : > { %v3986_v4 = vpop.f32.mrf.mxu1  ;;  %v4073_v2 = vmax.f32 %v3954_v36, 0.0 }
 0x445   : > { %v3987_v26 = vadd.f32 %v3986_v4, %v3778_v13  ;;  %v3766_v4 = vadd.f32 %v9509_v32, %v3557_v29  ;;  %v3548_v27 = vadd.f32 %v9416_v54, %v3339_v63  ;;  %v3760_v32 = vadd.f32 %v9483_v31, %v3551_v15  ;;  %v12068_v63 = vld [vmem:[#allocation30_spill] sm:$0xff] }
 0x446   : > { %v3972_v23 = vadd.f32 %v9547_v12, %v3763_v43  ;;  %v3751_v12 = vadd.f32 %v9442_v44, %v9228_v9  ;;  %v3733_v29 = vadd.f32 %v12062_v50, %v12061_v1 }
 0x447   : > { %v4084_v30 = vmax.f32 %v3987_v26, 0.0  ;;  %4033 = vmatmul.f32.gmra.mxu1 %v2816_v51  ;;  %v3975_v22 = vadd.f32 %v9558_v8, %v3766_v4  ;;  %v3757_v7 = vadd.f32 %v9469_v21, %v3548_v27  ;;  %v3969_v61 = vadd.f32 %v9534_v45, %v3760_v32  ;;  %v9648_v8 = vpop.f32.mrf.mxu3  ;;  %v12069_v32 = vld [vmem:[#allocation27_spill] sm:$0xff] }
 0x448   : > { %v9630_v59 = vpop.f32.mrf.mxu0  ;;  %v4079_v54 = vmax.f32 %v3972_v23, 0.0  ;;  %v3963_v21 = vadd.f32 %v9502_v39, %v3754_v57  ;;  %v3748_v51 = vadd.f32 %v9418_v3, %v9207_v19  ;;  %v3960_v20 = vadd.f32 %v9488_v14, %v3751_v12 }
 0x449   : > { %4215 = vmatpush.msra.mxu2 %v4084_v30  ;;  %v4080_v38 = vmax.f32 %v3975_v22, 0.0  ;;  %v3966_v13 = vadd.f32 %v9519_v6, %v3757_v7  ;;  %v4078_v60 = vmax.f32 %v3969_v61, 0.0  ;;  %v9663_v6 = vpop.f32.mrf.mxu2  ;;  %v3742_v39 = vadd.f32 %v9372_v16, %v9151_v37  ;;  %v12070_v7 = vld [vmem:[#allocation111_spill] sm:$0xff] }
 0x44a   : > { %v3957_v9 = vadd.f32 %v9476_v0, %v3748_v51  ;;  %v4076_v44 = vmax.f32 %v3963_v21, 0.0  ;;  %v4075_v17 = vmax.f32 %v3960_v20, 0.0  ;;  %v3739_v3 = vadd.f32 %v9358_v35, %v9124_v25  ;;  %v12060_v0 = vld [vmem:[#allocation63_spill] sm:$0xff]  ;;  %v12074_v20 = vld [vmem:[#allocation114_spill] sm:$0xff] }
 0x44b   : > { %4216 = vmatpush.msra.mxu2 %v4083_v28  ;;  %v4077_v49 = vmax.f32 %v3966_v13, 0.0  ;;  %v3951_v14 = vadd.f32 %v9450_v58, %v3742_v39  ;;  %v3736_v37 = vadd.f32 %v9350_v24, %v12060_v0  ;;  %v9689_v58 = vld [vmem:[%s11738_s6 + $0x1] ss:$0 sm:$0xff]  ;;  %v12077_v0 = vld [vmem:[#allocation17_spill] sm:$0xff] }
 0x44c   : > { %v9639_v48 = vpop.f32.mrf.mxu1  ;;  %v4074_v26 = vmax.f32 %v3957_v9, 0.0  ;;  %v3948_v16 = vadd.f32 %v9429_v47, %v3739_v3  ;;  %12064 = vst [vmem:[#allocation61_spill] sm:$0xff] %v9689_v58  ;;  %v1455_v30 = vadd.f32 %v9689_v58, %v12065_v42  ;;  %v12066_v47 = vld [vmem:[#allocation139_spill] sm:$0xff]  ;;  %v1452_v4 = vadd.f32 %v9689_v58, %v12067_v18 }
 0x44d   : > { %12057 = vst [vmem:[#allocation68_spill] sm:$0xff] %v9639_v48  ;;  %4217 = vmatpush.msra.mxu2 %v4082_v33  ;;  %v3945_v25 = vadd.f32 %v12063_v52, %v3736_v37  ;;  %v4072_v35 = vmax.f32 %v3951_v14, 0.0  ;;  %v3942_v11 = vadd.f32 %v12066_v47, %v3733_v29  ;;  %v1449_v15 = vadd.f32 %v9689_v58, %v12068_v63  ;;  %v4103_v33 = vld [vmem:[%s11741_s9 + $0x10] sm:$0xff]  ;;  %v12073_v21 = vld [vmem:[#allocation23_spill] sm:$0xff] }
 0x44e   : > { %v4071_v10 = vmax.f32 %v3948_v16, 0.0  ;;  %v1616_v43 = vmax.f32 %v1455_v30, 0.0  ;;  %v1446_v23 = vadd.f32 %v9689_v58, %v12069_v32  ;;  %v4107_v14 = vld [vmem:[%s11741_s9 + $0x30] sm:$0xff]  ;;  %v1434_v37 = vadd.f32 %v9689_v58, %v12077_v0  ;;  %v12079_v29 = vld [vmem:[#allocation15_spill] sm:$0xff]  ;;  %v12081_v30 = vld [vmem:[#allocation14_spill] sm:$0xff] }
 0x44f   : > { %4218 = vmatpush.msra.mxu2 %v4081_v62  ;;  %v9671_v19 = vpop.f32.mrf.mxu3  ;;  %v4070_v34 = vmax.f32 %v3945_v25, 0.0  ;;  %v4069_v22 = vmax.f32 %v3942_v11, 0.0  ;;  %v1615_v62 = vmax.f32 %v1452_v4, 0.0  ;;  %v1614_v13 = vmax.f32 %v1449_v15, 0.0  ;;  %v4111_v32 = vld [vmem:[%s11741_s9 + $0x50] sm:$0xff] }
 0x450   : > { %v9653_v31 = vpop.f32.mrf.mxu0  ;;  %v2512_v61 = vmul.f32 %v12070_v7, %v1616_v43  ;;  %v1613_v51 = vmax.f32 %v1446_v23, 0.0  ;;  %v1431_v52 = vadd.f32 %v9689_v58, %v12079_v29  ;;  %v1428_v47 = vadd.f32 %v9689_v58, %v12081_v30  ;;  %v12084_v43 = vld [vmem:[#allocation142_spill] sm:$0xff] }
 0x451   : > { %4219 = vmatpush.msra.mxu2 %v4080_v38  ;;  %v9693_v24 = vpop.f32.mrf.mxu2  ;;  %v12071_v38 = vld [vmem:[#allocation25_spill] sm:$0xff]  ;;  %v1609_v11 = vmax.f32 %v1434_v37, 0.0  ;;  %v12085_v23 = vld [vmem:[#allocation10_spill] sm:$0xff]  ;;  %v12092_v37 = vld [vmem:[#allocation31_spill] sm:$0xff] }
 0x452   : > { %v1443_v57 = vadd.f32 %v9689_v58, %v12071_v38  ;;  %v1608_v15 = vmax.f32 %v1431_v52, 0.0  ;;  %v1607_v7 = vmax.f32 %v1428_v47, 0.0  ;;  %v12095_v47 = vld [vmem:[#allocation33_spill] sm:$0xff] }
 0x453   : > { %4220 = vmatpush.msra.mxu2 %v4079_v54  ;;  %v12072_v54 = vld [vmem:[#allocation126_spill] sm:$0xff] }
 0x454   : > { %v9658_v45 = vpop.f32.mrf.mxu1  ;;  %v2511_v12 = vmul.f32 %v12072_v54, %v1615_v62  ;;  %v1612_v36 = vmax.f32 %v1443_v57, 0.0  ;;  %v1422_v62 = vadd.f32 %v9689_v58, %v12085_v23  ;;  %v4119_v23 = vld [vmem:[%s11741_s9 + $0x90] sm:$0xff] }
 0x455   : > { %12058 = vst [vmem:[#allocation54_spill] sm:$0xff] %v9658_v45  ;;  %4221 = vmatpush.msra.mxu2 %v4078_v60  ;;  %v1440_v60 = vadd.f32 %v9689_v58, %v12073_v21  ;;  %v12088_v21 = vld [vmem:[#allocation137_spill] sm:$0xff] }
 0x457   : > { %4222 = vmatpush.msra.mxu2 %v4077_v49  ;;  %v9698_v28 = vpop.f32.mrf.mxu3  ;;  %v2510_v49 = vmul.f32 %v12074_v20, %v1614_v13  ;;  %v1611_v16 = vmax.f32 %v1440_v60, 0.0  ;;  %v12087_v13 = vld [vmem:[#allocation8_spill] sm:$0xff]  ;;  %v2503_v60 = vmul.f32 %v12088_v21, %v1607_v7  ;;  %v12089_v20 = vld [vmem:[#allocation7_spill] sm:$0xff] }
 0x458   : > { %v9676_v40 = vpop.f32.mrf.mxu0  ;;  %v1419_v54 = vadd.f32 %v9689_v58, %v12087_v13  ;;  %v4123_v13 = vld [vmem:[%s11741_s9 + $0xb0] sm:$0xff] }
 0x459   : > { %4223 = vmatpush.msra.mxu2 %v4076_v44  ;;  %v9718_v5 = vpop.f32.mrf.mxu2  ;;  %v12075_v44 = vld [vmem:[#allocation20_spill] sm:$0xff] }
 0x45a   : > { %v1437_v39 = vadd.f32 %v9689_v58, %v12075_v44  ;;  %v1605_v44 = vmax.f32 %v1422_v62, 0.0  ;;  %v1604_v0 = vmax.f32 %v1419_v54, 0.0  ;;  %v4102_v62 = vld [vmem:[%s11741_s9 + $0x8] sm:$0xff] }
 0x45b   : > { %4224 = vmatpush.msra.mxu2 %v4075_v17  ;;  %v12076_v17 = vld [vmem:[#allocation128_spill] sm:$0xff]  ;;  %4190 = vmatmul.f32.vlgmr.msrb.gmra.mxu3 %v4102_v62 }
 0x45c   : > { %v9678_v55 = vpop.f32.mrf.mxu1  ;;  %v2509_v3 = vmul.f32 %v12076_v17, %v1613_v51  ;;  %v1610_v25 = vmax.f32 %v1437_v39, 0.0  ;;  %v12090_v39 = vld [vmem:[#allocation28_spill] sm:$0xff] }
 0x45d   : > { %12059 = vst [vmem:[#allocation66_spill] sm:$0xff] %v9678_v55  ;;  %4225 = vmatpush.msra.mxu2 %v4074_v26  ;;  %v12106_v55 = vld [vmem:[#allocation99_spill] sm:$0xff] }
 0x45f   : > { %4226 = vmatpush.msra.mxu2 %v4073_v2  ;;  %v9728_v26 = vpop.f32.mrf.mxu3  ;;  %v12078_v2 = vld [vmem:[#allocation132_spill] sm:$0xff] }
 0x460   : > { %v9707_v27 = vpop.f32.mrf.mxu0  ;;  %v2508_v1 = vmul.f32 %v12078_v2, %v1612_v36  ;;  %v4115_v2 = vld [vmem:[%s11741_s9 + $0x70] sm:$0xff] }
 0x461   : > { %4227 = vmatpush.msra.mxu2 %v4072_v35  ;;  %v12080_v35 = vld [vmem:[#allocation121_spill] sm:$0xff] }
 0x462   : > { %v2507_v42 = vmul.f32 %v12080_v35, %v1611_v16  ;;  %v2501_v16 = vmul.f32 %v12092_v37, %v1605_v44  ;;  %v4110_v44 = vld [vmem:[%s11741_s9 + $0x48] sm:$0xff] }
 0x463   : > { %4228 = vmatpush.msra.mxu2 %v4071_v10  ;;  %v12082_v10 = vld [vmem:[#allocation125_spill] sm:$0xff] }
 0x464   : > { %v9700_v46 = vpop.f32.mrf.mxu1  ;;  %v2506_v18 = vmul.f32 %v12082_v10, %v1610_v25  ;;  %v12094_v25 = vld [vmem:[#allocation21_spill] sm:$0xff] }
 0x465   : > { %4229 = vmatpush.msra.mxu2 %v4070_v34  ;;  %v12083_v34 = vld [vmem:[#allocation12_spill] sm:$0xff]  ;;  %v2500_v35 = vmul.f32 %v12094_v25, %v1604_v0 }
 0x466   : > { %v1425_v63 = vadd.f32 %v9689_v58, %v12083_v34  ;;  %v12096_v34 = vld [vmem:[#allocation78_spill] sm:$0xff]  ;;  %v4114_v0 = vld [vmem:[%s11741_s9 + $0x68] sm:$0xff] }
 0x467   : > { %4230 = vmatpush.msra.mxu2 %v4069_v22  ;;  %v2505_v22 = vmul.f32 %v12084_v43, %v1609_v11  ;;  %v9754_v57 = vpop.f32.mrf.mxu3 }
 0x468   : > { %4231 = vmatmul.f32.vlgmr.msra.gmra.mxu2 %v4103_v33  ;;  %v9733_v50 = vpop.f32.mrf.mxu0  ;;  %v9746_v33 = vpop.f32.mrf.mxu2 }
 0x469   : > { %4937 = vmatpush.msrb.mxu2 %v2512_v61  ;;  %v12086_v61 = vld [vmem:[#allocation143_spill] sm:$0xff] }
 0x46a   : > { %v2504_v38 = vmul.f32 %v12086_v61, %v1608_v15 }
 0x46b   : > { %4938 = vmatpush.msrb.mxu2 %v2511_v12  ;;  %v1606_v12 = vmax.f32 %v1425_v63, 0.0 }
 0x46c   : > { %v9720_v9 = vpop.f32.mrf.mxu1 }
 0x46d   : > { %4939 = vmatpush.msrb.mxu2 %v2510_v49  ;;  %v1416_v49 = vadd.f32 %v9689_v58, %v12089_v20  ;;  %v2502_v36 = vmul.f32 %v12090_v39, %v1606_v12  ;;  %v4106_v12 = vld [vmem:[%s11741_s9 + $0x28] sm:$0xff]  ;;  %v4127_v20 = vld [vmem:[%s11741_s9 + $0xd0] sm:$0xff] }
 0x46e   : > { %4193 = vmatmul.f32.gmra.mxu3 %v4106_v12  ;;  %v4309_v12 = vld [vmem:[%s11742_s10 + $0x60] sm:$0xff] }
 0x46f   : > { %4940 = vmatpush.msrb.mxu2 %v2509_v3  ;;  %v12091_v3 = vld [vmem:[#allocation6_spill] sm:$0xff]  ;;  %v1603_v52 = vmax.f32 %v1416_v49, 0.0  ;;  %v9778_v10 = vpop.f32.mrf.mxu3 }
 0x470   : > { %4234 = vmatmul.f32.gmra.mxu2 %v4107_v14  ;;  %v9759_v51 = vpop.f32.mrf.mxu0  ;;  %v1413_v14 = vadd.f32 %v9689_v58, %v12091_v3 }
 0x471   : > { %4941 = vmatpush.msrb.mxu2 %v2508_v1  ;;  %v12093_v1 = vld [vmem:[#allocation5_spill] sm:$0xff]  ;;  %v2499_v11 = vmul.f32 %v12095_v47, %v1603_v52  ;;  %v4118_v52 = vld [vmem:[%s11741_s9 + $0x88] sm:$0xff]  ;;  %v4301_v47 = vld [vmem:[%s11742_s10 + $0x20] sm:$0xff] }
 0x472   : > { %v1410_v29 = vadd.f32 %v9689_v58, %v12093_v1  ;;  %v1602_v30 = vmax.f32 %v1413_v14, 0.0  ;;  %v4131_v14 = vld [vmem:[%s11741_s9 + $0xf0] sm:$0xff]  ;;  %v4297_v1 = vld [vmem:[%s11742_s10] sm:$0xff] }
 0x473   : > { %4942 = vmatpush.msrb.mxu2 %v2507_v42  ;;  %v9775_v42 = vpop.f32.mrf.mxu2 }
 0x474   : > { %v9741_v4 = vpop.f32.mrf.mxu1  ;;  %v2498_v63 = vmul.f32 %v12096_v34, %v1602_v30 }
 0x475   : > { %4943 = vmatpush.msrb.mxu2 %v2506_v18  ;;  %v1601_v18 = vmax.f32 %v1410_v29, 0.0 }
 0x476   : > { %4196 = vmatmul.f32.gmra.mxu3 %v4110_v44  ;;  %v4130_v44 = vld [vmem:[%s11741_s9 + $0xe8] sm:$0xff] }
 0x477   : > { %4944 = vmatpush.msrb.mxu2 %v2505_v22  ;;  %v12097_v22 = vld [vmem:[#allocation144_spill] sm:$0xff]  ;;  %v9792_v61 = vpop.f32.mrf.mxu3 }
 0x478   : > { %4237 = vmatmul.f32.gmra.mxu2 %v4111_v32  ;;  %v9781_v15 = vpop.f32.mrf.mxu0  ;;  %v2497_v32 = vmul.f32 %v12097_v22, %v1601_v18  ;;  %v4305_v22 = vld [vmem:[%s11742_s10 + $0x40] sm:$0xff] }
 0x479   : > { %4945 = vmatpush.msrb.mxu2 %v2504_v38 }
 0x47b   : > { %4946 = vmatpush.msrb.mxu2 %v2503_v60  ;;  %v3404_v7 = vpop.f32.mrf.mxu2 }
 0x47c   : > { %v9764_v17 = vpop.f32.mrf.mxu1 }
 0x47d   : > { %4947 = vmatpush.msrb.mxu2 %v2502_v36 }
 0x47e   : > { %4199 = vmatmul.f32.gmra.mxu3 %v4114_v0 }
 0x47f   : > { %4948 = vmatpush.msrb.mxu2 %v2501_v16  ;;  %v3604_v49 = vpop.f32.mrf.mxu3 }
 0x480   : > { %4240 = vmatmul.f32.gmra.mxu2 %v4115_v2  ;;  %v9799_v54 = vpop.f32.mrf.mxu0 }
 0x481   : > { %4949 = vmatpush.msrb.mxu2 %v2500_v35 }
 0x483   : > { %4950 = vmatpush.msrb.mxu2 %v2499_v11  ;;  %v3407_v21 = vpop.f32.mrf.mxu2  ;;  %v4122_v11 = vld [vmem:[%s11741_s9 + $0xa8] sm:$0xff] }
 0x484   : > { %v9783_v43 = vpop.f32.mrf.mxu1 }
 0x485   : > { %4951 = vmatpush.msrb.mxu2 %v2498_v63 }
 0x486   : > { %4202 = vmatmul.f32.gmra.mxu3 %v4118_v52 }
 0x487   : > { %4952 = vmatpush.msrb.mxu2 %v2497_v32  ;;  %v3607_v37 = vpop.f32.mrf.mxu3 }
 0x488   : > { %4243 = vmatmul.f32.gmra.mxu2 %v4119_v23  ;;  %v9812_v39 = vpop.f32.mrf.mxu0  ;;  %v4126_v23 = vld [vmem:[%s11741_s9 + $0xc8] sm:$0xff] }
 0x48b   : > { %v9814_v36 = vpop.f32.mrf.mxu2 }
 0x48c   : > { %v9794_v38 = vpop.f32.mrf.mxu1  ;;  %12098 = vst [vmem:[#allocation46_spill] sm:$0xff] %v9814_v36 }
 0x48e   : > { %4205 = vmatmul.f32.gmra.mxu3 %v4122_v11  ;;  %v12104_v11 = vld [vmem:[#allocation97_spill] sm:$0xff] }
 0x48f   : > { %v3610_v25 = vpop.f32.mrf.mxu3 }
 0x490   : > { %4246 = vmatmul.f32.gmra.mxu2 %v4123_v13  ;;  %v3816_v16 = vpop.f32.mrf.mxu0 }
 0x493   : > { %v9827_v29 = vpop.f32.mrf.mxu2 }
 0x494   : > { %v9804_v60 = vpop.f32.mrf.mxu1  ;;  %12099 = vst [vmem:[#allocation59_spill] sm:$0xff] %v9827_v29 }
 0x496   : > { %4208 = vmatmul.f32.gmra.mxu3 %v4126_v23 }
 0x497   : > { %v3613_v34 = vpop.f32.mrf.mxu3 }
 0x498   : > { %4249 = vmatmul.f32.gmra.mxu2 %v4127_v20  ;;  %v3819_v35 = vpop.f32.mrf.mxu0 }
 0x49b   : > { %v9838_v18 = vpop.f32.mrf.mxu2 }
 0x49c   : > { %v9816_v3 = vpop.f32.mrf.mxu1  ;;  %12100 = vst [vmem:[#allocation53_spill] sm:$0xff] %v9838_v18  ;;  %v12105_v18 = vld [vmem:[#allocation84_spill] sm:$0xff] }
 0x49d   : > { %v3399_v29 = vadd.f32 %v9746_v33, %v12105_v18 }
 0x49e   : > { %4211 = vmatmul.f32.gmra.mxu3 %v4130_v44 }
 0x49f   : > { %v3616_v20 = vpop.f32.mrf.mxu3  ;;  %v3608_v44 = vadd.f32 %v3607_v37, %v3399_v29 }
 0x4a0   : > { %4252 = vmatmul.f32.gmra.mxu2 %v4131_v14  ;;  %v3822_v32 = vpop.f32.mrf.mxu0  ;;  %v12102_v14 = vld [vmem:[#allocation91_spill] sm:$0xff] }
 0x4a1   : > { %v3405_v0 = vadd.f32 %v3404_v7, %v12102_v14  ;;  %v3396_v7 = vadd.f32 %v9718_v5, %v12106_v55  ;;  %v3817_v18 = vadd.f32 %v3816_v16, %v3608_v44  ;;  %v12115_v44 = vld [vmem:[#allocation115_spill] sm:$0xff] }
 0x4a3   : > { %v9846_v62 = vpop.f32.mrf.mxu2  ;;  %v3614_v23 = vadd.f32 %v3613_v34, %v3405_v0  ;;  %v12107_v34 = vld [vmem:[#allocation103_spill] sm:$0xff] }
 0x4a4   : > { %v4022_v2 = vpop.f32.mrf.mxu1  ;;  %12101 = vst [vmem:[#allocation41_spill] sm:$0xff] %v9846_v62  ;;  %v3393_v33 = vadd.f32 %v9693_v24, %v12107_v34  ;;  %v12118_v34 = vld [vmem:[#allocation49_spill] sm:$0xff] }
 0x4a5   : > { %v3823_v48 = vadd.f32 %v3822_v32, %v3614_v23 }
 0x4a6   : > { %v3602_v55 = vadd.f32 %v9792_v61, %v3393_v33 }
 0x4a8   : > { %4953 = vmatmul.f32.vlgmr.msrb.gmra.mxu2 %v4297_v1  ;;  %v12103_v1 = vld [vmem:[#allocation77_spill] sm:$0xff] }
 0x4a9   : > { %v3408_v52 = vadd.f32 %v3407_v21, %v12103_v1 }
 0x4ab   : > { %v3617_v62 = vadd.f32 %v3616_v20, %v3408_v52  ;;  %v9860_v58 = vpop.f32.mrf.mxu2  ;;  %v12108_v20 = vld [vmem:[#allocation92_spill] sm:$0xff] }
 0x4ac   : > { %v4025_v30 = vpop.f32.mrf.mxu1  ;;  %v3390_v0 = vadd.f32 %v9663_v6, %v12108_v20 }
 0x4ae   : > { %v3599_v24 = vadd.f32 %v9778_v10, %v3390_v0  ;;  %v12122_v0 = vld [vmem:[#allocation55_spill] sm:$0xff] }
 0x4b0   : > { %4956 = vmatmul.f32.gmra.mxu2 %v4301_v47  ;;  %v3825_v47 = vpop.f32.mrf.mxu0 }
 0x4b1   : > { %v3826_v45 = vadd.f32 %v3825_v47, %v3617_v62  ;;  %v12114_v47 = vld [vmem:[#allocation73_spill] sm:$0xff] }
 0x4b3   : > { %v9885_v10 = vpop.f32.mrf.mxu2 }
 0x4b4   : > { %v4028_v63 = vpop.f32.mrf.mxu1 }
 0x4b8   : > { %4959 = vmatmul.f32.gmra.mxu2 %v4305_v22  ;;  %v3402_v22 = vadd.f32 %v9775_v42, %v12104_v11  ;;  %v4313_v42 = vld [vmem:[%s11742_s10 + $0x80] sm:$0xff] }
 0x4ba   : > { %v3611_v36 = vadd.f32 %v3610_v25, %v3402_v22  ;;  %v3605_v25 = vadd.f32 %v3604_v49, %v3396_v7  ;;  %v3811_v49 = vadd.f32 %v9799_v54, %v3602_v55  ;;  %v12111_v54 = vld [vmem:[#allocation100_spill] sm:$0xff] }
 0x4bc   : > { %v4031_v13 = vpop.f32.mrf.mxu1  ;;  %v3820_v14 = vadd.f32 %v3819_v35, %v3611_v36  ;;  %v12109_v36 = vld [vmem:[#allocation32_spill] sm:$0xff] }
 0x4bd   : > { %v3387_v37 = vadd.f32 %v9641_v41, %v12109_v36  ;;  %v12110_v35 = vld [vmem:[#allocation108_spill] sm:$0xff]  ;;  %v4317_v41 = vld [vmem:[%s11742_s10 + $0xa0] sm:$0xff] }
 0x4be   : > { %v4029_v32 = vadd.f32 %v4028_v63, %v3820_v14  ;;  %v3384_v6 = vadd.f32 %v9613_v53, %v12110_v35 }
 0x4bf   : > { %v3596_v61 = vadd.f32 %v9754_v57, %v3387_v37 }
 0x4c0   : > { %4962 = vmatmul.f32.gmra.mxu2 %v4309_v12  ;;  %v4032_v12 = vadd.f32 %v4031_v13, %v3823_v48  ;;  %v3814_v48 = vadd.f32 %v9812_v39, %v3605_v25  ;;  %v4098_v29 = vmax.f32 %v4029_v32, 0.0  ;;  %v3808_v39 = vadd.f32 %v9781_v15, %v3599_v24 }
 0x4c1   : > { %v3593_v52 = vadd.f32 %v9728_v26, %v3384_v6  ;;  %v3805_v53 = vadd.f32 %v9759_v51, %v3596_v61  ;;  %v12116_v26 = vld [vmem:[#allocation39_spill] sm:$0xff]  ;;  %v12128_v61 = vld [vmem:[#allocation45_spill] sm:$0xff] }
 0x4c2   : > { %v4099_v5 = vmax.f32 %v4032_v12, 0.0  ;;  %v4023_v16 = vadd.f32 %v4022_v2, %v3814_v48  ;;  %v12112_v2 = vld [vmem:[#allocation76_spill] sm:$0xff]  ;;  %v4017_v57 = vadd.f32 %v9804_v60, %v3808_v39  ;;  %v3375_v14 = vadd.f32 %v12116_v26, %v12115_v44  ;;  %v12123_v48 = vld [vmem:[#allocation62_spill] sm:$0xff] }
 0x4c3   : > { %v3381_v13 = vadd.f32 %v12112_v2, %v12111_v54  ;;  %v3802_v23 = vadd.f32 %v9733_v50, %v3593_v52  ;;  %v4014_v7 = vadd.f32 %v9794_v38, %v3805_v53  ;;  %v4325_v54 = vld [vmem:[%s11742_s10 + $0xe0] sm:$0xff] }
 0x4c4   : > { %v4034_v21 = vpop.f32.mrf.mxu1  ;;  %v4096_v15 = vmax.f32 %v4023_v16, 0.0  ;;  %v3584_v50 = vadd.f32 %v9648_v8, %v3375_v14  ;;  %v12127_v16 = vld [vmem:[#allocation74_spill] sm:$0xff]  ;;  %v12133_v53 = vld [vmem:[#allocation83_spill] sm:$0xff] }
 0x4c5   : > { %v4035_v1 = vadd.f32 %v4034_v21, %v3826_v45  ;;  %v4026_v45 = vadd.f32 %v4025_v30, %v3817_v18  ;;  %v4020_v30 = vadd.f32 %v9816_v3, %v3811_v49  ;;  %v12113_v3 = vld [vmem:[#allocation110_spill] sm:$0xff]  ;;  %v3590_v22 = vadd.f32 %v9698_v28, %v3381_v13  ;;  %v12120_v18 = vld [vmem:[#allocation13_spill] sm:$0xff] }
 0x4c6   : > { %v3378_v11 = vadd.f32 %v12114_v47, %v12113_v3  ;;  %v4011_v12 = vadd.f32 %v9783_v43, %v3802_v23  ;;  %v4093_v25 = vmax.f32 %v4014_v7, 0.0  ;;  %v12131_v2 = vld [vmem:[#allocation90_spill] sm:$0xff]  ;;  %v12132_v13 = vld [vmem:[#allocation61_spill] sm:$0xff] }
 0x4c7   : > { %v4100_v62 = vmax.f32 %v4035_v1, 0.0  ;;  %v4097_v63 = vmax.f32 %v4026_v45, 0.0  ;;  %v4095_v21 = vmax.f32 %v4020_v30, 0.0  ;;  %v3799_v60 = vadd.f32 %v9707_v27, %v3590_v22  ;;  %v12119_v27 = vld [vmem:[#allocation116_spill] sm:$0xff]  ;;  %v12135_v47 = vld [vmem:[#allocation85_spill] sm:$0xff]  ;;  %v12137_v44 = vld [vmem:[#allocation82_spill] sm:$0xff] }
 0x4c8   : > { %4965 = vmatmul.f32.gmra.mxu2 %v4313_v42  ;;  %v3587_v51 = vadd.f32 %v9671_v19, %v3378_v11  ;;  %v4094_v1 = vmax.f32 %v4017_v57, 0.0  ;;  %v12117_v42 = vld [vmem:[#allocation35_spill] sm:$0xff]  ;;  %v3369_v43 = vadd.f32 %v12120_v18, %v12119_v27  ;;  %v4092_v8 = vmax.f32 %v4011_v12, 0.0  ;;  %v12129_v30 = vld [vmem:[#allocation80_spill] sm:$0xff]  ;;  %v12141_v18 = vld [vmem:[#allocation129_spill] sm:$0xff] }
 0x4c9   : > { %4256 = vmatpush.msra.mxu3 %v4100_v62  ;;  %v3372_v28 = vadd.f32 %v12118_v34, %v12117_v42  ;;  %v4008_v33 = vadd.f32 %v9764_v17, %v3799_v60  ;;  %v4321_v19 = vld [vmem:[%s11742_s10 + $0xc0] sm:$0xff]  ;;  %v3793_v62 = vadd.f32 %v9653_v31, %v3584_v50  ;;  %v1503_v52 = vadd.f32 %v12132_v13, %v12131_v2  ;;  %v12136_v22 = vld [vmem:[#allocation68_spill] sm:$0xff]  ;;  %v4104_v34 = vld [vmem:[%s11741_s9 + $0x18] sm:$0xff] }
 0x4ca   : > { %v3796_v38 = vadd.f32 %v9676_v40, %v3587_v51  ;;  %v9915_v40 = vpop.f32.mrf.mxu2  ;;  %v12121_v17 = vld [vmem:[#allocation122_spill] sm:$0xff]  ;;  %v3578_v45 = vadd.f32 %v12123_v48, %v3369_v43  ;;  %v12125_v31 = vld [vmem:[#allocation3_spill] sm:$0xff]  ;;  %v1500_v11 = vadd.f32 %v12132_v13, %v12135_v47  ;;  %v1497_v26 = vadd.f32 %v12132_v13, %v12137_v44 }
 0x4cb   : > { %4257 = vmatpush.msra.mxu3 %v4099_v5  ;;  %v3581_v32 = vadd.f32 %v9624_v56, %v3372_v28  ;;  %v3366_v55 = vadd.f32 %v12122_v0, %v12121_v17  ;;  %v4002_v36 = vadd.f32 %v9720_v9, %v3793_v62  ;;  %v4091_v37 = vmax.f32 %v4008_v33, 0.0  ;;  %v12124_v56 = vld [vmem:[#allocation120_spill] sm:$0xff]  ;;  %v12138_v60 = vld [vmem:[#allocation79_spill] sm:$0xff] }
 0x4cc   : > { %v4005_v20 = vadd.f32 %v9741_v4, %v3796_v38  ;;  %v3363_v24 = vadd.f32 %v12125_v31, %v12124_v56  ;;  %v12126_v4 = vld [vmem:[#allocation69_spill] sm:$0xff]  ;;  %v1632_v14 = vmax.f32 %v1503_v52, 0.0  ;;  %v1494_v12 = vadd.f32 %v12132_v13, %v12138_v60  ;;  %v4329_v28 = vld [vmem:[%s11742_s10 + $0x100] sm:$0xff]  ;;  %v12139_v38 = vld [vmem:[#allocation124_spill] sm:$0xff] }
 0x4cd   : > { %4258 = vmatpush.msra.mxu3 %v4098_v29  ;;  %v3790_v5 = vadd.f32 %v9630_v59, %v3581_v32  ;;  %v3575_v49 = vadd.f32 %v12126_v4, %v3366_v55  ;;  %v3787_v29 = vadd.f32 %v12127_v16, %v3578_v45  ;;  %v12130_v59 = vld [vmem:[#allocation66_spill] sm:$0xff]  ;;  %v4089_v9 = vmax.f32 %v4002_v36, 0.0  ;;  %v12142_v32 = vld [vmem:[#allocation71_spill] sm:$0xff]  ;;  %v12146_v56 = vld [vmem:[#allocation64_spill] sm:$0xff] }
 0x4ce   : > { %v4090_v6 = vmax.f32 %v4005_v20, 0.0  ;;  %v3572_v39 = vadd.f32 %v12128_v61, %v3363_v24  ;;  %v1630_v50 = vmax.f32 %v1497_v26, 0.0  ;;  %v2528_v33 = vmul.f32 %v12139_v38, %v1632_v14  ;;  %v12143_v20 = vld [vmem:[#allocation117_spill] sm:$0xff]  ;;  %v12144_v0 = vld [vmem:[#allocation67_spill] sm:$0xff]  ;;  %v12148_v16 = vld [vmem:[#allocation60_spill] sm:$0xff] }
 0x4cf   : > { %4259 = vmatpush.msra.mxu3 %v4097_v63  ;;  %v3999_v35 = vadd.f32 %v9700_v46, %v3790_v5  ;;  %v3784_v63 = vadd.f32 %v12129_v30, %v3575_v49  ;;  %v12134_v46 = vld [vmem:[#allocation54_spill] sm:$0xff]  ;;  %v1629_v27 = vmax.f32 %v1494_v12, 0.0  ;;  %v1488_v62 = vadd.f32 %v12132_v13, %v12142_v32  ;;  %v12145_v45 = vld [vmem:[#allocation131_spill] sm:$0xff]  ;;  %v12157_v14 = vld [vmem:[#allocation16_spill] sm:$0xff] }
 0x4d0   : > { %4968 = vmatmul.f32.gmra.mxu2 %v4317_v41  ;;  %v3996_v41 = vadd.f32 %v12130_v59, %v3787_v29  ;;  %v3781_v57 = vadd.f32 %v12133_v53, %v3572_v39  ;;  %v1485_v55 = vadd.f32 %v12132_v13, %v12144_v0  ;;  %v4108_v36 = vld [vmem:[%s11741_s9 + $0x38] sm:$0xff]  ;;  %v1482_v31 = vadd.f32 %v12132_v13, %v12146_v56  ;;  %v12147_v4 = vld [vmem:[#allocation135_spill] sm:$0xff]  ;;  %v12150_v39 = vld [vmem:[#allocation56_spill] sm:$0xff] }
 0x4d1   : > { %4260 = vmatpush.msra.mxu3 %v4096_v15  ;;  %v3993_v15 = vadd.f32 %v12134_v46, %v3784_v63  ;;  %v4088_v3 = vmax.f32 %v3999_v35, 0.0  ;;  %v2525_v5 = vmul.f32 %v12145_v45, %v1629_v27  ;;  %v1627_v24 = vmax.f32 %v1488_v62, 0.0  ;;  %v12151_v59 = vld [vmem:[#allocation140_spill] sm:$0xff]  ;;  %v12153_v53 = vld [vmem:[#allocation134_spill] sm:$0xff] }
 0x4d2   : > { %v3990_v23 = vadd.f32 %v12136_v22, %v3781_v57  ;;  %v4087_v7 = vmax.f32 %v3996_v41, 0.0  ;;  %v1479_v29 = vadd.f32 %v12132_v13, %v12148_v16  ;;  %v1626_v35 = vmax.f32 %v1485_v55, 0.0  ;;  %v4112_v46 = vld [vmem:[%s11741_s9 + $0x58] sm:$0xff]  ;;  %v12166_v56 = vld [vmem:[#allocation72_spill] sm:$0xff]  ;;  %v4349_v16 = vld [vmem:[%s11742_s10 + $0x1a0] sm:$0xff] }
 0x4d3   : > { %4261 = vmatpush.msra.mxu3 %v4095_v21  ;;  %v9940_v21 = vpop.f32.mrf.mxu2  ;;  %v4086_v51 = vmax.f32 %v3993_v15, 0.0  ;;  %v1476_v30 = vadd.f32 %v12132_v13, %v12150_v39  ;;  %v1625_v63 = vmax.f32 %v1482_v31, 0.0  ;;  %v4337_v15 = vld [vmem:[%s11742_s10 + $0x140] sm:$0xff]  ;;  %v12155_v22 = vld [vmem:[#allocation9_spill] sm:$0xff] }
 0x4d4   : > { %v4085_v42 = vmax.f32 %v3990_v23, 0.0  ;;  %v2522_v41 = vmul.f32 %v12151_v59, %v1626_v35  ;;  %v1624_v52 = vmax.f32 %v1479_v29, 0.0  ;;  %v12158_v60 = vld [vmem:[#allocation42_spill] sm:$0xff]  ;;  %v12164_v55 = vld [vmem:[#allocation29_spill] sm:$0xff] }
 0x4d5   : > { %4262 = vmatpush.msra.mxu3 %v4094_v1  ;;  %v1631_v1 = vmax.f32 %v1500_v11, 0.0  ;;  %v2521_v57 = vmul.f32 %v12153_v53, %v1625_v63  ;;  %v1623_v11 = vmax.f32 %v1476_v30, 0.0  ;;  %v1464_v12 = vadd.f32 %v12132_v13, %v12158_v60  ;;  %v4116_v27 = vld [vmem:[%s11741_s9 + $0x78] sm:$0xff]  ;;  %v4299_v29 = vld [vmem:[%s11742_s10 + $0x10] sm:$0xff]  ;;  %v4353_v39 = vld [vmem:[%s11742_s10 + $0x1c0] sm:$0xff] }
 0x4d6   : > { %v2520_v23 = vmul.f32 %v12155_v22, %v1624_v52  ;;  %v4300_v35 = vld [vmem:[%s11742_s10 + $0x18] sm:$0xff]  ;;  %5371 = vmatmul.f32.vlgmr.msra.gmra.mxu0 %v4299_v29  ;;  %v4303_v30 = vld [vmem:[%s11742_s10 + $0x30] sm:$0xff]  ;;  %v4369_v60 = vld [vmem:[%s11742_s10 + $0x240] sm:$0xff] }
 0x4d7   : > { %4263 = vmatpush.msra.mxu3 %v4093_v25  ;;  %v12140_v25 = vld [vmem:[#allocation75_spill] sm:$0xff]  ;;  %v2527_v43 = vmul.f32 %v12141_v18, %v1631_v1  ;;  %v1619_v62 = vmax.f32 %v1464_v12, 0.0  ;;  %5580 = vmatmul.f32.vlgmr.msra.gmra.mxu1 %v4300_v35  ;;  %v4304_v63 = vld [vmem:[%s11742_s10 + $0x38] sm:$0xff]  ;;  %v4307_v52 = vld [vmem:[%s11742_s10 + $0x50] sm:$0xff] }
 0x4d8   : > { %4971 = vmatmul.f32.gmra.mxu2 %v4321_v19  ;;  %v1491_v19 = vadd.f32 %v12132_v13, %v12140_v25  ;;  %v12161_v25 = vld [vmem:[#allocation26_spill] sm:$0xff]  ;;  %v4306_v12 = vld [vmem:[%s11742_s10 + $0x48] sm:$0xff] }
 0x4d9   : > { %4264 = vmatpush.msra.mxu3 %v4092_v8  ;;  %v2526_v8 = vmul.f32 %v12143_v20, %v1630_v50  ;;  %v12160_v50 = vld [vmem:[#allocation40_spill] sm:$0xff]  ;;  %v4341_v18 = vld [vmem:[%s11742_s10 + $0x160] sm:$0xff]  ;;  %v4308_v53 = vld [vmem:[%s11742_s10 + $0x58] sm:$0xff] }
 0x4da   : > { %v1628_v48 = vmax.f32 %v1491_v19, 0.0  ;;  %v1461_v38 = vadd.f32 %v12132_v13, %v12160_v50  ;;  %v12163_v20 = vld [vmem:[#allocation36_spill] sm:$0xff]  ;;  %v4336_v29 = vld [vmem:[%s11742_s10 + $0x138] sm:$0xff] }
 0x4db   : > { %4265 = vmatpush.msra.mxu3 %v4091_v37  ;;  %v4333_v37 = vld [vmem:[%s11742_s10 + $0x120] sm:$0xff] }
 0x4dc   : > { %v2524_v49 = vmul.f32 %v12147_v4, %v1628_v48  ;;  %v1618_v0 = vmax.f32 %v1461_v38, 0.0  ;;  %v2515_v48 = vmul.f32 %v12164_v55, %v1619_v62  ;;  %v4373_v38 = vld [vmem:[%s11742_s10 + $0x260] sm:$0xff]  ;;  %v4327_v62 = vld [vmem:[%s11742_s10 + $0xf0] sm:$0xff]  ;;  %v4318_v55 = vld [vmem:[%s11742_s10 + $0xa8] sm:$0xff] }
 0x4dd   : > { %4266 = vmatpush.msra.mxu3 %v4090_v6  ;;  %v12149_v6 = vld [vmem:[#allocation138_spill] sm:$0xff] }
 0x4de   : > { %v2523_v61 = vmul.f32 %v12149_v6, %v1627_v24  ;;  %v4345_v24 = vld [vmem:[%s11742_s10 + $0x180] sm:$0xff]  ;;  %5374 = vmatmul.f32.gmra.mxu0 %v4303_v30  ;;  %v4326_v30 = vld [vmem:[%s11742_s10 + $0xe8] sm:$0xff] }
 0x4df   : > { %4267 = vmatpush.msra.mxu3 %v4089_v9  ;;  %5583 = vmatmul.f32.gmra.mxu1 %v4304_v63 }
 0x4e0   : > { %4974 = vmatmul.f32.gmra.mxu2 %v4325_v54  ;;  %v12152_v54 = vld [vmem:[#allocation52_spill] sm:$0xff] }
 0x4e1   : > { %4268 = vmatpush.msra.mxu3 %v4088_v3  ;;  %v1473_v2 = vadd.f32 %v12132_v13, %v12152_v54  ;;  %v12154_v3 = vld [vmem:[#allocation48_spill] sm:$0xff]  ;;  %v4357_v54 = vld [vmem:[%s11742_s10 + $0x1e0] sm:$0xff] }
 0x4e2   : > { %v1470_v47 = vadd.f32 %v12132_v13, %v12154_v3 }
 0x4e3   : > { %4269 = vmatpush.msra.mxu3 %v4087_v7  ;;  %v12156_v7 = vld [vmem:[#allocation44_spill] sm:$0xff]  ;;  %v1622_v26 = vmax.f32 %v1473_v2, 0.0  ;;  %v10060_v2 = vpop.f32.mrf.mxu3 }
 0x4e4   : > { %v1467_v44 = vadd.f32 %v12132_v13, %v12156_v7  ;;  %v1621_v1 = vmax.f32 %v1470_v47, 0.0  ;;  %v4311_v47 = vld [vmem:[%s11742_s10 + $0x70] sm:$0xff]  ;;  %v4302_v7 = vld [vmem:[%s11742_s10 + $0x28] sm:$0xff] }
 0x4e5   : > { %4270 = vmatpush.msra.mxu3 %v4086_v51  ;;  %v2519_v51 = vmul.f32 %v12157_v14, %v1623_v11  ;;  %v4312_v11 = vld [vmem:[%s11742_s10 + $0x78] sm:$0xff] }
 0x4e6   : > { %v2517_v19 = vmul.f32 %v12161_v25, %v1621_v1  ;;  %5377 = vmatmul.f32.gmra.mxu0 %v4307_v52  ;;  %v4319_v1 = vld [vmem:[%s11742_s10 + $0xb0] sm:$0xff] }
 0x4e7   : > { %4271 = vmatpush.msra.mxu3 %v4085_v42  ;;  %v12159_v42 = vld [vmem:[#allocation11_spill] sm:$0xff]  ;;  %5586 = vmatmul.f32.gmra.mxu1 %v4308_v53  ;;  %v4323_v25 = vld [vmem:[%s11742_s10 + $0xd0] sm:$0xff] }
 0x4e8   : > { %4272 = vmatmul.f32.vlgmr.msra.gmra.mxu3 %v4104_v34  ;;  %4977 = vmatmul.f32.gmra.mxu2 %v4329_v28  ;;  %v2518_v34 = vmul.f32 %v12159_v42, %v1622_v26  ;;  %v4316_v26 = vld [vmem:[%s11742_s10 + $0x98] sm:$0xff] }
 0x4e9   : > { %5146 = vmatpush.msrb.mxu3 %v2528_v33  ;;  %v1620_v33 = vmax.f32 %v1467_v44, 0.0  ;;  %v4315_v44 = vld [vmem:[%s11742_s10 + $0x90] sm:$0xff]  ;;  %v4320_v42 = vld [vmem:[%s11742_s10 + $0xb8] sm:$0xff] }
 0x4eb   : > { %5147 = vmatpush.msrb.mxu3 %v2527_v43  ;;  %v9959_v17 = vpop.f32.mrf.mxu2  ;;  %v12162_v43 = vld [vmem:[#allocation38_spill] sm:$0xff] }
 0x4ec   : > { %v1458_v32 = vadd.f32 %v12132_v13, %v12162_v43  ;;  %v4120_v13 = vld [vmem:[%s11741_s9 + $0x98] sm:$0xff]  ;;  %v4314_v43 = vld [vmem:[%s11742_s10 + $0x88] sm:$0xff] }
 0x4ed   : > { %5148 = vmatpush.msrb.mxu3 %v2526_v8  ;;  %v2516_v8 = vmul.f32 %v12163_v20, %v1620_v33  ;;  %v4310_v33 = vld [vmem:[%s11742_s10 + $0x68] sm:$0xff]  ;;  %v4328_v20 = vld [vmem:[%s11742_s10 + $0xf8] sm:$0xff] }
 0x4ee   : > { %v1617_v45 = vmax.f32 %v1458_v32, 0.0  ;;  %5380 = vmatmul.f32.gmra.mxu0 %v4311_v47  ;;  %v4330_v47 = vld [vmem:[%s11742_s10 + $0x108] sm:$0xff] }
 0x4ef   : > { %5149 = vmatpush.msrb.mxu3 %v2525_v5  ;;  %v12165_v5 = vld [vmem:[#allocation47_spill] sm:$0xff]  ;;  %5589 = vmatmul.f32.gmra.mxu1 %v4312_v11  ;;  %v12169_v11 = vld [vmem:[#allocation46_spill] sm:$0xff] }
 0x4f0   : > { %4275 = vmatmul.f32.gmra.mxu3 %v4108_v36  ;;  %4980 = vmatmul.f32.gmra.mxu2 %v4333_v37  ;;  %v2514_v36 = vmul.f32 %v12165_v5, %v1618_v0  ;;  %v2513_v31 = vmul.f32 %v12166_v56, %v1617_v45  ;;  %v4381_v0 = vld [vmem:[%s11742_s10 + $0x2a0] sm:$0xff]  ;;  %v4331_v5 = vld [vmem:[%s11742_s10 + $0x110] sm:$0xff] }
 0x4f1   : > { %5150 = vmatpush.msrb.mxu3 %v2524_v49  ;;  %v4124_v49 = vld [vmem:[%s11741_s9 + $0xb8] sm:$0xff]  ;;  %v10076_v3 = vpop.f32.mrf.mxu3 }
 0x4f3   : > { %5151 = vmatpush.msrb.mxu3 %v2523_v61  ;;  %v9979_v9 = vpop.f32.mrf.mxu2  ;;  %v4128_v61 = vld [vmem:[%s11741_s9 + $0xd8] sm:$0xff] }
 0x4f5   : > { %5152 = vmatpush.msrb.mxu3 %v2522_v41  ;;  %v4132_v41 = vld [vmem:[%s11741_s9 + $0xf8] sm:$0xff] }
 0x4f6   : > { %5383 = vmatmul.f32.gmra.mxu0 %v4315_v44  ;;  %v4343_v44 = vld [vmem:[%s11742_s10 + $0x170] sm:$0xff] }
 0x4f7   : > { %5153 = vmatpush.msrb.mxu3 %v2521_v57  ;;  %5592 = vmatmul.f32.gmra.mxu1 %v4316_v26  ;;  %v4344_v26 = vld [vmem:[%s11742_s10 + $0x178] sm:$0xff] }
 0x4f8   : > { %4278 = vmatmul.f32.gmra.mxu3 %v4112_v46  ;;  %4983 = vmatmul.f32.gmra.mxu2 %v4337_v15  ;;  %v4361_v46 = vld [vmem:[%s11742_s10 + $0x200] sm:$0xff]  ;;  %v4298_v15 = vld [vmem:[%s11742_s10 + $0x8] sm:$0xff] }
 0x4f9   : > { %5154 = vmatpush.msrb.mxu3 %v2520_v23  ;;  %v4365_v23 = vld [vmem:[%s11742_s10 + $0x220] sm:$0xff]  ;;  %v10098_v14 = vpop.f32.mrf.mxu3 }
 0x4fb   : > { %5155 = vmatpush.msrb.mxu3 %v2519_v51  ;;  %v9999_v28 = vpop.f32.mrf.mxu2 }
 0x4fd   : > { %5156 = vmatpush.msrb.mxu3 %v2518_v34 }
 0x4fe   : > { %5386 = vmatmul.f32.gmra.mxu0 %v4319_v1 }
 0x4ff   : > { %5157 = vmatpush.msrb.mxu3 %v2517_v19  ;;  %5595 = vmatmul.f32.gmra.mxu1 %v4320_v42  ;;  %v4324_v19 = vld [vmem:[%s11742_s10 + $0xd8] sm:$0xff] }
 0x500   : > { %4281 = vmatmul.f32.gmra.mxu3 %v4116_v27  ;;  %4986 = vmatmul.f32.gmra.mxu2 %v4341_v18  ;;  %v4377_v18 = vld [vmem:[%s11742_s10 + $0x280] sm:$0xff] }
 0x501   : > { %5158 = vmatpush.msrb.mxu3 %v2516_v8  ;;  %v10116_v50 = vpop.f32.mrf.mxu3 }
 0x503   : > { %5159 = vmatpush.msrb.mxu3 %v2515_v48  ;;  %v10015_v37 = vpop.f32.mrf.mxu2  ;;  %v10154_v48 = vpop.permute.xlu2 %4774 }
 0x504   : > { %12167 = vst [vmem:[#allocation51_spill] sm:$0xff] %v10154_v48  ;;  %v4427_v48 = vld [vmem:[%s11742_s10 + $0x410] sm:$0xff] }
 0x505   : > { %5160 = vmatpush.msrb.mxu3 %v2514_v36  ;;  %v4332_v36 = vld [vmem:[%s11742_s10 + $0x118] sm:$0xff] }
 0x506   : > { %5389 = vmatmul.f32.gmra.mxu0 %v4323_v25  ;;  %v4334_v25 = vld [vmem:[%s11742_s10 + $0x128] sm:$0xff] }
 0x507   : > { %5161 = vmatpush.msrb.mxu3 %v2513_v31  ;;  %5598 = vmatmul.f32.gmra.mxu1 %v4324_v19  ;;  %v4385_v31 = vld [vmem:[%s11742_s10 + $0x2c0] sm:$0xff] }
 0x508   : > { %4284 = vmatmul.f32.gmra.mxu3 %v4120_v13  ;;  %4989 = vmatmul.f32.gmra.mxu2 %v4345_v24  ;;  %v4322_v13 = vld [vmem:[%s11742_s10 + $0xc8] sm:$0xff]  ;;  %v10172_v24 = vpop.permute.xlu0 %4694 }
 0x509   : > { %v10138_v32 = vpop.f32.mrf.mxu3  ;;  %v12172_v19 = vld [vmem:[#allocation59_spill] sm:$0xff] }
 0x50b   : > { %v10024_v4 = vpop.f32.mrf.mxu2 }
 0x50e   : > { %5392 = vmatmul.f32.gmra.mxu0 %v4327_v62 }
 0x50f   : > { %5601 = vmatmul.f32.gmra.mxu1 %v4328_v20 }
 0x510   : > { %4287 = vmatmul.f32.gmra.mxu3 %v4124_v49  ;;  %4992 = vmatmul.f32.gmra.mxu2 %v4349_v16  ;;  %v10174_v49 = vpop.permute.xlu2 %4679  ;;  %v4335_v16 = vld [vmem:[%s11742_s10 + $0x130] sm:$0xff]  ;;  %v10192_v63 = vpop.permute.xlu0 %4684 }
 0x511   : > { %v10156_v45 = vpop.f32.mrf.mxu3 }
 0x513   : > { %v10038_v6 = vpop.f32.mrf.mxu2 }
 0x516   : > { %5395 = vmatmul.f32.gmra.mxu0 %v4331_v5 }
 0x517   : > { %5604 = vmatmul.f32.gmra.mxu1 %v4332_v36  ;;  %v4401_v36 = vld [vmem:[%s11742_s10 + $0x340] sm:$0xff] }
 0x518   : > { %4290 = vmatmul.f32.gmra.mxu3 %v4128_v61  ;;  %4995 = vmatmul.f32.gmra.mxu2 %v4353_v39  ;;  %v4389_v39 = vld [vmem:[%s11742_s10 + $0x2e0] sm:$0xff]  ;;  %v10200_v52 = vpop.permute.xlu2 %4759 }
 0x519   : > { %v10182_v35 = vpop.f32.mrf.mxu3  ;;  %12168 = vst [vmem:[#allocation107_spill] sm:$0xff] %v10200_v52  ;;  %v4477_v52 = vld [vmem:[%s11742_s10 + $0x5a0] sm:$0xff] }
 0x51b   : > { %v10052_v59 = vpop.f32.mrf.mxu2 }
 0x51e   : > { %5398 = vmatmul.f32.gmra.mxu0 %v4335_v16 }
 0x51f   : > { %5607 = vmatmul.f32.gmra.mxu1 %v4336_v29 }
 0x520   : > { %4293 = vmatmul.f32.gmra.mxu3 %v4132_v41  ;;  %4998 = vmatmul.f32.gmra.mxu2 %v4357_v54  ;;  %v4339_v41 = vld [vmem:[%s11742_s10 + $0x150] sm:$0xff]  ;;  %v4340_v54 = vld [vmem:[%s11742_s10 + $0x158] sm:$0xff] }
 0x521   : > { %v10202_v53 = vpop.f32.mrf.mxu3 }
 0x523   : > { %v10068_v57 = vpop.f32.mrf.mxu2 }
 0x526   : > { %5401 = vmatmul.f32.gmra.mxu0 %v4339_v41 }
 0x527   : > { %5610 = vmatmul.f32.gmra.mxu1 %v4340_v54 }
 0x528   : > { %5001 = vmatmul.f32.gmra.mxu2 %v4361_v46  ;;  %5162 = vmatmul.f32.vlgmr.msrb.gmra.mxu3 %v4298_v15  ;;  %v4393_v15 = vld [vmem:[%s11742_s10 + $0x300] sm:$0xff] }
 0x52b   : > { %v10084_v22 = vpop.f32.mrf.mxu2 }
 0x52e   : > { %5404 = vmatmul.f32.gmra.mxu0 %v4343_v44 }
 0x52f   : > { %5613 = vmatmul.f32.gmra.mxu1 %v4344_v26 }
 0x530   : > { %5004 = vmatmul.f32.gmra.mxu2 %v4365_v23  ;;  %5165 = vmatmul.f32.gmra.mxu3 %v4302_v7  ;;  %v4192_v23 = vadd.f32 %v10060_v2, %v12169_v11  ;;  %v10214_v7 = vpop.permute.xlu1 %4689  ;;  %v4342_v11 = vld [vmem:[%s11742_s10 + $0x168] sm:$0xff] }
 0x533   : > { %v10100_v51 = vpop.f32.mrf.mxu2 }
 0x538   : > { %5007 = vmatmul.f32.gmra.mxu2 %v4369_v60  ;;  %5168 = vmatmul.f32.gmra.mxu3 %v4306_v12  ;;  %v10222_v60 = vpop.permute.xlu0 %4764  ;;  %v4233_v12 = vadd.f32 %v9959_v17, %v4192_v23  ;;  %v4347_v17 = vld [vmem:[%s11742_s10 + $0x190] sm:$0xff]  ;;  %v10245_v62 = vpop.permute.xlu1 %4769 }
 0x539   : > { %12170 = vst [vmem:[#allocation118_spill] sm:$0xff] %v10222_v60  ;;  %5407 = vmatmul.f32.gmra.mxu0 %v4347_v17  ;;  %v12178_v23 = vld [vmem:[#allocation41_spill] sm:$0xff] }
 0x53a   : > { %12173 = vst [vmem:[#allocation24_spill] sm:$0xff] %v10245_v62  ;;  %v4201_v44 = vadd.f32 %v10116_v50, %v12178_v23 }
 0x53b   : > { %v10114_v34 = vpop.f32.mrf.mxu2 }
 0x540   : > { %5010 = vmatmul.f32.gmra.mxu2 %v4373_v38  ;;  %5171 = vmatmul.f32.gmra.mxu3 %v4310_v33  ;;  %v10229_v38 = vpop.permute.xlu2 %4664  ;;  %v4397_v33 = vld [vmem:[%s11742_s10 + $0x320] sm:$0xff]  ;;  %v10252_v5 = vpop.permute.xlu0 %4669 }
 0x541   : > { %v10271_v54 = vpop.permute.xlu1 %4674 }
 0x543   : > { %v10130_v27 = vpop.f32.mrf.mxu2 }
 0x548   : > { %5013 = vmatmul.f32.gmra.mxu2 %v4377_v18  ;;  %5174 = vmatmul.f32.gmra.mxu3 %v4314_v43  ;;  %v4195_v18 = vadd.f32 %v10076_v3, %v12172_v19  ;;  %v4348_v43 = vld [vmem:[%s11742_s10 + $0x198] sm:$0xff]  ;;  %v10262_v29 = vpop.permute.xlu2 %4744  ;;  %v10285_v26 = vpop.permute.xlu0 %4749  ;;  %v4409_v19 = vld [vmem:[%s11742_s10 + $0x380] sm:$0xff] }
 0x549   : > { %5616 = vmatmul.f32.gmra.mxu1 %v4348_v43  ;;  %12176 = vst [vmem:[#allocation106_spill] sm:$0xff] %v10262_v29  ;;  %v10304_v17 = vpop.permute.xlu1 %4754  ;;  %v4204_v43 = vadd.f32 %v10138_v32, %v9860_v58 }
 0x54a   : > { %v4236_v20 = vadd.f32 %v9979_v9, %v4195_v18  ;;  %v4351_v9 = vld [vmem:[%s11742_s10 + $0x1b0] sm:$0xff]  ;;  %12179 = vst [vmem:[#allocation104_spill] sm:$0xff] %v10285_v26  ;;  %v4346_v18 = vld [vmem:[%s11742_s10 + $0x188] sm:$0xff] }
 0x54b   : > { %v10146_v8 = vpop.f32.mrf.mxu2  ;;  %5410 = vmatmul.f32.gmra.mxu0 %v4351_v9  ;;  %12181 = vst [vmem:[#allocation50_spill] sm:$0xff] %v10304_v17  ;;  %v4350_v9 = vld [vmem:[%s11742_s10 + $0x1a8] sm:$0xff] }
 0x550   : > { %5016 = vmatmul.f32.gmra.mxu2 %v4381_v0  ;;  %5177 = vmatmul.f32.gmra.mxu3 %v4318_v55 }
 0x553   : > { %v10164_v56 = vpop.f32.mrf.mxu2 }
 0x558   : > { %5019 = vmatmul.f32.gmra.mxu2 %v4385_v31  ;;  %5180 = vmatmul.f32.gmra.mxu3 %v4322_v13  ;;  %v4338_v31 = vld [vmem:[%s11742_s10 + $0x148] sm:$0xff]  ;;  %v12175_v13 = vld [vmem:[#allocation53_spill] sm:$0xff] }
 0x559   : > { %v4198_v16 = vadd.f32 %v10098_v14, %v12175_v13 }
 0x55b   : > { %v10184_v61 = vpop.f32.mrf.mxu2 }
 0x560   : > { %5022 = vmatmul.f32.gmra.mxu2 %v4389_v39  ;;  %5183 = vmatmul.f32.gmra.mxu3 %v4326_v30  ;;  %v4352_v39 = vld [vmem:[%s11742_s10 + $0x1b8] sm:$0xff]  ;;  %v4239_v30 = vadd.f32 %v9999_v28, %v4198_v16  ;;  %v4355_v28 = vld [vmem:[%s11742_s10 + $0x1d0] sm:$0xff]  ;;  %v4413_v16 = vld [vmem:[%s11742_s10 + $0x3a0] sm:$0xff] }
 0x561   : > { %5619 = vmatmul.f32.gmra.mxu1 %v4352_v39  ;;  %5413 = vmatmul.f32.gmra.mxu0 %v4355_v28  ;;  %v4207_v39 = vadd.f32 %v10156_v45, %v9885_v10  ;;  %v4364_v10 = vld [vmem:[%s11742_s10 + $0x218] sm:$0xff] }
 0x563   : > { %v10204_v46 = vpop.f32.mrf.mxu2  ;;  %v4248_v23 = vadd.f32 %v10038_v6, %v4207_v39  ;;  %v4354_v6 = vld [vmem:[%s11742_s10 + $0x1c8] sm:$0xff]  ;;  %v4213_v39 = vadd.f32 %v10202_v53, %v9940_v21 }
 0x568   : > { %5025 = vmatmul.f32.gmra.mxu2 %v4393_v15  ;;  %5186 = vmatmul.f32.gmra.mxu3 %v4330_v47  ;;  %v4405_v47 = vld [vmem:[%s11742_s10 + $0x360] sm:$0xff] }
 0x56b   : > { %v4273_v1 = vpop.f32.mrf.mxu3  ;;  %v10225_v2 = vpop.f32.mrf.mxu2 }
 0x56c   : > { %v10227_v42 = vadd.f32 %v4273_v1, %v4233_v12  ;;  %v4356_v12 = vld [vmem:[%s11742_s10 + $0x1d8] sm:$0xff]  ;;  %v10293_v1 = vpop.permute.xlu2 %4649 }
 0x56d   : > { %5622 = vmatmul.f32.gmra.mxu1 %v4356_v12 }
 0x56e   : > { %12171 = vst [vmem:[#allocation113_spill] sm:$0xff] %v10227_v42  ;;  %v4473_v42 = vld [vmem:[%s11742_s10 + $0x580] sm:$0xff] }
 0x570   : > { %5028 = vmatmul.f32.gmra.mxu2 %v4397_v33  ;;  %5189 = vmatmul.f32.gmra.mxu3 %v4334_v25  ;;  %v4242_v33 = vadd.f32 %v10015_v37, %v4201_v44  ;;  %v4359_v37 = vld [vmem:[%s11742_s10 + $0x1f0] sm:$0xff] }
 0x571   : > { %5416 = vmatmul.f32.gmra.mxu0 %v4359_v37 }
 0x573   : > { %v4276_v0 = vpop.f32.mrf.mxu3  ;;  %v10248_v55 = vpop.f32.mrf.mxu2 }
 0x574   : > { %v10250_v3 = vadd.f32 %v4276_v0, %v4236_v20  ;;  %v4360_v0 = vld [vmem:[%s11742_s10 + $0x1f8] sm:$0xff]  ;;  %v10319_v13 = vpop.permute.xlu2 %4729 }
 0x575   : > { %5625 = vmatmul.f32.gmra.mxu1 %v4360_v0  ;;  %12182 = vst [vmem:[#allocation133_spill] sm:$0xff] %v10319_v13 }
 0x576   : > { %12174 = vst [vmem:[#allocation112_spill] sm:$0xff] %v10250_v3 }
 0x578   : > { %5031 = vmatmul.f32.gmra.mxu2 %v4401_v36  ;;  %5192 = vmatmul.f32.gmra.mxu3 %v4338_v31  ;;  %v10316_v36 = vpop.permute.xlu0 %4654  ;;  %v4245_v31 = vadd.f32 %v10024_v4, %v4204_v43  ;;  %v10335_v4 = vpop.permute.xlu1 %4659  ;;  %v4367_v43 = vld [vmem:[%s11742_s10 + $0x230] sm:$0xff] }
 0x57b   : > { %v4279_v41 = vpop.f32.mrf.mxu3  ;;  %v10275_v15 = vpop.f32.mrf.mxu2 }
 0x57c   : > { %v10273_v14 = vadd.f32 %v4279_v41, %v4239_v30  ;;  %v10331_v30 = vpop.f32.mrf.mxu0  ;;  %v10333_v41 = vpop.f32.mrf.mxu1 }
 0x57d   : > { %5628 = vmatmul.f32.gmra.mxu1 %v4364_v10  ;;  %v10350_v12 = vpop.permute.xlu2 %4634 }
 0x57e   : > { %12177 = vst [vmem:[#allocation96_spill] sm:$0xff] %v10273_v14  ;;  %v4420_v14 = vld [vmem:[%s11742_s10 + $0x3d8] sm:$0xff] }
 0x580   : > { %5034 = vmatmul.f32.gmra.mxu2 %v4405_v47  ;;  %5195 = vmatmul.f32.gmra.mxu3 %v4342_v11  ;;  %v4363_v47 = vld [vmem:[%s11742_s10 + $0x210] sm:$0xff]  ;;  %v10346_v45 = vpop.permute.xlu0 %4734  ;;  %v10367_v37 = vpop.permute.xlu1 %4739 }
 0x581   : > { %5419 = vmatmul.f32.gmra.mxu0 %v4363_v47  ;;  %12184 = vst [vmem:[#allocation102_spill] sm:$0xff] %v10346_v45 }
 0x582   : > { %12186 = vst [vmem:[#allocation65_spill] sm:$0xff] %v10367_v37 }
 0x583   : > { %v4282_v25 = vpop.f32.mrf.mxu3  ;;  %v10308_v20 = vpop.f32.mrf.mxu2 }
 0x584   : > { %v10296_v50 = vadd.f32 %v4282_v25, %v4242_v33  ;;  %v4417_v33 = vld [vmem:[%s11742_s10 + $0x3c0] sm:$0xff]  ;;  %v4210_v25 = vadd.f32 %v10182_v35, %v9915_v40 }
 0x585   : > { %v10391_v10 = vpop.permute.xlu2 %4714 }
 0x586   : > { %12180 = vst [vmem:[#allocation127_spill] sm:$0xff] %v10296_v50  ;;  %v4251_v0 = vadd.f32 %v10052_v59, %v4210_v25  ;;  %v4358_v59 = vld [vmem:[%s11742_s10 + $0x1e8] sm:$0xff] }
 0x588   : > { %5037 = vmatmul.f32.gmra.mxu2 %v4409_v19  ;;  %5198 = vmatmul.f32.gmra.mxu3 %v4346_v18  ;;  %v10360_v19 = vpop.f32.mrf.mxu0  ;;  %v10362_v18 = vpop.f32.mrf.mxu1 }
 0x589   : > { %5422 = vmatmul.f32.gmra.mxu0 %v4367_v43  ;;  %v10402_v25 = vpop.permute.xlu1 %4644 }
 0x58b   : > { %v4285_v58 = vpop.f32.mrf.mxu3  ;;  %v10340_v11 = vpop.f32.mrf.mxu2 }
 0x58c   : > { %v10321_v32 = vadd.f32 %v4285_v58, %v4245_v31  ;;  %v4368_v31 = vld [vmem:[%s11742_s10 + $0x238] sm:$0xff] }
 0x58d   : > { %5631 = vmatmul.f32.gmra.mxu1 %v4368_v31 }
 0x58e   : > { %12183 = vst [vmem:[#allocation98_spill] sm:$0xff] %v10321_v32 }
 0x590   : > { %5040 = vmatmul.f32.gmra.mxu2 %v4413_v16  ;;  %5201 = vmatmul.f32.gmra.mxu3 %v4350_v9  ;;  %v10377_v16 = vpop.permute.xlu0 %4639  ;;  %v4421_v9 = vld [vmem:[%s11742_s10 + $0x3e0] sm:$0xff]  ;;  %v10387_v47 = vpop.f32.mrf.mxu0 }
 0x593   : > { %v4288_v44 = vpop.f32.mrf.mxu3  ;;  %v10373_v40 = vpop.f32.mrf.mxu2 }
 0x594   : > { %v10348_v28 = vadd.f32 %v4288_v44, %v4248_v23  ;;  %v10389_v23 = vpop.f32.mrf.mxu1  ;;  %v4371_v44 = vld [vmem:[%s11742_s10 + $0x250] sm:$0xff] }
 0x595   : > { %5425 = vmatmul.f32.gmra.mxu0 %v4371_v44 }
 0x596   : > { %12185 = vst [vmem:[#allocation130_spill] sm:$0xff] %v10348_v28 }
 0x598   : > { %5043 = vmatmul.f32.gmra.mxu2 %v4417_v33  ;;  %5204 = vmatmul.f32.gmra.mxu3 %v4354_v6  ;;  %v4254_v33 = vadd.f32 %v10068_v57, %v4213_v39  ;;  %v4372_v6 = vld [vmem:[%s11742_s10 + $0x258] sm:$0xff]  ;;  %v4362_v57 = vld [vmem:[%s11742_s10 + $0x208] sm:$0xff]  ;;  %v10412_v31 = vpop.f32.mrf.mxu0  ;;  %v4620_v39 = vpop.permute.xlu2 %4619 }
 0x599   : > { %5634 = vmatmul.f32.gmra.mxu1 %v4372_v6  ;;  %v4955_v44 = vadd.f32 %v10084_v22, %v4620_v39  ;;  %v10436_v39 = vpop.permute.xlu1 %4724 }
 0x59a   : > { %12189 = vst [vmem:[#allocation105_spill] sm:$0xff] %v10436_v39  ;;  %v4994_v39 = vadd.f32 %v10373_v40, %v10192_v63  ;;  %v4988_v63 = vadd.f32 %v10308_v20, %v10271_v54 }
 0x59b   : > { %v4291_v35 = vpop.f32.mrf.mxu3  ;;  %v10404_v43 = vpop.f32.mrf.mxu2 }
 0x59c   : > { %v10375_v58 = vadd.f32 %v4291_v35, %v4251_v0  ;;  %v4425_v0 = vld [vmem:[%s11742_s10 + $0x400] sm:$0xff]  ;;  %v10414_v35 = vpop.f32.mrf.mxu1 }
 0x59e   : > { %12187 = vst [vmem:[#allocation19_spill] sm:$0xff] %v10375_v58 }
 0x5a0   : > { %5046 = vmatmul.f32.gmra.mxu2 %v4421_v9  ;;  %5207 = vmatmul.f32.gmra.mxu3 %v4358_v59  ;;  %v10416_v9 = vpop.permute.xlu0 %4719  ;;  %v4375_v59 = vld [vmem:[%s11742_s10 + $0x270] sm:$0xff] }
 0x5a1   : > { %5428 = vmatmul.f32.gmra.mxu0 %v4375_v59  ;;  %v10432_v59 = vpop.f32.mrf.mxu0 }
 0x5a3   : > { %v4294_v21 = vpop.f32.mrf.mxu3  ;;  %v10438_v58 = vpop.f32.mrf.mxu2 }
 0x5a4   : > { %v10400_v53 = vadd.f32 %v4294_v21, %v4254_v33  ;;  %v4376_v33 = vld [vmem:[%s11742_s10 + $0x278] sm:$0xff]  ;;  %v10434_v22 = vpop.f32.mrf.mxu1 }
 0x5a5   : > { %5637 = vmatmul.f32.gmra.mxu1 %v4376_v33  ;;  %v4379_v33 = vld [vmem:[%s11742_s10 + $0x290] sm:$0xff] }
 0x5a6   : > { %12188 = vst [vmem:[#allocation70_spill] sm:$0xff] %v10400_v53 }
 0x5a8   : > { %5049 = vmatmul.f32.gmra.mxu2 %v4425_v0  ;;  %5210 = vmatmul.f32.gmra.mxu3 %v4362_v57  ;;  %v4429_v0 = vld [vmem:[%s11742_s10 + $0x420] sm:$0xff]  ;;  %v4366_v57 = vld [vmem:[%s11742_s10 + $0x228] sm:$0xff] }
 0x5a9   : > { %5431 = vmatmul.f32.gmra.mxu0 %v4379_v33 }
 0x5ab   : > { %v5163_v6 = vpop.f32.mrf.mxu3 }
 0x5ac   : > { %v5164_v21 = vadd.f32 %v5163_v6, %v4955_v44  ;;  %v4625_v6 = vpop.permute.xlu0 %4624 }
 0x5ae   : > { %v5373_v53 = vadd.f32 %v10331_v30, %v5164_v21  ;;  %v4958_v30 = vadd.f32 %v10100_v51, %v4625_v6  ;;  %v4380_v21 = vld [vmem:[%s11742_s10 + $0x298] sm:$0xff]  ;;  %v10459_v51 = vpop.f32.mrf.mxu1  ;;  %v4630_v6 = vpop.permute.xlu1 %4629 }
 0x5af   : > { %5640 = vmatmul.f32.gmra.mxu1 %v4380_v21  ;;  %v4961_v21 = vadd.f32 %v10114_v34, %v4630_v6  ;;  %v4387_v6 = vld [vmem:[%s11742_s10 + $0x2d0] sm:$0xff] }
 0x5b0   : > { %v10441_v44 = vadd.f32 %v10333_v41, %v5373_v53  ;;  %5052 = vmatmul.f32.gmra.mxu2 %v4429_v0  ;;  %5213 = vmatmul.f32.gmra.mxu3 %v4366_v57  ;;  %v4433_v41 = vld [vmem:[%s11742_s10 + $0x440] sm:$0xff]  ;;  %v4370_v53 = vld [vmem:[%s11742_s10 + $0x248] sm:$0xff]  ;;  %v10457_v57 = vpop.f32.mrf.mxu0 }
 0x5b3   : > { %v5166_v28 = vpop.f32.mrf.mxu3 }
 0x5b4   : > { %v5167_v32 = vadd.f32 %v5166_v28, %v4958_v30  ;;  %v4383_v28 = vld [vmem:[%s11742_s10 + $0x2b0] sm:$0xff]  ;;  %v10467_v30 = vpop.f32.mrf.mxu2 }
 0x5b5   : > { %5434 = vmatmul.f32.gmra.mxu0 %v4383_v28 }
 0x5b6   : > { %v5376_v0 = vadd.f32 %v10360_v19, %v5167_v32  ;;  %v4384_v32 = vld [vmem:[%s11742_s10 + $0x2b8] sm:$0xff]  ;;  %v10480_v50 = vpop.f32.mrf.mxu1 }
 0x5b7   : > { %5643 = vmatmul.f32.gmra.mxu1 %v4384_v32 }
 0x5b8   : > { %v10462_v33 = vadd.f32 %v10362_v18, %v5376_v0  ;;  %5055 = vmatmul.f32.gmra.mxu2 %v4433_v41  ;;  %5216 = vmatmul.f32.gmra.mxu3 %v4370_v53  ;;  %v4437_v41 = vld [vmem:[%s11742_s10 + $0x460] sm:$0xff]  ;;  %v4374_v53 = vld [vmem:[%s11742_s10 + $0x268] sm:$0xff]  ;;  %v5390_v28 = vpop.f32.mrf.mxu0 }
 0x5bb   : > { %v5169_v19 = vpop.f32.mrf.mxu3 }
 0x5bc   : > { %v5170_v18 = vadd.f32 %v5169_v19, %v4961_v21  ;;  %v4964_v21 = vadd.f32 %v10130_v27, %v10350_v12  ;;  %v10493_v32 = vpop.f32.mrf.mxu2 }
 0x5bd   : > { %5437 = vmatmul.f32.gmra.mxu0 %v4387_v6  ;;  %v4391_v6 = vld [vmem:[%s11742_s10 + $0x2f0] sm:$0xff] }
 0x5be   : > { %v5379_v0 = vadd.f32 %v10387_v47, %v5170_v18  ;;  %v4388_v47 = vld [vmem:[%s11742_s10 + $0x2d8] sm:$0xff]  ;;  %v4441_v18 = vld [vmem:[%s11742_s10 + $0x480] sm:$0xff]  ;;  %v10502_v12 = vpop.f32.mrf.mxu1 }
 0x5bf   : > { %5646 = vmatmul.f32.gmra.mxu1 %v4388_v47 }
 0x5c0   : > { %v10483_v34 = vadd.f32 %v10389_v23, %v5379_v0  ;;  %5058 = vmatmul.f32.gmra.mxu2 %v4437_v41  ;;  %5219 = vmatmul.f32.gmra.mxu3 %v4374_v53  ;;  %v4378_v41 = vld [vmem:[%s11742_s10 + $0x288] sm:$0xff]  ;;  %v5393_v27 = vpop.f32.mrf.mxu0 }
 0x5c3   : > { %v5172_v19 = vpop.f32.mrf.mxu3 }
 0x5c4   : > { %v5173_v23 = vadd.f32 %v5172_v19, %v4964_v21  ;;  %v4967_v21 = vadd.f32 %v10146_v8, %v10377_v16 }
 0x5c5   : > { %5440 = vmatmul.f32.gmra.mxu0 %v4391_v6  ;;  %v4395_v6 = vld [vmem:[%s11742_s10 + $0x310] sm:$0xff] }
 0x5c6   : > { %v5382_v53 = vadd.f32 %v10412_v31, %v5173_v23  ;;  %v4392_v31 = vld [vmem:[%s11742_s10 + $0x2f8] sm:$0xff]  ;;  %v10515_v23 = vpop.f32.mrf.mxu2  ;;  %v10524_v16 = vpop.f32.mrf.mxu1 }
 0x5c7   : > { %5649 = vmatmul.f32.gmra.mxu1 %v4392_v31 }
 0x5c8   : > { %v10505_v0 = vadd.f32 %v10414_v35, %v5382_v53  ;;  %5061 = vmatmul.f32.gmra.mxu2 %v4441_v18  ;;  %5222 = vmatmul.f32.gmra.mxu3 %v4378_v41  ;;  %v4445_v35 = vld [vmem:[%s11742_s10 + $0x4a0] sm:$0xff]  ;;  %v4382_v18 = vld [vmem:[%s11742_s10 + $0x2a8] sm:$0xff]  ;;  %v5396_v8 = vpop.f32.mrf.mxu0 }
 0x5cb   : > { %v5175_v47 = vpop.f32.mrf.mxu3 }
 0x5cc   : > { %v5176_v19 = vadd.f32 %v5175_v47, %v4967_v21  ;;  %v4970_v21 = vadd.f32 %v10164_v56, %v10402_v25 }
 0x5cd   : > { %5443 = vmatmul.f32.gmra.mxu0 %v4395_v6  ;;  %v4399_v6 = vld [vmem:[%s11742_s10 + $0x330] sm:$0xff] }
 0x5ce   : > { %v5385_v41 = vadd.f32 %v10432_v59, %v5176_v19  ;;  %v4396_v59 = vld [vmem:[%s11742_s10 + $0x318] sm:$0xff]  ;;  %v4386_v19 = vld [vmem:[%s11742_s10 + $0x2c8] sm:$0xff]  ;;  %v10546_v56 = vpop.f32.mrf.mxu1  ;;  %v10548_v25 = vpop.f32.mrf.mxu2 }
 0x5cf   : > { %5652 = vmatmul.f32.gmra.mxu1 %v4396_v59 }
 0x5d0   : > { %v10527_v53 = vadd.f32 %v10434_v22, %v5385_v41  ;;  %5064 = vmatmul.f32.gmra.mxu2 %v4445_v35  ;;  %5225 = vmatmul.f32.gmra.mxu3 %v4382_v18  ;;  %v4449_v22 = vld [vmem:[%s11742_s10 + $0x4c0] sm:$0xff]  ;;  %v10544_v18 = vpop.f32.mrf.mxu0 }
 0x5d3   : > { %v5178_v31 = vpop.f32.mrf.mxu3 }
 0x5d4   : > { %v5179_v47 = vadd.f32 %v5178_v31, %v4970_v21  ;;  %v4973_v21 = vadd.f32 %v10184_v61, %v10293_v1  ;;  %v4403_v1 = vld [vmem:[%s11742_s10 + $0x350] sm:$0xff] }
 0x5d5   : > { %5446 = vmatmul.f32.gmra.mxu0 %v4399_v6 }
 0x5d6   : > { %v5388_v35 = vadd.f32 %v10457_v57, %v5179_v47  ;;  %v4400_v57 = vld [vmem:[%s11742_s10 + $0x338] sm:$0xff]  ;;  %v4390_v47 = vld [vmem:[%s11742_s10 + $0x2e8] sm:$0xff]  ;;  %v10577_v6 = vpop.f32.mrf.mxu2 }
 0x5d7   : > { %5655 = vmatmul.f32.gmra.mxu1 %v4400_v57 }
 0x5d8   : > { %v10551_v41 = vadd.f32 %v10459_v51, %v5388_v35  ;;  %5067 = vmatmul.f32.gmra.mxu2 %v4449_v22  ;;  %5228 = vmatmul.f32.gmra.mxu3 %v4386_v19  ;;  %v4453_v51 = vld [vmem:[%s11742_s10 + $0x4e0] sm:$0xff]  ;;  %v10567_v19 = vpop.f32.mrf.mxu0  ;;  %v10569_v35 = vpop.f32.mrf.mxu1 }
 0x5db   : > { %v5181_v59 = vpop.f32.mrf.mxu3 }
 0x5dc   : > { %v5182_v31 = vadd.f32 %v5181_v59, %v4973_v21  ;;  %v4976_v21 = vadd.f32 %v10204_v46, %v10316_v36  ;;  %v4457_v59 = vld [vmem:[%s11742_s10 + $0x500] sm:$0xff]  ;;  %v4407_v36 = vld [vmem:[%s11742_s10 + $0x370] sm:$0xff] }
 0x5dd   : > { %5449 = vmatmul.f32.gmra.mxu0 %v4403_v1  ;;  %v4979_v1 = vadd.f32 %v10225_v2, %v10335_v4 }
 0x5de   : > { %v5391_v22 = vadd.f32 %v5390_v28, %v5182_v31  ;;  %v4404_v28 = vld [vmem:[%s11742_s10 + $0x358] sm:$0xff]  ;;  %v4394_v31 = vld [vmem:[%s11742_s10 + $0x308] sm:$0xff] }
 0x5df   : > { %5658 = vmatmul.f32.gmra.mxu1 %v4404_v28 }
 0x5e0   : > { %v10572_v61 = vadd.f32 %v10480_v50, %v5391_v22  ;;  %5070 = vmatmul.f32.gmra.mxu2 %v4453_v51  ;;  %5231 = vmatmul.f32.gmra.mxu3 %v4390_v47  ;;  %v10590_v47 = vpop.f32.mrf.mxu0  ;;  %v10592_v22 = vpop.f32.mrf.mxu1 }
 0x5e3   : > { %v5184_v57 = vpop.f32.mrf.mxu3 }
 0x5e4   : > { %v5185_v50 = vadd.f32 %v5184_v57, %v4976_v21  ;;  %v10605_v21 = vpop.f32.mrf.mxu2  ;;  %v4461_v57 = vld [vmem:[%s11742_s10 + $0x520] sm:$0xff] }
 0x5e5   : > { %5452 = vmatmul.f32.gmra.mxu0 %v4407_v36  ;;  %12190 = vst [vmem:[#allocation123_spill] sm:$0xff] %v10605_v21  ;;  %v4412_v36 = vld [vmem:[%s11742_s10 + $0x398] sm:$0xff]  ;;  %v4435_v21 = vld [vmem:[%s11742_s10 + $0x450] sm:$0xff] }
 0x5e6   : > { %v5394_v51 = vadd.f32 %v5393_v27, %v5185_v50  ;;  %v4408_v27 = vld [vmem:[%s11742_s10 + $0x378] sm:$0xff]  ;;  %v4398_v50 = vld [vmem:[%s11742_s10 + $0x328] sm:$0xff] }
 0x5e7   : > { %5661 = vmatmul.f32.gmra.mxu1 %v4408_v27  ;;  %v4402_v27 = vld [vmem:[%s11742_s10 + $0x348] sm:$0xff] }
 0x5e8   : > { %v10595_v46 = vadd.f32 %v10502_v12, %v5394_v51  ;;  %5073 = vmatmul.f32.gmra.mxu2 %v4457_v59  ;;  %5234 = vmatmul.f32.gmra.mxu3 %v4394_v31  ;;  %v10613_v31 = vpop.f32.mrf.mxu0  ;;  %v10615_v2 = vpop.f32.mrf.mxu1  ;;  %v4411_v51 = vld [vmem:[%s11742_s10 + $0x390] sm:$0xff] }
 0x5eb   : > { %v5187_v28 = vpop.f32.mrf.mxu3 }
 0x5ec   : > { %v5188_v12 = vadd.f32 %v5187_v28, %v4979_v1 }
 0x5ed   : > { %5455 = vmatmul.f32.gmra.mxu0 %v4411_v51  ;;  %v4469_v51 = vld [vmem:[%s11742_s10 + $0x560] sm:$0xff] }
 0x5ee   : > { %v5397_v59 = vadd.f32 %v5396_v8, %v5188_v12  ;;  %v10628_v8 = vpop.f32.mrf.mxu2 }
 0x5ef   : > { %5664 = vmatmul.f32.gmra.mxu1 %v4412_v36  ;;  %12191 = vst [vmem:[#allocation58_spill] sm:$0xff] %v10628_v8  ;;  %v4406_v36 = vld [vmem:[%s11742_s10 + $0x368] sm:$0xff]  ;;  %v10730_v8 = vpop.permute.xlu1 %4709 }
 0x5f0   : > { %v10618_v4 = vadd.f32 %v10524_v16, %v5397_v59  ;;  %5076 = vmatmul.f32.gmra.mxu2 %v4461_v57  ;;  %5237 = vmatmul.f32.gmra.mxu3 %v4398_v50  ;;  %v4465_v16 = vld [vmem:[%s11742_s10 + $0x540] sm:$0xff]  ;;  %v10636_v28 = vpop.f32.mrf.mxu0  ;;  %v10638_v12 = vpop.f32.mrf.mxu1  ;;  %v4415_v57 = vld [vmem:[%s11742_s10 + $0x3b0] sm:$0xff]  ;;  %v4416_v50 = vld [vmem:[%s11742_s10 + $0x3b8] sm:$0xff] }
 0x5f3   : > { %v10626_v1 = vpop.f32.mrf.mxu3 }
 0x5f5   : > { %5458 = vmatmul.f32.gmra.mxu0 %v4415_v57 }
 0x5f6   : > { %v10658_v57 = vpop.f32.mrf.mxu2 }
 0x5f7   : > { %5667 = vmatmul.f32.gmra.mxu1 %v4416_v50  ;;  %12192 = vst [vmem:[#allocation109_spill] sm:$0xff] %v10658_v57  ;;  %v4419_v50 = vld [vmem:[%s11742_s10 + $0x3d0] sm:$0xff]  ;;  %v4485_v57 = vld [vmem:[%s11742_s10 + $0x5e0] sm:$0xff] }
 0x5f8   : > { %5079 = vmatmul.f32.gmra.mxu2 %v4465_v16  ;;  %5240 = vmatmul.f32.gmra.mxu3 %v4402_v27  ;;  %v10654_v16 = vpop.f32.mrf.mxu0  ;;  %v10656_v27 = vpop.f32.mrf.mxu1 }
 0x5fb   : > { %v10646_v59 = vpop.f32.mrf.mxu3 }
 0x5fd   : > { %5461 = vmatmul.f32.gmra.mxu0 %v4419_v50  ;;  %v4423_v50 = vld [vmem:[%s11742_s10 + $0x3f0] sm:$0xff] }
 0x5fe   : > { %v10679_v26 = vpop.f32.mrf.mxu2 }
 0x5ff   : > { %5670 = vmatmul.f32.gmra.mxu1 %v4420_v14  ;;  %12193 = vst [vmem:[#allocation86_spill] sm:$0xff] %v10679_v26  ;;  %v4424_v14 = vld [vmem:[%s11742_s10 + $0x3f8] sm:$0xff] }
 0x600   : > { %5082 = vmatmul.f32.gmra.mxu2 %v4469_v51  ;;  %5243 = vmatmul.f32.gmra.mxu3 %v4406_v36  ;;  %v4410_v51 = vld [vmem:[%s11742_s10 + $0x388] sm:$0xff]  ;;  %v5417_v36 = vpop.f32.mrf.mxu0  ;;  %v10674_v29 = vpop.f32.mrf.mxu1 }
 0x603   : > { %v10666_v3 = vpop.f32.mrf.mxu3 }
 0x605   : > { %5464 = vmatmul.f32.gmra.mxu0 %v4423_v50 }
 0x606   : > { %v10700_v62 = vpop.f32.mrf.mxu2 }
 0x607   : > { %5673 = vmatmul.f32.gmra.mxu1 %v4424_v14  ;;  %v4428_v14 = vld [vmem:[%s11742_s10 + $0x418] sm:$0xff]  ;;  %12194 = vst [vmem:[#allocation136_spill] sm:$0xff] %v10700_v62 }
 0x608   : > { %5085 = vmatmul.f32.gmra.mxu2 %v4473_v42  ;;  %5246 = vmatmul.f32.gmra.mxu3 %v4410_v51  ;;  %v4414_v42 = vld [vmem:[%s11742_s10 + $0x3a8] sm:$0xff]  ;;  %v10690_v51 = vpop.f32.mrf.mxu0  ;;  %v10692_v50 = vpop.f32.mrf.mxu1  ;;  %v4432_v62 = vld [vmem:[%s11742_s10 + $0x438] sm:$0xff] }
 0x60b   : > { %v5199_v17 = vpop.f32.mrf.mxu3 }
 0x60d   : > { %5467 = vmatmul.f32.gmra.mxu0 %v4427_v48 }
 0x60e   : > { %v10726_v45 = vpop.f32.mrf.mxu2 }
 0x60f   : > { %5676 = vmatmul.f32.gmra.mxu1 %v4428_v14  ;;  %v4431_v14 = vld [vmem:[%s11742_s10 + $0x430] sm:$0xff]  ;;  %12195 = vst [vmem:[#allocation141_spill] sm:$0xff] %v10726_v45 }
 0x610   : > { %5088 = vmatmul.f32.gmra.mxu2 %v4477_v52  ;;  %5249 = vmatmul.f32.gmra.mxu3 %v4414_v42  ;;  %v4481_v52 = vld [vmem:[%s11742_s10 + $0x5c0] sm:$0xff]  ;;  %v4418_v42 = vld [vmem:[%s11742_s10 + $0x3c8] sm:$0xff]  ;;  %v10708_v26 = vpop.f32.mrf.mxu0  ;;  %v10710_v48 = vpop.f32.mrf.mxu1 }
 0x613   : > { %v5202_v60 = vpop.f32.mrf.mxu3 }
 0x615   : > { %5470 = vmatmul.f32.gmra.mxu0 %v4431_v14 }
 0x616   : > { %v10761_v54 = vpop.f32.mrf.mxu2 }
 0x617   : > { %5679 = vmatmul.f32.gmra.mxu1 %v4432_v62 }
 0x618   : > { %5091 = vmatmul.f32.gmra.mxu2 %v4481_v52  ;;  %5252 = vmatmul.f32.gmra.mxu3 %v4418_v42  ;;  %v4422_v52 = vld [vmem:[%s11742_s10 + $0x3e8] sm:$0xff]  ;;  %v4997_v42 = vadd.f32 %v10404_v43, %v10214_v7  ;;  %v10728_v14 = vpop.f32.mrf.mxu0  ;;  %v10732_v62 = vpop.f32.mrf.mxu1  ;;  %v5000_v7 = vadd.f32 %v10438_v58, %v10172_v24  ;;  %v4436_v43 = vld [vmem:[%s11742_s10 + $0x458] sm:$0xff]  ;;  %v4489_v24 = vld [vmem:[%s11742_s10 + $0x600] sm:$0xff] }
 0x619   : > { %v4426_v58 = vld [vmem:[%s11742_s10 + $0x408] sm:$0xff] }
 0x61b   : > { %v5205_v37 = vpop.f32.mrf.mxu3 }
 0x61c   : > { %v5206_v13 = vadd.f32 %v5205_v37, %v4997_v42  ;;  %v4991_v37 = vadd.f32 %v10340_v11, %v10174_v49 }
 0x61d   : > { %5473 = vmatmul.f32.gmra.mxu0 %v4435_v21 }
 0x61e   : > { %v5415_v42 = vadd.f32 %v10654_v16, %v5206_v13  ;;  %v5200_v40 = vadd.f32 %v5199_v17, %v4991_v37  ;;  %v5197_v13 = vadd.f32 %v10666_v3, %v4988_v63  ;;  %v4700_v16 = vpop.permute.xlu1 %4699  ;;  %v4982_v3 = vadd.f32 %v10248_v55, %v10229_v38  ;;  %v4443_v63 = vld [vmem:[%s11742_s10 + $0x490] sm:$0xff] }
 0x61f   : > { %5682 = vmatmul.f32.gmra.mxu1 %v4436_v43 }
 0x620   : > { %5094 = vmatmul.f32.gmra.mxu2 %v4485_v57  ;;  %5255 = vmatmul.f32.gmra.mxu3 %v4422_v52  ;;  %v5203_v57 = vadd.f32 %v5202_v60, %v4994_v39  ;;  %v10755_v49 = vpop.f32.mrf.mxu0  ;;  %v4985_v60 = vadd.f32 %v10275_v15, %v10252_v5  ;;  %v5624_v17 = vadd.f32 %v10656_v27, %v5415_v42  ;;  %v4440_v27 = vld [vmem:[%s11742_s10 + $0x478] sm:$0xff] }
 0x621   : > { %v5409_v15 = vadd.f32 %v10613_v31, %v5200_v40 }
 0x622   : > { %v5412_v11 = vadd.f32 %v10636_v28, %v5203_v57  ;;  %v10765_v39 = vpop.f32.mrf.mxu1  ;;  %v5194_v5 = vadd.f32 %v10646_v59, %v4985_v60  ;;  %v5003_v28 = vadd.f32 %v10467_v30, %v4700_v16  ;;  %v5787_v38 = vmax.f32 %v5624_v17, 0.0  ;;  %v4493_v59 = vld [vmem:[%s11742_s10 + $0x620] sm:$0xff] }
 0x623   : > { %v5208_v52 = vpop.f32.mrf.mxu3  ;;  %v5618_v30 = vadd.f32 %v10615_v2, %v5409_v15  ;;  %v5780_v15 = vmax.f32 %v10595_v46, 0.0 }
 0x624   : > { %v5209_v45 = vadd.f32 %v5208_v52, %v5000_v7  ;;  %v5406_v7 = vadd.f32 %v10590_v47, %v5197_v13  ;;  %v5621_v43 = vadd.f32 %v10638_v12, %v5412_v11  ;;  %v5403_v31 = vadd.f32 %v10567_v19, %v5194_v5 }
 0x625   : > { %v5781_v5 = vmax.f32 %v10618_v4, 0.0  ;;  %v4501_v4 = vld [vmem:[%s11742_s10 + $0x660] sm:$0xff] }
 0x626   : > { %v5418_v21 = vadd.f32 %v5417_v36, %v5209_v45  ;;  %v4439_v45 = vld [vmem:[%s11742_s10 + $0x470] sm:$0xff]  ;;  %v5191_v36 = vadd.f32 %v10626_v1, %v4982_v3  ;;  %v4430_v1 = vld [vmem:[%s11742_s10 + $0x428] sm:$0xff]  ;;  %v5615_v52 = vadd.f32 %v10592_v22, %v5406_v7  ;;  %v5786_v19 = vmax.f32 %v5621_v43, 0.0  ;;  %v10804_v22 = vpop.f32.mrf.mxu2 }
 0x627   : > { %5476 = vmatmul.f32.gmra.mxu0 %v4439_v45  ;;  %5685 = vmatmul.f32.gmra.mxu1 %v4440_v27  ;;  %v5612_v40 = vadd.f32 %v10569_v35, %v5403_v31  ;;  %v4497_v35 = vld [vmem:[%s11742_s10 + $0x640] sm:$0xff]  ;;  %v4447_v3 = vld [vmem:[%s11742_s10 + $0x4b0] sm:$0xff]  ;;  %v5778_v7 = vmax.f32 %v10551_v41, 0.0  ;;  %v4452_v41 = vld [vmem:[%s11742_s10 + $0x4d8] sm:$0xff] }
 0x628   : > { %v5627_v20 = vadd.f32 %v10674_v29, %v5418_v21  ;;  %5097 = vmatmul.f32.gmra.mxu2 %v4489_v24  ;;  %5258 = vmatmul.f32.gmra.mxu3 %v4426_v58  ;;  %v10790_v12 = vpop.f32.mrf.mxu0  ;;  %v5400_v57 = vadd.f32 %v10544_v18, %v5191_v36  ;;  %v5785_v24 = vmax.f32 %v5618_v30, 0.0  ;;  %v5784_v21 = vmax.f32 %v5615_v52, 0.0 }
 0x629   : > { %v5783_v11 = vmax.f32 %v5612_v40, 0.0  ;;  %v5779_v36 = vmax.f32 %v10572_v61, 0.0  ;;  %v5775_v30 = vmax.f32 %v10483_v34, 0.0  ;;  %v5773_v52 = vmax.f32 %v10441_v44, 0.0  ;;  %v4446_v44 = vld [vmem:[%s11742_s10 + $0x4a8] sm:$0xff] }
 0x62a   : > { %v5788_v29 = vmax.f32 %v5627_v20, 0.0  ;;  %v5609_v58 = vadd.f32 %v10546_v56, %v5400_v57  ;;  %v4455_v57 = vld [vmem:[%s11742_s10 + $0x4f0] sm:$0xff] }
 0x62b   : > { %v5211_v37 = vpop.f32.mrf.mxu3 }
 0x62c   : > { %v5212_v55 = vadd.f32 %v5211_v37, %v5003_v28  ;;  %5869 = vmatpush.msra.mxu2 %v5788_v29  ;;  %v10797_v42 = vpop.f32.mrf.mxu1  ;;  %v5782_v56 = vmax.f32 %v5609_v58, 0.0  ;;  %v4451_v37 = vld [vmem:[%s11742_s10 + $0x4d0] sm:$0xff] }
 0x62d   : > { %v12197_v58 = vld [vmem:[#allocation105_spill] sm:$0xff] }
 0x62e   : > { %v5421_v47 = vadd.f32 %v10690_v51, %v5212_v55  ;;  %5870 = vmatpush.msra.mxu2 %v5787_v38  ;;  %v4705_v51 = vpop.permute.xlu0 %4704  ;;  %v10834_v29 = vpop.f32.mrf.mxu2  ;;  %v5777_v38 = vmax.f32 %v10527_v53, 0.0  ;;  %v4505_v53 = vld [vmem:[%s11742_s10 + $0x680] sm:$0xff] }
 0x62f   : > { %5479 = vmatmul.f32.gmra.mxu0 %v4443_v63  ;;  %v5006_v18 = vadd.f32 %v10493_v32, %v4705_v51  ;;  %v4434_v32 = vld [vmem:[%s11742_s10 + $0x448] sm:$0xff]  ;;  %v4509_v63 = vld [vmem:[%s11742_s10 + $0x6a0] sm:$0xff] }
 0x630   : > { %v10795_v2 = vadd.f32 %v10692_v50, %v5421_v47  ;;  %5100 = vmatmul.f32.gmra.mxu2 %v4493_v59  ;;  %5261 = vmatmul.f32.gmra.mxu3 %v4430_v1  ;;  %v4444_v50 = vld [vmem:[%s11742_s10 + $0x498] sm:$0xff]  ;;  %v5774_v1 = vmax.f32 %v10462_v33, 0.0 }
 0x631   : > { %5871 = vmatpush.msra.mxu2 %v5786_v19  ;;  %5688 = vmatmul.f32.gmra.mxu1 %v4444_v50  ;;  %v4456_v33 = vld [vmem:[%s11742_s10 + $0x4f8] sm:$0xff]  ;;  %v4459_v50 = vld [vmem:[%s11742_s10 + $0x510] sm:$0xff] }
 0x632   : > { %v10817_v20 = vpop.f32.mrf.mxu0 }
 0x633   : > { %5872 = vmatpush.msra.mxu2 %v5785_v24  ;;  %v5214_v60 = vpop.f32.mrf.mxu3 }
 0x634   : > { %v5215_v13 = vadd.f32 %v5214_v60, %v5006_v18  ;;  %v10822_v16 = vpop.f32.mrf.mxu1  ;;  %v4460_v60 = vld [vmem:[%s11742_s10 + $0x518] sm:$0xff] }
 0x635   : > { %5873 = vmatpush.msra.mxu2 %v5784_v21 }
 0x636   : > { %v5424_v17 = vadd.f32 %v10708_v26, %v5215_v13  ;;  %v5009_v26 = vadd.f32 %v10515_v23, %v10730_v8  ;;  %v4438_v23 = vld [vmem:[%s11742_s10 + $0x468] sm:$0xff] }
 0x637   : > { %5874 = vmatpush.msra.mxu2 %v5783_v11  ;;  %5482 = vmatmul.f32.gmra.mxu0 %v4447_v3  ;;  %v4513_v11 = vld [vmem:[%s11742_s10 + $0x6c0] sm:$0xff] }
 0x638   : > { %v10820_v45 = vadd.f32 %v10710_v48, %v5424_v17  ;;  %5103 = vmatmul.f32.gmra.mxu2 %v4497_v35  ;;  %5264 = vmatmul.f32.gmra.mxu3 %v4434_v32  ;;  %v4448_v48 = vld [vmem:[%s11742_s10 + $0x4b8] sm:$0xff]  ;;  %v4450_v35 = vld [vmem:[%s11742_s10 + $0x4c8] sm:$0xff] }
 0x639   : > { %5875 = vmatpush.msra.mxu2 %v5782_v56  ;;  %5691 = vmatmul.f32.gmra.mxu1 %v4448_v48  ;;  %v10924_v56 = vpop.permute.xlu2 %4854 }
 0x63a   : > { %v10844_v46 = vpop.f32.mrf.mxu0  ;;  %12199 = vst [vmem:[#allocation119_spill] sm:$0xff] %v10924_v56  ;;  %v12225_v56 = vld [vmem:[#allocation118_spill] sm:$0xff] }
 0x63b   : > { %5876 = vmatpush.msra.mxu2 %v5781_v5  ;;  %v5217_v28 = vpop.f32.mrf.mxu3 }
 0x63c   : > { %v5218_v27 = vadd.f32 %v5217_v28, %v5009_v26  ;;  %v10850_v61 = vpop.f32.mrf.mxu1  ;;  %v4463_v26 = vld [vmem:[%s11742_s10 + $0x530] sm:$0xff] }
 0x63d   : > { %5877 = vmatpush.msra.mxu2 %v5780_v15  ;;  %v12201_v15 = vld [vmem:[#allocation133_spill] sm:$0xff] }
 0x63e   : > { %v5427_v8 = vadd.f32 %v10728_v14, %v5218_v27  ;;  %v5012_v14 = vadd.f32 %v10548_v25, %v10391_v10  ;;  %v4442_v10 = vld [vmem:[%s11742_s10 + $0x488] sm:$0xff]  ;;  %v10869_v25 = vpop.f32.mrf.mxu2 }
 0x63f   : > { %5878 = vmatpush.msra.mxu2 %v5779_v36  ;;  %5485 = vmatmul.f32.gmra.mxu0 %v4451_v37 }
 0x640   : > { %v10848_v43 = vadd.f32 %v10732_v62, %v5427_v8  ;;  %5106 = vmatmul.f32.gmra.mxu2 %v4501_v4  ;;  %5267 = vmatmul.f32.gmra.mxu3 %v4438_v23  ;;  %v5776_v62 = vmax.f32 %v10505_v0, 0.0  ;;  %v4517_v23 = vld [vmem:[%s11742_s10 + $0x6e0] sm:$0xff]  ;;  %v4454_v8 = vld [vmem:[%s11742_s10 + $0x4e8] sm:$0xff] }
 0x641   : > { %5879 = vmatpush.msra.mxu2 %v5778_v7  ;;  %5694 = vmatmul.f32.gmra.mxu1 %v4452_v41  ;;  %v4467_v41 = vld [vmem:[%s11742_s10 + $0x550] sm:$0xff] }
 0x642   : > { %v10872_v0 = vpop.f32.mrf.mxu0 }
 0x643   : > { %5880 = vmatpush.msra.mxu2 %v5777_v38  ;;  %v5220_v55 = vpop.f32.mrf.mxu3 }
 0x644   : > { %v5221_v31 = vadd.f32 %v5220_v55, %v5012_v14  ;;  %v10878_v47 = vpop.f32.mrf.mxu1  ;;  %v12204_v55 = vld [vmem:[#allocation102_spill] sm:$0xff] }
 0x645   : > { %5881 = vmatpush.msra.mxu2 %v5776_v62  ;;  %v10960_v62 = vpop.permute.xlu2 %4844 }
 0x646   : > { %v5430_v59 = vadd.f32 %v10755_v49, %v5221_v31  ;;  %v5015_v49 = vadd.f32 %v10577_v6, %v10416_v9  ;;  %v10898_v9 = vpop.permute.xlu1 %4934  ;;  %v10900_v6 = vpop.f32.mrf.mxu2  ;;  %12203 = vst [vmem:[#allocation87_spill] sm:$0xff] %v10960_v62  ;;  %v12205_v31 = vld [vmem:[#allocation109_spill] sm:$0xff] }
 0x647   : > { %5882 = vmatpush.msra.mxu2 %v5775_v30  ;;  %5488 = vmatmul.f32.gmra.mxu0 %v4455_v57  ;;  %12196 = vst [vmem:[#allocation94_spill] sm:$0xff] %v10898_v9  ;;  %v5024_v30 = vadd.f32 %v12205_v31, %v12204_v55  ;;  %v4458_v57 = vld [vmem:[%s11742_s10 + $0x508] sm:$0xff]  ;;  %v4480_v55 = vld [vmem:[%s11742_s10 + $0x5b8] sm:$0xff] }
 0x648   : > { %v10876_v34 = vadd.f32 %v10765_v39, %v5430_v59  ;;  %5109 = vmatmul.f32.gmra.mxu2 %v4505_v53  ;;  %5270 = vmatmul.f32.gmra.mxu3 %v4442_v10  ;;  %v4496_v9 = vld [vmem:[%s11742_s10 + $0x638] sm:$0xff] }
 0x649   : > { %5883 = vmatpush.msra.mxu2 %v5774_v1  ;;  %5697 = vmatmul.f32.gmra.mxu1 %v4456_v33  ;;  %v4521_v1 = vld [vmem:[%s11742_s10 + $0x700] sm:$0xff] }
 0x64a   : > { %v10896_v40 = vpop.f32.mrf.mxu0 }
 0x64b   : > { %5884 = vmatpush.msra.mxu2 %v5773_v52  ;;  %v5223_v39 = vpop.f32.mrf.mxu3 }
 0x64c   : > { %v5224_v19 = vadd.f32 %v5223_v39, %v5015_v49  ;;  %v10905_v18 = vpop.f32.mrf.mxu1 }
 0x64e   : > { %v5433_v51 = vadd.f32 %v10790_v12, %v5224_v19  ;;  %v12198_v12 = vld [vmem:[#allocation123_spill] sm:$0xff]  ;;  %v10934_v48 = vpop.permute.xlu1 %4839  ;;  %v10938_v27 = vpop.f32.mrf.mxu2  ;;  %v4471_v19 = vld [vmem:[%s11742_s10 + $0x570] sm:$0xff] }
 0x64f   : > { %5491 = vmatmul.f32.gmra.mxu0 %v4459_v50  ;;  %v5018_v21 = vadd.f32 %v12198_v12, %v12197_v58  ;;  %12200 = vst [vmem:[#allocation18_spill] sm:$0xff] %v10934_v48  ;;  %v5042_v48 = vadd.f32 %v10834_v29, %v12225_v56  ;;  %v12228_v29 = vld [vmem:[#allocation50_spill] sm:$0xff] }
 0x650   : > { %v10903_v24 = vadd.f32 %v10797_v42, %v5433_v51  ;;  %5112 = vmatmul.f32.gmra.mxu2 %v4509_v63  ;;  %5273 = vmatmul.f32.gmra.mxu3 %v4446_v44  ;;  %v10988_v63 = vpop.permute.xlu0 %4849  ;;  %v12208_v44 = vld [vmem:[#allocation65_spill] sm:$0xff]  ;;  %v12209_v51 = vld [vmem:[#allocation86_spill] sm:$0xff]  ;;  %v5036_v56 = vadd.f32 %v10761_v54, %v12228_v29 }
 0x651   : > { %5700 = vmatmul.f32.gmra.mxu1 %v4460_v60  ;;  %12207 = vst [vmem:[#allocation93_spill] sm:$0xff] %v10988_v63  ;;  %v5027_v50 = vadd.f32 %v12209_v51, %v12208_v44  ;;  %v4525_v60 = vld [vmem:[%s11742_s10 + $0x720] sm:$0xff]  ;;  %v4484_v51 = vld [vmem:[%s11742_s10 + $0x5d8] sm:$0xff] }
 0x652   : > { %v10922_v17 = vpop.f32.mrf.mxu0 }
 0x653   : > { %v5226_v13 = vpop.f32.mrf.mxu3 }
 0x654   : > { %v5227_v42 = vadd.f32 %v5226_v13, %v5018_v21  ;;  %v10929_v5 = vpop.f32.mrf.mxu1  ;;  %v4462_v13 = vld [vmem:[%s11742_s10 + $0x528] sm:$0xff] }
 0x656   : > { %v5436_v32 = vadd.f32 %v10817_v20, %v5227_v42  ;;  %v12202_v20 = vld [vmem:[#allocation58_spill] sm:$0xff]  ;;  %v10969_v10 = vpop.f32.mrf.mxu2 }
 0x657   : > { %5494 = vmatmul.f32.gmra.mxu0 %v4463_v26  ;;  %v5021_v28 = vadd.f32 %v12202_v20, %v12201_v15  ;;  %v4475_v15 = vld [vmem:[%s11742_s10 + $0x590] sm:$0xff]  ;;  %v4476_v20 = vld [vmem:[%s11742_s10 + $0x598] sm:$0xff] }
 0x658   : > { %v10927_v3 = vadd.f32 %v10822_v16, %v5436_v32  ;;  %5115 = vmatmul.f32.gmra.mxu2 %v4513_v11  ;;  %5276 = vmatmul.f32.gmra.mxu3 %v4450_v35  ;;  %v4464_v16 = vld [vmem:[%s11742_s10 + $0x538] sm:$0xff] }
 0x659   : > { %5703 = vmatmul.f32.gmra.mxu1 %v4464_v16  ;;  %v4529_v16 = vld [vmem:[%s11742_s10 + $0x740] sm:$0xff] }
 0x65a   : > { %v10950_v37 = vpop.f32.mrf.mxu0 }
 0x65b   : > { %v5229_v36 = vpop.f32.mrf.mxu3 }
 0x65c   : > { %v5230_v4 = vadd.f32 %v5229_v36, %v5021_v28  ;;  %v10955_v14 = vpop.f32.mrf.mxu1  ;;  %v11021_v28 = vpop.permute.xlu0 %4929  ;;  %v4466_v36 = vld [vmem:[%s11742_s10 + $0x548] sm:$0xff] }
 0x65d   : > { %12212 = vst [vmem:[#allocation101_spill] sm:$0xff] %v11021_v28 }
 0x65e   : > { %v5439_v7 = vadd.f32 %v10844_v46, %v5230_v4  ;;  %v4468_v46 = vld [vmem:[%s11742_s10 + $0x558] sm:$0xff]  ;;  %v11005_v42 = vpop.f32.mrf.mxu2 }
 0x65f   : > { %5497 = vmatmul.f32.gmra.mxu0 %v4467_v41  ;;  %v4479_v41 = vld [vmem:[%s11742_s10 + $0x5b0] sm:$0xff] }
 0x660   : > { %v10953_v38 = vadd.f32 %v10850_v61, %v5439_v7  ;;  %5118 = vmatmul.f32.gmra.mxu2 %v4517_v23  ;;  %5279 = vmatmul.f32.gmra.mxu3 %v4454_v8  ;;  %v10967_v61 = vpop.permute.xlu1 %4919 }
 0x661   : > { %12206 = vst [vmem:[#allocation89_spill] sm:$0xff] %v10967_v61  ;;  %5706 = vmatmul.f32.gmra.mxu1 %v4468_v46  ;;  %v4533_v46 = vld [vmem:[%s11742_s10 + $0x760] sm:$0xff] }
 0x662   : > { %v10978_v49 = vpop.f32.mrf.mxu0 }
 0x663   : > { %v5232_v53 = vpop.f32.mrf.mxu3 }
 0x664   : > { %v5233_v59 = vadd.f32 %v5232_v53, %v5024_v30  ;;  %v10983_v39 = vpop.f32.mrf.mxu1  ;;  %v11049_v30 = vpop.permute.xlu0 %4834  ;;  %v4470_v53 = vld [vmem:[%s11742_s10 + $0x568] sm:$0xff] }
 0x665   : > { %12215 = vst [vmem:[#allocation63_spill] sm:$0xff] %v11049_v30  ;;  %v4499_v30 = vld [vmem:[%s11742_s10 + $0x650] sm:$0xff] }
 0x666   : > { %v5442_v52 = vadd.f32 %v10872_v0, %v5233_v59  ;;  %v4472_v0 = vld [vmem:[%s11742_s10 + $0x578] sm:$0xff]  ;;  %v11037_v8 = vpop.f32.mrf.mxu2 }
 0x667   : > { %5500 = vmatmul.f32.gmra.mxu0 %v4471_v19 }
 0x668   : > { %v10981_v33 = vadd.f32 %v10878_v47, %v5442_v52  ;;  %5121 = vmatmul.f32.gmra.mxu2 %v4521_v1  ;;  %5282 = vmatmul.f32.gmra.mxu3 %v4458_v57  ;;  %v10995_v47 = vpop.permute.xlu2 %4924  ;;  %v10997_v21 = vpop.permute.xlu1 %4824  ;;  %v4483_v52 = vld [vmem:[%s11742_s10 + $0x5d0] sm:$0xff] }
 0x669   : > { %12210 = vst [vmem:[#allocation81_spill] sm:$0xff] %v10995_v47  ;;  %5709 = vmatmul.f32.gmra.mxu1 %v4472_v0  ;;  %v4537_v0 = vld [vmem:[%s11742_s10 + $0x780] sm:$0xff] }
 0x66a   : > { %12211 = vst [vmem:[#allocation95_spill] sm:$0xff] %v10997_v21  ;;  %v11008_v35 = vpop.f32.mrf.mxu0 }
 0x66b   : > { %v5235_v58 = vpop.f32.mrf.mxu3 }
 0x66c   : > { %v5236_v12 = vadd.f32 %v5235_v58, %v5027_v50  ;;  %v11013_v26 = vpop.f32.mrf.mxu1  ;;  %v4474_v58 = vld [vmem:[%s11742_s10 + $0x588] sm:$0xff] }
 0x66e   : > { %v5445_v11 = vadd.f32 %v10896_v40, %v5236_v12  ;;  %v11068_v44 = vpop.f32.mrf.mxu2 }
 0x66f   : > { %5503 = vmatmul.f32.gmra.mxu0 %v4475_v15 }
 0x670   : > { %v11011_v32 = vadd.f32 %v10905_v18, %v5445_v11  ;;  %5124 = vmatmul.f32.gmra.mxu2 %v4525_v60  ;;  %5285 = vmatmul.f32.gmra.mxu3 %v4462_v13  ;;  %v11025_v18 = vpop.permute.xlu2 %4829  ;;  %v11035_v23 = vpop.permute.xlu1 %4904  ;;  %v4487_v11 = vld [vmem:[%s11742_s10 + $0x5f0] sm:$0xff] }
 0x671   : > { %5712 = vmatmul.f32.gmra.mxu1 %v4476_v20  ;;  %12213 = vst [vmem:[#allocation88_spill] sm:$0xff] %v11025_v18  ;;  %v11083_v60 = vpop.permute.xlu0 %4914  ;;  %v4488_v20 = vld [vmem:[%s11742_s10 + $0x5f8] sm:$0xff] }
 0x672   : > { %v11033_v4 = vpop.f32.mrf.mxu0  ;;  %12214 = vst [vmem:[#allocation22_spill] sm:$0xff] %v11035_v23 }
 0x673   : > { %v11023_v40 = vpop.f32.mrf.mxu3  ;;  %12217 = vst [vmem:[#allocation57_spill] sm:$0xff] %v11083_v60 }
 0x674   : > { %v11039_v7 = vpop.f32.mrf.mxu1 }
 0x677   : > { %5506 = vmatmul.f32.gmra.mxu0 %v4479_v41  ;;  %v11097_v41 = vpop.f32.mrf.mxu2 }
 0x678   : > { %5127 = vmatmul.f32.gmra.mxu2 %v4529_v16  ;;  %5288 = vmatmul.f32.gmra.mxu3 %v4466_v36  ;;  %v11059_v1 = vpop.permute.xlu2 %4909  ;;  %v11066_v19 = vpop.permute.xlu1 %4809 }
 0x679   : > { %5715 = vmatmul.f32.gmra.mxu1 %v4480_v55  ;;  %12216 = vst [vmem:[#allocation4_spill] sm:$0xff] %v11059_v1  ;;  %v4541_v55 = vld [vmem:[%s11742_s10 + $0x7a0] sm:$0xff] }
 0x67a   : > { %v11057_v59 = vpop.f32.mrf.mxu0 }
 0x67b   : > { %v11047_v31 = vpop.f32.mrf.mxu3 }
 0x67c   : > { %v11061_v57 = vpop.f32.mrf.mxu1 }
 0x67f   : > { %5509 = vmatmul.f32.gmra.mxu0 %v4483_v52  ;;  %v11127_v1 = vpop.f32.mrf.mxu2 }
 0x680   : > { %5130 = vmatmul.f32.gmra.mxu2 %v4533_v46  ;;  %5291 = vmatmul.f32.gmra.mxu3 %v4470_v53  ;;  %v11090_v15 = vpop.permute.xlu2 %4814  ;;  %v11095_v16 = vpop.permute.xlu1 %4889  ;;  %v4478_v46 = vld [vmem:[%s11742_s10 + $0x5a8] sm:$0xff] }
 0x681   : > { %5718 = vmatmul.f32.gmra.mxu1 %v4484_v51  ;;  %12218 = vst [vmem:[#allocation43_spill] sm:$0xff] %v11095_v16  ;;  %v4491_v51 = vld [vmem:[%s11742_s10 + $0x610] sm:$0xff] }
 0x682   : > { %v11081_v12 = vpop.f32.mrf.mxu0 }
 0x683   : > { %v11073_v50 = vpop.f32.mrf.mxu3 }
 0x684   : > { %v11085_v13 = vpop.f32.mrf.mxu1 }
 0x687   : > { %5512 = vmatmul.f32.gmra.mxu0 %v4487_v11 }
 0x688   : > { %5133 = vmatmul.f32.gmra.mxu2 %v4537_v0  ;;  %5294 = vmatmul.f32.gmra.mxu3 %v4474_v58  ;;  %v11112_v0 = vpop.permute.xlu0 %4819  ;;  %v4492_v58 = vld [vmem:[%s11742_s10 + $0x618] sm:$0xff]  ;;  %v11117_v11 = vpop.permute.xlu2 %4894 }
 0x689   : > { %5721 = vmatmul.f32.gmra.mxu1 %v4488_v20  ;;  %12219 = vst [vmem:[#allocation37_spill] sm:$0xff] %v11112_v0  ;;  %v11119_v23 = vpop.permute.xlu1 %4794 }
 0x68a   : > { %v11105_v53 = vpop.f32.mrf.mxu0  ;;  %12220 = vst [vmem:[#allocation139_spill] sm:$0xff] %v11117_v11  ;;  %v12222_v11 = vld [vmem:[#allocation24_spill] sm:$0xff] }
 0x68b   : > { %v5247_v36 = vpop.f32.mrf.mxu3 }
 0x68c   : > { %v11107_v52 = vpop.f32.mrf.mxu1 }
 0x68f   : > { %5515 = vmatmul.f32.gmra.mxu0 %v4491_v51 }
 0x690   : > { %5136 = vmatmul.f32.gmra.mxu2 %v4541_v55  ;;  %5297 = vmatmul.f32.gmra.mxu3 %v4478_v46  ;;  %v4545_v55 = vld [vmem:[%s11742_s10 + $0x7c0] sm:$0xff]  ;;  %v4482_v46 = vld [vmem:[%s11742_s10 + $0x5c8] sm:$0xff]  ;;  %v11139_v61 = vpop.permute.xlu0 %4899  ;;  %v11141_v28 = vpop.permute.xlu2 %4799 }
 0x691   : > { %5724 = vmatmul.f32.gmra.mxu1 %v4492_v58  ;;  %v4495_v58 = vld [vmem:[%s11742_s10 + $0x630] sm:$0xff]  ;;  %12221 = vst [vmem:[#allocation34_spill] sm:$0xff] %v11139_v61  ;;  %v11153_v21 = vpop.permute.xlu1 %4874  ;;  %v11155_v61 = vpop.f32.mrf.mxu2 }
 0x692   : > { %v11129_v51 = vpop.f32.mrf.mxu0  ;;  %12223 = vst [vmem:[#allocation30_spill] sm:$0xff] %v11153_v21  ;;  %v4500_v21 = vld [vmem:[%s11742_s10 + $0x658] sm:$0xff] }
 0x693   : > { %v5250_v20 = vpop.f32.mrf.mxu3  ;;  %12224 = vst [vmem:[#allocation27_spill] sm:$0xff] %v11155_v61 }
 0x694   : > { %v11131_v60 = vpop.f32.mrf.mxu1 }
 0x697   : > { %5518 = vmatmul.f32.gmra.mxu0 %v4495_v58  ;;  %v5045_v58 = vadd.f32 %v10869_v25, %v12222_v11  ;;  %v12226_v25 = vld [vmem:[#allocation51_spill] sm:$0xff] }
 0x698   : > { %5139 = vmatmul.f32.gmra.mxu2 %v4545_v55  ;;  %5300 = vmatmul.f32.gmra.mxu3 %v4482_v46  ;;  %v4549_v55 = vld [vmem:[%s11742_s10 + $0x7e0] sm:$0xff]  ;;  %v4486_v46 = vld [vmem:[%s11742_s10 + $0x5e8] sm:$0xff]  ;;  %v5048_v11 = vadd.f32 %v10900_v6, %v12226_v25  ;;  %v11172_v0 = vpop.permute.xlu0 %4804 }
 0x699   : > { %5727 = vmatmul.f32.gmra.mxu1 %v4496_v9  ;;  %v4490_v6 = vld [vmem:[%s11742_s10 + $0x608] sm:$0xff] }
 0x69a   : > { %v11151_v16 = vpop.f32.mrf.mxu0 }
 0x69b   : > { %v5253_v47 = vpop.f32.mrf.mxu3 }
 0x69c   : > { %v5254_v9 = vadd.f32 %v5253_v47, %v5045_v58  ;;  %v11157_v18 = vpop.f32.mrf.mxu1  ;;  %v12227_v47 = vld [vmem:[#allocation107_spill] sm:$0xff] }
 0x69e   : > { %v5463_v62 = vadd.f32 %v11057_v59, %v5254_v9 }
 0x69f   : > { %5521 = vmatmul.f32.gmra.mxu0 %v4499_v30 }
 0x6a0   : > { %5142 = vmatmul.f32.gmra.mxu2 %v4549_v55  ;;  %5303 = vmatmul.f32.gmra.mxu3 %v4486_v46  ;;  %v5039_v55 = vadd.f32 %v10804_v22, %v12227_v47  ;;  %v5251_v46 = vadd.f32 %v5250_v20, %v5042_v48  ;;  %v11182_v22 = vpop.permute.xlu2 %4879  ;;  %v12229_v48 = vld [vmem:[#allocation104_spill] sm:$0xff]  ;;  %v5245_v20 = vadd.f32 %v11073_v50, %v5036_v56  ;;  %v12231_v47 = vld [vmem:[#allocation106_spill] sm:$0xff] }
 0x6a1   : > { %5730 = vmatmul.f32.gmra.mxu1 %v4500_v21  ;;  %v12230_v21 = vld [vmem:[#allocation141_spill] sm:$0xff]  ;;  %v5672_v54 = vadd.f32 %v11061_v57, %v5463_v62 }
 0x6a2   : > { %v5248_v30 = vadd.f32 %v5247_v36, %v5039_v55  ;;  %v5033_v59 = vadd.f32 %v12230_v21, %v12229_v48  ;;  %v5460_v9 = vadd.f32 %v11033_v4, %v5251_v46  ;;  %v12232_v55 = vld [vmem:[#allocation136_spill] sm:$0xff]  ;;  %v4504_v57 = vld [vmem:[%s11742_s10 + $0x678] sm:$0xff]  ;;  %v5454_v46 = vadd.f32 %v10978_v49, %v5245_v20  ;;  %v11214_v49 = vpop.permute.xlu0 %4884 }
 0x6a3   : > { %v5256_v58 = vpop.f32.mrf.mxu3 }
 0x6a4   : > { %v5257_v63 = vadd.f32 %v5256_v58, %v5048_v11  ;;  %v11180_v61 = vpop.f32.mrf.mxu0  ;;  %v11190_v11 = vpop.f32.mrf.mxu1  ;;  %v5030_v58 = vadd.f32 %v12232_v55, %v12231_v47  ;;  %v5242_v29 = vadd.f32 %v11047_v31, %v5033_v59  ;;  %v5457_v50 = vadd.f32 %v11008_v35, %v5248_v30  ;;  %v4494_v30 = vld [vmem:[%s11742_s10 + $0x628] sm:$0xff] }
 0x6a5   : > { %v5669_v56 = vadd.f32 %v11039_v7, %v5460_v9  ;;  %v5663_v21 = vadd.f32 %v10983_v39, %v5454_v46  ;;  %v4508_v39 = vld [vmem:[%s11742_s10 + $0x698] sm:$0xff] }
 0x6a6   : > { %v5466_v25 = vadd.f32 %v11081_v12, %v5257_v63  ;;  %v4503_v63 = vld [vmem:[%s11742_s10 + $0x670] sm:$0xff]  ;;  %v4780_v12 = vpop.permute.xlu1 %4779  ;;  %v5451_v35 = vadd.f32 %v10950_v37, %v5242_v29 }
 0x6a7   : > { %5524 = vmatmul.f32.gmra.mxu0 %v4503_v63  ;;  %v5051_v62 = vadd.f32 %v10938_v27, %v4780_v12  ;;  %v5666_v27 = vadd.f32 %v11013_v26, %v5457_v50  ;;  %v5802_v59 = vmax.f32 %v5669_v56, 0.0  ;;  %v4511_v50 = vld [vmem:[%s11742_s10 + $0x6b0] sm:$0xff] }
 0x6a8   : > { %v5675_v36 = vadd.f32 %v11085_v13, %v5466_v25  ;;  %5306 = vmatmul.f32.gmra.mxu3 %v4490_v6  ;;  %v5239_v13 = vadd.f32 %v11023_v40, %v5030_v58  ;;  %v5803_v25 = vmax.f32 %v5672_v54, 0.0  ;;  %v4785_v20 = vpop.permute.xlu2 %4784  ;;  %v5660_v9 = vadd.f32 %v10955_v14, %v5451_v35  ;;  %v4498_v14 = vld [vmem:[%s11742_s10 + $0x648] sm:$0xff] }
 0x6a9   : > { %5733 = vmatmul.f32.gmra.mxu1 %v4504_v57  ;;  %v5801_v54 = vmax.f32 %v5666_v27, 0.0  ;;  %v5797_v57 = vmax.f32 %v11011_v32, 0.0  ;;  %v4502_v32 = vld [vmem:[%s11742_s10 + $0x668] sm:$0xff]  ;;  %v5793_v27 = vmax.f32 %v10903_v24, 0.0 }
 0x6aa   : > { %v5804_v4 = vmax.f32 %v5675_v36, 0.0  ;;  %v5448_v7 = vadd.f32 %v10922_v17, %v5239_v13  ;;  %v5054_v17 = vadd.f32 %v10969_v10, %v4785_v20  ;;  %v5800_v36 = vmax.f32 %v5663_v21, 0.0  ;;  %v4506_v24 = vld [vmem:[%s11742_s10 + $0x688] sm:$0xff] }
 0x6ab   : > { %v5259_v6 = vpop.f32.mrf.mxu3  ;;  %v5799_v47 = vmax.f32 %v5660_v9, 0.0  ;;  %v5796_v13 = vmax.f32 %v10981_v33, 0.0  ;;  %v5791_v21 = vmax.f32 %v10848_v43, 0.0  ;;  %v4519_v43 = vld [vmem:[%s11742_s10 + $0x6f0] sm:$0xff]  ;;  %v5789_v20 = vmax.f32 %v10795_v2, 0.0 }
 0x6ac   : > { %v5260_v31 = vadd.f32 %v5259_v6, %v5051_v62  ;;  %5910 = vmatpush.msra.mxu3 %v5804_v4  ;;  %v11212_v40 = vpop.f32.mrf.mxu0  ;;  %v4790_v62 = vpop.permute.xlu0 %4789  ;;  %v5795_v6 = vmax.f32 %v10953_v38, 0.0  ;;  %v4515_v38 = vld [vmem:[%s11742_s10 + $0x6d0] sm:$0xff] }
 0x6ad   : > { %v11246_v4 = vpop.f32.mrf.mxu2 }
 0x6ae   : > { %v5469_v48 = vadd.f32 %v11105_v53, %v5260_v31  ;;  %5911 = vmatpush.msra.mxu3 %v5803_v25  ;;  %v11221_v26 = vpop.f32.mrf.mxu1  ;;  %v4507_v53 = vld [vmem:[%s11742_s10 + $0x690] sm:$0xff]  ;;  %v5794_v31 = vmax.f32 %v10927_v3, 0.0  ;;  %v4516_v3 = vld [vmem:[%s11742_s10 + $0x6d8] sm:$0xff] }
 0x6af   : > { %5527 = vmatmul.f32.gmra.mxu0 %v4507_v53 }
 0x6b0   : > { %v11219_v37 = vadd.f32 %v11107_v52, %v5469_v48  ;;  %5309 = vmatmul.f32.gmra.mxu3 %v4494_v30  ;;  %v5657_v52 = vadd.f32 %v10929_v5, %v5448_v7 }
 0x6b1   : > { %5912 = vmatpush.msra.mxu3 %v5802_v59  ;;  %5736 = vmatmul.f32.gmra.mxu1 %v4508_v39  ;;  %v5790_v59 = vmax.f32 %v10820_v45, 0.0  ;;  %v4520_v45 = vld [vmem:[%s11742_s10 + $0x6f8] sm:$0xff] }
 0x6b2   : > { %v5798_v58 = vmax.f32 %v5657_v52, 0.0 }
 0x6b3   : > { %5913 = vmatpush.msra.mxu3 %v5801_v54  ;;  %v5262_v63 = vpop.f32.mrf.mxu3 }
 0x6b4   : > { %v5263_v12 = vadd.f32 %v5262_v63, %v5054_v17  ;;  %v11236_v10 = vpop.f32.mrf.mxu0  ;;  %v4510_v17 = vld [vmem:[%s11742_s10 + $0x6a8] sm:$0xff]  ;;  %v4524_v63 = vld [vmem:[%s11742_s10 + $0x718] sm:$0xff] }
 0x6b5   : > { %5914 = vmatpush.msra.mxu3 %v5800_v36  ;;  %v11277_v30 = vpop.f32.mrf.mxu2  ;;  %v5066_v36 = vadd.f32 %v11097_v41, %v11172_v0  ;;  %v4527_v0 = vld [vmem:[%s11742_s10 + $0x730] sm:$0xff] }
 0x6b6   : > { %v5472_v55 = vadd.f32 %v11129_v51, %v5263_v12  ;;  %v11241_v5 = vpop.f32.mrf.mxu1  ;;  %v5057_v51 = vadd.f32 %v11005_v42, %v4790_v62 }
 0x6b7   : > { %5915 = vmatpush.msra.mxu3 %v5799_v47  ;;  %5530 = vmatmul.f32.gmra.mxu0 %v4511_v50  ;;  %v5069_v50 = vadd.f32 %v11127_v1, %v11066_v19  ;;  %v4531_v19 = vld [vmem:[%s11742_s10 + $0x750] sm:$0xff] }
 0x6b8   : > { %v11239_v29 = vadd.f32 %v11131_v60, %v5472_v55  ;;  %5312 = vmatmul.f32.gmra.mxu3 %v4498_v14  ;;  %v4512_v60 = vld [vmem:[%s11742_s10 + $0x6b8] sm:$0xff] }
 0x6b9   : > { %5916 = vmatpush.msra.mxu3 %v5798_v58  ;;  %5739 = vmatmul.f32.gmra.mxu1 %v4512_v60 }
 0x6bb   : > { %5917 = vmatpush.msra.mxu3 %v5797_v57  ;;  %v5265_v46 = vpop.f32.mrf.mxu3 }
 0x6bc   : > { %v5266_v56 = vadd.f32 %v5265_v46, %v5057_v51  ;;  %v11259_v42 = vpop.f32.mrf.mxu0 }
 0x6bd   : > { %5918 = vmatpush.msra.mxu3 %v5796_v13  ;;  %v11297_v54 = vpop.f32.mrf.mxu2 }
 0x6be   : > { %v5475_v25 = vadd.f32 %v11151_v16, %v5266_v56  ;;  %v11265_v35 = vpop.f32.mrf.mxu1  ;;  %v5060_v16 = vadd.f32 %v11037_v8, %v11119_v23  ;;  %v12233_v56 = vld [vmem:[#allocation27_spill] sm:$0xff] }
 0x6bf   : > { %5919 = vmatpush.msra.mxu3 %v5795_v6  ;;  %5533 = vmatmul.f32.gmra.mxu0 %v4515_v38  ;;  %v5072_v6 = vadd.f32 %v12233_v56, %v11090_v15  ;;  %v4535_v15 = vld [vmem:[%s11742_s10 + $0x770] sm:$0xff] }
 0x6c0   : > { %v11263_v33 = vadd.f32 %v11157_v18, %v5475_v25  ;;  %5315 = vmatmul.f32.gmra.mxu3 %v4502_v32  ;;  %v5792_v18 = vmax.f32 %v10876_v34, 0.0  ;;  %v4532_v32 = vld [vmem:[%s11742_s10 + $0x758] sm:$0xff] }
 0x6c1   : > { %5920 = vmatpush.msra.mxu3 %v5794_v31  ;;  %5742 = vmatmul.f32.gmra.mxu1 %v4516_v3  ;;  %v4522_v31 = vld [vmem:[%s11742_s10 + $0x708] sm:$0xff]  ;;  %v12234_v3 = vld [vmem:[#allocation37_spill] sm:$0xff] }
 0x6c3   : > { %5921 = vmatpush.msra.mxu3 %v5793_v27  ;;  %v5268_v48 = vpop.f32.mrf.mxu3 }
 0x6c4   : > { %v5269_v7 = vadd.f32 %v5268_v48, %v5060_v16  ;;  %v5489_v8 = vpop.f32.mrf.mxu0  ;;  %v4536_v48 = vld [vmem:[%s11742_s10 + $0x778] sm:$0xff] }
 0x6c5   : > { %5922 = vmatpush.msra.mxu3 %v5792_v18  ;;  %v11320_v55 = vpop.f32.mrf.mxu2  ;;  %v5075_v18 = vadd.f32 %v11246_v4, %v12234_v3  ;;  %v4539_v4 = vld [vmem:[%s11742_s10 + $0x790] sm:$0xff] }
 0x6c6   : > { %v5478_v23 = vadd.f32 %v11180_v61, %v5269_v7  ;;  %v5698_v53 = vpop.f32.mrf.mxu1  ;;  %v5063_v61 = vadd.f32 %v11068_v44, %v11141_v28  ;;  %v4523_v44 = vld [vmem:[%s11742_s10 + $0x710] sm:$0xff] }
 0x6c7   : > { %5923 = vmatpush.msra.mxu3 %v5791_v21  ;;  %5536 = vmatmul.f32.gmra.mxu0 %v4519_v43 }
 0x6c8   : > { %v11286_v34 = vadd.f32 %v11190_v11, %v5478_v23  ;;  %5318 = vmatmul.f32.gmra.mxu3 %v4506_v24  ;;  %v4526_v23 = vld [vmem:[%s11742_s10 + $0x728] sm:$0xff] }
 0x6c9   : > { %5924 = vmatpush.msra.mxu3 %v5790_v59  ;;  %5745 = vmatmul.f32.gmra.mxu1 %v4520_v45 }
 0x6cb   : > { %5925 = vmatpush.msra.mxu3 %v5789_v20  ;;  %v5271_v11 = vpop.f32.mrf.mxu3  ;;  %v4540_v20 = vld [vmem:[%s11742_s10 + $0x798] sm:$0xff] }
 0x6cc   : > { %v5272_v9 = vadd.f32 %v5271_v11, %v5063_v61  ;;  %v5492_v39 = vpop.f32.mrf.mxu0  ;;  %v4530_v11 = vld [vmem:[%s11742_s10 + $0x748] sm:$0xff] }
 0x6cd   : > { %v11349_v46 = vpop.f32.mrf.mxu2 }
 0x6ce   : > { %v5481_v2 = vadd.f32 %v11212_v40, %v5272_v9  ;;  %v5701_v28 = vpop.f32.mrf.mxu1 }
 0x6cf   : > { %5539 = vmatmul.f32.gmra.mxu0 %v4523_v44  ;;  %v4534_v44 = vld [vmem:[%s11742_s10 + $0x768] sm:$0xff] }
 0x6d0   : > { %v11304_v52 = vadd.f32 %v11221_v26, %v5481_v2  ;;  %5321 = vmatmul.f32.gmra.mxu3 %v4510_v17  ;;  %v4514_v26 = vld [vmem:[%s11742_s10 + $0x6c8] sm:$0xff]  ;;  %v4543_v2 = vld [vmem:[%s11742_s10 + $0x7b0] sm:$0xff] }
 0x6d1   : > { %5748 = vmatmul.f32.gmra.mxu1 %v4524_v63 }
 0x6d3   : > { %v5274_v12 = vpop.f32.mrf.mxu3 }
 0x6d4   : > { %v5275_v40 = vadd.f32 %v5274_v12, %v5066_v36  ;;  %v11318_v14 = vpop.f32.mrf.mxu0 }
 0x6d5   : > { %v5089_v7 = vpop.f32.mrf.mxu2 }
 0x6d6   : > { %v5484_v47 = vadd.f32 %v11236_v10, %v5275_v40  ;;  %v11325_v41 = vpop.f32.mrf.mxu1  ;;  %v4528_v10 = vld [vmem:[%s11742_s10 + $0x738] sm:$0xff]  ;;  %v4547_v40 = vld [vmem:[%s11742_s10 + $0x7d0] sm:$0xff] }
 0x6d7   : > { %5542 = vmatmul.f32.gmra.mxu0 %v4527_v0  ;;  %v4538_v0 = vld [vmem:[%s11742_s10 + $0x788] sm:$0xff] }
 0x6d8   : > { %v11323_v58 = vadd.f32 %v11241_v5, %v5484_v47  ;;  %5324 = vmatmul.f32.gmra.mxu3 %v4514_v26  ;;  %v4518_v5 = vld [vmem:[%s11742_s10 + $0x6e8] sm:$0xff]  ;;  %v4548_v26 = vld [vmem:[%s11742_s10 + $0x7d8] sm:$0xff] }
 0x6d9   : > { %5751 = vmatmul.f32.gmra.mxu1 %v4528_v10 }
 0x6db   : > { %v5277_v62 = vpop.f32.mrf.mxu3 }
 0x6dc   : > { %v5278_v57 = vadd.f32 %v5277_v62, %v5069_v50  ;;  %v11339_v60 = vpop.f32.mrf.mxu0  ;;  %v4551_v62 = vld [vmem:[%s11742_s10 + $0x7f0] sm:$0xff] }
 0x6dd   : > { %v5092_v45 = vpop.f32.mrf.mxu2 }
 0x6de   : > { %v5487_v51 = vadd.f32 %v11259_v42, %v5278_v57  ;;  %v11344_v1 = vpop.f32.mrf.mxu1 }
 0x6df   : > { %5545 = vmatmul.f32.gmra.mxu0 %v4531_v19  ;;  %v4542_v19 = vld [vmem:[%s11742_s10 + $0x7a8] sm:$0xff] }
 0x6e0   : > { %v11342_v13 = vadd.f32 %v11265_v35, %v5487_v51  ;;  %5327 = vmatmul.f32.gmra.mxu3 %v4518_v5  ;;  %v4552_v5 = vld [vmem:[%s11742_s10 + $0x7f8] sm:$0xff] }
 0x6e1   : > { %5754 = vmatmul.f32.gmra.mxu1 %v4532_v32 }
 0x6e3   : > { %v5280_v25 = vpop.f32.mrf.mxu3 }
 0x6e4   : > { %v5281_v42 = vadd.f32 %v5280_v25, %v5072_v6  ;;  %v11359_v38 = vpop.f32.mrf.mxu0 }
 0x6e5   : > { %v5095_v63 = vpop.f32.mrf.mxu2 }
 0x6e6   : > { %v5490_v35 = vadd.f32 %v5489_v8, %v5281_v42  ;;  %v11363_v16 = vpop.f32.mrf.mxu1  ;;  %v4546_v42 = vld [vmem:[%s11742_s10 + $0x7c8] sm:$0xff] }
 0x6e7   : > { %5548 = vmatmul.f32.gmra.mxu0 %v4535_v15 }
 0x6e8   : > { %v11361_v27 = vadd.f32 %v5698_v53, %v5490_v35  ;;  %5330 = vmatmul.f32.gmra.mxu3 %v4522_v31 }
 0x6e9   : > { %5757 = vmatmul.f32.gmra.mxu1 %v4536_v48  ;;  %v11434_v48 = vpop.permute.xlu0 %4869 }
 0x6eb   : > { %v5283_v21 = vpop.f32.mrf.mxu3 }
 0x6ec   : > { %v5284_v24 = vadd.f32 %v5283_v21, %v5075_v18  ;;  %v11376_v59 = vpop.f32.mrf.mxu0  ;;  %v4550_v18 = vld [vmem:[%s11742_s10 + $0x7e8] sm:$0xff]  ;;  %v12235_v21 = vld [vmem:[#allocation93_spill] sm:$0xff] }
 0x6ed   : > { %v5098_v57 = vpop.f32.mrf.mxu2 }
 0x6ee   : > { %v5493_v8 = vadd.f32 %v5492_v39, %v5284_v24  ;;  %v11380_v43 = vpop.f32.mrf.mxu1  ;;  %v4544_v39 = vld [vmem:[%s11742_s10 + $0x7b8] sm:$0xff]  ;;  %v5093_v24 = vadd.f32 %v5092_v45, %v12235_v21 }
 0x6ef   : > { %5551 = vmatmul.f32.gmra.mxu0 %v4539_v4 }
 0x6f0   : > { %v11378_v53 = vadd.f32 %v5701_v28, %v5493_v8  ;;  %5333 = vmatmul.f32.gmra.mxu3 %v4526_v23  ;;  %v12236_v23 = vld [vmem:[#allocation87_spill] sm:$0xff] }
 0x6f1   : > { %5760 = vmatmul.f32.gmra.mxu1 %v4540_v20  ;;  %v5090_v8 = vadd.f32 %v5089_v7, %v12236_v23  ;;  %v12240_v7 = vld [vmem:[#allocation88_spill] sm:$0xff]  ;;  %v12241_v23 = vld [vmem:[#allocation95_spill] sm:$0xff] }
 0x6f3   : > { %v11388_v61 = vpop.f32.mrf.mxu3 }
 0x6f4   : > { %v5507_v9 = vpop.f32.mrf.mxu0 }
 0x6f5   : > { %v5101_v32 = vpop.f32.mrf.mxu2 }
 0x6f6   : > { %v11393_v17 = vpop.f32.mrf.mxu1 }
 0x6f7   : > { %5554 = vmatmul.f32.gmra.mxu0 %v4543_v2 }
 0x6f8   : > { %5336 = vmatmul.f32.gmra.mxu3 %v4530_v11  ;;  %v12237_v11 = vld [vmem:[#allocation18_spill] sm:$0xff] }
 0x6f9   : > { %5763 = vmatmul.f32.gmra.mxu1 %v4544_v39  ;;  %v5087_v2 = vadd.f32 %v11349_v46, %v12237_v11  ;;  %v12238_v39 = vld [vmem:[#allocation119_spill] sm:$0xff]  ;;  %v5078_v46 = vadd.f32 %v11277_v30, %v12241_v23  ;;  %v5811_v23 = vmax.f32 %v11342_v13, 0.0  ;;  %v5808_v13 = vmax.f32 %v11286_v34, 0.0 }
 0x6fa   : > { %v5837_v30 = vld [vmem:[%s11744_s12] sm:$0xff] }
 0x6fb   : > { %v5289_v28 = vpop.f32.mrf.mxu3  ;;  %5885 = vmatmul.f32.vlgmr.msra.gmra.mxu2 %v5837_v30 }
 0x6fc   : > { %v5510_v36 = vpop.f32.mrf.mxu0 }
 0x6fd   : > { %v11429_v3 = vpop.f32.mrf.mxu2 }
 0x6fe   : > { %v5719_v12 = vpop.f32.mrf.mxu1 }
 0x6ff   : > { %5557 = vmatmul.f32.gmra.mxu0 %v4547_v40 }
 0x700   : > { %5339 = vmatmul.f32.gmra.mxu3 %v4534_v44  ;;  %v5096_v44 = vadd.f32 %v5095_v63, %v12238_v39 }
 0x701   : > { %5766 = vmatmul.f32.gmra.mxu1 %v4548_v26 }
 0x703   : > { %v5292_v47 = vpop.f32.mrf.mxu3 }
 0x704   : > { %v5513_v50 = vpop.f32.mrf.mxu0 }
 0x705   : > { %v11451_v63 = vpop.f32.mrf.mxu2 }
 0x706   : > { %v5722_v10 = vpop.f32.mrf.mxu1 }
 0x707   : > { %5560 = vmatmul.f32.gmra.mxu0 %v4551_v62  ;;  %v12239_v62 = vld [vmem:[#allocation63_spill] sm:$0xff] }
 0x708   : > { %5342 = vmatmul.f32.gmra.mxu3 %v4538_v0 }
 0x709   : > { %5769 = vmatmul.f32.gmra.mxu1 %v4552_v5  ;;  %v5084_v5 = vadd.f32 %v11320_v55, %v12239_v62 }
 0x70b   : > { %v5295_v51 = vpop.f32.mrf.mxu3 }
 0x70c   : > { %v5516_v56 = vpop.f32.mrf.mxu0 }
 0x70e   : > { %v5725_v6 = vpop.f32.mrf.mxu1 }
 0x710   : > { %5345 = vmatmul.f32.gmra.mxu3 %v4542_v19  ;;  %v5296_v19 = vadd.f32 %v5295_v51, %v5087_v2 }
 0x712   : > { %v5505_v11 = vadd.f32 %v11376_v59, %v5296_v19 }
 0x713   : > { %v5298_v25 = vpop.f32.mrf.mxu3 }
 0x714   : > { %v11425_v31 = vpop.f32.mrf.mxu0  ;;  %v5299_v40 = vadd.f32 %v5298_v25, %v5090_v8  ;;  %v4860_v25 = vpop.permute.xlu0 %4859  ;;  %v5714_v59 = vadd.f32 %v11380_v43, %v5505_v11 }
 0x715   : > { %v5099_v51 = vadd.f32 %v5098_v57, %v4860_v25  ;;  %v5110_v43 = vpop.f32.mrf.mxu2 }
 0x716   : > { %v11427_v35 = vpop.f32.mrf.mxu1  ;;  %v5508_v21 = vadd.f32 %v5507_v9, %v5299_v40  ;;  %v5817_v40 = vmax.f32 %v5714_v59, 0.0 }
 0x718   : > { %5348 = vmatmul.f32.gmra.mxu3 %v4546_v42 }
 0x71b   : > { %v5301_v15 = vpop.f32.mrf.mxu3 }
 0x71c   : > { %v5302_v4 = vadd.f32 %v5301_v15, %v5093_v24  ;;  %v11438_v20 = vpop.f32.mrf.mxu0  ;;  %v5081_v15 = vadd.f32 %v11297_v54, %v12240_v7  ;;  %v5717_v54 = vadd.f32 %v11393_v17, %v5508_v21 }
 0x71d   : > { %v5113_v21 = vpop.f32.mrf.mxu2 }
 0x71e   : > { %v11443_v0 = vpop.f32.mrf.mxu1  ;;  %v5511_v45 = vadd.f32 %v5510_v36, %v5302_v4  ;;  %v5290_v8 = vadd.f32 %v5289_v28, %v5081_v15  ;;  %v5287_v36 = vadd.f32 %v11388_v61, %v5078_v46  ;;  %v5818_v57 = vmax.f32 %v5717_v54, 0.0 }
 0x71f   : > { %v5105_v15 = vadd.f32 %v11429_v3, %v11434_v48 }
 0x720   : > { %5351 = vmatmul.f32.gmra.mxu3 %v4550_v18  ;;  %v5293_v18 = vadd.f32 %v5292_v47, %v5084_v5  ;;  %v5720_v39 = vadd.f32 %v5719_v12, %v5511_v45  ;;  %v5499_v28 = vadd.f32 %v11339_v60, %v5290_v8  ;;  %v4865_v60 = vpop.permute.xlu2 %4864  ;;  %v12242_v8 = vld [vmem:[#allocation30_spill] sm:$0xff] }
 0x721   : > { %v5102_v62 = vadd.f32 %v5101_v32, %v4865_v60  ;;  %v5813_v32 = vmax.f32 %v11378_v53, 0.0  ;;  %v5810_v53 = vmax.f32 %v11323_v58, 0.0  ;;  %v5108_v11 = vadd.f32 %v11451_v63, %v12242_v8  ;;  %v5849_v58 = vld [vmem:[%s11744_s12 + $0x60] sm:$0xff] }
 0x722   : > { %v5502_v4 = vadd.f32 %v11359_v38, %v5293_v18  ;;  %v5819_v12 = vmax.f32 %v5720_v39, 0.0  ;;  %v5496_v38 = vadd.f32 %v11318_v14, %v5287_v36  ;;  %v5841_v14 = vld [vmem:[%s11744_s12 + $0x20] sm:$0xff]  ;;  %v5812_v18 = vmax.f32 %v11361_v27, 0.0 }
 0x723   : > { %v5304_v26 = vpop.f32.mrf.mxu3  ;;  %5888 = vmatmul.f32.gmra.mxu2 %v5841_v14  ;;  %v5809_v27 = vmax.f32 %v11304_v52, 0.0  ;;  %v5805_v63 = vmax.f32 %v11219_v37, 0.0  ;;  %v5114_v37 = vadd.f32 %v5113_v21, %v11214_v49  ;;  %v5861_v49 = vld [vmem:[%s11744_s12 + $0xc0] sm:$0xff] }
 0x724   : > { %v5305_v42 = vadd.f32 %v5304_v26, %v5096_v44  ;;  %v5711_v17 = vadd.f32 %v11363_v16, %v5502_v4  ;;  %v5708_v44 = vadd.f32 %v11344_v1, %v5499_v28  ;;  %v5705_v5 = vadd.f32 %v11325_v41, %v5496_v38 }
 0x725   : > { %v5116_v52 = vpop.f32.mrf.mxu2  ;;  %v5111_v4 = vadd.f32 %v5110_v43, %v11182_v22  ;;  %v5857_v22 = vld [vmem:[%s11744_s12 + $0xa0] sm:$0xff] }
 0x726   : > { %v5514_v24 = vadd.f32 %v5513_v50, %v5305_v42  ;;  %v11457_v50 = vpop.f32.mrf.mxu0  ;;  %v11464_v61 = vpop.f32.mrf.mxu1  ;;  %v5816_v19 = vmax.f32 %v5711_v17, 0.0  ;;  %v5815_v16 = vmax.f32 %v5708_v44, 0.0 }
 0x728   : > { %v5723_v55 = vadd.f32 %v5722_v10, %v5514_v24 }
 0x72a   : > { %v5820_v9 = vmax.f32 %v5723_v55, 0.0 }
 0x72b   : > { %v5307_v47 = vpop.f32.mrf.mxu3 }
 0x72c   : > { %v5308_v10 = vadd.f32 %v5307_v47, %v5099_v51  ;;  %5951 = vmatpush.msrb.mxu2 %v5820_v9  ;;  %v5853_v9 = vld [vmem:[%s11744_s12 + $0x80] sm:$0xff] }
 0x72e   : > { %v5517_v2 = vadd.f32 %v5516_v56, %v5308_v10  ;;  %5952 = vmatpush.msrb.mxu2 %v5819_v12  ;;  %v5528_v1 = vpop.f32.mrf.mxu0  ;;  %v5737_v7 = vpop.f32.mrf.mxu1 }
 0x730   : > { %v11469_v26 = vadd.f32 %v5725_v6, %v5517_v2  ;;  %5953 = vmatpush.msrb.mxu2 %v5818_v57  ;;  %v5814_v6 = vmax.f32 %v5705_v5, 0.0  ;;  %v12243_v57 = vld [vmem:[#allocation43_spill] sm:$0xff] }
 0x731   : > { %v5117_v2 = vadd.f32 %v5116_v52, %v12243_v57 }
 0x732   : > { %5954 = vmatpush.msrb.mxu2 %v5817_v40 }
 0x733   : > { %v5310_v45 = vpop.f32.mrf.mxu3 }
 0x734   : > { %v5311_v56 = vadd.f32 %v5310_v45, %v5102_v62  ;;  %5955 = vmatpush.msrb.mxu2 %v5816_v19  ;;  %v12244_v19 = vld [vmem:[#allocation139_spill] sm:$0xff] }
 0x736   : > { %v5520_v42 = vadd.f32 %v11425_v31, %v5311_v56  ;;  %5956 = vmatpush.msrb.mxu2 %v5815_v16  ;;  %v5845_v31 = vld [vmem:[%s11744_s12 + $0x40] sm:$0xff]  ;;  %v5531_v3 = vpop.f32.mrf.mxu0  ;;  %v5740_v25 = vpop.f32.mrf.mxu1 }
 0x737   : > { %5891 = vmatmul.f32.gmra.mxu2 %v5845_v31  ;;  %v5865_v56 = vld [vmem:[%s11744_s12 + $0xe0] sm:$0xff]  ;;  %v5839_v31 = vld [vmem:[%s11744_s12 + $0x10] sm:$0xff] }
 0x738   : > { %v11478_v41 = vadd.f32 %v11427_v35, %v5520_v42  ;;  %5957 = vmatpush.msrb.mxu2 %v5814_v6 }
 0x73a   : > { %5958 = vmatpush.msrb.mxu2 %v5813_v32 }
 0x73b   : > { %v5313_v24 = vpop.f32.mrf.mxu3 }
 0x73c   : > { %v5314_v46 = vadd.f32 %v5313_v24, %v5105_v15  ;;  %5959 = vmatpush.msrb.mxu2 %v5812_v18  ;;  %v5838_v15 = vld [vmem:[%s11744_s12 + $0x8] sm:$0xff]  ;;  %v12245_v18 = vld [vmem:[#allocation34_spill] sm:$0xff] }
 0x73d   : > { %5926 = vmatmul.f32.vlgmr.msra.gmra.mxu3 %v5838_v15 }
 0x73e   : > { %v5523_v35 = vadd.f32 %v11438_v20, %v5314_v46  ;;  %5960 = vmatpush.msrb.mxu2 %v5811_v23  ;;  %v5807_v20 = vmax.f32 %v11263_v33, 0.0  ;;  %v5534_v36 = vpop.f32.mrf.mxu0  ;;  %v5743_v54 = vpop.f32.mrf.mxu1 }
 0x73f   : > { %5894 = vmatmul.f32.gmra.mxu2 %v5849_v58 }
 0x740   : > { %v11491_v48 = vadd.f32 %v11443_v0, %v5523_v35  ;;  %5961 = vmatpush.msrb.mxu2 %v5810_v53  ;;  %v5806_v0 = vmax.f32 %v11239_v29, 0.0 }
 0x742   : > { %5962 = vmatpush.msrb.mxu2 %v5809_v27  ;;  %v5842_v27 = vld [vmem:[%s11744_s12 + $0x28] sm:$0xff] }
 0x743   : > { %v5316_v39 = vpop.f32.mrf.mxu3 }
 0x744   : > { %v5317_v55 = vadd.f32 %v5316_v39, %v5108_v11  ;;  %5963 = vmatpush.msrb.mxu2 %v5808_v13  ;;  %v5843_v11 = vld [vmem:[%s11744_s12 + $0x30] sm:$0xff]  ;;  %v5846_v39 = vld [vmem:[%s11744_s12 + $0x48] sm:$0xff] }
 0x745   : > { %5929 = vmatmul.f32.gmra.mxu3 %v5842_v27 }
 0x746   : > { %v5526_v51 = vadd.f32 %v11457_v50, %v5317_v55  ;;  %5964 = vmatpush.msrb.mxu2 %v5807_v20  ;;  %v5119_v50 = vpop.f32.mrf.mxu2  ;;  %v5537_v59 = vpop.f32.mrf.mxu0  ;;  %v5847_v55 = vld [vmem:[%s11744_s12 + $0x50] sm:$0xff] }
 0x747   : > { %5897 = vmatmul.f32.gmra.mxu2 %v5853_v9  ;;  %v5746_v10 = vpop.f32.mrf.mxu1  ;;  %v5120_v45 = vadd.f32 %v5119_v50, %v12244_v19  ;;  %v5866_v19 = vld [vmem:[%s11744_s12 + $0xe8] sm:$0xff] }
 0x748   : > { %v11504_v34 = vadd.f32 %v11464_v61, %v5526_v51  ;;  %5965 = vmatpush.msrb.mxu2 %v5806_v0  ;;  %v5850_v51 = vld [vmem:[%s11744_s12 + $0x68] sm:$0xff] }
 0x74a   : > { %5966 = vmatpush.msrb.mxu2 %v5805_v63 }
 0x74b   : > { %v5319_v33 = vpop.f32.mrf.mxu3 }
 0x74c   : > { %v5320_v29 = vadd.f32 %v5319_v33, %v5111_v4 }
 0x74d   : > { %5932 = vmatmul.f32.gmra.mxu3 %v5846_v39  ;;  %v12251_v39 = vld [vmem:[#allocation4_spill] sm:$0xff] }
 0x74e   : > { %v5529_v47 = vadd.f32 %v5528_v1, %v5320_v29  ;;  %v5122_v17 = vpop.f32.mrf.mxu2  ;;  %v5540_v60 = vpop.f32.mrf.mxu0 }
 0x74f   : > { %5900 = vmatmul.f32.gmra.mxu2 %v5857_v22  ;;  %v5749_v62 = vpop.f32.mrf.mxu1  ;;  %v5123_v21 = vadd.f32 %v5122_v17, %v12245_v18  ;;  %v5859_v22 = vld [vmem:[%s11744_s12 + $0xb0] sm:$0xff] }
 0x750   : > { %v11510_v30 = vadd.f32 %v5737_v7, %v5529_v47  ;;  %v5855_v47 = vld [vmem:[%s11744_s12 + $0x90] sm:$0xff] }
 0x753   : > { %v5322_v28 = vpop.f32.mrf.mxu3 }
 0x754   : > { %v5323_v12 = vadd.f32 %v5322_v28, %v5114_v37  ;;  %v5858_v28 = vld [vmem:[%s11744_s12 + $0xa8] sm:$0xff] }
 0x755   : > { %5935 = vmatmul.f32.gmra.mxu3 %v5850_v51 }
 0x756   : > { %v5532_v61 = vadd.f32 %v5531_v3, %v5323_v12  ;;  %v11525_v14 = vpop.f32.mrf.mxu2  ;;  %v11530_v42 = vpop.f32.mrf.mxu0 }
 0x757   : > { %5903 = vmatmul.f32.gmra.mxu2 %v5861_v49  ;;  %v11534_v32 = vpop.f32.mrf.mxu1 }
 0x758   : > { %v11516_v38 = vadd.f32 %v5740_v25, %v5532_v61  ;;  %v5862_v61 = vld [vmem:[%s11744_s12 + $0xc8] sm:$0xff] }
 0x75b   : > { %v5325_v44 = vpop.f32.mrf.mxu3 }
 0x75c   : > { %v5326_v40 = vadd.f32 %v5325_v44, %v5117_v2  ;;  %v5863_v2 = vld [vmem:[%s11744_s12 + $0xd0] sm:$0xff] }
 0x75d   : > { %v12246_v44 = vld [vmem:[#allocation101_spill] sm:$0xff] }
 0x75e   : > { %v5535_v43 = vadd.f32 %v5534_v36, %v5326_v40  ;;  %v11543_v46 = vpop.f32.mrf.mxu2  ;;  %v11547_v3 = vpop.f32.mrf.mxu0  ;;  %v5851_v36 = vld [vmem:[%s11744_s12 + $0x70] sm:$0xff] }
 0x75f   : > { %5906 = vmatmul.f32.gmra.mxu2 %v5865_v56  ;;  %v11554_v8 = vpop.f32.mrf.mxu1  ;;  %v12249_v56 = vld [vmem:[#allocation94_spill] sm:$0xff] }
 0x760   : > { %v11522_v5 = vadd.f32 %v5743_v54, %v5535_v43  ;;  %v5854_v54 = vld [vmem:[%s11744_s12 + $0x88] sm:$0xff] }
 0x761   : > { %5938 = vmatmul.f32.gmra.mxu3 %v5854_v54  ;;  %v12252_v54 = vld [vmem:[#allocation22_spill] sm:$0xff] }
 0x763   : > { %v5328_v16 = vpop.f32.mrf.mxu3 }
 0x764   : > { %v5329_v1 = vadd.f32 %v5328_v16, %v5120_v45  ;;  %v12248_v45 = vld [vmem:[#allocation89_spill] sm:$0xff] }
 0x766   : > { %v5538_v6 = vadd.f32 %v5537_v59, %v5329_v1  ;;  %v5131_v13 = vpop.f32.mrf.mxu2  ;;  %v5549_v20 = vpop.f32.mrf.mxu0 }
 0x767   : > { %5967 = vmatmul.f32.vlgmr.msrb.gmra.mxu2 %v5839_v31  ;;  %v11565_v52 = vpop.f32.mrf.mxu1 }
 0x768   : > { %v11532_v7 = vadd.f32 %v5746_v10, %v5538_v6 }
 0x769   : > { %5941 = vmatmul.f32.gmra.mxu3 %v5858_v28 }
 0x76b   : > { %v5331_v24 = vpop.f32.mrf.mxu3 }
 0x76c   : > { %v5332_v23 = vadd.f32 %v5331_v24, %v5123_v21  ;;  %v5867_v21 = vld [vmem:[%s11744_s12 + $0xf0] sm:$0xff] }
 0x76d   : > { %v12250_v24 = vld [vmem:[#allocation57_spill] sm:$0xff] }
 0x76e   : > { %v5541_v53 = vadd.f32 %v5540_v60, %v5332_v23  ;;  %v5134_v0 = vpop.f32.mrf.mxu2  ;;  %v5552_v4 = vpop.f32.mrf.mxu0  ;;  %v12247_v60 = vld [vmem:[#allocation81_spill] sm:$0xff]  ;;  %v5132_v31 = vadd.f32 %v5131_v13, %v12250_v24  ;;  %v12255_v24 = vld [vmem:[#allocation96_spill] sm:$0xff] }
 0x76f   : > { %5970 = vmatmul.f32.gmra.mxu2 %v5843_v11  ;;  %v5761_v33 = vpop.f32.mrf.mxu1  ;;  %v5135_v16 = vadd.f32 %v5134_v0, %v12248_v45 }
 0x770   : > { %v11545_v35 = vadd.f32 %v5749_v62, %v5541_v53 }
 0x771   : > { %5944 = vmatmul.f32.gmra.mxu3 %v5862_v61 }
 0x773   : > { %v11552_v25 = vpop.f32.mrf.mxu3 }
 0x776   : > { %v5137_v9 = vpop.f32.mrf.mxu2  ;;  %v5555_v50 = vpop.f32.mrf.mxu0 }
 0x777   : > { %5973 = vmatmul.f32.gmra.mxu2 %v5847_v55  ;;  %v5764_v37 = vpop.f32.mrf.mxu1  ;;  %v5138_v43 = vadd.f32 %v5137_v9, %v12247_v60  ;;  %v5129_v55 = vadd.f32 %v11543_v46, %v12251_v39  ;;  %v5126_v9 = vadd.f32 %v11525_v14, %v12252_v54  ;;  %v5860_v60 = vld [vmem:[%s11744_s12 + $0xb8] sm:$0xff] }
 0x779   : > { %5947 = vmatmul.f32.gmra.mxu3 %v5866_v19  ;;  %v5335_v13 = vadd.f32 %v11552_v25, %v5126_v9  ;;  %v5868_v19 = vld [vmem:[%s11744_s12 + $0xf8] sm:$0xff] }
 0x77b   : > { %v5337_v58 = vpop.f32.mrf.mxu3  ;;  %v5544_v46 = vadd.f32 %v11530_v42, %v5335_v13  ;;  %v5828_v42 = vmax.f32 %v11532_v7, 0.0  ;;  %v5821_v7 = vmax.f32 %v11469_v26, 0.0  ;;  %v5852_v26 = vld [vmem:[%s11744_s12 + $0x78] sm:$0xff] }
 0x77c   : > { %v12260_v13 = vld [vmem:[#allocation70_spill] sm:$0xff] }
 0x77d   : > { %v5753_v25 = vadd.f32 %v11534_v32, %v5544_v46  ;;  %v5825_v32 = vmax.f32 %v11510_v30, 0.0  ;;  %v6035_v30 = vld [vmem:[%s11745_s13 + $0x10] sm:$0xff] }
 0x77e   : > { %v5140_v12 = vpop.f32.mrf.mxu2  ;;  %v5558_v10 = vpop.f32.mrf.mxu0 }
 0x77f   : > { %5976 = vmatmul.f32.gmra.mxu2 %v5851_v36  ;;  %v5767_v57 = vpop.f32.mrf.mxu1  ;;  %v5141_v49 = vadd.f32 %v5140_v12, %v12246_v44  ;;  %v6033_v44 = vld [vmem:[%s11745_s13] sm:$0xff] }
 0x783   : > { %v5340_v63 = vpop.f32.mrf.mxu3 }
 0x784   : > { %v5341_v0 = vadd.f32 %v5340_v63, %v5132_v31 }
 0x786   : > { %v5143_v40 = vpop.f32.mrf.mxu2  ;;  %v5561_v18 = vpop.f32.mrf.mxu0 }
 0x787   : > { %5979 = vmatmul.f32.gmra.mxu2 %v5855_v47  ;;  %v5144_v1 = vadd.f32 %v5143_v40, %v12249_v56  ;;  %v5770_v11 = vpop.f32.mrf.mxu1  ;;  %v5338_v47 = vadd.f32 %v5337_v58, %v5129_v55 }
 0x789   : > { %v5547_v61 = vadd.f32 %v11547_v3, %v5338_v47  ;;  %v5830_v3 = vmax.f32 %v5753_v25, 0.0  ;;  %v12258_v47 = vld [vmem:[#allocation130_spill] sm:$0xff] }
 0x78b   : > { %v5343_v29 = vpop.f32.mrf.mxu3  ;;  %v5756_v14 = vadd.f32 %v11554_v8, %v5547_v61  ;;  %v5826_v8 = vmax.f32 %v11516_v38, 0.0  ;;  %v5840_v38 = vld [vmem:[%s11744_s12 + $0x18] sm:$0xff] }
 0x78c   : > { %v5344_v23 = vadd.f32 %v5343_v29, %v5135_v16  ;;  %v5550_v29 = vadd.f32 %v5549_v20, %v5341_v0  ;;  %v12257_v0 = vld [vmem:[#allocation98_spill] sm:$0xff] }
 0x78e   : > { %v5553_v28 = vadd.f32 %v5552_v4, %v5344_v23  ;;  %v5759_v63 = vadd.f32 %v11565_v52, %v5550_v29  ;;  %v5831_v4 = vmax.f32 %v5756_v14, 0.0  ;;  %v5827_v52 = vmax.f32 %v11522_v5, 0.0  ;;  %v6034_v5 = vld [vmem:[%s11745_s13 + $0x8] sm:$0xff]  ;;  %v5886_v40 = vpop.f32.mrf.mxu2 }
 0x78f   : > { %5982 = vmatmul.f32.gmra.mxu2 %v5859_v22 }
 0x790   : > { %v5832_v20 = vmax.f32 %v5759_v63, 0.0 }
 0x793   : > { %v5346_v59 = vpop.f32.mrf.mxu3 }
 0x794   : > { %v5347_v6 = vadd.f32 %v5346_v59, %v5138_v43 }
 0x796   : > { %v5556_v51 = vadd.f32 %v5555_v50, %v5347_v6  ;;  %v12253_v6 = vld [vmem:[#allocation113_spill] sm:$0xff] }
 0x797   : > { %5985 = vmatmul.f32.gmra.mxu2 %v5863_v2 }
 0x798   : > { %v5765_v12 = vadd.f32 %v5764_v37, %v5556_v51  ;;  %v5824_v37 = vmax.f32 %v11504_v34, 0.0  ;;  %v5844_v34 = vld [vmem:[%s11744_s12 + $0x38] sm:$0xff]  ;;  %v6038_v51 = vld [vmem:[%s11745_s13 + $0x28] sm:$0xff] }
 0x79a   : > { %v5834_v50 = vmax.f32 %v5765_v12, 0.0 }
 0x79b   : > { %v5349_v17 = vpop.f32.mrf.mxu3 }
 0x79c   : > { %v5350_v62 = vadd.f32 %v5349_v17, %v5141_v49  ;;  %v5762_v17 = vadd.f32 %v5761_v33, %v5553_v28  ;;  %v5829_v33 = vmax.f32 %v11545_v35, 0.0  ;;  %v5822_v35 = vmax.f32 %v11478_v41, 0.0  ;;  %v6036_v41 = vld [vmem:[%s11745_s13 + $0x18] sm:$0xff]  ;;  %v12259_v28 = vld [vmem:[#allocation19_spill] sm:$0xff] }
 0x79d   : > { %v5856_v49 = vld [vmem:[%s11744_s12 + $0x98] sm:$0xff] }
 0x79e   : > { %v5559_v53 = vadd.f32 %v5558_v10, %v5350_v62  ;;  %v5833_v58 = vmax.f32 %v5762_v17, 0.0  ;;  %v5864_v62 = vld [vmem:[%s11744_s12 + $0xd8] sm:$0xff] }
 0x79f   : > { %5988 = vmatmul.f32.gmra.mxu2 %v5867_v21 }
 0x7a0   : > { %v5768_v59 = vadd.f32 %v5767_v57, %v5559_v53  ;;  %v5823_v57 = vmax.f32 %v11491_v48, 0.0  ;;  %v5848_v48 = vld [vmem:[%s11744_s12 + $0x58] sm:$0xff]  ;;  %v12256_v53 = vld [vmem:[#allocation127_spill] sm:$0xff] }
 0x7a2   : > { %v5835_v2 = vmax.f32 %v5768_v59, 0.0 }
 0x7a3   : > { %v5352_v15 = vpop.f32.mrf.mxu3 }
 0x7a4   : > { %v5353_v27 = vadd.f32 %v5352_v15, %v5144_v1  ;;  %v12254_v15 = vld [vmem:[#allocation112_spill] sm:$0xff] }
 0x7a6   : > { %v5562_v36 = vadd.f32 %v5561_v18, %v5353_v27  ;;  %v5889_v43 = vpop.f32.mrf.mxu2  ;;  %v6040_v27 = vld [vmem:[%s11745_s13 + $0x38] sm:$0xff] }
 0x7a7   : > { %6078 = vmatpush.msra.mxu2 %v6040_v27 }
 0x7a8   : > { %v5771_v22 = vadd.f32 %v5770_v11, %v5562_v36  ;;  %v6039_v11 = vld [vmem:[%s11745_s13 + $0x30] sm:$0xff]  ;;  %v6037_v36 = vld [vmem:[%s11745_s13 + $0x20] sm:$0xff] }
 0x7a9   : > { %6079 = vmatpush.msra.mxu2 %v6039_v11 }
 0x7aa   : > { %v5836_v10 = vmax.f32 %v5771_v22, 0.0 }
 0x7ab   : > { %6080 = vmatpush.msra.mxu2 %v6038_v51 }
 0x7ac   : > { %5992 = vmatpush.msrb.mxu3 %v5836_v10 }
 0x7ad   : > { %6081 = vmatpush.msra.mxu2 %v6037_v36 }
 0x7ae   : > { %5993 = vmatpush.msrb.mxu3 %v5835_v2 }
 0x7b0   : > { %5994 = vmatpush.msrb.mxu3 %v5834_v50 }
 0x7b2   : > { %5995 = vmatpush.msrb.mxu3 %v5833_v58 }
 0x7b4   : > { %5996 = vmatpush.msrb.mxu3 %v5832_v20 }
 0x7b6   : > { %5997 = vmatpush.msrb.mxu3 %v5831_v4 }
 0x7b8   : > { %5998 = vmatpush.msrb.mxu3 %v5830_v3 }
 0x7ba   : > { %5999 = vmatpush.msrb.mxu3 %v5829_v33  ;;  %v5892_v16 = vpop.f32.mrf.mxu2 }
 0x7bc   : > { %6000 = vmatpush.msrb.mxu3 %v5828_v42 }
 0x7be   : > { %6001 = vmatpush.msrb.mxu3 %v5827_v52 }
 0x7c0   : > { %6002 = vmatpush.msrb.mxu3 %v5826_v8  ;;  %v5927_v45 = vpop.f32.mrf.mxu3 }
 0x7c1   : > { %v5928_v10 = vadd.f32 %v5927_v45, %v5886_v40 }
 0x7c2   : > { %6003 = vmatpush.msrb.mxu3 %v5825_v32  ;;  %v5895_v1 = vpop.f32.mrf.mxu2 }
 0x7c4   : > { %6004 = vmatpush.msrb.mxu3 %v5824_v37 }
 0x7c6   : > { %6005 = vmatpush.msrb.mxu3 %v5823_v57 }
 0x7c8   : > { %6006 = vmatpush.msrb.mxu3 %v5822_v35  ;;  %v5930_v56 = vpop.f32.mrf.mxu3 }
 0x7c9   : > { %v5931_v63 = vadd.f32 %v5930_v56, %v5889_v43  ;;  %v6193_v56 = vld [vmem:[%s11746_s14 + $0x18] sm:$0xff] }
 0x7ca   : > { %6007 = vmatpush.msrb.mxu3 %v5821_v7  ;;  %v5898_v21 = vpop.f32.mrf.mxu2  ;;  %6234 = vmatpush.msrb.mxu2 %v6193_v56 }
 0x7cb   : > { %6008 = vmatmul.f32.vlgmr.msrb.gmra.mxu3 %v5840_v38 }
 0x7cc   : > { %6143 = vmatpush.msra.mxu3 %v6036_v41 }
 0x7ce   : > { %6144 = vmatpush.msra.mxu3 %v6035_v30 }
 0x7d0   : > { %6145 = vmatpush.msra.mxu3 %v6034_v5  ;;  %v5933_v18 = vpop.f32.mrf.mxu3 }
 0x7d1   : > { %v5934_v25 = vadd.f32 %v5933_v18, %v5892_v16 }
 0x7d2   : > { %6146 = vmatpush.msra.mxu3 %v6033_v44  ;;  %v5901_v23 = vpop.f32.mrf.mxu2 }
 0x7d3   : > { %6011 = vmatmul.f32.gmra.mxu3 %v5844_v34 }
 0x7d8   : > { %v5936_v31 = vpop.f32.mrf.mxu3 }
 0x7d9   : > { %v5937_v42 = vadd.f32 %v5936_v31, %v5895_v1  ;;  %v6192_v1 = vld [vmem:[%s11746_s14 + $0x10] sm:$0xff] }
 0x7da   : > { %v5904_v55 = vpop.f32.mrf.mxu2  ;;  %6235 = vmatpush.msrb.mxu2 %v6192_v1 }
 0x7db   : > { %6014 = vmatmul.f32.gmra.mxu3 %v5848_v48 }
 0x7e2   : > { %v5907_v9 = vpop.f32.mrf.mxu2 }
 0x7e3   : > { %6017 = vmatmul.f32.gmra.mxu3 %v5852_v26 }
 0x7e4   : > { %v5939_v39 = vpop.f32.mrf.mxu3 }
 0x7e5   : > { %v5940_v57 = vadd.f32 %v5939_v39, %v5898_v21 }
 0x7ea   : > { %v5968_v22 = vpop.f32.mrf.mxu2 }
 0x7eb   : > { %6020 = vmatmul.f32.gmra.mxu3 %v5856_v49  ;;  %v5969_v61 = vadd.f32 %v5968_v22, %v5928_v10 }
 0x7ec   : > { %v5942_v54 = vpop.f32.mrf.mxu3 }
 0x7ed   : > { %v5943_v48 = vadd.f32 %v5942_v54, %v5901_v23 }
 0x7f2   : > { %v5971_v12 = vpop.f32.mrf.mxu2 }
 0x7f3   : > { %6023 = vmatmul.f32.gmra.mxu3 %v5860_v60  ;;  %v5972_v50 = vadd.f32 %v5971_v12, %v5931_v63 }
 0x7f4   : > { %v5945_v59 = vpop.f32.mrf.mxu3 }
 0x7f5   : > { %v5946_v44 = vadd.f32 %v5945_v59, %v5904_v55 }
 0x7fa   : > { %v5974_v46 = vpop.f32.mrf.mxu2 }
 0x7fb   : > { %6026 = vmatmul.f32.gmra.mxu3 %v5864_v62  ;;  %v5975_v4 = vadd.f32 %v5974_v46, %v5934_v25 }
 0x7fc   : > { %v5948_v29 = vpop.f32.mrf.mxu3 }
 0x7fd   : > { %v5949_v43 = vadd.f32 %v5948_v29, %v5907_v9 }
 0x802   : > { %v5977_v20 = vpop.f32.mrf.mxu2 }
 0x803   : > { %6029 = vmatmul.f32.gmra.mxu3 %v5868_v19  ;;  %v5978_v8 = vadd.f32 %v5977_v20, %v5937_v42 }
 0x80a   : > { %v5980_v52 = vpop.f32.mrf.mxu2 }
 0x80b   : > { %6517 = vmatmul.msk.f32.vlgmr.msra.gmra.mxu3 %vm6041_vm2, %v12253_v6  ;;  %v5981_v35 = vadd.f32 %v5980_v52, %v5940_v57  ;;  %v6191_v6 = vld [vmem:[%s11746_s14 + $0x8] sm:$0xff]  ;;  %v6554_v57 = vld [vmem:[#allocation2] ss:$0 sm:$0xff] }
 0x80c   : > { %6236 = vmatpush.msrb.mxu2 %v6191_v6 }
 0x812   : > { %v5983_v38 = vpop.f32.mrf.mxu2 }
 0x813   : > { %6518 = vmatmul.msk.f32.gmra.mxu3 %vm6041_vm2, %v12254_v15  ;;  %v5984_v26 = vadd.f32 %v5983_v38, %v5943_v48  ;;  %v6190_v15 = vld [vmem:[%s11746_s14] sm:$0xff] }
 0x814   : > { %6237 = vmatpush.msrb.mxu2 %v6190_v15 }
 0x81a   : > { %v5986_v5 = vpop.f32.mrf.mxu2 }
 0x81b   : > { %6519 = vmatmul.msk.f32.gmra.mxu3 %vm6041_vm2, %v12255_v24  ;;  %v5987_v49 = vadd.f32 %v5986_v5, %v5946_v44  ;;  %v6553_v24 = vld [vmem:[%s11738_s6 + $0x2] ss:$0 sm:$0xff] }
 0x822   : > { %v5989_v62 = vpop.f32.mrf.mxu2 }
 0x823   : > { %6520 = vmatmul.msk.f32.gmra.mxu3 %vm6041_vm2, %v12256_v53  ;;  %v5990_v19 = vadd.f32 %v5989_v62, %v5949_v43 }
 0x82b   : > { %6521 = vmatmul.msk.f32.gmra.mxu3 %vm6041_vm2, %v12257_v0 }
 0x833   : > { %6522 = vmatmul.msk.f32.gmra.mxu3 %vm6041_vm2, %v12258_v47 }
 0x83b   : > { %6523 = vmatmul.msk.f32.gmra.mxu3 %vm6041_vm2, %v12259_v28 }
 0x843   : > { %6524 = vmatmul.msk.f32.gmra.mxu3 %vm6041_vm2, %v12260_v13 }
 0x84e   : > { %v6009_v17 = vpop.f32.mrf.mxu3 }
 0x84f   : > { %v6010_v2 = vadd.f32 %v6009_v17, %v5969_v61 }
 0x851   : > { %6509 = vmatmul.msk.f32.vlgmr.msra.gmra.mxu2 %vm6041_vm2, %v6010_v2 }
 0x856   : > { %v6012_v14 = vpop.f32.mrf.mxu3 }
 0x857   : > { %v6013_v58 = vadd.f32 %v6012_v14, %v5972_v50 }
 0x859   : > { %6510 = vmatmul.msk.f32.gmra.mxu2 %vm6041_vm2, %v6013_v58 }
 0x85e   : > { %v6015_v3 = vpop.f32.mrf.mxu3 }
 0x85f   : > { %v6016_v33 = vadd.f32 %v6015_v3, %v5975_v4 }
 0x861   : > { %6511 = vmatmul.msk.f32.gmra.mxu2 %vm6041_vm2, %v6016_v33 }
 0x866   : > { %v6018_v32 = vpop.f32.mrf.mxu3 }
 0x867   : > { %v6019_v37 = vadd.f32 %v6018_v32, %v5978_v8 }
 0x869   : > { %6512 = vmatmul.msk.f32.gmra.mxu2 %vm6041_vm2, %v6019_v37 }
 0x86e   : > { %v6021_v7 = vpop.f32.mrf.mxu3 }
 0x86f   : > { %v6022_v34 = vadd.f32 %v6021_v7, %v5981_v35 }
 0x871   : > { %6513 = vmatmul.msk.f32.gmra.mxu2 %vm6041_vm2, %v6022_v34 }
 0x876   : > { %v6024_v41 = vpop.f32.mrf.mxu3 }
 0x877   : > { %v6025_v30 = vadd.f32 %v6024_v41, %v5984_v26 }
 0x879   : > { %6514 = vmatmul.msk.f32.gmra.mxu2 %vm6041_vm2, %v6025_v30 }
 0x87e   : > { %v6027_v40 = vpop.f32.mrf.mxu3 }
 0x87f   : > { %v6028_v60 = vadd.f32 %v6027_v40, %v5987_v49 }
 0x881   : > { %6515 = vmatmul.msk.f32.gmra.mxu2 %vm6041_vm2, %v6028_v60 }
 0x886   : > { %v6030_v45 = vpop.f32.mrf.mxu3 }
 0x887   : > { %v6031_v16 = vadd.f32 %v6030_v45, %v5990_v19 }
 0x889   : > { %6516 = vmatmul.msk.f32.gmra.mxu2 %vm6041_vm2, %v6031_v16 }
 0x88e   : > { %v6148_v18 = vpop.f32.mrf.mxu3 }
 0x896   : > { %v6151_v21 = vpop.f32.mrf.mxu3 }
 0x89e   : > { %v6154_v11 = vpop.f32.mrf.mxu3 }
 0x8a6   : > { %v6157_v36 = vpop.f32.mrf.mxu3 }
 0x8ae   : > { %v6160_v13 = vpop.f32.mrf.mxu3 }
 0x8b6   : > { %v6163_v2 = vpop.f32.mrf.mxu3 }
 0x8be   : > { %v6166_v25 = vpop.f32.mrf.mxu3 }
 0x8c6   : > { %v6169_v42 = vpop.f32.mrf.mxu3 }
 0x8d4   : > { %v6083_v31 = vpop.f32.mrf.mxu2 }
 0x8d5   : > { %v6149_v23 = vadd.f32 %v6148_v18, %v6083_v31 }
 0x8d7   : > { %v6174_v53 = vadd.f32 %v6553_v24, %v6149_v23 }
 0x8d9   : > { %v6182_v27 = vmax.f32 %v6174_v53, 0.0 }
 0x8db   : > { %6525 = vmatmul.msk.f32.vlgmr.msrb.gmra.mxu2 %vm6041_vm2, %v6182_v27 }
 0x8dc   : > { %v6086_v39 = vpop.f32.mrf.mxu2 }
 0x8dd   : > { %v6152_v55 = vadd.f32 %v6151_v21, %v6086_v39 }
 0x8df   : > { %v6175_v0 = vadd.f32 %v6553_v24, %v6152_v55 }
 0x8e1   : > { %v6183_v51 = vmax.f32 %v6175_v0, 0.0 }
 0x8e3   : > { %6526 = vmatmul.msk.f32.gmra.mxu2 %vm6041_vm2, %v6183_v51 }
 0x8e4   : > { %v6089_v54 = vpop.f32.mrf.mxu2 }
 0x8e5   : > { %v6155_v9 = vadd.f32 %v6154_v11, %v6089_v54 }
 0x8e7   : > { %v6176_v47 = vadd.f32 %v6553_v24, %v6155_v9 }
 0x8e9   : > { %v6184_v28 = vmax.f32 %v6176_v47, 0.0 }
 0x8eb   : > { %6527 = vmatmul.msk.f32.gmra.mxu2 %vm6041_vm2, %v6184_v28 }
 0x8ec   : > { %v6092_v59 = vpop.f32.mrf.mxu2 }
 0x8ed   : > { %v6158_v22 = vadd.f32 %v6157_v36, %v6092_v59 }
 0x8ef   : > { %v6177_v29 = vadd.f32 %v6553_v24, %v6158_v22 }
 0x8f1   : > { %v6185_v12 = vmax.f32 %v6177_v29, 0.0 }
 0x8f3   : > { %6528 = vmatmul.msk.f32.gmra.mxu2 %vm6041_vm2, %v6185_v12 }
 0x8f4   : > { %v6095_v10 = vpop.f32.mrf.mxu2 }
 0x8f5   : > { %v6161_v61 = vadd.f32 %v6160_v13, %v6095_v10 }
 0x8f7   : > { %v6178_v17 = vadd.f32 %v6553_v24, %v6161_v61 }
 0x8f9   : > { %v6186_v46 = vmax.f32 %v6178_v17, 0.0 }
 0x8fb   : > { %6529 = vmatmul.msk.f32.gmra.mxu2 %vm6041_vm2, %v6186_v46 }
 0x8fc   : > { %v6098_v63 = vpop.f32.mrf.mxu2 }
 0x8fd   : > { %v6164_v50 = vadd.f32 %v6163_v2, %v6098_v63 }
 0x8ff   : > { %v6179_v14 = vadd.f32 %v6553_v24, %v6164_v50 }
 0x901   : > { %v6187_v58 = vmax.f32 %v6179_v14, 0.0 }
 0x903   : > { %6530 = vmatmul.msk.f32.gmra.mxu2 %vm6041_vm2, %v6187_v58 }
 0x904   : > { %v6101_v20 = vpop.f32.mrf.mxu2 }
 0x905   : > { %v6167_v4 = vadd.f32 %v6166_v25, %v6101_v20 }
 0x907   : > { %v6180_v3 = vadd.f32 %v6553_v24, %v6167_v4 }
 0x909   : > { %v6188_v33 = vmax.f32 %v6180_v3, 0.0 }
 0x90b   : > { %6531 = vmatmul.msk.f32.gmra.mxu2 %vm6041_vm2, %v6188_v33 }
 0x90c   : > { %v6104_v52 = vpop.f32.mrf.mxu2 }
 0x90d   : > { %v6170_v8 = vadd.f32 %v6169_v42, %v6104_v52 }
 0x90f   : > { %v6181_v32 = vadd.f32 %v6553_v24, %v6170_v8 }
 0x911   : > { %v6189_v37 = vmax.f32 %v6181_v32, 0.0 }
 0x913   : > { %6532 = vmatmul.msk.f32.gmra.mxu2 %vm6041_vm2, %v6189_v37 }
 0x95e   : > { %v6239_v35 = vpop.f32.mrf.mxu2 }
 0x95f   : > { %v6240_v7 = vadd.f32 %v6554_v57, %v6239_v35 }
 0x961   : > { %6264 = vst.msk [vmem:[%s591_s17] sm:$0xff] %vm6263_vm3, %v6240_v7 }
 0x966   : > { %v6242_v38 = vpop.f32.mrf.mxu2 }
 0x967   : > { %v6243_v34 = vadd.f32 %v6554_v57, %v6242_v38 }
 0x969   : > { %6265 = vst.msk [vmem:[%s591_s17 + $0x8] sm:$0xff] %vm6263_vm3, %v6243_v34 }
 0x96e   : > { %v6245_v48 = vpop.f32.mrf.mxu2 }
 0x96f   : > { %v6246_v26 = vadd.f32 %v6554_v57, %v6245_v48 }
 0x971   : > { %6266 = vst.msk [vmem:[%s591_s17 + $0x10] sm:$0xff] %vm6263_vm3, %v6246_v26 }
 0x976   : > { %v6248_v41 = vpop.f32.mrf.mxu2 }
 0x977   : > { %v6249_v30 = vadd.f32 %v6554_v57, %v6248_v41 }
 0x979   : > { %6267 = vst.msk [vmem:[%s591_s17 + $0x18] sm:$0xff] %vm6263_vm3, %v6249_v30 }
 0x97e   : > { %v6251_v5 = vpop.f32.mrf.mxu2 }
 0x97f   : > { %v6252_v44 = vadd.f32 %v6554_v57, %v6251_v5 }
 0x981   : > { %6268 = vst.msk [vmem:[%s591_s17 + $0x20] sm:$0xff] %vm6263_vm3, %v6252_v44 }
 0x986   : > { %v6254_v49 = vpop.f32.mrf.mxu2 }
 0x987   : > { %v6255_v40 = vadd.f32 %v6554_v57, %v6254_v49 }
 0x989   : > { %6269 = vst.msk [vmem:[%s591_s17 + $0x28] sm:$0xff] %vm6263_vm3, %v6255_v40 }
 0x98e   : > { %v6257_v60 = vpop.f32.mrf.mxu2 }
 0x98f   : > { %v6258_v43 = vadd.f32 %v6554_v57, %v6257_v60 }
 0x991   : > { %6270 = vst.msk [vmem:[%s591_s17 + $0x30] sm:$0xff] %vm6263_vm3, %v6258_v43 }
 0x996   : > { %v6260_v62 = vpop.f32.mrf.mxu2 }
 0x997   : > { %v6261_v19 = vadd.f32 %v6554_v57, %v6260_v62 }
 0x999   : > { %6271 = vst.msk [vmem:[%s591_s17 + $0x38] sm:$0xff] %vm6263_vm3, %v6261_v19 }
 0x99a PF: > { %s28_s23 = sadd.s32 1, %s6563_s23  }
 0x99b   : > { %p25_p5 = scmp.ge.s32.totalorder %s28_s23, 4  }
 0x99d   :  { %27 = sbr.rel (!%p25_p5) target bundleno = 3 (0x3), region = 123 }

</bundles_post_ra>
